<compile_context>
chip_gen: v7x
topology: tpu7x:2x2x1
jax: 0.10.0
libtpu: 0.0.40
codegen_flags: <defaults>
</compile_context>

<pallas_src>
import functools

import jax
import jax.numpy as jnp
from jax.experimental import pallas as pl
from jax.experimental.pallas import tpu as pltpu


MASK_NEG = -1e9            # additive mask bias (finite: avoids -inf - -inf = NaN)
RUNNING_MAX_INIT = -1e30   # init for the online-softmax running max
VMEM_LIMIT_BYTES = 32 * 1024 * 1024  # demo footprint is tiny; size from weights+tiles in prod


# ---------------------------------------------------------------------------
# 1) Fused projection kernel: y = x @ W + b, emitted head-split (H, Tm, dh).
#    Used for fused QKV (self-attn), Q-only and fused KV (memory-attn).
# ---------------------------------------------------------------------------
def head_proj_kernel(x_ref, w_ref, b_ref, *out_refs, num_heads, dim_head):
    D = num_heads * dim_head
    x = x_ref[0].astype(jnp.bfloat16)                                # (Tm, Din)
    y = jnp.dot(x, w_ref[...], preferred_element_type=jnp.float32) + b_ref[...]
    y = y.astype(jnp.bfloat16)                                       # (Tm, n_chunks*D)
    for c, o_ref in enumerate(out_refs):
        base = c * D
        for h in range(num_heads):                                   # static unroll
            o_ref[0, h] = y[:, base + h * dim_head: base + (h + 1) * dim_head]


def head_projection(x, w, b, *, num_heads, block_m=64, vmem_limit=VMEM_LIMIT_BYTES):
    """x:(B,S,D) f32, w:(D, n*D) bf16, b:(1, n*D) f32 -> n arrays (B,H,S,dh) bf16."""
    B, S, D = x.shape
    n_chunks = w.shape[1] // D
    dh = D // num_heads
    block_m = min(block_m, S)
    assert S % block_m == 0

    kernel = functools.partial(head_proj_kernel, num_heads=num_heads, dim_head=dh)
    out_shape = tuple(jax.ShapeDtypeStruct((B, num_heads, S, dh), jnp.bfloat16)
                      for _ in range(n_chunks))
    out_specs = tuple(pl.BlockSpec((1, num_heads, block_m, dh), lambda i, j: (i, 0, j, 0))
                      for _ in range(n_chunks))
    outs = pl.pallas_call(
        kernel,
        out_shape=out_shape,
        grid=(B, S // block_m),
        in_specs=[
            pl.BlockSpec((1, block_m, D), lambda i, j: (i, j, 0)),
            pl.BlockSpec((D, n_chunks * D), lambda i, j: (0, 0)),
            pl.BlockSpec((1, n_chunks * D), lambda i, j: (0, 0)),
        ],
        out_specs=out_specs,
        compiler_params=pltpu.CompilerParams(
            dimension_semantics=("parallel", "parallel"),
            vmem_limit_bytes=vmem_limit),
    )(x, w, b)
    if not isinstance(outs, (tuple, list)):
        outs = (outs,)
    return tuple(outs)


# ---------------------------------------------------------------------------
# 2) Flash attention kernel (head-batched, online softmax, additive int8 mask).
#    grid = (B, q_tiles, kv_tiles); kv axis last, "arbitrary".
# ---------------------------------------------------------------------------
def flash_attn_kernel(q_ref, k_ref, v_ref, mask_ref, o_ref, m_scr, l_scr, acc_scr):
    kj = pl.program_id(2)
    nk = pl.num_programs(2)

    @pl.when(kj == 0)
    def _init():
        m_scr[...] = jnp.full_like(m_scr, RUNNING_MAX_INIT)
        l_scr[...] = jnp.zeros_like(l_scr)
        acc_scr[...] = jnp.zeros_like(acc_scr)

    q = q_ref[0]                              # (H, Tq, dh) bf16 (already 1/temperature)
    k = k_ref[0]                              # (H, Tk, dh) bf16
    v = v_ref[0]                              # (H, Tk, dh) bf16

    # Head-batched logits; no transpose of k (contraction on the last dims).
    s = jnp.einsum("hqd,hkd->hqk", q, k, preferred_element_type=jnp.float32)
    s = s + mask_ref[0].astype(jnp.float32) * MASK_NEG         # additive mask bias

    # Online softmax update (all statistics in f32).
    m_prev = m_scr[...]
    m_new = jnp.maximum(m_prev, jnp.max(s, axis=-1, keepdims=True))
    alpha = jnp.exp(m_prev - m_new)
    p = jnp.exp(s - m_new)
    l_scr[...] = alpha * l_scr[...] + jnp.sum(p, axis=-1, keepdims=True)
    acc_scr[...] = alpha * acc_scr[...] + jnp.einsum(
        "hqk,hkd->hqd", p.astype(jnp.bfloat16), v, preferred_element_type=jnp.float32)
    m_scr[...] = m_new

    @pl.when(kj == nk - 1)
    def _finalize():
        inv_l = pl.reciprocal(l_scr[...], approx=True)         # EUP slot
        o_ref[0] = (acc_scr[...] * inv_l).astype(o_ref.dtype)


def flash_attention(q, k, v, mask_i8, *, block_q=64, block_k=128,
                    vmem_limit=VMEM_LIMIT_BYTES):
    B, H, Sq, dh = q.shape
    Sk = k.shape[2]
    block_q = min(block_q, Sq)
    block_k = min(block_k, Sk)
    assert Sq % block_q == 0 and Sk % block_k == 0

    return pl.pallas_call(
        flash_attn_kernel,
        out_shape=jax.ShapeDtypeStruct((B, H, Sq, dh), jnp.bfloat16),
        grid=(B, Sq // block_q, Sk // block_k),
        in_specs=[
            pl.BlockSpec((1, H, block_q, dh), lambda b, i, j: (b, 0, i, 0)),
            pl.BlockSpec((1, H, block_k, dh), lambda b, i, j: (b, 0, j, 0)),
            pl.BlockSpec((1, H, block_k, dh), lambda b, i, j: (b, 0, j, 0)),
            pl.BlockSpec((1, block_q, block_k), lambda b, i, j: (b, i, j)),   # int8 mask
        ],
        out_specs=pl.BlockSpec((1, H, block_q, dh), lambda b, i, j: (b, 0, i, 0)),
        scratch_shapes=[
            pltpu.VMEM((H, block_q, 1), jnp.float32),    # running max
            pltpu.VMEM((H, block_q, 1), jnp.float32),    # running denominator
            pltpu.VMEM((H, block_q, dh), jnp.float32),   # context accumulator
        ],
        compiler_params=pltpu.CompilerParams(
            dimension_semantics=("parallel", "parallel", "arbitrary"),
            vmem_limit_bytes=vmem_limit),
    )(q, k, v, mask_i8)


# ---------------------------------------------------------------------------
# 3) Output projection + residual + LayerNorm.
# ---------------------------------------------------------------------------
def outproj_addnorm_kernel(ctx_ref, res_ref, wo_ref, bo_ref, g_ref, b_ref, out_ref,
                           *, num_heads, eps):
    ctx = ctx_ref[0]                                     # (H, Tm, dh) bf16
    tm = ctx.shape[1]
    D = wo_ref.shape[2]
    proj = jnp.zeros((tm, D), jnp.float32)
    for h in range(num_heads):                           # per-head accumulation (no concat)
        proj = proj + jnp.dot(ctx[h], wo_ref[h], preferred_element_type=jnp.float32)
    y = proj + bo_ref[...] + res_ref[0]                  # out-proj + residual (f32)
    mu = jnp.mean(y, axis=-1, keepdims=True)
    var = jnp.mean(jnp.square(y - mu), axis=-1, keepdims=True)
    out_ref[0] = ((y - mu) * jax.lax.rsqrt(var + eps) * g_ref[...]
                  + b_ref[...]).astype(out_ref.dtype)


def outproj_addnorm(ctx, residual, wo3, bo, gamma, beta, *, eps, block_m=64,
                    vmem_limit=VMEM_LIMIT_BYTES):
    B, H, S, dh = ctx.shape
    D = H * dh
    block_m = min(block_m, S)
    assert S % block_m == 0
    kernel = functools.partial(outproj_addnorm_kernel, num_heads=H, eps=eps)
    return pl.pallas_call(
        kernel,
        out_shape=jax.ShapeDtypeStruct((B, S, D), jnp.float32),
        grid=(B, S // block_m),
        in_specs=[
            pl.BlockSpec((1, H, block_m, dh), lambda b, i: (b, 0, i, 0)),
            pl.BlockSpec((1, block_m, D), lambda b, i: (b, i, 0)),
            pl.BlockSpec((H, dh, D), lambda b, i: (0, 0, 0)),
            pl.BlockSpec((1, D), lambda b, i: (0, 0)),
            pl.BlockSpec((1, D), lambda b, i: (0, 0)),
            pl.BlockSpec((1, D), lambda b, i: (0, 0)),
        ],
        out_specs=pl.BlockSpec((1, block_m, D), lambda b, i: (b, i, 0)),
        compiler_params=pltpu.CompilerParams(
            dimension_semantics=("parallel", "parallel"),
            vmem_limit_bytes=vmem_limit),
    )(ctx, residual, wo3, bo, gamma, beta)


# ---------------------------------------------------------------------------
# 4) Position-wise FFN (Linear -> ReLU -> Linear -> ReLU) + residual + LayerNorm.
# ---------------------------------------------------------------------------
def ffn_addnorm_kernel(x_ref, w1_ref, b1_ref, w2_ref, b2_ref, g_ref, b_ref, out_ref,
                       *, eps):
    x = x_ref[0]                                                   # (Tm, D) f32
    h = jnp.dot(x.astype(jnp.bfloat16), w1_ref[...],
                preferred_element_type=jnp.float32) + b1_ref[...]
    h = jnp.maximum(h, 0.0)
    f = jnp.dot(h.astype(jnp.bfloat16), w2_ref[...],
                preferred_element_type=jnp.float32) + b2_ref[...]
    f = jnp.maximum(f, 0.0)
    y = f + x
    mu = jnp.mean(y, axis=-1, keepdims=True)
    var = jnp.mean(jnp.square(y - mu), axis=-1, keepdims=True)
    out_ref[0] = ((y - mu) * jax.lax.rsqrt(var + eps) * g_ref[...]
                  + b_ref[...]).astype(out_ref.dtype)


def ffn_addnorm(x, w1, b1, w2, b2, gamma, beta, *, eps, block_m=64,
                vmem_limit=VMEM_LIMIT_BYTES):
    B, S, D = x.shape
    F = w1.shape[1]
    block_m = min(block_m, S)
    assert S % block_m == 0
    kernel = functools.partial(ffn_addnorm_kernel, eps=eps)
    return pl.pallas_call(
        kernel,
        out_shape=jax.ShapeDtypeStruct((B, S, D), jnp.float32),
        grid=(B, S // block_m),
        in_specs=[
            pl.BlockSpec((1, block_m, D), lambda b, i: (b, i, 0)),
            pl.BlockSpec((D, F), lambda b, i: (0, 0)),
            pl.BlockSpec((1, F), lambda b, i: (0, 0)),
            pl.BlockSpec((F, D), lambda b, i: (0, 0)),
            pl.BlockSpec((1, D), lambda b, i: (0, 0)),
            pl.BlockSpec((1, D), lambda b, i: (0, 0)),
            pl.BlockSpec((1, D), lambda b, i: (0, 0)),
        ],
        out_specs=pl.BlockSpec((1, block_m, D), lambda b, i: (b, i, 0)),
        compiler_params=pltpu.CompilerParams(
            dimension_semantics=("parallel", "parallel"),
            vmem_limit_bytes=vmem_limit),
    )(x, w1, b1, w2, b2, gamma, beta)


# ---------------------------------------------------------------------------
# Full decoder layer wrapper.
# ---------------------------------------------------------------------------
def transformer_decoder_layer(x, memory, memory_mask, targets_mask, params, *,
                              num_heads, eps=1e-5, block_q=64, block_k=128):
    B, S, D = x.shape
    dh = D // num_heads
    temp = float(D) ** 0.5      # module uses dim_model ** 0.5 (not dim_head ** 0.5)
    bf16 = jnp.bfloat16

    tgt_mask = targets_mask.astype(jnp.int8)     # compressed mask (1 == masked)
    mem_mask = memory_mask.astype(jnp.int8)

    # ---- self-attention + add & norm (fused QKV, 1/temp folded into Wq/bq) ----
    ps = params["self"]
    w_qkv = jnp.concatenate([ps["wq"] / temp, ps["wk"], ps["wv"]], axis=1).astype(bf16)
    b_qkv = jnp.concatenate([ps["bq"] / temp, ps["bk"], ps["bv"]], axis=1)
    q, k, v = head_projection(x, w_qkv, b_qkv, num_heads=num_heads, block_m=block_q)
    ctx = flash_attention(q, k, v, tgt_mask, block_q=block_q, block_k=block_k)
    h1 = outproj_addnorm(ctx, x, ps["wo"].reshape(num_heads, dh, D).astype(bf16),
                         ps["bo"], params["ln1_g"], params["ln1_b"],
                         eps=eps, block_m=block_q)

    # ---- memory (cross) attention + add & norm ----
    pm = params["mem"]
    (qm,) = head_projection(h1, (pm["wq"] / temp).astype(bf16), pm["bq"] / temp,
                            num_heads=num_heads, block_m=block_q)
    w_kv = jnp.concatenate([pm["wk"], pm["wv"]], axis=1).astype(bf16)
    b_kv = jnp.concatenate([pm["bk"], pm["bv"]], axis=1)
    km, vm = head_projection(memory, w_kv, b_kv, num_heads=num_heads, block_m=block_q)
    ctx_m = flash_attention(qm, km, vm, mem_mask, block_q=block_q, block_k=block_k)
    h2 = outproj_addnorm(ctx_m, h1, pm["wo"].reshape(num_heads, dh, D).astype(bf16),
                         pm["bo"], params["ln2_g"], params["ln2_b"],
                         eps=eps, block_m=block_q)

    # ---- position-wise FFN + add & norm ----
    out = ffn_addnorm(h2, params["w1"].astype(bf16), params["b1"],
                      params["w2"].astype(bf16), params["b2"],
                      params["ln3_g"], params["ln3_b"],
                      eps=eps, block_m=block_q)
    return out


# ---------------------------------------------------------------------------
# Parameters + pure-JAX (f32) reference mirroring the PyTorch module (eval mode).
# ---------------------------------------------------------------------------
def init_params(key, dim_model, dim_ff):
    keys = jax.random.split(key, 32)
    it = iter(keys)
    D, F = dim_model, dim_ff

    def n(shape, scale=0.05):
        return (scale * jax.random.normal(next(it), shape)).astype(jnp.float32)

    def attn():
        return {"wq": n((D, D)), "bq": n((1, D)),
                "wk": n((D, D)), "bk": n((1, D)),
                "wv": n((D, D)), "bv": n((1, D)),
                "wo": n((D, D)), "bo": n((1, D))}

    return {
        "self": attn(), "mem": attn(),
        "ln1_g": 1.0 + n((1, D), 0.1), "ln1_b": n((1, D), 0.1),
        "ln2_g": 1.0 + n((1, D), 0.1), "ln2_b": n((1, D), 0.1),
        "w1": n((D, F)), "b1": n((1, F)),
        "w2": n((F, D)), "b2": n((1, D)),
        "ln3_g": 1.0 + n((1, D), 0.1), "ln3_b": n((1, D), 0.1),
    }


def reference_decoder_layer(x, memory, memory_mask, targets_mask, params, *,
                            num_heads, eps=1e-5):
    D = x.shape[-1]
    dh = D // num_heads
    temp = float(D) ** 0.5

    def mha(q_in, kv_in, mask, p):
        B, Lq, _ = q_in.shape
        Lk = kv_in.shape[1]
        q = (q_in @ p["wq"] + p["bq"]).reshape(B, Lq, num_heads, dh).transpose(0, 2, 1, 3)
        k = (kv_in @ p["wk"] + p["bk"]).reshape(B, Lk, num_heads, dh).transpose(0, 2, 1, 3)
        v = (kv_in @ p["wv"] + p["bv"]).reshape(B, Lk, num_heads, dh).transpose(0, 2, 1, 3)
        logits = jnp.einsum("bhqd,bhkd->bhqk", q, k) / temp
        logits = jnp.where(mask[:, None].astype(bool), -jnp.inf, logits)
        a = jax.nn.softmax(logits, axis=-1)
        ctx = jnp.einsum("bhqk,bhkd->bhqd", a, v).transpose(0, 2, 1, 3).reshape(B, Lq, D)
        return ctx @ p["wo"] + p["bo"]

    def ln(y, g, b):
        mu = jnp.mean(y, axis=-1, keepdims=True)
        var = jnp.mean((y - mu) ** 2, axis=-1, keepdims=True)
        return (y - mu) * jax.lax.rsqrt(var + eps) * g + b

    h1 = ln(mha(x, x, targets_mask, params["self"]) + x, params["ln1_g"], params["ln1_b"])
    h2 = ln(mha(h1, memory, memory_mask, params["mem"]) + h1,
            params["ln2_g"], params["ln2_b"])
    f = jnp.maximum(h2 @ params["w1"] + params["b1"], 0.0)
    f = jnp.maximum(f @ params["w2"] + params["b2"], 0.0)
    return ln(f + h2, params["ln3_g"], params["ln3_b"])


if __name__ == "__main__":
    B, S_TGT, S_MEM, D, H, F = 2, 256, 128, 128, 4, 256

    key = jax.random.PRNGKey(0)
    k_x, k_m, k_p = jax.random.split(key, 3)

    x = jax.random.normal(k_x, (B, S_TGT, D), dtype=jnp.float32)
    memory = jax.random.normal(k_m, (B, S_MEM, D), dtype=jnp.float32)

    # Causal targets mask (True == masked); every query row keeps >= 1 valid key.
    row = jnp.arange(S_TGT)[:, None]
    col = jnp.arange(S_TGT)[None, :]
    targets_mask = jnp.broadcast_to(col > row, (B, S_TGT, S_TGT))

    # Memory key-padding mask: batch 1 has its last 32 memory positions masked.
    valid_len = jnp.array([S_MEM, S_MEM - 32])
    memory_mask = jnp.broadcast_to(
        jnp.arange(S_MEM)[None, None, :] >= valid_len[:, None, None], (B, S_TGT, S_MEM))

    params = init_params(k_p, D, F)

    layer = jax.jit(functools.partial(transformer_decoder_layer, num_heads=H))
    out = layer(x, memory, memory_mask, targets_mask, params)
    out = jax.block_until_ready(out)

    ref = reference_decoder_layer(x, memory, memory_mask, targets_mask, params,
                                  num_heads=H)
    assert out.shape == (B, S_TGT, D)
    # bf16 matmul operands + approx reciprocal -> compare against f32 reference loosely.
    max_err = float(jnp.max(jnp.abs(out - ref)))
    assert jnp.allclose(out, ref, atol=3e-2, rtol=3e-2), f"mismatch vs reference: {max_err}"

    print("KERNEL_OK")
</pallas_src>

<mosaic_0001>
module attributes {stable_mosaic.version = 11 : i64} {
  func.func @outproj_addnorm_kernel(%arg0: i32, %arg1: i32, %arg2: memref<1x4x64x32xbf16, #tpu.memory_space<vmem>>, %arg3: memref<1x64x128xf32, #tpu.memory_space<vmem>>, %arg4: memref<4x32x128xbf16, #tpu.memory_space<vmem>>, %arg5: memref<1x128xf32, #tpu.memory_space<vmem>>, %arg6: memref<1x128xf32, #tpu.memory_space<vmem>>, %arg7: memref<1x128xf32, #tpu.memory_space<vmem>>, %arg8: memref<1x64x128xf32, #tpu.memory_space<vmem>>) attributes {dimension_semantics = [#tpu.dimension_semantics<parallel>, #tpu.dimension_semantics<parallel>], iteration_bounds = array<i64: 2, 4>, scalar_prefetch = 0 : i64, scratch_operands = 0 : i64, tpu.core_type = #tpu.core_type<tc>, window_params = [{transform_indices = @transform_0, window_bounds = array<i64: 1, 4, 64, 32>}, {transform_indices = @transform_1, window_bounds = array<i64: 1, 64, 128>}, {pipeline_mode = #tpu.pipeline_mode<synchronous>, transform_indices = @transform_2, window_bounds = array<i64: 4, 32, 128>}, {pipeline_mode = #tpu.pipeline_mode<synchronous>, transform_indices = @transform_3, window_bounds = array<i64: 1, 128>}, {pipeline_mode = #tpu.pipeline_mode<synchronous>, transform_indices = @transform_4, window_bounds = array<i64: 1, 128>}, {pipeline_mode = #tpu.pipeline_mode<synchronous>, transform_indices = @transform_5, window_bounds = array<i64: 1, 128>}, {transform_indices = @transform_6, window_bounds = array<i64: 1, 64, 128>}]} {
    %c0 = arith.constant 0 : index
    %c0_0 = arith.constant 0 : index
    %c0_1 = arith.constant 0 : index
    %c0_2 = arith.constant 0 : index
    %0 = vector.load %arg2[%c0, %c0_0, %c0_1, %c0_2] : memref<1x4x64x32xbf16, #tpu.memory_space<vmem>>, vector<1x4x64x32xbf16>
    %1 = vector.shape_cast %0 : vector<1x4x64x32xbf16> to vector<4x64x32xbf16>
    %cst = arith.constant 0.000000e+00 : f32
    %2 = vector.broadcast %cst : f32 to vector<64x128xf32>
    %3 = vector.extract_strided_slice %1 {offsets = [0, 0, 0], sizes = [1, 64, 32], strides = [1, 1, 1]} : vector<4x64x32xbf16> to vector<1x64x32xbf16>
    %4 = vector.shape_cast %3 : vector<1x64x32xbf16> to vector<64x32xbf16>
    %c0_3 = arith.constant 0 : index
    %c0_4 = arith.constant 0 : index
    %c0_5 = arith.constant 0 : index
    %5 = vector.load %arg4[%c0_3, %c0_4, %c0_5] : memref<4x32x128xbf16, #tpu.memory_space<vmem>>, vector<1x32x128xbf16>
    %6 = vector.shape_cast %5 : vector<1x32x128xbf16> to vector<32x128xbf16>
    %cst_6 = arith.constant dense<0.000000e+00> : vector<64x128xf32>
    %7 = tpu.matmul %4, %6, %cst_6 {dimension_numbers = #tpu.dot_dimension_numbers<[1], [0], [0], [1], [0, 0, 1, 1], [], []>} : vector<64x32xbf16>, vector<32x128xbf16>, vector<64x128xf32> -> vector<64x128xf32>
    %8 = arith.addf %2, %7 : vector<64x128xf32>
    %9 = vector.extract_strided_slice %1 {offsets = [1, 0, 0], sizes = [1, 64, 32], strides = [1, 1, 1]} : vector<4x64x32xbf16> to vector<1x64x32xbf16>
    %10 = vector.shape_cast %9 : vector<1x64x32xbf16> to vector<64x32xbf16>
    %c1 = arith.constant 1 : index
    %c0_7 = arith.constant 0 : index
    %c0_8 = arith.constant 0 : index
    %11 = vector.load %arg4[%c1, %c0_7, %c0_8] : memref<4x32x128xbf16, #tpu.memory_space<vmem>>, vector<1x32x128xbf16>
    %12 = vector.shape_cast %11 : vector<1x32x128xbf16> to vector<32x128xbf16>
    %cst_9 = arith.constant dense<0.000000e+00> : vector<64x128xf32>
    %13 = tpu.matmul %10, %12, %cst_9 {dimension_numbers = #tpu.dot_dimension_numbers<[1], [0], [0], [1], [0, 0, 1, 1], [], []>} : vector<64x32xbf16>, vector<32x128xbf16>, vector<64x128xf32> -> vector<64x128xf32>
    %14 = arith.addf %8, %13 : vector<64x128xf32>
    %15 = vector.extract_strided_slice %1 {offsets = [2, 0, 0], sizes = [1, 64, 32], strides = [1, 1, 1]} : vector<4x64x32xbf16> to vector<1x64x32xbf16>
    %16 = vector.shape_cast %15 : vector<1x64x32xbf16> to vector<64x32xbf16>
    %c2 = arith.constant 2 : index
    %c0_10 = arith.constant 0 : index
    %c0_11 = arith.constant 0 : index
    %17 = vector.load %arg4[%c2, %c0_10, %c0_11] : memref<4x32x128xbf16, #tpu.memory_space<vmem>>, vector<1x32x128xbf16>
    %18 = vector.shape_cast %17 : vector<1x32x128xbf16> to vector<32x128xbf16>
    %cst_12 = arith.constant dense<0.000000e+00> : vector<64x128xf32>
    %19 = tpu.matmul %16, %18, %cst_12 {dimension_numbers = #tpu.dot_dimension_numbers<[1], [0], [0], [1], [0, 0, 1, 1], [], []>} : vector<64x32xbf16>, vector<32x128xbf16>, vector<64x128xf32> -> vector<64x128xf32>
    %20 = arith.addf %14, %19 : vector<64x128xf32>
    %21 = vector.extract_strided_slice %1 {offsets = [3, 0, 0], sizes = [1, 64, 32], strides = [1, 1, 1]} : vector<4x64x32xbf16> to vector<1x64x32xbf16>
    %22 = vector.shape_cast %21 : vector<1x64x32xbf16> to vector<64x32xbf16>
    %c3 = arith.constant 3 : index
    %c0_13 = arith.constant 0 : index
    %c0_14 = arith.constant 0 : index
    %23 = vector.load %arg4[%c3, %c0_13, %c0_14] : memref<4x32x128xbf16, #tpu.memory_space<vmem>>, vector<1x32x128xbf16>
    %24 = vector.shape_cast %23 : vector<1x32x128xbf16> to vector<32x128xbf16>
    %cst_15 = arith.constant dense<0.000000e+00> : vector<64x128xf32>
    %25 = tpu.matmul %22, %24, %cst_15 {dimension_numbers = #tpu.dot_dimension_numbers<[1], [0], [0], [1], [0, 0, 1, 1], [], []>} : vector<64x32xbf16>, vector<32x128xbf16>, vector<64x128xf32> -> vector<64x128xf32>
    %26 = arith.addf %20, %25 : vector<64x128xf32>
    %c0_16 = arith.constant 0 : index
    %c0_17 = arith.constant 0 : index
    %27 = vector.load %arg5[%c0_16, %c0_17] : memref<1x128xf32, #tpu.memory_space<vmem>>, vector<1x128xf32>
    %28 = vector.broadcast %27 : vector<1x128xf32> to vector<64x128xf32>
    %29 = arith.addf %26, %28 : vector<64x128xf32>
    %c0_18 = arith.constant 0 : index
    %c0_19 = arith.constant 0 : index
    %c0_20 = arith.constant 0 : index
    %30 = vector.load %arg3[%c0_18, %c0_19, %c0_20] : memref<1x64x128xf32, #tpu.memory_space<vmem>>, vector<1x64x128xf32>
    %31 = vector.shape_cast %30 : vector<1x64x128xf32> to vector<64x128xf32>
    %32 = arith.addf %29, %31 : vector<64x128xf32>
    %cst_21 = arith.constant dense<0.000000e+00> : vector<64xf32>
    %33 = vector.multi_reduction <add>, %32, %cst_21 [1] : vector<64x128xf32> to vector<64xf32>
    %34 = vector.shape_cast %33 : vector<64xf32> to vector<64x1xf32>
    %cst_22 = arith.constant 1.280000e+02 : f32
    %35 = vector.broadcast %cst_22 : f32 to vector<64x1xf32>
    %36 = arith.divf %34, %35 : vector<64x1xf32>
    %37 = vector.broadcast %36 : vector<64x1xf32> to vector<64x128xf32>
    %38 = arith.subf %32, %37 : vector<64x128xf32>
    %39 = arith.mulf %38, %38 : vector<64x128xf32>
    %cst_23 = arith.constant dense<0.000000e+00> : vector<64xf32>
    %40 = vector.multi_reduction <add>, %39, %cst_23 [1] : vector<64x128xf32> to vector<64xf32>
    %41 = vector.shape_cast %40 : vector<64xf32> to vector<64x1xf32>
    %cst_24 = arith.constant 1.280000e+02 : f32
    %42 = vector.broadcast %cst_24 : f32 to vector<64x1xf32>
    %43 = arith.divf %41, %42 : vector<64x1xf32>
    %44 = vector.broadcast %36 : vector<64x1xf32> to vector<64x128xf32>
    %45 = arith.subf %32, %44 : vector<64x128xf32>
    %cst_25 = arith.constant 9.99999974E-6 : f32
    %46 = vector.broadcast %cst_25 : f32 to vector<64x1xf32>
    %47 = arith.addf %43, %46 : vector<64x1xf32>
    %48 = math.rsqrt %47 : vector<64x1xf32>
    %49 = vector.broadcast %48 : vector<64x1xf32> to vector<64x128xf32>
    %50 = arith.mulf %45, %49 : vector<64x128xf32>
    %c0_26 = arith.constant 0 : index
    %c0_27 = arith.constant 0 : index
    %51 = vector.load %arg6[%c0_26, %c0_27] : memref<1x128xf32, #tpu.memory_space<vmem>>, vector<1x128xf32>
    %52 = vector.broadcast %51 : vector<1x128xf32> to vector<64x128xf32>
    %53 = arith.mulf %50, %52 : vector<64x128xf32>
    %c0_28 = arith.constant 0 : index
    %c0_29 = arith.constant 0 : index
    %54 = vector.load %arg7[%c0_28, %c0_29] : memref<1x128xf32, #tpu.memory_space<vmem>>, vector<1x128xf32>
    %55 = vector.broadcast %54 : vector<1x128xf32> to vector<64x128xf32>
    %56 = arith.addf %53, %55 : vector<64x128xf32>
    %c0_30 = arith.constant 0 : index
    %c0_31 = arith.constant 0 : index
    %c0_32 = arith.constant 0 : index
    %57 = vector.load %arg8[%c0_30, %c0_31, %c0_32] : memref<1x64x128xf32, #tpu.memory_space<vmem>>, vector<1x64x128xf32>
    %58 = vector.shape_cast %57 : vector<1x64x128xf32> to vector<64x128xf32>
    %59 = vector.shape_cast %56 : vector<64x128xf32> to vector<1x64x128xf32>
    tpu.vector_store %arg8[%c0_30, %c0_31, %c0_32], %59 {strides = array<i32>} : memref<1x64x128xf32, #tpu.memory_space<vmem>>, vector<1x64x128xf32>,
    return
  }
  func.func @transform_0(%arg0: i32, %arg1: i32) -> (i32, i32, i32, i32) {
    %c0_i32 = arith.constant 0 : i32
    %c0_i32_0 = arith.constant 0 : i32
    %c0_i32_1 = arith.constant 0 : i32
    return %arg0, %c0_i32, %arg1, %c0_i32_0 : i32, i32, i32, i32
  }
  func.func @transform_1(%arg0: i32, %arg1: i32) -> (i32, i32, i32) {
    %c0_i32 = arith.constant 0 : i32
    %c0_i32_0 = arith.constant 0 : i32
    return %arg0, %arg1, %c0_i32 : i32, i32, i32
  }
  func.func @transform_2(%arg0: i32, %arg1: i32) -> (i32, i32, i32) {
    %c0_i32 = arith.constant 0 : i32
    %c0_i32_0 = arith.constant 0 : i32
    %c0_i32_1 = arith.constant 0 : i32
    %c0_i32_2 = arith.constant 0 : i32
    return %c0_i32, %c0_i32_0, %c0_i32_1 : i32, i32, i32
  }
  func.func @transform_3(%arg0: i32, %arg1: i32) -> (i32, i32) {
    %c0_i32 = arith.constant 0 : i32
    %c0_i32_0 = arith.constant 0 : i32
    %c0_i32_1 = arith.constant 0 : i32
    return %c0_i32, %c0_i32_0 : i32, i32
  }
  func.func @transform_4(%arg0: i32, %arg1: i32) -> (i32, i32) {
    %c0_i32 = arith.constant 0 : i32
    %c0_i32_0 = arith.constant 0 : i32
    %c0_i32_1 = arith.constant 0 : i32
    return %c0_i32, %c0_i32_0 : i32, i32
  }
  func.func @transform_5(%arg0: i32, %arg1: i32) -> (i32, i32) {
    %c0_i32 = arith.constant 0 : i32
    %c0_i32_0 = arith.constant 0 : i32
    %c0_i32_1 = arith.constant 0 : i32
    return %c0_i32, %c0_i32_0 : i32, i32
  }
  func.func @transform_6(%arg0: i32, %arg1: i32) -> (i32, i32, i32) {
    %c0_i32 = arith.constant 0 : i32
    %c0_i32_0 = arith.constant 0 : i32
    return %arg0, %arg1, %c0_i32 : i32, i32, i32
  }
}

module attributes {stable_mosaic.version = 11 : i64} {
  func.func @flash_attn_kernel(%arg0: i32, %arg1: i32, %arg2: i32, %arg3: memref<1x4x64x32xbf16, #tpu.memory_space<vmem>>, %arg4: memref<1x4x128x32xbf16, #tpu.memory_space<vmem>>, %arg5: memref<1x4x128x32xbf16, #tpu.memory_space<vmem>>, %arg6: memref<1x64x128xi8, #tpu.memory_space<vmem>>, %arg7: memref<1x4x64x32xbf16, #tpu.memory_space<vmem>>, %arg8: memref<4x64x1xf32, #tpu.memory_space<vmem>>, %arg9: memref<4x64x1xf32, #tpu.memory_space<vmem>>, %arg10: memref<4x64x32xf32, #tpu.memory_space<vmem>>) attributes {dimension_semantics = [#tpu.dimension_semantics<parallel>, #tpu.dimension_semantics<parallel>, #tpu.dimension_semantics<arbitrary>], iteration_bounds = array<i64: 2, 4, 2>, scalar_prefetch = 0 : i64, scratch_operands = 3 : i64, tpu.core_type = #tpu.core_type<tc>, window_params = [{transform_indices = @transform_0, window_bounds = array<i64: 1, 4, 64, 32>}, {transform_indices = @transform_1, window_bounds = array<i64: 1, 4, 128, 32>}, {transform_indices = @transform_2, window_bounds = array<i64: 1, 4, 128, 32>}, {transform_indices = @transform_3, window_bounds = array<i64: 1, 64, 128>}, {transform_indices = @transform_4, window_bounds = array<i64: 1, 4, 64, 32>}]} {
    %c0_i32 = arith.constant 0 : i32
    %0 = arith.cmpi eq, %arg2, %c0_i32 : i32
    %1 = arith.extui %0 : i1 to i32
    %c0_i32_0 = arith.constant 0 : i32
    %2 = arith.cmpi ne, %1, %c0_i32_0 : i32
    scf.if %2 {
      %cst_38 = arith.constant -1.000000e+30 : f32
      %44 = vector.broadcast %cst_38 : f32 to vector<4x64x1xf32>
      %c0_39 = arith.constant 0 : index
      %c0_40 = arith.constant 0 : index
      %c0_41 = arith.constant 0 : index
      %45 = vector.load %arg8[%c0_39, %c0_40, %c0_41] : memref<4x64x1xf32, #tpu.memory_space<vmem>>, vector<4x64x1xf32>
      tpu.vector_store %arg8[%c0_39, %c0_40, %c0_41], %44 {strides = array<i32>} : memref<4x64x1xf32, #tpu.memory_space<vmem>>, vector<4x64x1xf32>,
      %cst_42 = arith.constant 0.000000e+00 : f32
      %46 = vector.broadcast %cst_42 : f32 to vector<4x64x1xf32>
      %c0_43 = arith.constant 0 : index
      %c0_44 = arith.constant 0 : index
      %c0_45 = arith.constant 0 : index
      %47 = vector.load %arg9[%c0_43, %c0_44, %c0_45] : memref<4x64x1xf32, #tpu.memory_space<vmem>>, vector<4x64x1xf32>
      tpu.vector_store %arg9[%c0_43, %c0_44, %c0_45], %46 {strides = array<i32>} : memref<4x64x1xf32, #tpu.memory_space<vmem>>, vector<4x64x1xf32>,
      %cst_46 = arith.constant 0.000000e+00 : f32
      %48 = vector.broadcast %cst_46 : f32 to vector<4x64x32xf32>
      %c0_47 = arith.constant 0 : index
      %c0_48 = arith.constant 0 : index
      %c0_49 = arith.constant 0 : index
      %49 = vector.load %arg10[%c0_47, %c0_48, %c0_49] : memref<4x64x32xf32, #tpu.memory_space<vmem>>, vector<4x64x32xf32>
      tpu.vector_store %arg10[%c0_47, %c0_48, %c0_49], %48 {strides = array<i32>} : memref<4x64x32xf32, #tpu.memory_space<vmem>>, vector<4x64x32xf32>,
    } else {
    }
    %c0 = arith.constant 0 : index
    %c0_1 = arith.constant 0 : index
    %c0_2 = arith.constant 0 : index
    %c0_3 = arith.constant 0 : index
    %3 = vector.load %arg3[%c0, %c0_1, %c0_2, %c0_3] : memref<1x4x64x32xbf16, #tpu.memory_space<vmem>>, vector<1x4x64x32xbf16>
    %4 = vector.shape_cast %3 : vector<1x4x64x32xbf16> to vector<4x64x32xbf16>
    %c0_4 = arith.constant 0 : index
    %c0_5 = arith.constant 0 : index
    %c0_6 = arith.constant 0 : index
    %c0_7 = arith.constant 0 : index
    %5 = vector.load %arg4[%c0_4, %c0_5, %c0_6, %c0_7] : memref<1x4x128x32xbf16, #tpu.memory_space<vmem>>, vector<1x4x128x32xbf16>
    %6 = vector.shape_cast %5 : vector<1x4x128x32xbf16> to vector<4x128x32xbf16>
    %c0_8 = arith.constant 0 : index
    %c0_9 = arith.constant 0 : index
    %c0_10 = arith.constant 0 : index
    %c0_11 = arith.constant 0 : index
    %7 = vector.load %arg5[%c0_8, %c0_9, %c0_10, %c0_11] : memref<1x4x128x32xbf16, #tpu.memory_space<vmem>>, vector<1x4x128x32xbf16>
    %8 = vector.shape_cast %7 : vector<1x4x128x32xbf16> to vector<4x128x32xbf16>
    "tpu.trace_start"() <{level = 10 : i32, message = "hqd,hkd->hqk"}> : () -> ()
    %cst = arith.constant dense<0.000000e+00> : vector<4x64x128xf32>
    %9 = tpu.matmul %4, %6, %cst {dimension_numbers = #tpu.dot_dimension_numbers<[2], [2], [1], [1], [0, 0, 0, 1, 1, 1], [0], [0]>} : vector<4x64x32xbf16>, vector<4x128x32xbf16>, vector<4x64x128xf32> -> vector<4x64x128xf32>
    "tpu.trace_stop"() : () -> ()
    %c0_12 = arith.constant 0 : index
    %c0_13 = arith.constant 0 : index
    %c0_14 = arith.constant 0 : index
    %10 = vector.load %arg6[%c0_12, %c0_13, %c0_14] : memref<1x64x128xi8, #tpu.memory_space<vmem>>, vector<1x64x128xi8>
    %11 = vector.shape_cast %10 : vector<1x64x128xi8> to vector<64x128xi8>
    %12 = arith.sitofp %11 : vector<64x128xi8> to vector<64x128xf32>
    %cst_15 = arith.constant -1.000000e+09 : f32
    %13 = vector.broadcast %cst_15 : f32 to vector<64x128xf32>
    %14 = arith.mulf %12, %13 : vector<64x128xf32>
    %15 = vector.shape_cast %14 : vector<64x128xf32> to vector<1x64x128xf32>
    %16 = vector.broadcast %15 : vector<1x64x128xf32> to vector<4x64x128xf32>
    %17 = arith.addf %9, %16 : vector<4x64x128xf32>
    %c0_16 = arith.constant 0 : index
    %c0_17 = arith.constant 0 : index
    %c0_18 = arith.constant 0 : index
    %18 = vector.load %arg8[%c0_16, %c0_17, %c0_18] : memref<4x64x1xf32, #tpu.memory_space<vmem>>, vector<4x64x1xf32>
    %cst_19 = arith.constant dense<0xFF800000> : vector<4x64xf32>
    %19 = vector.multi_reduction <maximumf>, %17, %cst_19 [2] : vector<4x64x128xf32> to vector<4x64xf32>
    %20 = vector.shape_cast %19 : vector<4x64xf32> to vector<4x64x1xf32>
    %21 = arith.maximumf %18, %20 : vector<4x64x1xf32>
    %22 = arith.subf %18, %21 : vector<4x64x1xf32>
    %23 = math.exp %22 : vector<4x64x1xf32>
    %24 = vector.broadcast %21 : vector<4x64x1xf32> to vector<4x64x128xf32>
    %25 = arith.subf %17, %24 : vector<4x64x128xf32>
    %26 = math.exp %25 : vector<4x64x128xf32>
    %c0_20 = arith.constant 0 : index
    %c0_21 = arith.constant 0 : index
    %c0_22 = arith.constant 0 : index
    %27 = vector.load %arg9[%c0_20, %c0_21, %c0_22] : memref<4x64x1xf32, #tpu.memory_space<vmem>>, vector<4x64x1xf32>
    %28 = arith.mulf %23, %27 : vector<4x64x1xf32>
    %cst_23 = arith.constant dense<0.000000e+00> : vector<4x64xf32>
    %29 = vector.multi_reduction <add>, %26, %cst_23 [2] : vector<4x64x128xf32> to vector<4x64xf32>
    %30 = vector.shape_cast %29 : vector<4x64xf32> to vector<4x64x1xf32>
    %31 = arith.addf %28, %30 : vector<4x64x1xf32>
    %c0_24 = arith.constant 0 : index
    %c0_25 = arith.constant 0 : index
    %c0_26 = arith.constant 0 : index
    %32 = vector.load %arg9[%c0_24, %c0_25, %c0_26] : memref<4x64x1xf32, #tpu.memory_space<vmem>>, vector<4x64x1xf32>
    tpu.vector_store %arg9[%c0_24, %c0_25, %c0_26], %31 {strides = array<i32>} : memref<4x64x1xf32, #tpu.memory_space<vmem>>, vector<4x64x1xf32>,
    %c0_27 = arith.constant 0 : index
    %c0_28 = arith.constant 0 : index
    %c0_29 = arith.constant 0 : index
    %33 = vector.load %arg10[%c0_27, %c0_28, %c0_29] : memref<4x64x32xf32, #tpu.memory_space<vmem>>, vector<4x64x32xf32>
    %34 = vector.broadcast %23 : vector<4x64x1xf32> to vector<4x64x32xf32>
    %35 = arith.mulf %34, %33 : vector<4x64x32xf32>
    %36 = arith.truncf %26 : vector<4x64x128xf32> to vector<4x64x128xbf16>
    "tpu.trace_start"() <{level = 10 : i32, message = "hqk,hkd->hqd"}> : () -> ()
    %cst_30 = arith.constant dense<0.000000e+00> : vector<4x64x32xf32>
    %37 = tpu.matmul %36, %8, %cst_30 {dimension_numbers = #tpu.dot_dimension_numbers<[2], [1], [1], [2], [0, 0, 0, 1, 1, 2], [0], [0]>} : vector<4x64x128xbf16>, vector<4x128x32xbf16>, vector<4x64x32xf32> -> vector<4x64x32xf32>
    "tpu.trace_stop"() : () -> ()
    %38 = arith.addf %35, %37 : vector<4x64x32xf32>
    %c0_31 = arith.constant 0 : index
    %c0_32 = arith.constant 0 : index
    %c0_33 = arith.constant 0 : index
    %39 = vector.load %arg10[%c0_31, %c0_32, %c0_33] : memref<4x64x32xf32, #tpu.memory_space<vmem>>, vector<4x64x32xf32>
    tpu.vector_store %arg10[%c0_31, %c0_32, %c0_33], %38 {strides = array<i32>} : memref<4x64x32xf32, #tpu.memory_space<vmem>>, vector<4x64x32xf32>,
    %c0_34 = arith.constant 0 : index
    %c0_35 = arith.constant 0 : index
    %c0_36 = arith.constant 0 : index
    %40 = vector.load %arg8[%c0_34, %c0_35, %c0_36] : memref<4x64x1xf32, #tpu.memory_space<vmem>>, vector<4x64x1xf32>
    tpu.vector_store %arg8[%c0_34, %c0_35, %c0_36], %21 {strides = array<i32>} : memref<4x64x1xf32, #tpu.memory_space<vmem>>, vector<4x64x1xf32>,
    %c1_i32 = arith.constant 1 : i32
    %41 = arith.cmpi eq, %arg2, %c1_i32 : i32
    %42 = arith.extui %41 : i1 to i32
    %c0_i32_37 = arith.constant 0 : i32
    %43 = arith.cmpi ne, %42, %c0_i32_37 : i32
    scf.if %43 {
      %c0_38 = arith.constant 0 : index
      %c0_39 = arith.constant 0 : index
      %c0_40 = arith.constant 0 : index
      %44 = vector.load %arg9[%c0_38, %c0_39, %c0_40] : memref<4x64x1xf32, #tpu.memory_space<vmem>>, vector<4x64x1xf32>
      %45 = tpu.reciprocal %44 {approx = true} : vector<4x64x1xf32> -> vector<4x64x1xf32>
      %c0_41 = arith.constant 0 : index
      %c0_42 = arith.constant 0 : index
      %c0_43 = arith.constant 0 : index
      %46 = vector.load %arg10[%c0_41, %c0_42, %c0_43] : memref<4x64x32xf32, #tpu.memory_space<vmem>>, vector<4x64x32xf32>
      %47 = vector.broadcast %45 : vector<4x64x1xf32> to vector<4x64x32xf32>
      %48 = arith.mulf %46, %47 : vector<4x64x32xf32>
      %49 = arith.truncf %48 : vector<4x64x32xf32> to vector<4x64x32xbf16>
      %c0_44 = arith.constant 0 : index
      %c0_45 = arith.constant 0 : index
      %c0_46 = arith.constant 0 : index
      %c0_47 = arith.constant 0 : index
      %50 = vector.load %arg7[%c0_44, %c0_45, %c0_46, %c0_47] : memref<1x4x64x32xbf16, #tpu.memory_space<vmem>>, vector<1x4x64x32xbf16>
      %51 = vector.shape_cast %50 : vector<1x4x64x32xbf16> to vector<4x64x32xbf16>
      %52 = vector.shape_cast %49 : vector<4x64x32xbf16> to vector<1x4x64x32xbf16>
      tpu.vector_store %arg7[%c0_44, %c0_45, %c0_46, %c0_47], %52 {strides = array<i32>} : memref<1x4x64x32xbf16, #tpu.memory_space<vmem>>, vector<1x4x64x32xbf16>,
    } else {
    }
    return
  }
  func.func @transform_0(%arg0: i32, %arg1: i32, %arg2: i32) -> (i32, i32, i32, i32) {
    %c0_i32 = arith.constant 0 : i32
    %c0_i32_0 = arith.constant 0 : i32
    %c0_i32_1 = arith.constant 0 : i32
    return %arg0, %c0_i32, %arg1, %c0_i32_0 : i32, i32, i32, i32
  }
  func.func @transform_1(%arg0: i32, %arg1: i32, %arg2: i32) -> (i32, i32, i32, i32) {
    %c0_i32 = arith.constant 0 : i32
    %c0_i32_0 = arith.constant 0 : i32
    %c0_i32_1 = arith.constant 0 : i32
    return %arg0, %c0_i32, %arg2, %c0_i32_0 : i32, i32, i32, i32
  }
  func.func @transform_2(%arg0: i32, %arg1: i32, %arg2: i32) -> (i32, i32, i32, i32) {
    %c0_i32 = arith.constant 0 : i32
    %c0_i32_0 = arith.constant 0 : i32
    %c0_i32_1 = arith.constant 0 : i32
    return %arg0, %c0_i32, %arg2, %c0_i32_0 : i32, i32, i32, i32
  }
  func.func @transform_3(%arg0: i32, %arg1: i32, %arg2: i32) -> (i32, i32, i32) {
    %c0_i32 = arith.constant 0 : i32
    return %arg0, %arg1, %arg2 : i32, i32, i32
  }
  func.func @transform_4(%arg0: i32, %arg1: i32, %arg2: i32) -> (i32, i32, i32, i32) {
    %c0_i32 = arith.constant 0 : i32
    %c0_i32_0 = arith.constant 0 : i32
    %c0_i32_1 = arith.constant 0 : i32
    return %arg0, %c0_i32, %arg1, %c0_i32_0 : i32, i32, i32, i32
  }
}

module attributes {stable_mosaic.version = 11 : i64} {
  func.func @head_proj_kernel(%arg0: i32, %arg1: i32, %arg2: memref<1x64x128xf32, #tpu.memory_space<vmem>>, %arg3: memref<128x384xbf16, #tpu.memory_space<vmem>>, %arg4: memref<1x384xf32, #tpu.memory_space<vmem>>, %arg5: memref<1x4x64x32xbf16, #tpu.memory_space<vmem>>, %arg6: memref<1x4x64x32xbf16, #tpu.memory_space<vmem>>, %arg7: memref<1x4x64x32xbf16, #tpu.memory_space<vmem>>) attributes {dimension_semantics = [#tpu.dimension_semantics<parallel>, #tpu.dimension_semantics<parallel>], iteration_bounds = array<i64: 2, 4>, scalar_prefetch = 0 : i64, scratch_operands = 0 : i64, tpu.core_type = #tpu.core_type<tc>, window_params = [{transform_indices = @transform_0, window_bounds = array<i64: 1, 64, 128>}, {pipeline_mode = #tpu.pipeline_mode<synchronous>, transform_indices = @transform_1, window_bounds = array<i64: 128, 384>}, {pipeline_mode = #tpu.pipeline_mode<synchronous>, transform_indices = @transform_2, window_bounds = array<i64: 1, 384>}, {transform_indices = @transform_3, window_bounds = array<i64: 1, 4, 64, 32>}, {transform_indices = @transform_4, window_bounds = array<i64: 1, 4, 64, 32>}, {transform_indices = @transform_5, window_bounds = array<i64: 1, 4, 64, 32>}]} {
    %c0 = arith.constant 0 : index
    %c0_0 = arith.constant 0 : index
    %c0_1 = arith.constant 0 : index
    %0 = vector.load %arg2[%c0, %c0_0, %c0_1] : memref<1x64x128xf32, #tpu.memory_space<vmem>>, vector<1x64x128xf32>
    %1 = vector.shape_cast %0 : vector<1x64x128xf32> to vector<64x128xf32>
    %2 = arith.truncf %1 : vector<64x128xf32> to vector<64x128xbf16>
    %c0_2 = arith.constant 0 : index
    %c0_3 = arith.constant 0 : index
    %3 = vector.load %arg3[%c0_2, %c0_3] : memref<128x384xbf16, #tpu.memory_space<vmem>>, vector<128x384xbf16>
    %cst = arith.constant dense<0.000000e+00> : vector<64x384xf32>
    %4 = tpu.matmul %2, %3, %cst {dimension_numbers = #tpu.dot_dimension_numbers<[1], [0], [0], [1], [0, 0, 1, 1], [], []>} : vector<64x128xbf16>, vector<128x384xbf16>, vector<64x384xf32> -> vector<64x384xf32>
    %c0_4 = arith.constant 0 : index
    %c0_5 = arith.constant 0 : index
    %5 = vector.load %arg4[%c0_4, %c0_5] : memref<1x384xf32, #tpu.memory_space<vmem>>, vector<1x384xf32>
    %6 = vector.broadcast %5 : vector<1x384xf32> to vector<64x384xf32>
    %7 = arith.addf %4, %6 : vector<64x384xf32>
    %8 = arith.truncf %7 : vector<64x384xf32> to vector<64x384xbf16>
    %9 = vector.extract_strided_slice %8 {offsets = [0, 0], sizes = [64, 32], strides = [1, 1]} : vector<64x384xbf16> to vector<64x32xbf16>
    %c0_6 = arith.constant 0 : index
    %c0_7 = arith.constant 0 : index
    %c0_8 = arith.constant 0 : index
    %c0_9 = arith.constant 0 : index
    %10 = vector.load %arg5[%c0_6, %c0_7, %c0_8, %c0_9] : memref<1x4x64x32xbf16, #tpu.memory_space<vmem>>, vector<1x1x64x32xbf16>
    %11 = vector.shape_cast %10 : vector<1x1x64x32xbf16> to vector<64x32xbf16>
    %12 = vector.shape_cast %9 : vector<64x32xbf16> to vector<1x1x64x32xbf16>
    tpu.vector_store %arg5[%c0_6, %c0_7, %c0_8, %c0_9], %12 {strides = array<i32>} : memref<1x4x64x32xbf16, #tpu.memory_space<vmem>>, vector<1x1x64x32xbf16>,
    %13 = vector.extract_strided_slice %8 {offsets = [0, 32], sizes = [64, 32], strides = [1, 1]} : vector<64x384xbf16> to vector<64x32xbf16>
    %c0_10 = arith.constant 0 : index
    %c1 = arith.constant 1 : index
    %c0_11 = arith.constant 0 : index
    %c0_12 = arith.constant 0 : index
    %14 = vector.load %arg5[%c0_10, %c1, %c0_11, %c0_12] : memref<1x4x64x32xbf16, #tpu.memory_space<vmem>>, vector<1x1x64x32xbf16>
    %15 = vector.shape_cast %14 : vector<1x1x64x32xbf16> to vector<64x32xbf16>
    %16 = vector.shape_cast %13 : vector<64x32xbf16> to vector<1x1x64x32xbf16>
    tpu.vector_store %arg5[%c0_10, %c1, %c0_11, %c0_12], %16 {strides = array<i32>} : memref<1x4x64x32xbf16, #tpu.memory_space<vmem>>, vector<1x1x64x32xbf16>,
    %17 = vector.extract_strided_slice %8 {offsets = [0, 64], sizes = [64, 32], strides = [1, 1]} : vector<64x384xbf16> to vector<64x32xbf16>
    %c0_13 = arith.constant 0 : index
    %c2 = arith.constant 2 : index
    %c0_14 = arith.constant 0 : index
    %c0_15 = arith.constant 0 : index
    %18 = vector.load %arg5[%c0_13, %c2, %c0_14, %c0_15] : memref<1x4x64x32xbf16, #tpu.memory_space<vmem>>, vector<1x1x64x32xbf16>
    %19 = vector.shape_cast %18 : vector<1x1x64x32xbf16> to vector<64x32xbf16>
    %20 = vector.shape_cast %17 : vector<64x32xbf16> to vector<1x1x64x32xbf16>
    tpu.vector_store %arg5[%c0_13, %c2, %c0_14, %c0_15], %20 {strides = array<i32>} : memref<1x4x64x32xbf16, #tpu.memory_space<vmem>>, vector<1x1x64x32xbf16>,
    %21 = vector.extract_strided_slice %8 {offsets = [0, 96], sizes = [64, 32], strides = [1, 1]} : vector<64x384xbf16> to vector<64x32xbf16>
    %c0_16 = arith.constant 0 : index
    %c3 = arith.constant 3 : index
    %c0_17 = arith.constant 0 : index
    %c0_18 = arith.constant 0 : index
    %22 = vector.load %arg5[%c0_16, %c3, %c0_17, %c0_18] : memref<1x4x64x32xbf16, #tpu.memory_space<vmem>>, vector<1x1x64x32xbf16>
    %23 = vector.shape_cast %22 : vector<1x1x64x32xbf16> to vector<64x32xbf16>
    %24 = vector.shape_cast %21 : vector<64x32xbf16> to vector<1x1x64x32xbf16>
    tpu.vector_store %arg5[%c0_16, %c3, %c0_17, %c0_18], %24 {strides = array<i32>} : memref<1x4x64x32xbf16, #tpu.memory_space<vmem>>, vector<1x1x64x32xbf16>,
    %25 = vector.extract_strided_slice %8 {offsets = [0, 128], sizes = [64, 32], strides = [1, 1]} : vector<64x384xbf16> to vector<64x32xbf16>
    %c0_19 = arith.constant 0 : index
    %c0_20 = arith.constant 0 : index
    %c0_21 = arith.constant 0 : index
    %c0_22 = arith.constant 0 : index
    %26 = vector.load %arg6[%c0_19, %c0_20, %c0_21, %c0_22] : memref<1x4x64x32xbf16, #tpu.memory_space<vmem>>, vector<1x1x64x32xbf16>
    %27 = vector.shape_cast %26 : vector<1x1x64x32xbf16> to vector<64x32xbf16>
    %28 = vector.shape_cast %25 : vector<64x32xbf16> to vector<1x1x64x32xbf16>
    tpu.vector_store %arg6[%c0_19, %c0_20, %c0_21, %c0_22], %28 {strides = array<i32>} : memref<1x4x64x32xbf16, #tpu.memory_space<vmem>>, vector<1x1x64x32xbf16>,
    %29 = vector.extract_strided_slice %8 {offsets = [0, 160], sizes = [64, 32], strides = [1, 1]} : vector<64x384xbf16> to vector<64x32xbf16>
    %c0_23 = arith.constant 0 : index
    %c1_24 = arith.constant 1 : index
    %c0_25 = arith.constant 0 : index
    %c0_26 = arith.constant 0 : index
    %30 = vector.load %arg6[%c0_23, %c1_24, %c0_25, %c0_26] : memref<1x4x64x32xbf16, #tpu.memory_space<vmem>>, vector<1x1x64x32xbf16>
    %31 = vector.shape_cast %30 : vector<1x1x64x32xbf16> to vector<64x32xbf16>
    %32 = vector.shape_cast %29 : vector<64x32xbf16> to vector<1x1x64x32xbf16>
    tpu.vector_store %arg6[%c0_23, %c1_24, %c0_25, %c0_26], %32 {strides = array<i32>} : memref<1x4x64x32xbf16, #tpu.memory_space<vmem>>, vector<1x1x64x32xbf16>,
    %33 = vector.extract_strided_slice %8 {offsets = [0, 192], sizes = [64, 32], strides = [1, 1]} : vector<64x384xbf16> to vector<64x32xbf16>
    %c0_27 = arith.constant 0 : index
    %c2_28 = arith.constant 2 : index
    %c0_29 = arith.constant 0 : index
    %c0_30 = arith.constant 0 : index
    %34 = vector.load %arg6[%c0_27, %c2_28, %c0_29, %c0_30] : memref<1x4x64x32xbf16, #tpu.memory_space<vmem>>, vector<1x1x64x32xbf16>
    %35 = vector.shape_cast %34 : vector<1x1x64x32xbf16> to vector<64x32xbf16>
    %36 = vector.shape_cast %33 : vector<64x32xbf16> to vector<1x1x64x32xbf16>
    tpu.vector_store %arg6[%c0_27, %c2_28, %c0_29, %c0_30], %36 {strides = array<i32>} : memref<1x4x64x32xbf16, #tpu.memory_space<vmem>>, vector<1x1x64x32xbf16>,
    %37 = vector.extract_strided_slice %8 {offsets = [0, 224], sizes = [64, 32], strides = [1, 1]} : vector<64x384xbf16> to vector<64x32xbf16>
    %c0_31 = arith.constant 0 : index
    %c3_32 = arith.constant 3 : index
    %c0_33 = arith.constant 0 : index
    %c0_34 = arith.constant 0 : index
    %38 = vector.load %arg6[%c0_31, %c3_32, %c0_33, %c0_34] : memref<1x4x64x32xbf16, #tpu.memory_space<vmem>>, vector<1x1x64x32xbf16>
    %39 = vector.shape_cast %38 : vector<1x1x64x32xbf16> to vector<64x32xbf16>
    %40 = vector.shape_cast %37 : vector<64x32xbf16> to vector<1x1x64x32xbf16>
    tpu.vector_store %arg6[%c0_31, %c3_32, %c0_33, %c0_34], %40 {strides = array<i32>} : memref<1x4x64x32xbf16, #tpu.memory_space<vmem>>, vector<1x1x64x32xbf16>,
    %41 = vector.extract_strided_slice %8 {offsets = [0, 256], sizes = [64, 32], strides = [1, 1]} : vector<64x384xbf16> to vector<64x32xbf16>
    %c0_35 = arith.constant 0 : index
    %c0_36 = arith.constant 0 : index
    %c0_37 = arith.constant 0 : index
    %c0_38 = arith.constant 0 : index
    %42 = vector.load %arg7[%c0_35, %c0_36, %c0_37, %c0_38] : memref<1x4x64x32xbf16, #tpu.memory_space<vmem>>, vector<1x1x64x32xbf16>
    %43 = vector.shape_cast %42 : vector<1x1x64x32xbf16> to vector<64x32xbf16>
    %44 = vector.shape_cast %41 : vector<64x32xbf16> to vector<1x1x64x32xbf16>
    tpu.vector_store %arg7[%c0_35, %c0_36, %c0_37, %c0_38], %44 {strides = array<i32>} : memref<1x4x64x32xbf16, #tpu.memory_space<vmem>>, vector<1x1x64x32xbf16>,
    %45 = vector.extract_strided_slice %8 {offsets = [0, 288], sizes = [64, 32], strides = [1, 1]} : vector<64x384xbf16> to vector<64x32xbf16>
    %c0_39 = arith.constant 0 : index
    %c1_40 = arith.constant 1 : index
    %c0_41 = arith.constant 0 : index
    %c0_42 = arith.constant 0 : index
    %46 = vector.load %arg7[%c0_39, %c1_40, %c0_41, %c0_42] : memref<1x4x64x32xbf16, #tpu.memory_space<vmem>>, vector<1x1x64x32xbf16>
    %47 = vector.shape_cast %46 : vector<1x1x64x32xbf16> to vector<64x32xbf16>
    %48 = vector.shape_cast %45 : vector<64x32xbf16> to vector<1x1x64x32xbf16>
    tpu.vector_store %arg7[%c0_39, %c1_40, %c0_41, %c0_42], %48 {strides = array<i32>} : memref<1x4x64x32xbf16, #tpu.memory_space<vmem>>, vector<1x1x64x32xbf16>,
    %49 = vector.extract_strided_slice %8 {offsets = [0, 320], sizes = [64, 32], strides = [1, 1]} : vector<64x384xbf16> to vector<64x32xbf16>
    %c0_43 = arith.constant 0 : index
    %c2_44 = arith.constant 2 : index
    %c0_45 = arith.constant 0 : index
    %c0_46 = arith.constant 0 : index
    %50 = vector.load %arg7[%c0_43, %c2_44, %c0_45, %c0_46] : memref<1x4x64x32xbf16, #tpu.memory_space<vmem>>, vector<1x1x64x32xbf16>
    %51 = vector.shape_cast %50 : vector<1x1x64x32xbf16> to vector<64x32xbf16>
    %52 = vector.shape_cast %49 : vector<64x32xbf16> to vector<1x1x64x32xbf16>
    tpu.vector_store %arg7[%c0_43, %c2_44, %c0_45, %c0_46], %52 {strides = array<i32>} : memref<1x4x64x32xbf16, #tpu.memory_space<vmem>>, vector<1x1x64x32xbf16>,
    %53 = vector.extract_strided_slice %8 {offsets = [0, 352], sizes = [64, 32], strides = [1, 1]} : vector<64x384xbf16> to vector<64x32xbf16>
    %c0_47 = arith.constant 0 : index
    %c3_48 = arith.constant 3 : index
    %c0_49 = arith.constant 0 : index
    %c0_50 = arith.constant 0 : index
    %54 = vector.load %arg7[%c0_47, %c3_48, %c0_49, %c0_50] : memref<1x4x64x32xbf16, #tpu.memory_space<vmem>>, vector<1x1x64x32xbf16>
    %55 = vector.shape_cast %54 : vector<1x1x64x32xbf16> to vector<64x32xbf16>
    %56 = vector.shape_cast %53 : vector<64x32xbf16> to vector<1x1x64x32xbf16>
    tpu.vector_store %arg7[%c0_47, %c3_48, %c0_49, %c0_50], %56 {strides = array<i32>} : memref<1x4x64x32xbf16, #tpu.memory_space<vmem>>, vector<1x1x64x32xbf16>,
    return
  }
  func.func @transform_0(%arg0: i32, %arg1: i32) -> (i32, i32, i32) {
    %c0_i32 = arith.constant 0 : i32
    %c0_i32_0 = arith.constant 0 : i32
    return %arg0, %arg1, %c0_i32 : i32, i32, i32
  }
  func.func @transform_1(%arg0: i32, %arg1: i32) -> (i32, i32) {
    %c0_i32 = arith.constant 0 : i32
    %c0_i32_0 = arith.constant 0 : i32
    %c0_i32_1 = arith.constant 0 : i32
    return %c0_i32, %c0_i32_0 : i32, i32
  }
  func.func @transform_2(%arg0: i32, %arg1: i32) -> (i32, i32) {
    %c0_i32 = arith.constant 0 : i32
    %c0_i32_0 = arith.constant 0 : i32
    %c0_i32_1 = arith.constant 0 : i32
    return %c0_i32, %c0_i32_0 : i32, i32
  }
  func.func @transform_3(%arg0: i32, %arg1: i32) -> (i32, i32, i32, i32) {
    %c0_i32 = arith.constant 0 : i32
    %c0_i32_0 = arith.constant 0 : i32
    %c0_i32_1 = arith.constant 0 : i32
    return %arg0, %c0_i32, %arg1, %c0_i32_0 : i32, i32, i32, i32
  }
  func.func @transform_4(%arg0: i32, %arg1: i32) -> (i32, i32, i32, i32) {
    %c0_i32 = arith.constant 0 : i32
    %c0_i32_0 = arith.constant 0 : i32
    %c0_i32_1 = arith.constant 0 : i32
    return %arg0, %c0_i32, %arg1, %c0_i32_0 : i32, i32, i32, i32
  }
  func.func @transform_5(%arg0: i32, %arg1: i32) -> (i32, i32, i32, i32) {
    %c0_i32 = arith.constant 0 : i32
    %c0_i32_0 = arith.constant 0 : i32
    %c0_i32_1 = arith.constant 0 : i32
    return %arg0, %c0_i32, %arg1, %c0_i32_0 : i32, i32, i32, i32
  }
}

module attributes {stable_mosaic.version = 11 : i64} {
  func.func @head_proj_kernel(%arg0: i32, %arg1: i32, %arg2: memref<1x64x128xf32, #tpu.memory_space<vmem>>, %arg3: memref<128x128xbf16, #tpu.memory_space<vmem>>, %arg4: memref<1x128xf32, #tpu.memory_space<vmem>>, %arg5: memref<1x4x64x32xbf16, #tpu.memory_space<vmem>>) attributes {dimension_semantics = [#tpu.dimension_semantics<parallel>, #tpu.dimension_semantics<parallel>], iteration_bounds = array<i64: 2, 4>, scalar_prefetch = 0 : i64, scratch_operands = 0 : i64, tpu.core_type = #tpu.core_type<tc>, window_params = [{transform_indices = @transform_0, window_bounds = array<i64: 1, 64, 128>}, {pipeline_mode = #tpu.pipeline_mode<synchronous>, transform_indices = @transform_1, window_bounds = array<i64: 128, 128>}, {pipeline_mode = #tpu.pipeline_mode<synchronous>, transform_indices = @transform_2, window_bounds = array<i64: 1, 128>}, {transform_indices = @transform_3, window_bounds = array<i64: 1, 4, 64, 32>}]} {
    %c0 = arith.constant 0 : index
    %c0_0 = arith.constant 0 : index
    %c0_1 = arith.constant 0 : index
    %0 = vector.load %arg2[%c0, %c0_0, %c0_1] : memref<1x64x128xf32, #tpu.memory_space<vmem>>, vector<1x64x128xf32>
    %1 = vector.shape_cast %0 : vector<1x64x128xf32> to vector<64x128xf32>
    %2 = arith.truncf %1 : vector<64x128xf32> to vector<64x128xbf16>
    %c0_2 = arith.constant 0 : index
    %c0_3 = arith.constant 0 : index
    %3 = vector.load %arg3[%c0_2, %c0_3] : memref<128x128xbf16, #tpu.memory_space<vmem>>, vector<128x128xbf16>
    %cst = arith.constant dense<0.000000e+00> : vector<64x128xf32>
    %4 = tpu.matmul %2, %3, %cst {dimension_numbers = #tpu.dot_dimension_numbers<[1], [0], [0], [1], [0, 0, 1, 1], [], []>} : vector<64x128xbf16>, vector<128x128xbf16>, vector<64x128xf32> -> vector<64x128xf32>
    %c0_4 = arith.constant 0 : index
    %c0_5 = arith.constant 0 : index
    %5 = vector.load %arg4[%c0_4, %c0_5] : memref<1x128xf32, #tpu.memory_space<vmem>>, vector<1x128xf32>
    %6 = vector.broadcast %5 : vector<1x128xf32> to vector<64x128xf32>
    %7 = arith.addf %4, %6 : vector<64x128xf32>
    %8 = arith.truncf %7 : vector<64x128xf32> to vector<64x128xbf16>
    %9 = vector.extract_strided_slice %8 {offsets = [0, 0], sizes = [64, 32], strides = [1, 1]} : vector<64x128xbf16> to vector<64x32xbf16>
    %c0_6 = arith.constant 0 : index
    %c0_7 = arith.constant 0 : index
    %c0_8 = arith.constant 0 : index
    %c0_9 = arith.constant 0 : index
    %10 = vector.load %arg5[%c0_6, %c0_7, %c0_8, %c0_9] : memref<1x4x64x32xbf16, #tpu.memory_space<vmem>>, vector<1x1x64x32xbf16>
    %11 = vector.shape_cast %10 : vector<1x1x64x32xbf16> to vector<64x32xbf16>
    %12 = vector.shape_cast %9 : vector<64x32xbf16> to vector<1x1x64x32xbf16>
    tpu.vector_store %arg5[%c0_6, %c0_7, %c0_8, %c0_9], %12 {strides = array<i32>} : memref<1x4x64x32xbf16, #tpu.memory_space<vmem>>, vector<1x1x64x32xbf16>,
    %13 = vector.extract_strided_slice %8 {offsets = [0, 32], sizes = [64, 32], strides = [1, 1]} : vector<64x128xbf16> to vector<64x32xbf16>
    %c0_10 = arith.constant 0 : index
    %c1 = arith.constant 1 : index
    %c0_11 = arith.constant 0 : index
    %c0_12 = arith.constant 0 : index
    %14 = vector.load %arg5[%c0_10, %c1, %c0_11, %c0_12] : memref<1x4x64x32xbf16, #tpu.memory_space<vmem>>, vector<1x1x64x32xbf16>
    %15 = vector.shape_cast %14 : vector<1x1x64x32xbf16> to vector<64x32xbf16>
    %16 = vector.shape_cast %13 : vector<64x32xbf16> to vector<1x1x64x32xbf16>
    tpu.vector_store %arg5[%c0_10, %c1, %c0_11, %c0_12], %16 {strides = array<i32>} : memref<1x4x64x32xbf16, #tpu.memory_space<vmem>>, vector<1x1x64x32xbf16>,
    %17 = vector.extract_strided_slice %8 {offsets = [0, 64], sizes = [64, 32], strides = [1, 1]} : vector<64x128xbf16> to vector<64x32xbf16>
    %c0_13 = arith.constant 0 : index
    %c2 = arith.constant 2 : index
    %c0_14 = arith.constant 0 : index
    %c0_15 = arith.constant 0 : index
    %18 = vector.load %arg5[%c0_13, %c2, %c0_14, %c0_15] : memref<1x4x64x32xbf16, #tpu.memory_space<vmem>>, vector<1x1x64x32xbf16>
    %19 = vector.shape_cast %18 : vector<1x1x64x32xbf16> to vector<64x32xbf16>
    %20 = vector.shape_cast %17 : vector<64x32xbf16> to vector<1x1x64x32xbf16>
    tpu.vector_store %arg5[%c0_13, %c2, %c0_14, %c0_15], %20 {strides = array<i32>} : memref<1x4x64x32xbf16, #tpu.memory_space<vmem>>, vector<1x1x64x32xbf16>,
    %21 = vector.extract_strided_slice %8 {offsets = [0, 96], sizes = [64, 32], strides = [1, 1]} : vector<64x128xbf16> to vector<64x32xbf16>
    %c0_16 = arith.constant 0 : index
    %c3 = arith.constant 3 : index
    %c0_17 = arith.constant 0 : index
    %c0_18 = arith.constant 0 : index
    %22 = vector.load %arg5[%c0_16, %c3, %c0_17, %c0_18] : memref<1x4x64x32xbf16, #tpu.memory_space<vmem>>, vector<1x1x64x32xbf16>
    %23 = vector.shape_cast %22 : vector<1x1x64x32xbf16> to vector<64x32xbf16>
    %24 = vector.shape_cast %21 : vector<64x32xbf16> to vector<1x1x64x32xbf16>
    tpu.vector_store %arg5[%c0_16, %c3, %c0_17, %c0_18], %24 {strides = array<i32>} : memref<1x4x64x32xbf16, #tpu.memory_space<vmem>>, vector<1x1x64x32xbf16>,
    return
  }
  func.func @transform_0(%arg0: i32, %arg1: i32) -> (i32, i32, i32) {
    %c0_i32 = arith.constant 0 : i32
    %c0_i32_0 = arith.constant 0 : i32
    return %arg0, %arg1, %c0_i32 : i32, i32, i32
  }
  func.func @transform_1(%arg0: i32, %arg1: i32) -> (i32, i32) {
    %c0_i32 = arith.constant 0 : i32
    %c0_i32_0 = arith.constant 0 : i32
    %c0_i32_1 = arith.constant 0 : i32
    return %c0_i32, %c0_i32_0 : i32, i32
  }
  func.func @transform_2(%arg0: i32, %arg1: i32) -> (i32, i32) {
    %c0_i32 = arith.constant 0 : i32
    %c0_i32_0 = arith.constant 0 : i32
    %c0_i32_1 = arith.constant 0 : i32
    return %c0_i32, %c0_i32_0 : i32, i32
  }
  func.func @transform_3(%arg0: i32, %arg1: i32) -> (i32, i32, i32, i32) {
    %c0_i32 = arith.constant 0 : i32
    %c0_i32_0 = arith.constant 0 : i32
    %c0_i32_1 = arith.constant 0 : i32
    return %arg0, %c0_i32, %arg1, %c0_i32_0 : i32, i32, i32, i32
  }
}

module attributes {stable_mosaic.version = 11 : i64} {
  func.func @head_proj_kernel(%arg0: i32, %arg1: i32, %arg2: memref<1x64x128xf32, #tpu.memory_space<vmem>>, %arg3: memref<128x256xbf16, #tpu.memory_space<vmem>>, %arg4: memref<1x256xf32, #tpu.memory_space<vmem>>, %arg5: memref<1x4x64x32xbf16, #tpu.memory_space<vmem>>, %arg6: memref<1x4x64x32xbf16, #tpu.memory_space<vmem>>) attributes {dimension_semantics = [#tpu.dimension_semantics<parallel>, #tpu.dimension_semantics<parallel>], iteration_bounds = array<i64: 2, 2>, scalar_prefetch = 0 : i64, scratch_operands = 0 : i64, tpu.core_type = #tpu.core_type<tc>, window_params = [{transform_indices = @transform_0, window_bounds = array<i64: 1, 64, 128>}, {pipeline_mode = #tpu.pipeline_mode<synchronous>, transform_indices = @transform_1, window_bounds = array<i64: 128, 256>}, {pipeline_mode = #tpu.pipeline_mode<synchronous>, transform_indices = @transform_2, window_bounds = array<i64: 1, 256>}, {transform_indices = @transform_3, window_bounds = array<i64: 1, 4, 64, 32>}, {transform_indices = @transform_4, window_bounds = array<i64: 1, 4, 64, 32>}]} {
    %c0 = arith.constant 0 : index
    %c0_0 = arith.constant 0 : index
    %c0_1 = arith.constant 0 : index
    %0 = vector.load %arg2[%c0, %c0_0, %c0_1] : memref<1x64x128xf32, #tpu.memory_space<vmem>>, vector<1x64x128xf32>
    %1 = vector.shape_cast %0 : vector<1x64x128xf32> to vector<64x128xf32>
    %2 = arith.truncf %1 : vector<64x128xf32> to vector<64x128xbf16>
    %c0_2 = arith.constant 0 : index
    %c0_3 = arith.constant 0 : index
    %3 = vector.load %arg3[%c0_2, %c0_3] : memref<128x256xbf16, #tpu.memory_space<vmem>>, vector<128x256xbf16>
    %cst = arith.constant dense<0.000000e+00> : vector<64x256xf32>
    %4 = tpu.matmul %2, %3, %cst {dimension_numbers = #tpu.dot_dimension_numbers<[1], [0], [0], [1], [0, 0, 1, 1], [], []>} : vector<64x128xbf16>, vector<128x256xbf16>, vector<64x256xf32> -> vector<64x256xf32>
    %c0_4 = arith.constant 0 : index
    %c0_5 = arith.constant 0 : index
    %5 = vector.load %arg4[%c0_4, %c0_5] : memref<1x256xf32, #tpu.memory_space<vmem>>, vector<1x256xf32>
    %6 = vector.broadcast %5 : vector<1x256xf32> to vector<64x256xf32>
    %7 = arith.addf %4, %6 : vector<64x256xf32>
    %8 = arith.truncf %7 : vector<64x256xf32> to vector<64x256xbf16>
    %9 = vector.extract_strided_slice %8 {offsets = [0, 0], sizes = [64, 32], strides = [1, 1]} : vector<64x256xbf16> to vector<64x32xbf16>
    %c0_6 = arith.constant 0 : index
    %c0_7 = arith.constant 0 : index
    %c0_8 = arith.constant 0 : index
    %c0_9 = arith.constant 0 : index
    %10 = vector.load %arg5[%c0_6, %c0_7, %c0_8, %c0_9] : memref<1x4x64x32xbf16, #tpu.memory_space<vmem>>, vector<1x1x64x32xbf16>
    %11 = vector.shape_cast %10 : vector<1x1x64x32xbf16> to vector<64x32xbf16>
    %12 = vector.shape_cast %9 : vector<64x32xbf16> to vector<1x1x64x32xbf16>
    tpu.vector_store %arg5[%c0_6, %c0_7, %c0_8, %c0_9], %12 {strides = array<i32>} : memref<1x4x64x32xbf16, #tpu.memory_space<vmem>>, vector<1x1x64x32xbf16>,
    %13 = vector.extract_strided_slice %8 {offsets = [0, 32], sizes = [64, 32], strides = [1, 1]} : vector<64x256xbf16> to vector<64x32xbf16>
    %c0_10 = arith.constant 0 : index
    %c1 = arith.constant 1 : index
    %c0_11 = arith.constant 0 : index
    %c0_12 = arith.constant 0 : index
    %14 = vector.load %arg5[%c0_10, %c1, %c0_11, %c0_12] : memref<1x4x64x32xbf16, #tpu.memory_space<vmem>>, vector<1x1x64x32xbf16>
    %15 = vector.shape_cast %14 : vector<1x1x64x32xbf16> to vector<64x32xbf16>
    %16 = vector.shape_cast %13 : vector<64x32xbf16> to vector<1x1x64x32xbf16>
    tpu.vector_store %arg5[%c0_10, %c1, %c0_11, %c0_12], %16 {strides = array<i32>} : memref<1x4x64x32xbf16, #tpu.memory_space<vmem>>, vector<1x1x64x32xbf16>,
    %17 = vector.extract_strided_slice %8 {offsets = [0, 64], sizes = [64, 32], strides = [1, 1]} : vector<64x256xbf16> to vector<64x32xbf16>
    %c0_13 = arith.constant 0 : index
    %c2 = arith.constant 2 : index
    %c0_14 = arith.constant 0 : index
    %c0_15 = arith.constant 0 : index
    %18 = vector.load %arg5[%c0_13, %c2, %c0_14, %c0_15] : memref<1x4x64x32xbf16, #tpu.memory_space<vmem>>, vector<1x1x64x32xbf16>
    %19 = vector.shape_cast %18 : vector<1x1x64x32xbf16> to vector<64x32xbf16>
    %20 = vector.shape_cast %17 : vector<64x32xbf16> to vector<1x1x64x32xbf16>
    tpu.vector_store %arg5[%c0_13, %c2, %c0_14, %c0_15], %20 {strides = array<i32>} : memref<1x4x64x32xbf16, #tpu.memory_space<vmem>>, vector<1x1x64x32xbf16>,
    %21 = vector.extract_strided_slice %8 {offsets = [0, 96], sizes = [64, 32], strides = [1, 1]} : vector<64x256xbf16> to vector<64x32xbf16>
    %c0_16 = arith.constant 0 : index
    %c3 = arith.constant 3 : index
    %c0_17 = arith.constant 0 : index
    %c0_18 = arith.constant 0 : index
    %22 = vector.load %arg5[%c0_16, %c3, %c0_17, %c0_18] : memref<1x4x64x32xbf16, #tpu.memory_space<vmem>>, vector<1x1x64x32xbf16>
    %23 = vector.shape_cast %22 : vector<1x1x64x32xbf16> to vector<64x32xbf16>
    %24 = vector.shape_cast %21 : vector<64x32xbf16> to vector<1x1x64x32xbf16>
    tpu.vector_store %arg5[%c0_16, %c3, %c0_17, %c0_18], %24 {strides = array<i32>} : memref<1x4x64x32xbf16, #tpu.memory_space<vmem>>, vector<1x1x64x32xbf16>,
    %25 = vector.extract_strided_slice %8 {offsets = [0, 128], sizes = [64, 32], strides = [1, 1]} : vector<64x256xbf16> to vector<64x32xbf16>
    %c0_19 = arith.constant 0 : index
    %c0_20 = arith.constant 0 : index
    %c0_21 = arith.constant 0 : index
    %c0_22 = arith.constant 0 : index
    %26 = vector.load %arg6[%c0_19, %c0_20, %c0_21, %c0_22] : memref<1x4x64x32xbf16, #tpu.memory_space<vmem>>, vector<1x1x64x32xbf16>
    %27 = vector.shape_cast %26 : vector<1x1x64x32xbf16> to vector<64x32xbf16>
    %28 = vector.shape_cast %25 : vector<64x32xbf16> to vector<1x1x64x32xbf16>
    tpu.vector_store %arg6[%c0_19, %c0_20, %c0_21, %c0_22], %28 {strides = array<i32>} : memref<1x4x64x32xbf16, #tpu.memory_space<vmem>>, vector<1x1x64x32xbf16>,
    %29 = vector.extract_strided_slice %8 {offsets = [0, 160], sizes = [64, 32], strides = [1, 1]} : vector<64x256xbf16> to vector<64x32xbf16>
    %c0_23 = arith.constant 0 : index
    %c1_24 = arith.constant 1 : index
    %c0_25 = arith.constant 0 : index
    %c0_26 = arith.constant 0 : index
    %30 = vector.load %arg6[%c0_23, %c1_24, %c0_25, %c0_26] : memref<1x4x64x32xbf16, #tpu.memory_space<vmem>>, vector<1x1x64x32xbf16>
    %31 = vector.shape_cast %30 : vector<1x1x64x32xbf16> to vector<64x32xbf16>
    %32 = vector.shape_cast %29 : vector<64x32xbf16> to vector<1x1x64x32xbf16>
    tpu.vector_store %arg6[%c0_23, %c1_24, %c0_25, %c0_26], %32 {strides = array<i32>} : memref<1x4x64x32xbf16, #tpu.memory_space<vmem>>, vector<1x1x64x32xbf16>,
    %33 = vector.extract_strided_slice %8 {offsets = [0, 192], sizes = [64, 32], strides = [1, 1]} : vector<64x256xbf16> to vector<64x32xbf16>
    %c0_27 = arith.constant 0 : index
    %c2_28 = arith.constant 2 : index
    %c0_29 = arith.constant 0 : index
    %c0_30 = arith.constant 0 : index
    %34 = vector.load %arg6[%c0_27, %c2_28, %c0_29, %c0_30] : memref<1x4x64x32xbf16, #tpu.memory_space<vmem>>, vector<1x1x64x32xbf16>
    %35 = vector.shape_cast %34 : vector<1x1x64x32xbf16> to vector<64x32xbf16>
    %36 = vector.shape_cast %33 : vector<64x32xbf16> to vector<1x1x64x32xbf16>
    tpu.vector_store %arg6[%c0_27, %c2_28, %c0_29, %c0_30], %36 {strides = array<i32>} : memref<1x4x64x32xbf16, #tpu.memory_space<vmem>>, vector<1x1x64x32xbf16>,
    %37 = vector.extract_strided_slice %8 {offsets = [0, 224], sizes = [64, 32], strides = [1, 1]} : vector<64x256xbf16> to vector<64x32xbf16>
    %c0_31 = arith.constant 0 : index
    %c3_32 = arith.constant 3 : index
    %c0_33 = arith.constant 0 : index
    %c0_34 = arith.constant 0 : index
    %38 = vector.load %arg6[%c0_31, %c3_32, %c0_33, %c0_34] : memref<1x4x64x32xbf16, #tpu.memory_space<vmem>>, vector<1x1x64x32xbf16>
    %39 = vector.shape_cast %38 : vector<1x1x64x32xbf16> to vector<64x32xbf16>
    %40 = vector.shape_cast %37 : vector<64x32xbf16> to vector<1x1x64x32xbf16>
    tpu.vector_store %arg6[%c0_31, %c3_32, %c0_33, %c0_34], %40 {strides = array<i32>} : memref<1x4x64x32xbf16, #tpu.memory_space<vmem>>, vector<1x1x64x32xbf16>,
    return
  }
  func.func @transform_0(%arg0: i32, %arg1: i32) -> (i32, i32, i32) {
    %c0_i32 = arith.constant 0 : i32
    %c0_i32_0 = arith.constant 0 : i32
    return %arg0, %arg1, %c0_i32 : i32, i32, i32
  }
  func.func @transform_1(%arg0: i32, %arg1: i32) -> (i32, i32) {
    %c0_i32 = arith.constant 0 : i32
    %c0_i32_0 = arith.constant 0 : i32
    %c0_i32_1 = arith.constant 0 : i32
    return %c0_i32, %c0_i32_0 : i32, i32
  }
  func.func @transform_2(%arg0: i32, %arg1: i32) -> (i32, i32) {
    %c0_i32 = arith.constant 0 : i32
    %c0_i32_0 = arith.constant 0 : i32
    %c0_i32_1 = arith.constant 0 : i32
    return %c0_i32, %c0_i32_0 : i32, i32
  }
  func.func @transform_3(%arg0: i32, %arg1: i32) -> (i32, i32, i32, i32) {
    %c0_i32 = arith.constant 0 : i32
    %c0_i32_0 = arith.constant 0 : i32
    %c0_i32_1 = arith.constant 0 : i32
    return %arg0, %c0_i32, %arg1, %c0_i32_0 : i32, i32, i32, i32
  }
  func.func @transform_4(%arg0: i32, %arg1: i32) -> (i32, i32, i32, i32) {
    %c0_i32 = arith.constant 0 : i32
    %c0_i32_0 = arith.constant 0 : i32
    %c0_i32_1 = arith.constant 0 : i32
    return %arg0, %c0_i32, %arg1, %c0_i32_0 : i32, i32, i32, i32
  }
}

module attributes {stable_mosaic.version = 11 : i64} {
  func.func @flash_attn_kernel(%arg0: i32, %arg1: i32, %arg2: i32, %arg3: memref<1x4x64x32xbf16, #tpu.memory_space<vmem>>, %arg4: memref<1x4x128x32xbf16, #tpu.memory_space<vmem>>, %arg5: memref<1x4x128x32xbf16, #tpu.memory_space<vmem>>, %arg6: memref<1x64x128xi8, #tpu.memory_space<vmem>>, %arg7: memref<1x4x64x32xbf16, #tpu.memory_space<vmem>>, %arg8: memref<4x64x1xf32, #tpu.memory_space<vmem>>, %arg9: memref<4x64x1xf32, #tpu.memory_space<vmem>>, %arg10: memref<4x64x32xf32, #tpu.memory_space<vmem>>) attributes {dimension_semantics = [#tpu.dimension_semantics<parallel>, #tpu.dimension_semantics<parallel>, #tpu.dimension_semantics<arbitrary>], iteration_bounds = array<i64: 2, 4, 1>, scalar_prefetch = 0 : i64, scratch_operands = 3 : i64, tpu.core_type = #tpu.core_type<tc>, window_params = [{transform_indices = @transform_0, window_bounds = array<i64: 1, 4, 64, 32>}, {transform_indices = @transform_1, window_bounds = array<i64: 1, 4, 128, 32>}, {transform_indices = @transform_2, window_bounds = array<i64: 1, 4, 128, 32>}, {transform_indices = @transform_3, window_bounds = array<i64: 1, 64, 128>}, {transform_indices = @transform_4, window_bounds = array<i64: 1, 4, 64, 32>}]} {
    %c0_i32 = arith.constant 0 : i32
    %0 = arith.cmpi eq, %arg2, %c0_i32 : i32
    %1 = arith.extui %0 : i1 to i32
    %c0_i32_0 = arith.constant 0 : i32
    %2 = arith.cmpi ne, %1, %c0_i32_0 : i32
    scf.if %2 {
      %cst_39 = arith.constant -1.000000e+30 : f32
      %44 = vector.broadcast %cst_39 : f32 to vector<4x64x1xf32>
      %c0_40 = arith.constant 0 : index
      %c0_41 = arith.constant 0 : index
      %c0_42 = arith.constant 0 : index
      %45 = vector.load %arg8[%c0_40, %c0_41, %c0_42] : memref<4x64x1xf32, #tpu.memory_space<vmem>>, vector<4x64x1xf32>
      tpu.vector_store %arg8[%c0_40, %c0_41, %c0_42], %44 {strides = array<i32>} : memref<4x64x1xf32, #tpu.memory_space<vmem>>, vector<4x64x1xf32>,
      %cst_43 = arith.constant 0.000000e+00 : f32
      %46 = vector.broadcast %cst_43 : f32 to vector<4x64x1xf32>
      %c0_44 = arith.constant 0 : index
      %c0_45 = arith.constant 0 : index
      %c0_46 = arith.constant 0 : index
      %47 = vector.load %arg9[%c0_44, %c0_45, %c0_46] : memref<4x64x1xf32, #tpu.memory_space<vmem>>, vector<4x64x1xf32>
      tpu.vector_store %arg9[%c0_44, %c0_45, %c0_46], %46 {strides = array<i32>} : memref<4x64x1xf32, #tpu.memory_space<vmem>>, vector<4x64x1xf32>,
      %cst_47 = arith.constant 0.000000e+00 : f32
      %48 = vector.broadcast %cst_47 : f32 to vector<4x64x32xf32>
      %c0_48 = arith.constant 0 : index
      %c0_49 = arith.constant 0 : index
      %c0_50 = arith.constant 0 : index
      %49 = vector.load %arg10[%c0_48, %c0_49, %c0_50] : memref<4x64x32xf32, #tpu.memory_space<vmem>>, vector<4x64x32xf32>
      tpu.vector_store %arg10[%c0_48, %c0_49, %c0_50], %48 {strides = array<i32>} : memref<4x64x32xf32, #tpu.memory_space<vmem>>, vector<4x64x32xf32>,
    } else {
    }
    %c0 = arith.constant 0 : index
    %c0_1 = arith.constant 0 : index
    %c0_2 = arith.constant 0 : index
    %c0_3 = arith.constant 0 : index
    %3 = vector.load %arg3[%c0, %c0_1, %c0_2, %c0_3] : memref<1x4x64x32xbf16, #tpu.memory_space<vmem>>, vector<1x4x64x32xbf16>
    %4 = vector.shape_cast %3 : vector<1x4x64x32xbf16> to vector<4x64x32xbf16>
    %c0_4 = arith.constant 0 : index
    %c0_5 = arith.constant 0 : index
    %c0_6 = arith.constant 0 : index
    %c0_7 = arith.constant 0 : index
    %5 = vector.load %arg4[%c0_4, %c0_5, %c0_6, %c0_7] : memref<1x4x128x32xbf16, #tpu.memory_space<vmem>>, vector<1x4x128x32xbf16>
    %6 = vector.shape_cast %5 : vector<1x4x128x32xbf16> to vector<4x128x32xbf16>
    %c0_8 = arith.constant 0 : index
    %c0_9 = arith.constant 0 : index
    %c0_10 = arith.constant 0 : index
    %c0_11 = arith.constant 0 : index
    %7 = vector.load %arg5[%c0_8, %c0_9, %c0_10, %c0_11] : memref<1x4x128x32xbf16, #tpu.memory_space<vmem>>, vector<1x4x128x32xbf16>
    %8 = vector.shape_cast %7 : vector<1x4x128x32xbf16> to vector<4x128x32xbf16>
    "tpu.trace_start"() <{level = 10 : i32, message = "hqd,hkd->hqk"}> : () -> ()
    %cst = arith.constant dense<0.000000e+00> : vector<4x64x128xf32>
    %9 = tpu.matmul %4, %6, %cst {dimension_numbers = #tpu.dot_dimension_numbers<[2], [2], [1], [1], [0, 0, 0, 1, 1, 1], [0], [0]>} : vector<4x64x32xbf16>, vector<4x128x32xbf16>, vector<4x64x128xf32> -> vector<4x64x128xf32>
    "tpu.trace_stop"() : () -> ()
    %c0_12 = arith.constant 0 : index
    %c0_13 = arith.constant 0 : index
    %c0_14 = arith.constant 0 : index
    %10 = vector.load %arg6[%c0_12, %c0_13, %c0_14] : memref<1x64x128xi8, #tpu.memory_space<vmem>>, vector<1x64x128xi8>
    %11 = vector.shape_cast %10 : vector<1x64x128xi8> to vector<64x128xi8>
    %12 = arith.sitofp %11 : vector<64x128xi8> to vector<64x128xf32>
    %cst_15 = arith.constant -1.000000e+09 : f32
    %13 = vector.broadcast %cst_15 : f32 to vector<64x128xf32>
    %14 = arith.mulf %12, %13 : vector<64x128xf32>
    %15 = vector.shape_cast %14 : vector<64x128xf32> to vector<1x64x128xf32>
    %16 = vector.broadcast %15 : vector<1x64x128xf32> to vector<4x64x128xf32>
    %17 = arith.addf %9, %16 : vector<4x64x128xf32>
    %c0_16 = arith.constant 0 : index
    %c0_17 = arith.constant 0 : index
    %c0_18 = arith.constant 0 : index
    %18 = vector.load %arg8[%c0_16, %c0_17, %c0_18] : memref<4x64x1xf32, #tpu.memory_space<vmem>>, vector<4x64x1xf32>
    %cst_19 = arith.constant dense<0xFF800000> : vector<4x64xf32>
    %19 = vector.multi_reduction <maximumf>, %17, %cst_19 [2] : vector<4x64x128xf32> to vector<4x64xf32>
    %20 = vector.shape_cast %19 : vector<4x64xf32> to vector<4x64x1xf32>
    %21 = arith.maximumf %18, %20 : vector<4x64x1xf32>
    %22 = arith.subf %18, %21 : vector<4x64x1xf32>
    %23 = math.exp %22 : vector<4x64x1xf32>
    %24 = vector.broadcast %21 : vector<4x64x1xf32> to vector<4x64x128xf32>
    %25 = arith.subf %17, %24 : vector<4x64x128xf32>
    %26 = math.exp %25 : vector<4x64x128xf32>
    %c0_20 = arith.constant 0 : index
    %c0_21 = arith.constant 0 : index
    %c0_22 = arith.constant 0 : index
    %27 = vector.load %arg9[%c0_20, %c0_21, %c0_22] : memref<4x64x1xf32, #tpu.memory_space<vmem>>, vector<4x64x1xf32>
    %28 = arith.mulf %23, %27 : vector<4x64x1xf32>
    %cst_23 = arith.constant dense<0.000000e+00> : vector<4x64xf32>
    %29 = vector.multi_reduction <add>, %26, %cst_23 [2] : vector<4x64x128xf32> to vector<4x64xf32>
    %30 = vector.shape_cast %29 : vector<4x64xf32> to vector<4x64x1xf32>
    %31 = arith.addf %28, %30 : vector<4x64x1xf32>
    %c0_24 = arith.constant 0 : index
    %c0_25 = arith.constant 0 : index
    %c0_26 = arith.constant 0 : index
    %32 = vector.load %arg9[%c0_24, %c0_25, %c0_26] : memref<4x64x1xf32, #tpu.memory_space<vmem>>, vector<4x64x1xf32>
    tpu.vector_store %arg9[%c0_24, %c0_25, %c0_26], %31 {strides = array<i32>} : memref<4x64x1xf32, #tpu.memory_space<vmem>>, vector<4x64x1xf32>,
    %c0_27 = arith.constant 0 : index
    %c0_28 = arith.constant 0 : index
    %c0_29 = arith.constant 0 : index
    %33 = vector.load %arg10[%c0_27, %c0_28, %c0_29] : memref<4x64x32xf32, #tpu.memory_space<vmem>>, vector<4x64x32xf32>
    %34 = vector.broadcast %23 : vector<4x64x1xf32> to vector<4x64x32xf32>
    %35 = arith.mulf %34, %33 : vector<4x64x32xf32>
    %36 = arith.truncf %26 : vector<4x64x128xf32> to vector<4x64x128xbf16>
    "tpu.trace_start"() <{level = 10 : i32, message = "hqk,hkd->hqd"}> : () -> ()
    %cst_30 = arith.constant dense<0.000000e+00> : vector<4x64x32xf32>
    %37 = tpu.matmul %36, %8, %cst_30 {dimension_numbers = #tpu.dot_dimension_numbers<[2], [1], [1], [2], [0, 0, 0, 1, 1, 2], [0], [0]>} : vector<4x64x128xbf16>, vector<4x128x32xbf16>, vector<4x64x32xf32> -> vector<4x64x32xf32>
    "tpu.trace_stop"() : () -> ()
    %38 = arith.addf %35, %37 : vector<4x64x32xf32>
    %c0_31 = arith.constant 0 : index
    %c0_32 = arith.constant 0 : index
    %c0_33 = arith.constant 0 : index
    %39 = vector.load %arg10[%c0_31, %c0_32, %c0_33] : memref<4x64x32xf32, #tpu.memory_space<vmem>>, vector<4x64x32xf32>
    tpu.vector_store %arg10[%c0_31, %c0_32, %c0_33], %38 {strides = array<i32>} : memref<4x64x32xf32, #tpu.memory_space<vmem>>, vector<4x64x32xf32>,
    %c0_34 = arith.constant 0 : index
    %c0_35 = arith.constant 0 : index
    %c0_36 = arith.constant 0 : index
    %40 = vector.load %arg8[%c0_34, %c0_35, %c0_36] : memref<4x64x1xf32, #tpu.memory_space<vmem>>, vector<4x64x1xf32>
    tpu.vector_store %arg8[%c0_34, %c0_35, %c0_36], %21 {strides = array<i32>} : memref<4x64x1xf32, #tpu.memory_space<vmem>>, vector<4x64x1xf32>,
    %c0_i32_37 = arith.constant 0 : i32
    %41 = arith.cmpi eq, %arg2, %c0_i32_37 : i32
    %42 = arith.extui %41 : i1 to i32
    %c0_i32_38 = arith.constant 0 : i32
    %43 = arith.cmpi ne, %42, %c0_i32_38 : i32
    scf.if %43 {
      %c0_39 = arith.constant 0 : index
      %c0_40 = arith.constant 0 : index
      %c0_41 = arith.constant 0 : index
      %44 = vector.load %arg9[%c0_39, %c0_40, %c0_41] : memref<4x64x1xf32, #tpu.memory_space<vmem>>, vector<4x64x1xf32>
      %45 = tpu.reciprocal %44 {approx = true} : vector<4x64x1xf32> -> vector<4x64x1xf32>
      %c0_42 = arith.constant 0 : index
      %c0_43 = arith.constant 0 : index
      %c0_44 = arith.constant 0 : index
      %46 = vector.load %arg10[%c0_42, %c0_43, %c0_44] : memref<4x64x32xf32, #tpu.memory_space<vmem>>, vector<4x64x32xf32>
      %47 = vector.broadcast %45 : vector<4x64x1xf32> to vector<4x64x32xf32>
      %48 = arith.mulf %46, %47 : vector<4x64x32xf32>
      %49 = arith.truncf %48 : vector<4x64x32xf32> to vector<4x64x32xbf16>
      %c0_45 = arith.constant 0 : index
      %c0_46 = arith.constant 0 : index
      %c0_47 = arith.constant 0 : index
      %c0_48 = arith.constant 0 : index
      %50 = vector.load %arg7[%c0_45, %c0_46, %c0_47, %c0_48] : memref<1x4x64x32xbf16, #tpu.memory_space<vmem>>, vector<1x4x64x32xbf16>
      %51 = vector.shape_cast %50 : vector<1x4x64x32xbf16> to vector<4x64x32xbf16>
      %52 = vector.shape_cast %49 : vector<4x64x32xbf16> to vector<1x4x64x32xbf16>
      tpu.vector_store %arg7[%c0_45, %c0_46, %c0_47, %c0_48], %52 {strides = array<i32>} : memref<1x4x64x32xbf16, #tpu.memory_space<vmem>>, vector<1x4x64x32xbf16>,
    } else {
    }
    return
  }
  func.func @transform_0(%arg0: i32, %arg1: i32, %arg2: i32) -> (i32, i32, i32, i32) {
    %c0_i32 = arith.constant 0 : i32
    %c0_i32_0 = arith.constant 0 : i32
    %c0_i32_1 = arith.constant 0 : i32
    return %arg0, %c0_i32, %arg1, %c0_i32_0 : i32, i32, i32, i32
  }
  func.func @transform_1(%arg0: i32, %arg1: i32, %arg2: i32) -> (i32, i32, i32, i32) {
    %c0_i32 = arith.constant 0 : i32
    %c0_i32_0 = arith.constant 0 : i32
    %c0_i32_1 = arith.constant 0 : i32
    return %arg0, %c0_i32, %arg2, %c0_i32_0 : i32, i32, i32, i32
  }
  func.func @transform_2(%arg0: i32, %arg1: i32, %arg2: i32) -> (i32, i32, i32, i32) {
    %c0_i32 = arith.constant 0 : i32
    %c0_i32_0 = arith.constant 0 : i32
    %c0_i32_1 = arith.constant 0 : i32
    return %arg0, %c0_i32, %arg2, %c0_i32_0 : i32, i32, i32, i32
  }
  func.func @transform_3(%arg0: i32, %arg1: i32, %arg2: i32) -> (i32, i32, i32) {
    %c0_i32 = arith.constant 0 : i32
    return %arg0, %arg1, %arg2 : i32, i32, i32
  }
  func.func @transform_4(%arg0: i32, %arg1: i32, %arg2: i32) -> (i32, i32, i32, i32) {
    %c0_i32 = arith.constant 0 : i32
    %c0_i32_0 = arith.constant 0 : i32
    %c0_i32_1 = arith.constant 0 : i32
    return %arg0, %c0_i32, %arg1, %c0_i32_0 : i32, i32, i32, i32
  }
}

module attributes {stable_mosaic.version = 11 : i64} {
  func.func @ffn_addnorm_kernel(%arg0: i32, %arg1: i32, %arg2: memref<1x64x128xf32, #tpu.memory_space<vmem>>, %arg3: memref<128x256xbf16, #tpu.memory_space<vmem>>, %arg4: memref<1x256xf32, #tpu.memory_space<vmem>>, %arg5: memref<256x128xbf16, #tpu.memory_space<vmem>>, %arg6: memref<1x128xf32, #tpu.memory_space<vmem>>, %arg7: memref<1x128xf32, #tpu.memory_space<vmem>>, %arg8: memref<1x128xf32, #tpu.memory_space<vmem>>, %arg9: memref<1x64x128xf32, #tpu.memory_space<vmem>>) attributes {dimension_semantics = [#tpu.dimension_semantics<parallel>, #tpu.dimension_semantics<parallel>], iteration_bounds = array<i64: 2, 4>, scalar_prefetch = 0 : i64, scratch_operands = 0 : i64, tpu.core_type = #tpu.core_type<tc>, window_params = [{transform_indices = @transform_0, window_bounds = array<i64: 1, 64, 128>}, {pipeline_mode = #tpu.pipeline_mode<synchronous>, transform_indices = @transform_1, window_bounds = array<i64: 128, 256>}, {pipeline_mode = #tpu.pipeline_mode<synchronous>, transform_indices = @transform_2, window_bounds = array<i64: 1, 256>}, {pipeline_mode = #tpu.pipeline_mode<synchronous>, transform_indices = @transform_3, window_bounds = array<i64: 256, 128>}, {pipeline_mode = #tpu.pipeline_mode<synchronous>, transform_indices = @transform_4, window_bounds = array<i64: 1, 128>}, {pipeline_mode = #tpu.pipeline_mode<synchronous>, transform_indices = @transform_5, window_bounds = array<i64: 1, 128>}, {pipeline_mode = #tpu.pipeline_mode<synchronous>, transform_indices = @transform_6, window_bounds = array<i64: 1, 128>}, {transform_indices = @transform_7, window_bounds = array<i64: 1, 64, 128>}]} {
    %c0 = arith.constant 0 : index
    %c0_0 = arith.constant 0 : index
    %c0_1 = arith.constant 0 : index
    %0 = vector.load %arg2[%c0, %c0_0, %c0_1] : memref<1x64x128xf32, #tpu.memory_space<vmem>>, vector<1x64x128xf32>
    %1 = vector.shape_cast %0 : vector<1x64x128xf32> to vector<64x128xf32>
    %2 = arith.truncf %1 : vector<64x128xf32> to vector<64x128xbf16>
    %c0_2 = arith.constant 0 : index
    %c0_3 = arith.constant 0 : index
    %3 = vector.load %arg3[%c0_2, %c0_3] : memref<128x256xbf16, #tpu.memory_space<vmem>>, vector<128x256xbf16>
    %cst = arith.constant dense<0.000000e+00> : vector<64x256xf32>
    %4 = tpu.matmul %2, %3, %cst {dimension_numbers = #tpu.dot_dimension_numbers<[1], [0], [0], [1], [0, 0, 1, 1], [], []>} : vector<64x128xbf16>, vector<128x256xbf16>, vector<64x256xf32> -> vector<64x256xf32>
    %c0_4 = arith.constant 0 : index
    %c0_5 = arith.constant 0 : index
    %5 = vector.load %arg4[%c0_4, %c0_5] : memref<1x256xf32, #tpu.memory_space<vmem>>, vector<1x256xf32>
    %6 = vector.broadcast %5 : vector<1x256xf32> to vector<64x256xf32>
    %7 = arith.addf %4, %6 : vector<64x256xf32>
    %cst_6 = arith.constant 0.000000e+00 : f32
    %8 = vector.broadcast %cst_6 : f32 to vector<64x256xf32>
    %9 = arith.maximumf %7, %8 : vector<64x256xf32>
    %10 = arith.truncf %9 : vector<64x256xf32> to vector<64x256xbf16>
    %c0_7 = arith.constant 0 : index
    %c0_8 = arith.constant 0 : index
    %11 = vector.load %arg5[%c0_7, %c0_8] : memref<256x128xbf16, #tpu.memory_space<vmem>>, vector<256x128xbf16>
    %cst_9 = arith.constant dense<0.000000e+00> : vector<64x128xf32>
    %12 = tpu.matmul %10, %11, %cst_9 {dimension_numbers = #tpu.dot_dimension_numbers<[1], [0], [0], [1], [0, 0, 1, 1], [], []>} : vector<64x256xbf16>, vector<256x128xbf16>, vector<64x128xf32> -> vector<64x128xf32>
    %c0_10 = arith.constant 0 : index
    %c0_11 = arith.constant 0 : index
    %13 = vector.load %arg6[%c0_10, %c0_11] : memref<1x128xf32, #tpu.memory_space<vmem>>, vector<1x128xf32>
    %14 = vector.broadcast %13 : vector<1x128xf32> to vector<64x128xf32>
    %15 = arith.addf %12, %14 : vector<64x128xf32>
    %cst_12 = arith.constant 0.000000e+00 : f32
    %16 = vector.broadcast %cst_12 : f32 to vector<64x128xf32>
    %17 = arith.maximumf %15, %16 : vector<64x128xf32>
    %18 = arith.addf %17, %1 : vector<64x128xf32>
    %cst_13 = arith.constant dense<0.000000e+00> : vector<64xf32>
    %19 = vector.multi_reduction <add>, %18, %cst_13 [1] : vector<64x128xf32> to vector<64xf32>
    %20 = vector.shape_cast %19 : vector<64xf32> to vector<64x1xf32>
    %cst_14 = arith.constant 1.280000e+02 : f32
    %21 = vector.broadcast %cst_14 : f32 to vector<64x1xf32>
    %22 = arith.divf %20, %21 : vector<64x1xf32>
    %23 = vector.broadcast %22 : vector<64x1xf32> to vector<64x128xf32>
    %24 = arith.subf %18, %23 : vector<64x128xf32>
    %25 = arith.mulf %24, %24 : vector<64x128xf32>
    %cst_15 = arith.constant dense<0.000000e+00> : vector<64xf32>
    %26 = vector.multi_reduction <add>, %25, %cst_15 [1] : vector<64x128xf32> to vector<64xf32>
    %27 = vector.shape_cast %26 : vector<64xf32> to vector<64x1xf32>
    %cst_16 = arith.constant 1.280000e+02 : f32
    %28 = vector.broadcast %cst_16 : f32 to vector<64x1xf32>
    %29 = arith.divf %27, %28 : vector<64x1xf32>
    %30 = vector.broadcast %22 : vector<64x1xf32> to vector<64x128xf32>
    %31 = arith.subf %18, %30 : vector<64x128xf32>
    %cst_17 = arith.constant 9.99999974E-6 : f32
    %32 = vector.broadcast %cst_17 : f32 to vector<64x1xf32>
    %33 = arith.addf %29, %32 : vector<64x1xf32>
    %34 = math.rsqrt %33 : vector<64x1xf32>
    %35 = vector.broadcast %34 : vector<64x1xf32> to vector<64x128xf32>
    %36 = arith.mulf %31, %35 : vector<64x128xf32>
    %c0_18 = arith.constant 0 : index
    %c0_19 = arith.constant 0 : index
    %37 = vector.load %arg7[%c0_18, %c0_19] : memref<1x128xf32, #tpu.memory_space<vmem>>, vector<1x128xf32>
    %38 = vector.broadcast %37 : vector<1x128xf32> to vector<64x128xf32>
    %39 = arith.mulf %36, %38 : vector<64x128xf32>
    %c0_20 = arith.constant 0 : index
    %c0_21 = arith.constant 0 : index
    %40 = vector.load %arg8[%c0_20, %c0_21] : memref<1x128xf32, #tpu.memory_space<vmem>>, vector<1x128xf32>
    %41 = vector.broadcast %40 : vector<1x128xf32> to vector<64x128xf32>
    %42 = arith.addf %39, %41 : vector<64x128xf32>
    %c0_22 = arith.constant 0 : index
    %c0_23 = arith.constant 0 : index
    %c0_24 = arith.constant 0 : index
    %43 = vector.load %arg9[%c0_22, %c0_23, %c0_24] : memref<1x64x128xf32, #tpu.memory_space<vmem>>, vector<1x64x128xf32>
    %44 = vector.shape_cast %43 : vector<1x64x128xf32> to vector<64x128xf32>
    %45 = vector.shape_cast %42 : vector<64x128xf32> to vector<1x64x128xf32>
    tpu.vector_store %arg9[%c0_22, %c0_23, %c0_24], %45 {strides = array<i32>} : memref<1x64x128xf32, #tpu.memory_space<vmem>>, vector<1x64x128xf32>,
    return
  }
  func.func @transform_0(%arg0: i32, %arg1: i32) -> (i32, i32, i32) {
    %c0_i32 = arith.constant 0 : i32
    %c0_i32_0 = arith.constant 0 : i32
    return %arg0, %arg1, %c0_i32 : i32, i32, i32
  }
  func.func @transform_1(%arg0: i32, %arg1: i32) -> (i32, i32) {
    %c0_i32 = arith.constant 0 : i32
    %c0_i32_0 = arith.constant 0 : i32
    %c0_i32_1 = arith.constant 0 : i32
    return %c0_i32, %c0_i32_0 : i32, i32
  }
  func.func @transform_2(%arg0: i32, %arg1: i32) -> (i32, i32) {
    %c0_i32 = arith.constant 0 : i32
    %c0_i32_0 = arith.constant 0 : i32
    %c0_i32_1 = arith.constant 0 : i32
    return %c0_i32, %c0_i32_0 : i32, i32
  }
  func.func @transform_3(%arg0: i32, %arg1: i32) -> (i32, i32) {
    %c0_i32 = arith.constant 0 : i32
    %c0_i32_0 = arith.constant 0 : i32
    %c0_i32_1 = arith.constant 0 : i32
    return %c0_i32, %c0_i32_0 : i32, i32
  }
  func.func @transform_4(%arg0: i32, %arg1: i32) -> (i32, i32) {
    %c0_i32 = arith.constant 0 : i32
    %c0_i32_0 = arith.constant 0 : i32
    %c0_i32_1 = arith.constant 0 : i32
    return %c0_i32, %c0_i32_0 : i32, i32
  }
  func.func @transform_5(%arg0: i32, %arg1: i32) -> (i32, i32) {
    %c0_i32 = arith.constant 0 : i32
    %c0_i32_0 = arith.constant 0 : i32
    %c0_i32_1 = arith.constant 0 : i32
    return %c0_i32, %c0_i32_0 : i32, i32
  }
  func.func @transform_6(%arg0: i32, %arg1: i32) -> (i32, i32) {
    %c0_i32 = arith.constant 0 : i32
    %c0_i32_0 = arith.constant 0 : i32
    %c0_i32_1 = arith.constant 0 : i32
    return %c0_i32, %c0_i32_0 : i32, i32
  }
  func.func @transform_7(%arg0: i32, %arg1: i32) -> (i32, i32, i32) {
    %c0_i32 = arith.constant 0 : i32
    %c0_i32_0 = arith.constant 0 : i32
    return %arg0, %arg1, %c0_i32 : i32, i32, i32
  }
}

</mosaic_0001>

<bundles_post_ra>
// kernel: transformer_decoder_layer.11
= control target key start
LH: loop header
LB: loop body
LE: loop exit
PB: predicated region body
PF: predicated region fallthrough
CT: control target
= control target key end

     0   :  { %s993_s12 = smov 0   ;;  %s995_s13 = smov 0   ;;  %s1215_s0 = inlined_call_operand.vmem [shape: f32[2,256,128], index: 0, kind: input, shape index: {}]   ;;  %s1216_s1 = inlined_call_operand.vmem [shape: bf16[128,128], index: 1, kind: input, shape index: {}]   ;;  %s1217_s2 = inlined_call_operand.vmem [shape: f32[1,128], index: 2, kind: input, shape index: {}]   ;;  %s1218_s3 = inlined_call_operand.vmem [shape: bf16[2,4,256,32], index: 3, kind: output, shape index: {}]  }
   0x1   :  { %s997_s14 = smov 0   ;;  %s999_s15 = smov 0  }
   0x2   :  { %s1001_s16 = smov 0   ;;  %s1003_s17 = smov 0  }
   0x3   :  { %s1005_s18 = smov 0  }
   0x4 LB: > { %s22_s19 = sadd.s32 1, %s960_s16  ;;  %s25_s20 = sadd.s32 1, %s964_s17  ;;  %s968_s18 = sphi %s1005_s18, %s13_s18   ;;  %s964_s17 = sphi %s1003_s17, %s1225_s17   ;;  %s960_s16 = sphi %s1001_s16, %s1224_s16   ;;  %s956_s15 = sphi %s999_s15, %s1223_s15   ;;  %s952_s14 = sphi %s997_s14, %s1222_s14   ;;  %s948_s13 = sphi %s995_s13, %s1221_s13   ;;  %s944_s12 = sphi %s993_s12, %s1220_s12  }
   0x5   : > { %p23_p0 = scmp.ge.s32.totalorder %s22_s19, 4  ;;  %s731_s21 = sadd.s32 4294967295, %s968_s18  }
   0x6   : > { %p114_p1 = scmp.ne.s32.totalorder %s948_s13, %s944_s12  ;;  %p115_p2 = scmp.eq.s32.totalorder %s731_s21, 7 }
   0x7   : > { %s1227_s19 = smov (%p23_p0, %s22_s19), 0  ;;  %s1229_s20 = smov (!%p23_p0, %s25_s20), %s964_s17 }
   0x8   : > { %s100_s22 = ssub.s32 %s960_s16, %s1227_s19  ;;  %p27_p3 = scmp.ge.s32.totalorder %s1229_s20, 2 }
   0x9   : > { %p735_p4 = scmp.ge.s32.totalorder %s968_s18, 1  ;;  %p1037_p5 = por %p115_p2, %p114_p1 }
   0xa   : > { %p158_p6 = scmp.lt.s32.totalorder %s968_s18, 9  ;;  %s1231_s20 = smov (%p27_p3, %s1229_s20), 0 }
   0xb   : > { %s99_s24 = ssub.s32 %s964_s17, %s1231_s20  ;;  %s104_s26 = sadd.s32 1, %s948_s13 }
   0xc   : > { %p159_p7 = pnand %p735_p4, %p158_p6  ;;  %s101_s25 = sor.u32 %s100_s22, %s99_s24 }
   0xd   : > { %p102_p8 = scmp.eq.s32.totalorder %s101_s25, 0  ;;  %v906_v0 = vld [vmem:[%s1216_s1] sm:$0xff] (!%p159_p7)   ;;  %s1053_s30 = sshll.u32 (!%p159_p7), %s952_s14, 3  ;;  %v907_v1 = vld [vmem:[%s1216_s1 + $0x8] sm:$0xff] (!%p159_p7)   ;;  %v908_v2 = vld [vmem:[%s1216_s1 + $0x10] sm:$0xff] (!%p159_p7)   ;;  %vm377_vm0 = vcmask (!%p159_p7), 257024  }
   0xe   : > { %162 = sbr.rel (%p159_p7) target bundleno = 431 (0x1af), region = 32  ;;  %p186_p9 = scmp.lt.s32.totalorder (!%p159_p7), %s956_s15, 1  ;;  %807 = vmatprep.subr.bf16.mxu0 (!%p159_p7), %v906_v0  ;;  %831 = vmatprep.subr.bf16.mxu1 (!%p159_p7), %v906_v0  ;;  %v909_v3 = vld [vmem:[%s1216_s1 + $0x18] sm:$0xff] (!%p159_p7)   ;;  %v910_v10 = vld [vmem:[%s1216_s1 + $0x20] sm:$0xff] (!%p159_p7)   ;;  %v911_v11 = vld [vmem:[%s1216_s1 + $0x28] sm:$0xff] (!%p159_p7)  }
   0xf   : > { %s1048_s27 = scalar_select %p102_p8, %s948_s13, %s104_s26  }
  0x10   : > { %p188_p10 = scmp.lt.s32.totalorder (!%p159_p7), %s1053_s30, 31  ;;  %808 = vmatpush3.bf16.msra.mxu0 (!%p159_p7), %v906_v0  ;;  %839 = vmatpush3.bf16.msra.mxu1 (!%p159_p7), %v906_v0  ;;  %v912_v12 = vld [vmem:[%s1216_s1 + $0x30] sm:$0xff] (!%p159_p7)   ;;  %v913_v13 = vld [vmem:[%s1216_s1 + $0x38] sm:$0xff] (!%p159_p7)   ;;  %v740_v20 = vld [vmem:[%s1217_s2] ss:$0 sm:$0xff] (!%p159_p7)  ;;  %s970_s22 = smov (!%p159_p7), 96  }
  0x11   : > { %809 = vmatprep.subr.bf16.mxu0 (!%p159_p7), %v907_v1  ;;  %832 = vmatprep.subr.bf16.mxu1 (!%p159_p7), %v907_v1  ;;  %s971_s24 = smov (!%p159_p7), 64   ;;  %s972_s25 = smov (!%p159_p7), 32  }
  0x14   : > { %810 = vmatpush3.bf16.msra.mxu0 (!%p159_p7), %v907_v1  ;;  %840 = vmatpush3.bf16.msra.mxu1 (!%p159_p7), %v907_v1 }
  0x15   : > { %s187_s6 = scalar_select %p186_p9, %s956_s15, 1  ;;  %811 = vmatprep.subr.bf16.mxu0 %v908_v2  ;;  %833 = vmatprep.subr.bf16.mxu1 %v908_v2 }
  0x16   : > { %s189_s9 = scalar_select %p188_p10, %s1053_s30, 31 }
  0x17   : > { %s738_s10 = sshll.u32 %s187_s6, 5 }
  0x18   : > { %s191_s11 = sadd.s32 %s738_s10, %s189_s9  ;;  %812 = vmatpush3.bf16.msra.mxu0 %v908_v2  ;;  %841 = vmatpush3.bf16.msra.mxu1 %v908_v2  ;;  %s182_s10 = sand.u32 1, %s944_s12  }
  0x19   : > { %s739_s14 = sshll.u32 %s191_s11, 3  ;;  %813 = vmatprep.subr.bf16.mxu0 %v909_v3  ;;  %834 = vmatprep.subr.bf16.mxu1 %v909_v3  ;;  %s736_s21 = sshll.u32 %s182_s10, 7 }
  0x1a   : > { %s1071_s26 = scalar_lea.vmem %s1215_s0, %s739_s14  ;;  %s1097_s12 = scalar_lea.vmem [#allocation2], %s736_s21 }
  0x1b   : > { %v197_v4 = vld [vmem:[%s1071_s26] sm:$0xff]  ;;  %v198_v5 = vld [vmem:[%s1071_s26 + $0x8] sm:$0xff]  ;;  %v199_v14 = vld [vmem:[%s1071_s26 + $0x10] sm:$0xff] }
  0x1c   : > { %v201_v6 = vld [vmem:[%s1071_s26 + $0x20] sm:$0xff]  ;;  %v205_v7 = vpack.c.bf16 %v198_v5, %v197_v4  ;;  %v202_v8 = vld [vmem:[%s1071_s26 + $0x28] sm:$0xff]  ;;  %814 = vmatpush3.bf16.msra.mxu0 %v909_v3  ;;  %842 = vmatpush3.bf16.msra.mxu1 %v909_v3  ;;  %v200_v15 = vld [vmem:[%s1071_s26 + $0x18] sm:$0xff] }
  0x1d   : > { %v207_v9 = vpack.c.bf16 %v202_v8, %v201_v6  ;;  %815 = vmatprep.subr.bf16.mxu0 %v910_v10  ;;  %835 = vmatprep.subr.bf16.mxu1 %v910_v10  ;;  %v203_v16 = vld [vmem:[%s1071_s26 + $0x30] sm:$0xff]  ;;  %v204_v17 = vld [vmem:[%s1071_s26 + $0x38] sm:$0xff]  ;;  %v206_v18 = vpack.c.bf16 %v200_v15, %v199_v14  ;;  %s783_s26 = sshll.u32 (%p1037_p5), %s956_s15, 7 }
  0x1e   : > { %823 = vmatprep.mubr.bf16.mxu0 %v205_v7  ;;  %v208_v19 = vpack.c.bf16 %v204_v17, %v203_v16  ;;  %s494_s23 = sadd.s32 (%p1037_p5), %s783_s26, %s1053_s30 }
  0x1f   : > { %827 = vmatprep.mubr.bf16.mxu1 %v207_v9  ;;  %s784_s28 = sshll.u32 (%p1037_p5), %s494_s23, 2 }
  0x20   : > { %816 = vmatpush3.bf16.msra.mxu0 %v910_v10  ;;  %843 = vmatpush3.bf16.msra.mxu1 %v910_v10  ;;  %s496_s5 = scalar_lea.vmem (%p1037_p5), %s1218_s3, %s784_s28 }
  0x21   : > { %817 = vmatprep.subr.bf16.mxu0 %v911_v11  ;;  %836 = vmatprep.subr.bf16.mxu1 %v911_v11 }
  0x24   : > { %818 = vmatpush3.bf16.msra.mxu0 %v911_v11  ;;  %844 = vmatpush3.bf16.msra.mxu1 %v911_v11 }
  0x25   : > { %819 = vmatprep.subr.bf16.mxu0 %v912_v12  ;;  %837 = vmatprep.subr.bf16.mxu1 %v912_v12 }
  0x28   : > { %820 = vmatpush3.bf16.msra.mxu0 %v912_v12  ;;  %845 = vmatpush3.bf16.msra.mxu1 %v912_v12 }
  0x29   : > { %821 = vmatprep.subr.bf16.mxu0 %v913_v13  ;;  %838 = vmatprep.subr.bf16.mxu1 %v913_v13 }
  0x2c   : > { %822 = vmatpush3.bf16.msra.mxu0 %v913_v13  ;;  %846 = vmatpush3.bf16.msra.mxu1 %v913_v13 }
  0x2f   : > { %824 = vmatmul.mubr.bf16.vlgmr.msra.gmra.mrb[0].mxu0 %v206_v18  ;;  %828 = vmatmul.mubr.bf16.vlgmr.msra.gmra.mrb[0].mxu1 %v208_v19 }
 0x102   : > { %v825_v21 = vpop.f32.mrb[0].mxu0  ;;  %v829_v22 = vpop.f32.mrb[0].mxu1 }
 0x103   : > { %v323_v23 = vadd.f32 %v825_v21, %v740_v20  ;;  %v339_v24 = vadd.f32 %v829_v22, %v740_v20  ;;  %v314_v25 = vpop.f32.mrb[1].mxu0  ;;  %v330_v26 = vpop.f32.mrb[1].mxu1 }
 0x104   : > { %v315_v27 = vadd.f32 %v740_v20, %v314_v25  ;;  %v331_v28 = vadd.f32 %v740_v20, %v330_v26  ;;  %v826_v29 = vpop.f32.mrb[2].mxu0  ;;  %v830_v30 = vpop.f32.mrb[2].mxu1 }
 0x105   : > { %v789_v31 = vpack.c.bf16 %v323_v23, %v323_v23  ;;  %v793_v32 = vpack.c.bf16 %v339_v24, %v339_v24  ;;  %v326_v33 = vadd.f32 %v826_v29, %v740_v20  ;;  %v342_v34 = vadd.f32 %v830_v30, %v740_v20  ;;  %v317_v35 = vpop.f32.mrb[3].mxu0  ;;  %v333_v36 = vpop.f32.mrb[3].mxu1 }
 0x106   : > { %v787_v37 = vpack.c.bf16 %v315_v27, %v315_v27  ;;  %v791_v38 = vpack.c.bf16 %v331_v28, %v331_v28  ;;  %v318_v39 = vadd.f32 %v740_v20, %v317_v35  ;;  %v334_v40 = vadd.f32 %v740_v20, %v333_v36 }
 0x107   : > { %380 = vst.msk [vmem:[%s1097_s12 + $0x8] sm:$0xf] %vm377_vm0, %v789_v31  ;;  %384 = vst.msk [vmem:[%s1097_s12 + $0x18] sm:$0xf] %vm377_vm0, %v793_v32  ;;  %v790_v41 = vpack.c.bf16 %v326_v33, %v326_v33  ;;  %v794_v42 = vpack.c.bf16 %v342_v34, %v342_v34  ;;  %398 = vrot.lane.b32.xlu0 %v793_v32, %s970_s22  ;;  %390 = vrot.lane.b32.xlu1 %v789_v31, %s970_s22 }
 0x108   : > { %378 = vst.msk [vmem:[%s1097_s12] sm:$0xf] %vm377_vm0, %v787_v37  ;;  %382 = vst.msk [vmem:[%s1097_s12 + $0x10] sm:$0xf] %vm377_vm0, %v791_v38  ;;  %v788_v43 = vpack.c.bf16 %v318_v39, %v318_v39  ;;  %v792_v44 = vpack.c.bf16 %v334_v40, %v334_v40 }
 0x109   : > { %381 = vst.msk [vmem:[%s1097_s12 + $0xc] sm:$0xf] %vm377_vm0, %v790_v41  ;;  %385 = vst.msk [vmem:[%s1097_s12 + $0x1c] sm:$0xf] %vm377_vm0, %v794_v42 }
 0x10a   : > { %379 = vst.msk [vmem:[%s1097_s12 + $0x4] sm:$0xf] %vm377_vm0, %v788_v43  ;;  %383 = vst.msk [vmem:[%s1097_s12 + $0x14] sm:$0xf] %vm377_vm0, %v792_v44 }
 0x10b   : > { %423 = vrot.lane.b32.xlu0 %v789_v31, %s971_s24  ;;  %392 = vrot.lane.b32.xlu1 %v790_v41, %s970_s22 }
 0x10f   : > { %431 = vrot.lane.b32.xlu0 %v793_v32, %s971_s24  ;;  %400 = vrot.lane.b32.xlu1 %v794_v42, %s970_s22 }
 0x110   : > { %v516_v6 = vld [vmem:[%s1097_s12 + $0x8] sm:$0xff] (%p1037_p5)   ;;  %v524_v8 = vld [vmem:[%s1097_s12 + $0x18] sm:$0xff] (%p1037_p5)  }
 0x111   : > { %v512_v5 = vld [vmem:[%s1097_s12] sm:$0xff] (%p1037_p5)   ;;  %v520_v7 = vld [vmem:[%s1097_s12 + $0x10] sm:$0xff] (%p1037_p5)   ;;  %517 = vst [vmem:[%s496_s5 + $0x8] sm:$0xff] (%p1037_p5), %v516_v6   ;;  %525 = vst [vmem:[%s496_s5 + $0x18] sm:$0xff] (%p1037_p5), %v524_v8  }
 0x112   : > { %513 = vst [vmem:[%s496_s5] sm:$0xff] (%p1037_p5), %v512_v5   ;;  %521 = vst [vmem:[%s496_s5 + $0x10] sm:$0xff] (%p1037_p5), %v520_v7  }
 0x113   : > { %456 = vrot.lane.b32.xlu0 %v789_v31, %s972_s25  ;;  %425 = vrot.lane.b32.xlu1 %v790_v41, %s971_s24 }
 0x117   : > { %433 = vrot.lane.b32.xlu1 %v794_v42, %s971_s24  ;;  %386 = vrot.lane.b32.xlu0 %v787_v37, %s970_s22 }
 0x11b   : > { %458 = vrot.lane.b32.xlu1 %v790_v41, %s972_s25  ;;  %394 = vrot.lane.b32.xlu0 %v791_v38, %s970_s22 }
 0x11f   : > { %396 = vrot.lane.b32.xlu1 %v792_v44, %s970_s22  ;;  %419 = vrot.lane.b32.xlu0 %v787_v37, %s971_s24 }
 0x123   : > { %421 = vrot.lane.b32.xlu1 %v788_v43, %s971_s24  ;;  %427 = vrot.lane.b32.xlu0 %v791_v38, %s971_s24 }
 0x127   : > { %429 = vrot.lane.b32.xlu1 %v792_v44, %s971_s24  ;;  %452 = vrot.lane.b32.xlu0 %v787_v37, %s972_s25 }
 0x12b   : > { %454 = vrot.lane.b32.xlu1 %v788_v43, %s972_s25  ;;  %460 = vrot.lane.b32.xlu0 %v791_v38, %s972_s25 }
 0x12f   : > { %462 = vrot.lane.b32.xlu1 %v792_v44, %s972_s25  ;;  %388 = vrot.lane.b32.xlu0 %v788_v43, %s970_s22 }
 0x133   : > { %466 = vrot.lane.b32.xlu1 %v794_v42, %s972_s25  ;;  %464 = vrot.lane.b32.xlu0 %v793_v32, %s972_s25 }
 0x179   : > { %v399_v45 = vpop.permute.xlu0 %398  ;;  %v391_v46 = vpop.permute.xlu1 %390 }
 0x17a   : > { %763 = vst.msk [vmem:[%s1097_s12 + $0x38] sm:$0xf] %vm377_vm0, %v399_v45  ;;  %759 = vst.msk [vmem:[%s1097_s12 + $0x28] sm:$0xf] %vm377_vm0, %v391_v46 }
 0x17d   : > { %v424_v47 = vpop.permute.xlu0 %423  ;;  %v393_v48 = vpop.permute.xlu1 %392 }
 0x17e   : > { %767 = vst.msk [vmem:[%s1097_s12 + $0x48] sm:$0xf] %vm377_vm0, %v424_v47  ;;  %760 = vst.msk [vmem:[%s1097_s12 + $0x2c] sm:$0xf] %vm377_vm0, %v393_v48 }
 0x181   : > { %v432_v49 = vpop.permute.xlu0 %431  ;;  %v401_v50 = vpop.permute.xlu1 %400 }
 0x182   : > { %771 = vst.msk [vmem:[%s1097_s12 + $0x58] sm:$0xf] %vm377_vm0, %v432_v49  ;;  %764 = vst.msk [vmem:[%s1097_s12 + $0x3c] sm:$0xf] %vm377_vm0, %v401_v50 }
 0x185   : > { %v457_v51 = vpop.permute.xlu0 %456  ;;  %v426_v52 = vpop.permute.xlu1 %425  ;;  %v532_v10 = vld [vmem:[%s1097_s12 + $0x28] sm:$0xff] (%p1037_p5)  }
 0x186   : > { %775 = vst.msk [vmem:[%s1097_s12 + $0x68] sm:$0xf] %vm377_vm0, %v457_v51  ;;  %768 = vst.msk [vmem:[%s1097_s12 + $0x4c] sm:$0xf] %vm377_vm0, %v426_v52 }
 0x187   : > { %533 = vst [vmem:[%s496_s5 + $0x88] sm:$0xff] (%p1037_p5), %v532_v10  }
 0x189   : > { %v434_v53 = vpop.permute.xlu1 %433  ;;  %v387_v54 = vpop.permute.xlu0 %386  ;;  %v540_v12 = vld [vmem:[%s1097_s12 + $0x38] sm:$0xff] (%p1037_p5)  }
 0x18a   : > { %772 = vst.msk [vmem:[%s1097_s12 + $0x5c] sm:$0xf] %vm377_vm0, %v434_v53  ;;  %757 = vst.msk [vmem:[%s1097_s12 + $0x20] sm:$0xf] %vm377_vm0, %v387_v54 }
 0x18b   : > { %541 = vst [vmem:[%s496_s5 + $0x98] sm:$0xff] (%p1037_p5), %v540_v12  }
 0x18d   : > { %v459_v55 = vpop.permute.xlu1 %458  ;;  %v395_v56 = vpop.permute.xlu0 %394  ;;  %v548_v14 = vld [vmem:[%s1097_s12 + $0x48] sm:$0xff] (%p1037_p5)  }
 0x18e   : > { %776 = vst.msk [vmem:[%s1097_s12 + $0x6c] sm:$0xf] %vm377_vm0, %v459_v55  ;;  %761 = vst.msk [vmem:[%s1097_s12 + $0x30] sm:$0xf] %vm377_vm0, %v395_v56 }
 0x18f   : > { %549 = vst [vmem:[%s496_s5 + $0x108] sm:$0xff] (%p1037_p5), %v548_v14  }
 0x191   : > { %v397_v57 = vpop.permute.xlu1 %396  ;;  %v420_v58 = vpop.permute.xlu0 %419  ;;  %v556_v16 = vld [vmem:[%s1097_s12 + $0x58] sm:$0xff] (%p1037_p5)  }
 0x192   : > { %762 = vst.msk [vmem:[%s1097_s12 + $0x34] sm:$0xf] %vm377_vm0, %v397_v57  ;;  %765 = vst.msk [vmem:[%s1097_s12 + $0x40] sm:$0xf] %vm377_vm0, %v420_v58 }
 0x193   : > { %557 = vst [vmem:[%s496_s5 + $0x118] sm:$0xff] (%p1037_p5), %v556_v16  }
 0x195   : > { %v422_v59 = vpop.permute.xlu1 %421  ;;  %v428_v60 = vpop.permute.xlu0 %427  ;;  %v564_v18 = vld [vmem:[%s1097_s12 + $0x68] sm:$0xff] (%p1037_p5)  }
 0x196   : > { %766 = vst.msk [vmem:[%s1097_s12 + $0x44] sm:$0xf] %vm377_vm0, %v422_v59  ;;  %769 = vst.msk [vmem:[%s1097_s12 + $0x50] sm:$0xf] %vm377_vm0, %v428_v60 }
 0x197   : > { %565 = vst [vmem:[%s496_s5 + $0x188] sm:$0xff] (%p1037_p5), %v564_v18  }
 0x199   : > { %v430_v61 = vpop.permute.xlu1 %429  ;;  %v453_v62 = vpop.permute.xlu0 %452  ;;  %v536_v11 = vld [vmem:[%s1097_s12 + $0x30] sm:$0xff] (%p1037_p5)  }
 0x19a   : > { %770 = vst.msk [vmem:[%s1097_s12 + $0x54] sm:$0xf] %vm377_vm0, %v430_v61  ;;  %773 = vst.msk [vmem:[%s1097_s12 + $0x60] sm:$0xf] %vm377_vm0, %v453_v62 }
 0x19b   : > { %537 = vst [vmem:[%s496_s5 + $0x90] sm:$0xff] (%p1037_p5), %v536_v11  }
 0x19d   : > { %v455_v63 = vpop.permute.xlu1 %454  ;;  %v461_v0 = vpop.permute.xlu0 %460  ;;  %v544_v13 = vld [vmem:[%s1097_s12 + $0x40] sm:$0xff] (%p1037_p5)  }
 0x19e   : > { %774 = vst.msk [vmem:[%s1097_s12 + $0x64] sm:$0xf] %vm377_vm0, %v455_v63  ;;  %777 = vst.msk [vmem:[%s1097_s12 + $0x70] sm:$0xf] %vm377_vm0, %v461_v0 }
 0x19f   : > { %545 = vst [vmem:[%s496_s5 + $0x100] sm:$0xff] (%p1037_p5), %v544_v13  }
 0x1a0   : > { %491 = sbr.rel (!%p1037_p5) target bundleno = 431 (0x1af), region = 36 }
 0x1a1   : > { %v463_v1 = vpop.permute.xlu1 %462  ;;  %v389_v2 = vpop.permute.xlu0 %388  ;;  %v552_v15 = vld [vmem:[%s1097_s12 + $0x50] sm:$0xff] (%p1037_p5)  }
 0x1a2   : > { %778 = vst.msk [vmem:[%s1097_s12 + $0x74] sm:$0xf] %vm377_vm0, %v463_v1  ;;  %758 = vst.msk [vmem:[%s1097_s12 + $0x24] sm:$0xf] %vm377_vm0, %v389_v2 }
 0x1a3   : > { %553 = vst [vmem:[%s496_s5 + $0x110] sm:$0xff] (%p1037_p5), %v552_v15  }
 0x1a5   : > { %v467_v3 = vpop.permute.xlu1 %466  ;;  %v465_v4 = vpop.permute.xlu0 %464  ;;  %v560_v17 = vld [vmem:[%s1097_s12 + $0x60] sm:$0xff] (%p1037_p5)  }
 0x1a6   : > { %780 = vst.msk [vmem:[%s1097_s12 + $0x7c] sm:$0xf] %vm377_vm0, %v467_v3  ;;  %779 = vst.msk [vmem:[%s1097_s12 + $0x78] sm:$0xf] %vm377_vm0, %v465_v4 }
 0x1a7   : > { %561 = vst [vmem:[%s496_s5 + $0x180] sm:$0xff] %v560_v17  }
 0x1a9   : > { %v528_v9 = vld [vmem:[%s1097_s12 + $0x20] sm:$0xff]   ;;  %v568_v19 = vld [vmem:[%s1097_s12 + $0x70] sm:$0xff]  }
 0x1aa   : > { %529 = vst [vmem:[%s496_s5 + $0x80] sm:$0xff] %v528_v9   ;;  %569 = vst [vmem:[%s496_s5 + $0x190] sm:$0xff] %v568_v19  }
 0x1ad   : > { %v572_v20 = vld [vmem:[%s1097_s12 + $0x78] sm:$0xff]  }
 0x1ae   : > { %573 = vst [vmem:[%s496_s5 + $0x198] sm:$0xff] %v572_v20  }
 0x1af PF: > { %s13_s18 = sadd.s32 1, %s968_s18   ;;  %s1220_s12 = smov %s948_s13 }
 0x1b0   : > { %p10_p11 = scmp.ge.s32.totalorder %s13_s18, 10   ;;  %s1221_s13 = smov %s1048_s27 }
 0x1b1   : > { %s1222_s14 = smov %s960_s16  ;;  %s1223_s15 = smov %s964_s17 }
 0x1b2   : > { %s1224_s16 = smov %s1227_s19  ;;  %s1225_s17 = smov %s1231_s20 }
 0x1b3   :  { %12 = sbr.rel (!%p10_p11) target bundleno = 4 (0x4), region = 106 }

// kernel: transformer_decoder_layer.10
= control target key start
LH: loop header
LB: loop body
LE: loop exit
PB: predicated region body
PF: predicated region fallthrough
CT: control target
= control target key end

     0   :  { %s1612_s21 = smov 0   ;;  %s1614_s22 = smov 0   ;;  %s1857_s0 = inlined_call_operand.vmem [shape: bf16[2,4,256,32], index: 0, kind: input, shape index: {}]   ;;  %s1858_s1 = inlined_call_operand.vmem [shape: f32[2,256,128], index: 1, kind: input, shape index: {}]   ;;  %s1859_s2 = inlined_call_operand.vmem [shape: bf16[4,32,128], index: 2, kind: input, shape index: {}]   ;;  %s1860_s3 = inlined_call_operand.vmem [shape: f32[1,128], index: 3, kind: input, shape index: {}]   ;;  %s1861_s4 = inlined_call_operand.vmem [shape: f32[1,128], index: 4, kind: input, shape index: {}]   ;;  %s1862_s5 = inlined_call_operand.vmem [shape: f32[1,128], index: 5, kind: input, shape index: {}]   ;;  %s1863_s6 = inlined_call_operand.vmem [shape: f32[2,256,128], index: 6, kind: output, shape index: {}]  }
   0x1   :  { %s1616_s23 = smov 0   ;;  %s1618_s24 = smov 0  }
   0x2   :  { %s1620_s25 = smov 0   ;;  %s1622_s26 = smov 0  }
   0x3   :  { %s1624_s27 = smov 0  }
   0x4 LB: > { %s25_s28 = sadd.s32 1, %s1567_s25  ;;  %s28_s29 = sadd.s32 1, %s1571_s26  ;;  %s1575_s27 = sphi %s1624_s27, %s16_s27   ;;  %s1571_s26 = sphi %s1622_s26, %s1869_s26   ;;  %s1567_s25 = sphi %s1620_s25, %s1868_s25   ;;  %s1563_s24 = sphi %s1618_s24, %s1867_s24   ;;  %s1559_s23 = sphi %s1616_s23, %s1866_s23   ;;  %s1555_s22 = sphi %s1614_s22, %s1865_s22   ;;  %s1551_s21 = sphi %s1612_s21, %s1864_s21  }
   0x5   : > { %p26_p0 = scmp.ge.s32.totalorder %s25_s28, 4  ;;  %p44_p1 = scmp.ne.s32.totalorder %s1555_s22, %s1551_s21 }
   0x6   : > { %p45_p2 = scmp.eq.s32.totalorder %s1575_s27, 0  ;;  %s37_s9 = sadd.s32 1, %s1555_s22 }
   0x7   : > { %s1871_s28 = smov (%p26_p0, %s25_s28), 0  ;;  %s1873_s29 = smov (!%p26_p0, %s28_s29), %s1571_s26 }
   0x8   : > { %p46_p3 = por %p45_p2, %p44_p1  ;;  %p30_p4 = scmp.ge.s32.totalorder %s1873_s29, 2 }
   0x9   : > { %s33_s30 = ssub.s32 %s1567_s25, %s1871_s28  ;;  %p1259_p6 = scmp.ge.s32.totalorder %s1575_s27, 8 }
   0xa   : > { %s1875_s29 = smov (%p30_p4, %s1873_s29), 0 }
   0xb   : > { %s32_s7 = ssub.s32 %s1571_s26, %s1875_s29  ;;  %222 = sbr.rel (%p1259_p6) target bundleno = 33 (0x21), region = 32 }
   0xc   : > { %s34_s8 = sor.u32 %s33_s30, %s32_s7 }
   0xd   : > { %p35_p5 = scmp.eq.s32.totalorder %s34_s8, 0 }
   0xf   : > { %s1663_s10 = scalar_select %p35_p5, %s1555_s22, %s37_s9  }
  0x12   : > { %225 = sbr.rel (!%p46_p3) target bundleno = 33 (0x21), region = 36  ;;  %s227_s11 = sand.u32 (%p46_p3), 1, %s1555_s22  }
  0x13   : > { %s1261_s12 = sshll.u32 (%p46_p3), %s1567_s25, 3  ;;  %s1260_s13 = sshll.u32 (%p46_p3), %s227_s11, 7 }
  0x14   : > { %s1262_s14 = sshll.u32 (%p46_p3), %s1571_s26, 7  ;;  %s229_s20 = scalar_lea.vmem (%p46_p3), [#allocation2], %s1260_s13 }
  0x15   : > { %s232_s15 = sadd.s32 (%p46_p3), %s1262_s14, %s1261_s12 }
  0x16   : > { %s1263_s16 = sshll.u32 (%p46_p3), %s232_s15, 2 }
  0x17   : > { %s1672_s19 = scalar_lea.vmem (%p46_p3), %s1857_s0, %s1263_s16 }
  0x18   : > { %v250_v0 = vld [vmem:[%s1672_s19] sm:$0xff] (%p46_p3)   ;;  %v254_v1 = vld [vmem:[%s1672_s19 + $0x8] sm:$0xff] (%p46_p3)   ;;  %v258_v2 = vld [vmem:[%s1672_s19 + $0x10] sm:$0xff] (%p46_p3)  }
  0x19   : > { %251 = vst [vmem:[%s229_s20] sm:$0xff] %v250_v0   ;;  %255 = vst [vmem:[%s229_s20 + $0x8] sm:$0xff] %v254_v1   ;;  %v262_v3 = vld [vmem:[%s1672_s19 + $0x18] sm:$0xff]   ;;  %v266_v4 = vld [vmem:[%s1672_s19 + $0x80] sm:$0xff]  }
  0x1a   : > { %259 = vst [vmem:[%s229_s20 + $0x10] sm:$0xff] %v258_v2   ;;  %v270_v5 = vld [vmem:[%s1672_s19 + $0x88] sm:$0xff]   ;;  %263 = vst [vmem:[%s229_s20 + $0x18] sm:$0xff] %v262_v3   ;;  %v274_v6 = vld [vmem:[%s1672_s19 + $0x90] sm:$0xff]  }
  0x1b   : > { %267 = vst [vmem:[%s229_s20 + $0x20] sm:$0xff] %v266_v4   ;;  %271 = vst [vmem:[%s229_s20 + $0x28] sm:$0xff] %v270_v5   ;;  %v278_v7 = vld [vmem:[%s1672_s19 + $0x98] sm:$0xff]   ;;  %v282_v8 = vld [vmem:[%s1672_s19 + $0x100] sm:$0xff]  }
  0x1c   : > { %275 = vst [vmem:[%s229_s20 + $0x30] sm:$0xff] %v274_v6   ;;  %279 = vst [vmem:[%s229_s20 + $0x38] sm:$0xff] %v278_v7   ;;  %v286_v9 = vld [vmem:[%s1672_s19 + $0x108] sm:$0xff]   ;;  %v290_v10 = vld [vmem:[%s1672_s19 + $0x110] sm:$0xff]  }
  0x1d   : > { %283 = vst [vmem:[%s229_s20 + $0x40] sm:$0xff] %v282_v8   ;;  %v294_v11 = vld [vmem:[%s1672_s19 + $0x118] sm:$0xff]   ;;  %287 = vst [vmem:[%s229_s20 + $0x48] sm:$0xff] %v286_v9   ;;  %v298_v12 = vld [vmem:[%s1672_s19 + $0x180] sm:$0xff]  }
  0x1e   : > { %291 = vst [vmem:[%s229_s20 + $0x50] sm:$0xff] %v290_v10   ;;  %295 = vst [vmem:[%s229_s20 + $0x58] sm:$0xff] %v294_v11   ;;  %v302_v13 = vld [vmem:[%s1672_s19 + $0x188] sm:$0xff]   ;;  %v306_v14 = vld [vmem:[%s1672_s19 + $0x190] sm:$0xff]  }
  0x1f   : > { %299 = vst [vmem:[%s229_s20 + $0x60] sm:$0xff] %v298_v12   ;;  %303 = vst [vmem:[%s229_s20 + $0x68] sm:$0xff] %v302_v13   ;;  %v310_v15 = vld [vmem:[%s1672_s19 + $0x198] sm:$0xff]  }
  0x20   : > { %307 = vst [vmem:[%s229_s20 + $0x70] sm:$0xff] %v306_v14   ;;  %311 = vst [vmem:[%s229_s20 + $0x78] sm:$0xff] %v310_v15  }
  0x21 PF: > { %p1264_p7 = scmp.ge.s32.totalorder %s1575_s27, 1  ;;  %p412_p8 = scmp.lt.s32.totalorder %s1575_s27, 9 }
  0x23   : > { %p413_p9 = pnand %p1264_p7, %p412_p8 }
  0x24   : > { %v1481_v16 = vld [vmem:[%s1859_s2 + $0x10] sm:$0xff] (!%p413_p9)   ;;  %s419_s8 = sand.u32 (!%p413_p9), 1, %s1551_s21   ;;  %v1482_v17 = vld [vmem:[%s1859_s2 + $0x20] sm:$0xff] (!%p413_p9)   ;;  %v1483_v18 = vld [vmem:[%s1859_s2 + $0x18] sm:$0xff] (!%p413_p9)   ;;  %vm556_vm0 = vcmask (!%p413_p9), 261120   ;;  %s1266_s11 = sshll.u32 (!%p413_p9), %s1559_s23, 3 }
  0x25   : > { %416 = sbr.rel (%p413_p9) target bundleno = 607 (0x25f), region = 81  ;;  %s1265_s12 = sshll.u32 (!%p413_p9), %s419_s8, 7  ;;  %1353 = vmatprep.subr.bf16.mxu1 (!%p413_p9), %v1481_v16  ;;  %1377 = vmatprep.subr.bf16.mxu0 (!%p413_p9), %v1482_v17  ;;  %v1484_v19 = vld [vmem:[%s1859_s2 + $0x28] sm:$0xff] (!%p413_p9)   ;;  %v1488_v23 = vld [vmem:[%s1859_s2] sm:$0xff] (!%p413_p9)   ;;  %v1490_v25 = vld [vmem:[%s1859_s2 + $0x30] sm:$0xff] (!%p413_p9)  }
  0x26   : > { %1354 = vmatpush3.bf16.msra.mxu1 (!%p413_p9), %v1481_v16  ;;  %1378 = vmatpush3.bf16.msra.mxu0 (!%p413_p9), %v1482_v17  ;;  %s1705_s21 = scalar_lea.vmem (!%p413_p9), [#allocation2], %s1265_s12  ;;  %v1494_v29 = vld [vmem:[%s1859_s2 + $0x8] sm:$0xff] (!%p413_p9)   ;;  %v1496_v31 = vld [vmem:[%s1859_s2 + $0x38] sm:$0xff] (!%p413_p9)   ;;  %p463_p10 = scmp.lt.s32.totalorder (!%p413_p9), %s1563_s24, 1  ;;  %v1324_v42 = vld [vmem:[%s1860_s3] ss:$0 sm:$0xff] (!%p413_p9) }
  0x27   : > { %1355 = vmatprep.subr.bf16.mxu1 (!%p413_p9), %v1483_v18  ;;  %v1485_v20 = vld [vmem:[%s1705_s21 + $0x20] sm:$0xff] (!%p413_p9)   ;;  %1379 = vmatprep.subr.bf16.mxu0 (!%p413_p9), %v1484_v19  ;;  %v1487_v22 = vld [vmem:[%s1705_s21 + $0x28] sm:$0xff] (!%p413_p9)   ;;  %v1491_v26 = vld [vmem:[%s1705_s21 + $0x30] sm:$0xff] (!%p413_p9)   ;;  %p465_p11 = scmp.lt.s32.totalorder (!%p413_p9), %s1266_s11, 31 }
  0x28   : > { %v1486_v21 = vld [vmem:[%s1705_s21 + $0x40] sm:$0xff] (!%p413_p9)   ;;  %1357 = vmatprep.mubr.msk.bf16.mxu1 (!%p413_p9), %vm556_vm0, %v1485_v20  ;;  %v1489_v24 = vld [vmem:[%s1705_s21 + $0x48] sm:$0xff] (!%p413_p9)   ;;  %v1492_v27 = vld [vmem:[%s1705_s21 + $0x50] sm:$0xff] (!%p413_p9)  }
  0x29   : > { %1381 = vmatprep.mubr.msk.bf16.mxu0 (!%p413_p9), %vm556_vm0, %v1486_v21  ;;  %v1493_v28 = vld [vmem:[%s1705_s21 + $0x38] sm:$0xff] (!%p413_p9)   ;;  %v1497_v32 = vld [vmem:[%s1705_s21] sm:$0xff] (!%p413_p9)   ;;  %v1499_v34 = vld [vmem:[%s1705_s21 + $0x8] sm:$0xff] (!%p413_p9)  }
  0x2a   : > { %1356 = vmatpush3.bf16.msra.mxu1 (!%p413_p9), %v1483_v18  ;;  %1380 = vmatpush3.bf16.msra.mxu0 (!%p413_p9), %v1484_v19  ;;  %v1495_v30 = vld [vmem:[%s1705_s21 + $0x58] sm:$0xff] (!%p413_p9)   ;;  %v1498_v33 = vld [vmem:[%s1705_s21 + $0x60] sm:$0xff] (!%p413_p9)   ;;  %v1500_v35 = vld [vmem:[%s1705_s21 + $0x68] sm:$0xff] (!%p413_p9)  }
  0x2b   : > { %1365 = vmatprep.subr.bf16.mxu1 (!%p413_p9), %v1488_v23  ;;  %1389 = vmatprep.subr.bf16.mxu0 (!%p413_p9), %v1490_v25  ;;  %v1501_v36 = vld [vmem:[%s1705_s21 + $0x10] sm:$0xff] (!%p413_p9)   ;;  %v1503_v38 = vld [vmem:[%s1705_s21 + $0x18] sm:$0xff] (!%p413_p9)  }
  0x2c   : > { %v1502_v37 = vld [vmem:[%s1705_s21 + $0x70] sm:$0xff]   ;;  %v1504_v39 = vld [vmem:[%s1705_s21 + $0x78] sm:$0xff]   ;;  %s1877_s24 = smov (!%p463_p10, %s1563_s24), 1  ;;  %s1879_s11 = smov (!%p465_p11, %s1266_s11), 31 }
  0x2d   : > { %1358 = vmatmul.mubr.msk.bf16.vlgmr.msra.gmra.mrb[0].mxu1 %vm556_vm0, %v1487_v22  ;;  %1382 = vmatmul.mubr.msk.bf16.vlgmr.msra.gmra.mrb[0].mxu0 %vm556_vm0, %v1489_v24  ;;  %s1267_s12 = sshll.u32 %s1877_s24, 5 }
  0x2e   : > { %1366 = vmatpush3.bf16.msra.mxu1 %v1488_v23  ;;  %1390 = vmatpush3.bf16.msra.mxu0 %v1490_v25  ;;  %s1754_s13 = sadd.s32 %s1267_s12, %s1879_s11 }
  0x2f   : > { %1361 = vmatprep.mubr.msk.bf16.mxu1 %vm556_vm0, %v1491_v26  ;;  %1385 = vmatprep.mubr.msk.bf16.mxu0 %vm556_vm0, %v1492_v27  ;;  %s1268_s14 = sshll.u32 %s1754_s13, 3 }
  0x30   : > { %1367 = vmatprep.subr.bf16.mxu1 %v1494_v29  ;;  %1391 = vmatprep.subr.bf16.mxu0 %v1496_v31  ;;  %s1762_s21 = scalar_lea.vmem %s1858_s1, %s1268_s14  ;;  %s1819_s8 = scalar_lea.vmem %s1863_s6, %s1268_s14 }
  0x31   : > { %v1004_v50 = vld [vmem:[%s1762_s21 + $0x10] sm:$0xff]  ;;  %v1002_v54 = vld [vmem:[%s1762_s21] sm:$0xff]  ;;  %v1005_v61 = vld [vmem:[%s1762_s21 + $0x18] sm:$0xff] }
  0x32   : > { %1368 = vmatpush3.bf16.msra.mxu1 %v1494_v29  ;;  %1392 = vmatpush3.bf16.msra.mxu0 %v1496_v31  ;;  %v1003_v63 = vld [vmem:[%s1762_s21 + $0x8] sm:$0xff]  ;;  %v1006_v12 = vld [vmem:[%s1762_s21 + $0x20] sm:$0xff]  ;;  %v1008_v19 = vld [vmem:[%s1762_s21 + $0x30] sm:$0xff] }
  0x33   : > { %v1007_v15 = vld [vmem:[%s1762_s21 + $0x28] sm:$0xff]  ;;  %v1009_v22 = vld [vmem:[%s1762_s21 + $0x38] sm:$0xff] }
  0x35   : > { %1362 = vmatmul.mubr.msk.bf16.gmra.mrb[4].mxu1 %vm556_vm0, %v1493_v28  ;;  %1386 = vmatmul.mubr.msk.bf16.gmra.mrb[4].mxu0 %vm556_vm0, %v1495_v30 }
  0x36   : > { %1369 = vmatprep.mubr.msk.bf16.mxu1 %vm556_vm0, %v1497_v32  ;;  %1393 = vmatprep.mubr.msk.bf16.mxu0 %vm556_vm0, %v1498_v33 }
  0x3d   : > { %1370 = vmatmul.mubr.msk.bf16.vlgmr.msra.gmra.mrb[0].mxu1 %vm556_vm0, %v1499_v34  ;;  %1394 = vmatmul.mubr.msk.bf16.vlgmr.msra.gmra.mrb[0].mxu0 %vm556_vm0, %v1500_v35 }
  0x3e   : > { %1373 = vmatprep.mubr.msk.bf16.mxu1 %vm556_vm0, %v1501_v36  ;;  %1397 = vmatprep.mubr.msk.bf16.mxu0 %vm556_vm0, %v1502_v37 }
  0x45   : > { %1374 = vmatmul.mubr.msk.bf16.gmra.mrb[4].mxu1 %vm556_vm0, %v1503_v38  ;;  %1398 = vmatmul.mubr.msk.bf16.gmra.mrb[4].mxu0 %vm556_vm0, %v1504_v39 }
 0x110   : > { %v1371_v40 = vpop.f32.mrb[0].mxu1  ;;  %v1395_v41 = vpop.f32.mrb[0].mxu0 }
 0x111   : > { %v712_v43 = vpop.f32.mrb[1].mxu1  ;;  %v1401_v44 = vadd.f32 %v1395_v41, %v1371_v40  ;;  %v948_v45 = vpop.f32.mrb[1].mxu0 }
 0x112   : > { %v1372_v46 = vpop.f32.mrb[2].mxu1  ;;  %v1402_v47 = vadd.f32 %v948_v45, %v712_v43  ;;  %v1396_v48 = vpop.f32.mrb[2].mxu0 }
 0x113   : > { %v715_v49 = vpop.f32.mrb[3].mxu1  ;;  %v996_v51 = vadd.f32 %v1401_v44, %v1324_v42  ;;  %v1403_v52 = vadd.f32 %v1396_v48, %v1372_v46  ;;  %v951_v53 = vpop.f32.mrb[3].mxu0 }
 0x114   : > { %v994_v55 = vadd.f32 %v1402_v47, %v1324_v42  ;;  %v1404_v56 = vadd.f32 %v951_v53, %v715_v49 }
 0x115   : > { %v997_v57 = vadd.f32 %v1403_v52, %v1324_v42  ;;  %v1012_v58 = vadd.f32 %v1004_v50, %v996_v51 }
 0x116   : > { %v995_v59 = vadd.f32 %v1404_v56, %v1324_v42  ;;  %v1010_v60 = vadd.f32 %v1002_v54, %v994_v55 }
 0x117   : > { %1022 = vadd.xlane.f32.xlu1 %v1012_v58  ;;  %v1013_v5 = vadd.f32 %v1005_v61, %v997_v57 }
 0x118   : > { %v1375_v62 = vpop.f32.mrb[4].mxu1  ;;  %v1399_v0 = vpop.f32.mrb[4].mxu0  ;;  %1018 = vadd.xlane.f32.xlu0 %v1010_v60  ;;  %v1011_v9 = vadd.f32 %v1003_v63, %v995_v59 }
 0x119   : > { %v728_v1 = vpop.f32.mrb[5].mxu1  ;;  %v1405_v2 = vadd.f32 %v1399_v0, %v1375_v62  ;;  %v964_v3 = vpop.f32.mrb[5].mxu0 }
 0x11a   : > { %v1376_v4 = vpop.f32.mrb[6].mxu1  ;;  %v1406_v6 = vadd.f32 %v964_v3, %v728_v1  ;;  %v1400_v7 = vpop.f32.mrb[6].mxu0 }
 0x11b   : > { %v731_v8 = vpop.f32.mrb[7].mxu1  ;;  %v1407_v10 = vadd.f32 %v1400_v7, %v1376_v4  ;;  %v967_v11 = vpop.f32.mrb[7].mxu0  ;;  %1024 = vadd.xlane.f32.xlu1 %v1013_v5  ;;  %v1000_v16 = vadd.f32 %v1405_v2, %v1324_v42 }
 0x11c   : > { %v998_v13 = vadd.f32 %v1406_v6, %v1324_v42  ;;  %v1408_v14 = vadd.f32 %v967_v11, %v731_v8  ;;  %1020 = vadd.xlane.f32.xlu0 %v1011_v9 }
 0x11d   : > { %v1001_v20 = vadd.f32 %v1407_v10, %v1324_v42  ;;  %v1016_v23 = vadd.f32 %v1008_v19, %v1000_v16 }
 0x11e   : > { %v999_v17 = vadd.f32 %v1408_v14, %v1324_v42  ;;  %v1014_v18 = vadd.f32 %v1006_v12, %v998_v13  ;;  %v1325_v13 = vld [vmem:[%s1861_s4] ss:$0 sm:$0xff] }
 0x11f   : > { %v1017_v24 = vadd.f32 %v1009_v22, %v1001_v20 }
 0x120   : > { %1026 = vadd.xlane.f32.xlu0 %v1014_v18  ;;  %v1015_v21 = vadd.f32 %v1007_v15, %v999_v17 }
 0x122   : > { %1028 = vadd.xlane.f32.xlu1 %v1015_v21 }
 0x124   : > { %1030 = vadd.xlane.f32.xlu0 %v1016_v23 }
 0x126   : > { %1032 = vadd.xlane.f32.xlu1 %v1017_v24 }
 0x1a4   : > { %v1023_v25 = vpop.xlane.xlu1 %1022 }
 0x1a5   : > { %v1037_v26 = vmul.f32 0.0078125, %v1023_v25  ;;  %v1019_v27 = vpop.xlane.xlu0 %1018 }
 0x1a6   : > { %v1035_v28 = vmul.f32 0.0078125, %v1019_v27 }
 0x1a7   : > { %v1775_v29 = vsub.f32 %v1012_v58, %v1037_v26 }
 0x1a8   : > { %v1025_v30 = vpop.xlane.xlu1 %1024  ;;  %v1777_v31 = vsub.f32 %v1010_v60, %v1035_v28 }
 0x1a9   : > { %v1038_v32 = vmul.f32 0.0078125, %v1025_v30  ;;  %v1021_v33 = vpop.xlane.xlu0 %1020  ;;  %v1053_v34 = vmul.f32 %v1775_v29, %v1775_v29 }
 0x1aa   : > { %v1036_v35 = vmul.f32 0.0078125, %v1021_v33  ;;  %v1051_v39 = vmul.f32 %v1777_v31, %v1777_v31 }
 0x1ab   : > { %v1781_v36 = vsub.f32 %v1013_v5, %v1038_v32  ;;  %1063 = vadd.xlane.f32.xlu0 %v1053_v34 }
 0x1ac   : > { %v1783_v37 = vsub.f32 %v1011_v9, %v1036_v35 }
 0x1ad   : > { %v1027_v38 = vpop.xlane.xlu0 %1026  ;;  %v1054_v40 = vmul.f32 %v1781_v36, %v1781_v36 }
 0x1ae   : > { %v1039_v41 = vmul.f32 0.0078125, %v1027_v38  ;;  %v1052_v46 = vmul.f32 %v1783_v37, %v1783_v37 }
 0x1af   : > { %1059 = vadd.xlane.f32.xlu0 %v1051_v39  ;;  %1065 = vadd.xlane.f32.xlu1 %v1054_v40  ;;  %v1029_v42 = vpop.xlane.xlu1 %1028 }
 0x1b0   : > { %v1789_v43 = vsub.f32 %v1014_v18, %v1039_v41  ;;  %v1040_v44 = vmul.f32 0.0078125, %v1029_v42  ;;  %v1326_v18 = vld [vmem:[%s1862_s5] ss:$0 sm:$0xff] }
 0x1b1   : > { %v1031_v45 = vpop.xlane.xlu0 %1030 }
 0x1b2   : > { %v1793_v47 = vsub.f32 %v1015_v21, %v1040_v44  ;;  %v1041_v48 = vmul.f32 0.0078125, %v1031_v45  ;;  %v1055_v49 = vmul.f32 %v1789_v43, %v1789_v43 }
 0x1b3   : > { %1061 = vadd.xlane.f32.xlu1 %v1052_v46  ;;  %v1033_v50 = vpop.xlane.xlu1 %1032 }
 0x1b4   : > { %v1797_v51 = vsub.f32 %v1016_v23, %v1041_v48  ;;  %v1042_v52 = vmul.f32 0.0078125, %v1033_v50  ;;  %1067 = vadd.xlane.f32.xlu0 %v1055_v49  ;;  %v1056_v53 = vmul.f32 %v1793_v47, %v1793_v47 }
 0x1b6   : > { %v1801_v54 = vsub.f32 %v1017_v24, %v1042_v52  ;;  %v1057_v55 = vmul.f32 %v1797_v51, %v1797_v51 }
 0x1b7   : > { %1069 = vadd.xlane.f32.xlu1 %v1056_v53 }
 0x1b8   : > { %1071 = vadd.xlane.f32.xlu0 %v1057_v55  ;;  %v1058_v56 = vmul.f32 %v1801_v54, %v1801_v54 }
 0x1bb   : > { %1073 = vadd.xlane.f32.xlu1 %v1058_v56 }
 0x238   : > { %v1064_v57 = vpop.xlane.xlu0 %1063 }
 0x239   : > { %v1077_v58 = vmul.f32 0.0078125, %v1064_v57 }
 0x23b   : > { %v1085_v59 = vadd.f32 1e-05, %v1077_v58 }
 0x23c   : > { %v1060_v60 = vpop.xlane.xlu0 %1059  ;;  %v1066_v61 = vpop.xlane.xlu1 %1065 }
 0x23d   : > { %1505 = vrsqrt.f32 %v1085_v59  ;;  %v1075_v62 = vmul.f32 0.0078125, %v1060_v60  ;;  %v1078_v63 = vmul.f32 0.0078125, %v1066_v61 }
 0x23f   : > { %v1083_v0 = vadd.f32 1e-05, %v1075_v62  ;;  %v1086_v1 = vadd.f32 1e-05, %v1078_v63 }
 0x240   : > { %v1062_v2 = vpop.xlane.xlu1 %1061 }
 0x241   : > { %1507 = vrsqrt.f32 %v1083_v0  ;;  %v1076_v3 = vmul.f32 0.0078125, %v1062_v2  ;;  %v1068_v4 = vpop.xlane.xlu0 %1067 }
 0x242   : > { %1509 = vrsqrt.f32 %v1086_v1  ;;  %v1079_v5 = vmul.f32 0.0078125, %v1068_v4 }
 0x243   : > { %v1084_v6 = vadd.f32 1e-05, %v1076_v3 }
 0x244   : > { %v1087_v7 = vadd.f32 1e-05, %v1079_v5  ;;  %v1070_v8 = vpop.xlane.xlu1 %1069 }
 0x245   : > { %1511 = vrsqrt.f32 %v1084_v6  ;;  %v1080_v9 = vmul.f32 0.0078125, %v1070_v8  ;;  %v1072_v10 = vpop.xlane.xlu0 %1071 }
 0x246   : > { %1513 = vrsqrt.f32 %v1087_v7  ;;  %v1081_v11 = vmul.f32 0.0078125, %v1072_v10 }
 0x247   : > { %v1506_v12 = vpop.eup %1505  ;;  %v1088_v14 = vadd.f32 1e-05, %v1080_v9 }
 0x248   : > { %v1101_v15 = vmul.f32 %v1506_v12, %v1775_v29  ;;  %v1089_v16 = vadd.f32 1e-05, %v1081_v11  ;;  %v1074_v17 = vpop.xlane.xlu1 %1073 }
 0x249   : > { %1515 = vrsqrt.f32 %v1088_v14  ;;  %v1082_v19 = vmul.f32 0.0078125, %v1074_v17 }
 0x24a   : > { %v1116_v20 = vmul.f32 %v1325_v13, %v1101_v15  ;;  %1517 = vrsqrt.f32 %v1089_v16 }
 0x24b   : > { %v1508_v21 = vpop.eup %1507  ;;  %v1090_v22 = vadd.f32 1e-05, %v1082_v19 }
 0x24c   : > { %v1510_v23 = vpop.eup %1509  ;;  %v1131_v24 = vadd.f32 %v1326_v18, %v1116_v20  ;;  %v1099_v25 = vmul.f32 %v1508_v21, %v1777_v31 }
 0x24d   : > { %v1102_v26 = vmul.f32 %v1510_v23, %v1781_v36  ;;  %1519 = vrsqrt.f32 %v1090_v22 }
 0x24e   : > { %1139 = vst [vmem:[%s1819_s8 + $0x10] sm:$0xff] %v1131_v24  ;;  %v1114_v27 = vmul.f32 %v1325_v13, %v1099_v25 }
 0x24f   : > { %v1512_v28 = vpop.eup %1511  ;;  %v1117_v29 = vmul.f32 %v1325_v13, %v1102_v26 }
 0x250   : > { %v1514_v30 = vpop.eup %1513  ;;  %v1129_v32 = vadd.f32 %v1326_v18, %v1114_v27  ;;  %v1100_v33 = vmul.f32 %v1512_v28, %v1783_v37 }
 0x251   : > { %v1132_v34 = vadd.f32 %v1326_v18, %v1117_v29  ;;  %v1103_v35 = vmul.f32 %v1514_v30, %v1789_v43 }
 0x252   : > { %1137 = vst [vmem:[%s1819_s8] sm:$0xff] %v1129_v32  ;;  %v1115_v38 = vmul.f32 %v1325_v13, %v1100_v33 }
 0x253   : > { %v1516_v39 = vpop.eup %1515  ;;  %1140 = vst [vmem:[%s1819_s8 + $0x18] sm:$0xff] %v1132_v34  ;;  %v1118_v31 = vmul.f32 %v1325_v13, %v1103_v35 }
 0x254   : > { %v1518_v36 = vpop.eup %1517  ;;  %v1130_v40 = vadd.f32 %v1326_v18, %v1115_v38  ;;  %v1104_v41 = vmul.f32 %v1516_v39, %v1793_v47 }
 0x255   : > { %v1133_v42 = vadd.f32 %v1326_v18, %v1118_v31  ;;  %v1105_v44 = vmul.f32 %v1518_v36, %v1797_v51 }
 0x256   : > { %1138 = vst [vmem:[%s1819_s8 + $0x8] sm:$0xff] %v1130_v40  ;;  %v1119_v37 = vmul.f32 %v1325_v13, %v1104_v41 }
 0x257   : > { %v1520_v45 = vpop.eup %1519  ;;  %1141 = vst [vmem:[%s1819_s8 + $0x20] sm:$0xff] %v1133_v42  ;;  %v1120_v43 = vmul.f32 %v1325_v13, %v1105_v44 }
 0x258   : > { %v1134_v46 = vadd.f32 %v1326_v18, %v1119_v37  ;;  %v1106_v48 = vmul.f32 %v1520_v45, %v1801_v54 }
 0x259   : > { %v1135_v49 = vadd.f32 %v1326_v18, %v1120_v43 }
 0x25a   : > { %1142 = vst [vmem:[%s1819_s8 + $0x28] sm:$0xff] %v1134_v46  ;;  %v1121_v50 = vmul.f32 %v1325_v13, %v1106_v48 }
 0x25b   : > { %1143 = vst [vmem:[%s1819_s8 + $0x30] sm:$0xff] %v1135_v49 }
 0x25c   : > { %v1136_v52 = vadd.f32 %v1326_v18, %v1121_v50 }
 0x25e   : > { %1144 = vst [vmem:[%s1819_s8 + $0x38] sm:$0xff] %v1136_v52 }
 0x25f PF: > { %s16_s27 = sadd.s32 1, %s1575_s27   ;;  %s1864_s21 = smov %s1555_s22 }
 0x260   : > { %p13_p12 = scmp.ge.s32.totalorder %s16_s27, 10   ;;  %s1865_s22 = smov %s1663_s10 }
 0x261   : > { %s1866_s23 = smov %s1567_s25  ;;  %s1867_s24 = smov %s1571_s26 }
 0x262   : > { %s1868_s25 = smov %s1871_s28  ;;  %s1869_s26 = smov %s1875_s29 }
 0x263   :  { %15 = sbr.rel (!%p13_p12) target bundleno = 4 (0x4), region = 126 }

// kernel: transformer_decoder_layer.8
= control target key start
LH: loop header
LB: loop body
LE: loop exit
PB: predicated region body
PF: predicated region fallthrough
CT: control target
= control target key end

     0   :  { %s2060_s18 = smov 0   ;;  %s2062_s19 = smov 0   ;;  %s2737_s0 = inlined_call_operand.vmem [shape: f32[2,256,128], index: 0, kind: input, shape index: {}]   ;;  %s2738_s1 = inlined_call_operand.vmem [shape: bf16[128,384], index: 1, kind: input, shape index: {}]   ;;  %s2739_s2 = inlined_call_operand.vmem [shape: f32[1,384], index: 2, kind: input, shape index: {}]   ;;  %s2740_s3 = inlined_call_operand.vmem [shape: bf16[2,4,256,32], index: 3, kind: output, shape index: {0}]   ;;  %s2741_s4 = inlined_call_operand.vmem [shape: bf16[2,4,256,32], index: 4, kind: output, shape index: {1}]   ;;  %s2742_s5 = inlined_call_operand.vmem [shape: bf16[2,4,256,32], index: 5, kind: output, shape index: {2}]  }
   0x1   :  { %s2064_s20 = smov 0   ;;  %s2066_s21 = smov 0  }
   0x2   :  { %s2068_s22 = smov 0   ;;  %s2070_s23 = smov 0  }
   0x3   :  { %s2072_s24 = smov 0  }
   0x4 LB: > { %s25_s25 = sadd.s32 1, %s2016_s22  ;;  %s28_s26 = sadd.s32 1, %s2020_s23  ;;  %s2024_s24 = sphi %s2072_s24, %s16_s24   ;;  %s2020_s23 = sphi %s2070_s23, %s2749_s23   ;;  %s2016_s22 = sphi %s2068_s22, %s2748_s22   ;;  %s2012_s21 = sphi %s2066_s21, %s2747_s21   ;;  %s2008_s20 = sphi %s2064_s20, %s2746_s20   ;;  %s2004_s19 = sphi %s2062_s19, %s2745_s19   ;;  %s2000_s18 = sphi %s2060_s18, %s2744_s18  }
   0x5   : > { %p26_p0 = scmp.ge.s32.totalorder %s25_s25, 4  ;;  %s1673_s27 = sadd.s32 4294967295, %s2024_s24  }
   0x6   : > { %p117_p1 = scmp.ne.s32.totalorder %s2004_s19, %s2000_s18  ;;  %p118_p2 = scmp.eq.s32.totalorder %s1673_s27, 7 }
   0x7   : > { %s2751_s25 = smov (%p26_p0, %s25_s25), 0  ;;  %s2753_s26 = smov (!%p26_p0, %s28_s26), %s2020_s23 }
   0x8   : > { %s103_s28 = ssub.s32 %s2016_s22, %s2751_s25  ;;  %p30_p3 = scmp.ge.s32.totalorder %s2753_s26, 2 }
   0x9   : > { %p1677_p4 = scmp.ge.s32.totalorder %s2024_s24, 1  ;;  %p2104_p5 = por %p118_p2, %p117_p1 }
   0xa   : > { %p217_p6 = scmp.lt.s32.totalorder %s2024_s24, 9  ;;  %s2755_s26 = smov (%p30_p3, %s2753_s26), 0 }
   0xb   : > { %s102_s30 = ssub.s32 %s2020_s23, %s2755_s26  ;;  %s107_s7 = sadd.s32 1, %s2004_s19 }
   0xc   : > { %p218_p7 = pnand %p1677_p4, %p217_p6  ;;  %s104_s6 = sor.u32 %s103_s28, %s102_s30 }
   0xd   : > { %p105_p8 = scmp.eq.s32.totalorder %s104_s6, 0  ;;  %v1938_v0 = vld [vmem:[%s2738_s1 + $0x4] ss:$12 sps:$4 sm:$0xff] (!%p218_p7)   ;;  %s2120_s11 = sshll.u32 (!%p218_p7), %s2008_s20, 3  ;;  %v1940_v1 = vld [vmem:[%s2738_s1] ss:$12 sps:$4 sm:$0xff] (!%p218_p7)   ;;  %v316_v37 = vlaneseq (!%p218_p7) }
   0xe   : > { %221 = sbr.rel (%p218_p7) target bundleno = 545 (0x221), region = 32  ;;  %v2026_v2 = vmov (!%p218_p7), 0   ;;  %p257_p9 = scmp.lt.s32.totalorder (!%p218_p7), %s2012_s21, 1  ;;  %459 = vmatprep.subr.bf16.mxu0 (!%p218_p7), %v1938_v0  ;;  %v1941_v3 = vld [vmem:[%s2738_s1 + $0x1c] ss:$12 sps:$4 sm:$0xff] (!%p218_p7)   ;;  %vm637_vm0 = vcmask (!%p218_p7), 257024  }
   0xf   : > { %s2115_s8 = scalar_select %p105_p8, %s2004_s19, %s107_s7  }
  0x10   : > { %491 = vmatprep.mubr.bf16.mxu0 (!%p218_p7), %v2026_v2  ;;  %p259_p10 = scmp.lt.s32.totalorder (!%p218_p7), %s2120_s11, 31  ;;  %v1943_v4 = vld [vmem:[%s2738_s1 + $0x18] ss:$12 sps:$4 sm:$0xff] (!%p218_p7)   ;;  %460 = vmatpush1.bf16.msra.mxu0 (!%p218_p7), %v1940_v1  ;;  %v1944_v5 = vld [vmem:[%s2738_s1 + $0x8] ss:$12 sps:$4 sm:$0xff] (!%p218_p7)   ;;  %v317_v38 = vshrl.u32 (!%p218_p7), %v316_v37, 7 }
  0x11   : > { %461 = vmatprep.subr.bf16.mxu0 (!%p218_p7), %v1941_v3  ;;  %v1945_v6 = vld [vmem:[%s2738_s1 + $0x34] ss:$12 sps:$4 sm:$0xff] (!%p218_p7)   ;;  %1854 = vmatprep.subr.bf16.mxu1 (!%p218_p7), %v1944_v5  ;;  %v1947_v8 = vld [vmem:[%s2738_s1 + $0x30] ss:$12 sps:$4 sm:$0xff] (!%p218_p7)   ;;  %v1949_v9 = vld [vmem:[%s2738_s1 + $0x4c] ss:$12 sps:$4 sm:$0xff] (!%p218_p7)  }
  0x12   : > { %v1948_v7 = vld [vmem:[%s2738_s1 + $0x20] ss:$12 sps:$4 sm:$0xff] (!%p218_p7)   ;;  %1855 = vmatpush3.bf16.msra.mxu1 (!%p218_p7), %v1944_v5  ;;  %v1952_v10 = vld [vmem:[%s2738_s1 + $0x38] ss:$12 sps:$4 sm:$0xff] (!%p218_p7)   ;;  %v1951_v11 = vld [vmem:[%s2738_s1 + $0x48] ss:$12 sps:$4 sm:$0xff] (!%p218_p7)  }
  0x13   : > { %1856 = vmatprep.subr.bf16.mxu1 (!%p218_p7), %v1948_v7  ;;  %v1956_v12 = vld [vmem:[%s2738_s1 + $0x50] ss:$12 sps:$4 sm:$0xff] (!%p218_p7)   ;;  %v1955_v14 = vld [vmem:[%s2738_s1 + $0x60] ss:$12 sps:$4 sm:$0xff] (!%p218_p7)   ;;  %v1960_v15 = vld [vmem:[%s2738_s1 + $0x68] ss:$12 sps:$4 sm:$0xff] (!%p218_p7)  }
  0x14   : > { %462 = vmatpush1.bf16.msra.mxu0 (!%p218_p7), %v1943_v4  ;;  %v1953_v13 = vld [vmem:[%s2738_s1 + $0x64] ss:$12 sps:$4 sm:$0xff] (!%p218_p7)   ;;  %v1957_v16 = vld [vmem:[%s2738_s1 + $0x7c] ss:$12 sps:$4 sm:$0xff] (!%p218_p7)   ;;  %v1964_v20 = vld [vmem:[%s2738_s1 + $0x80] ss:$12 sps:$4 sm:$0xff] (!%p218_p7)  }
  0x15   : > { %s258_s28 = scalar_select %p257_p9, %s2012_s21, 1  ;;  %463 = vmatprep.subr.bf16.mxu0 %v1945_v6  ;;  %v1959_v19 = vld [vmem:[%s2738_s1 + $0x78] ss:$12 sps:$4 sm:$0xff]   ;;  %v1961_v22 = vld [vmem:[%s2738_s1 + $0x94] ss:$12 sps:$4 sm:$0xff]   ;;  %v318_v39 = vsub.s32 0, %v317_v38 }
  0x16   : > { %s260_s7 = scalar_select %p259_p10, %s2120_s11, 31  ;;  %1857 = vmatpush3.bf16.msra.mxu1 %v1948_v7  ;;  %v1963_v23 = vld [vmem:[%s2738_s1 + $0x90] ss:$12 sps:$4 sm:$0xff]   ;;  %v1968_v24 = vld [vmem:[%s2738_s1 + $0x98] ss:$12 sps:$4 sm:$0xff]   ;;  %v322_v41 = vsub.s32 1, %v317_v38 }
  0x17   : > { %s1682_s14 = sshll.u32 %s258_s28, 5  ;;  %1858 = vmatprep.subr.bf16.mxu1 %v1952_v10  ;;  %v1965_v25 = vld [vmem:[%s2738_s1 + $0xac] ss:$12 sps:$4 sm:$0xff]   ;;  %v1967_v26 = vld [vmem:[%s2738_s1 + $0xa8] ss:$12 sps:$4 sm:$0xff]   ;;  %s241_s15 = sand.u32 1, %s2000_s18  }
  0x18   : > { %s262_s27 = sadd.s32 %s1682_s14, %s260_s7  ;;  %464 = vmatpush1.bf16.msra.mxu0 %v1947_v8  ;;  %v1969_v27 = vld [vmem:[%s2738_s1 + $0xb0] ss:$12 sps:$4 sm:$0xff]   ;;  %v314_v40 = vld [vmem:[%s2739_s2] sm:$0x7]  ;;  %v326_v42 = vsub.s32 2, %v317_v38  ;;  %s2027_s7 = smov 96  }
  0x19   : > { %s1683_s10 = sshll.u32 %s262_s27, 3  ;;  %465 = vmatprep.subr.bf16.mxu0 %v1949_v9  ;;  %v2216_v43 = vrot.slane %v314_v40, %v318_v39  ;;  %v2218_v44 = vrot.slane %v314_v40, %v322_v41  ;;  %s2028_s16 = smov 64  }
  0x1a   : > { %1859 = vmatpush3.bf16.msra.mxu1 %v1952_v10  ;;  %s2169_s17 = scalar_lea.vmem %s2737_s0, %s1683_s10  ;;  %v2222_v46 = vrot.slane %v314_v40, %v326_v42  ;;  %s2029_s27 = smov 32  }
  0x1b   : > { %1860 = vmatprep.subr.bf16.mxu1 %v1956_v12  ;;  %v270_v17 = vld [vmem:[%s2169_s17] sm:$0xff]  ;;  %v271_v18 = vld [vmem:[%s2169_s17 + $0x8] sm:$0xff]  ;;  %v272_v28 = vld [vmem:[%s2169_s17 + $0x10] sm:$0xff]  ;;  %s1808_s30 = sshll.u32 (%p2104_p5), %s2012_s21, 7 }
  0x1c   : > { %466 = vmatpush1.bf16.msra.mxu0 %v1951_v11  ;;  %v278_v21 = vpack.c.bf16 %v271_v18, %v270_v17  ;;  %v273_v29 = vld [vmem:[%s2169_s17 + $0x18] sm:$0xff]  ;;  %v274_v30 = vld [vmem:[%s2169_s17 + $0x20] sm:$0xff]  ;;  %v275_v31 = vld [vmem:[%s2169_s17 + $0x28] sm:$0xff]  ;;  %s1032_s6 = sadd.s32 (%p2104_p5), %s1808_s30, %s2120_s11 }
  0x1d   : > { %467 = vmatprep.subr.bf16.mxu0 %v1953_v13  ;;  %v279_v32 = vpack.c.bf16 %v273_v29, %v272_v28  ;;  %v280_v33 = vpack.c.bf16 %v275_v31, %v274_v30  ;;  %v276_v34 = vld [vmem:[%s2169_s17 + $0x30] sm:$0xff]  ;;  %v277_v35 = vld [vmem:[%s2169_s17 + $0x38] sm:$0xff]  ;;  %s2220_s17 = sshll.u32 %s241_s15, 7  ;;  %s1809_s28 = sshll.u32 (%p2104_p5), %s1032_s6, 2 }
  0x1e   : > { %1861 = vmatpush3.bf16.msra.mxu1 %v1956_v12  ;;  %1870 = vmatprep.mubr.bf16.mxu1 %v278_v21  ;;  %v281_v36 = vpack.c.bf16 %v277_v35, %v276_v34  ;;  %s2232_s18 = scalar_lea.vmem [#allocation2], %s2220_s17  ;;  %s2241_s14 = scalar_lea.vmem [#allocation3], %s2220_s17 }
  0x1f   : > { %1862 = vmatprep.subr.bf16.mxu1 %v1960_v15  ;;  %s2263_s20 = scalar_lea.vmem [#allocation4], %s2220_s17  ;;  %s1034_s12 = scalar_lea.vmem (%p2104_p5), %s2740_s3, %s1809_s28 }
  0x20   : > { %468 = vmatpush1.bf16.msra.mxu0 %v1955_v14 }
  0x21   : > { %469 = vmatprep.subr.bf16.mxu0 %v1957_v16 }
  0x22   : > { %1863 = vmatpush3.bf16.msra.mxu1 %v1960_v15 }
  0x23   : > { %1864 = vmatprep.subr.bf16.mxu1 %v1964_v20 }
  0x24   : > { %470 = vmatpush1.bf16.msra.mxu0 %v1959_v19 }
  0x25   : > { %471 = vmatprep.subr.bf16.mxu0 %v1961_v22 }
  0x26   : > { %1865 = vmatpush3.bf16.msra.mxu1 %v1964_v20 }
  0x27   : > { %1866 = vmatprep.subr.bf16.mxu1 %v1968_v24 }
  0x28   : > { %472 = vmatpush1.bf16.msra.mxu0 %v1963_v23 }
  0x29   : > { %473 = vmatprep.subr.bf16.mxu0 %v1965_v25 }
  0x2a   : > { %1867 = vmatpush3.bf16.msra.mxu1 %v1968_v24 }
  0x2b   : > { %1868 = vmatprep.subr.bf16.mxu1 %v1969_v27 }
  0x2c   : > { %474 = vmatpush1.bf16.msra.mxu0 %v1967_v26 }
  0x2e   : > { %1869 = vmatpush3.bf16.msra.mxu1 %v1969_v27 }
  0x2f   : > { %492 = vmatmul.mubr.bf16.vlgmr.msra.gmra.mrb[0].mxu0 %v278_v21 }
  0x30   : > { %501 = vmatprep.mubr.bf16.mxu0 %v2026_v2 }
  0x31   : > { %1871 = vmatmul.mubr.bf16.vlgmr.msra.gmra.mrb[0].mxu1 %v279_v32 }
  0x32   : > { %1874 = vmatprep.mubr.bf16.mxu1 %v280_v33 }
  0x37   : > { %502 = vmatmul.mubr.bf16.gmra.mrb[4].mxu0 %v279_v32 }
  0x38   : > { %511 = vmatprep.mubr.bf16.mxu0 %v2026_v2 }
  0x39   : > { %1875 = vmatmul.mubr.bf16.gmra.mrb[4].mxu1 %v281_v36 }
  0x3f   : > { %512 = vmatmul.mubr.bf16.gmra.mrb[8].mxu0 %v280_v33 }
  0x40   : > { %521 = vmatprep.mubr.bf16.mxu0 %v2026_v2 }
  0x47   : > { %522 = vmatmul.mubr.bf16.gmra.mrb[12].mxu0 %v281_v36 }
 0x102   : > { %v493_v45 = vpop.f32.mrb[0].mxu0 }
 0x103   : > { %v494_v47 = vadd.f32 %v493_v45, %v2216_v43  ;;  %v495_v48 = vpop.f32.mrb[1].mxu0 }
 0x104   : > { %v496_v49 = vadd.f32 %v495_v48, %v2218_v44  ;;  %v497_v50 = vpop.f32.mrb[2].mxu0  ;;  %v1872_v54 = vpop.f32.mrb[0].mxu1 }
 0x105   : > { %v1818_v51 = vpack.c.bf16 %v494_v47, %v494_v47  ;;  %v498_v52 = vadd.f32 %v497_v50, %v2216_v43  ;;  %v499_v53 = vpop.f32.mrb[3].mxu0  ;;  %v575_v57 = vadd.f32 %v1872_v54, %v2222_v46  ;;  %v566_v58 = vpop.f32.mrb[1].mxu1 }
 0x106   : > { %v2227_v55 = vpack.c.bf16 %v496_v49, %v496_v49  ;;  %v500_v56 = vadd.f32 %v499_v53, %v2218_v44  ;;  %v567_v60 = vadd.f32 %v566_v58, %v2222_v46  ;;  %v1873_v61 = vpop.f32.mrb[2].mxu1 }
 0x107   : > { %638 = vst.msk [vmem:[%s2232_s18] sm:$0xf] %vm637_vm0, %v1818_v51  ;;  %v2236_v59 = vpack.c.bf16 %v498_v52, %v498_v52  ;;  %646 = vrot.lane.b32.xlu0 %v1818_v51, %s2027_s7  ;;  %v2248_v63 = vpack.c.bf16 %v575_v57, %v575_v57  ;;  %v578_v0 = vadd.f32 %v1873_v61, %v2222_v46  ;;  %v569_v1 = vpop.f32.mrb[3].mxu1 }
 0x108   : > { %773 = vst.msk [vmem:[%s2241_s14] sm:$0xf] %vm637_vm0, %v2227_v55  ;;  %v2246_v62 = vpack.c.bf16 %v500_v56, %v500_v56  ;;  %v2254_v2 = vpack.c.bf16 %v567_v60, %v567_v60  ;;  %v570_v3 = vadd.f32 %v569_v1, %v2222_v46 }
 0x109   : > { %639 = vst.msk [vmem:[%s2232_s18 + $0x4] sm:$0xf] %vm637_vm0, %v2236_v59  ;;  %681 = vrot.lane.b32.xlu1 %v2236_v59, %s2028_s16  ;;  %910 = vst.msk [vmem:[%s2263_s20 + $0x8] sm:$0xf] %vm637_vm0, %v2248_v63  ;;  %v1837_v4 = vpack.c.bf16 %v578_v0, %v578_v0 }
 0x10a   : > { %774 = vst.msk [vmem:[%s2241_s14 + $0x4] sm:$0xf] %vm637_vm0, %v2246_v62  ;;  %v503_v5 = vpop.f32.mrb[4].mxu0  ;;  %908 = vst.msk [vmem:[%s2263_s20] sm:$0xf] %vm637_vm0, %v2254_v2  ;;  %v2271_v6 = vpack.c.bf16 %v570_v3, %v570_v3 }
 0x10b   : > { %679 = vrot.lane.b32.xlu0 %v1818_v51, %s2028_s16  ;;  %v504_v7 = vadd.f32 %v503_v5, %v2216_v43  ;;  %v505_v8 = vpop.f32.mrb[5].mxu0  ;;  %911 = vst.msk [vmem:[%s2263_s20 + $0xc] sm:$0xf] %vm637_vm0, %v1837_v4 }
 0x10c   : > { %v506_v9 = vadd.f32 %v505_v8, %v2218_v44  ;;  %v507_v10 = vpop.f32.mrb[6].mxu0  ;;  %909 = vst.msk [vmem:[%s2263_s20 + $0x4] sm:$0xf] %vm637_vm0, %v2271_v6  ;;  %v1876_v14 = vpop.f32.mrb[4].mxu1 }
 0x10d   : > { %714 = vrot.lane.b32.xlu1 %v2236_v59, %s2029_s27  ;;  %v2283_v11 = vpack.c.bf16 %v504_v7, %v504_v7  ;;  %v508_v12 = vadd.f32 %v507_v10, %v2216_v43  ;;  %v509_v13 = vpop.f32.mrb[7].mxu0  ;;  %v591_v17 = vadd.f32 %v1876_v14, %v2222_v46  ;;  %v582_v18 = vpop.f32.mrb[5].mxu1 }
 0x10e   : > { %v2286_v15 = vpack.c.bf16 %v506_v9, %v506_v9  ;;  %v510_v16 = vadd.f32 %v509_v13, %v2218_v44  ;;  %v583_v20 = vadd.f32 %v582_v18, %v2222_v46  ;;  %v1877_v21 = vpop.f32.mrb[6].mxu1 }
 0x10f   : > { %712 = vrot.lane.b32.xlu0 %v1818_v51, %s2029_s27  ;;  %640 = vst.msk [vmem:[%s2232_s18 + $0x8] sm:$0xf] %vm637_vm0, %v2283_v11  ;;  %v2294_v19 = vpack.c.bf16 %v508_v12, %v508_v12  ;;  %v2302_v23 = vpack.c.bf16 %v591_v17, %v591_v17  ;;  %v594_v24 = vadd.f32 %v1877_v21, %v2222_v46  ;;  %v585_v25 = vpop.f32.mrb[7].mxu1 }
 0x110   : > { %775 = vst.msk [vmem:[%s2241_s14 + $0x8] sm:$0xf] %vm637_vm0, %v2286_v15  ;;  %v2300_v22 = vpack.c.bf16 %v510_v16, %v510_v16  ;;  %v2309_v26 = vpack.c.bf16 %v583_v20, %v583_v20  ;;  %v586_v27 = vadd.f32 %v585_v25, %v2222_v46 }
 0x111   : > { %922 = vrot.lane.b32.xlu1 %v1837_v4, %s2027_s7  ;;  %641 = vst.msk [vmem:[%s2232_s18 + $0xc] sm:$0xf] %vm637_vm0, %v2294_v19  ;;  %914 = vst.msk [vmem:[%s2263_s20 + $0x18] sm:$0xf] %vm637_vm0, %v2302_v23  ;;  %v2318_v28 = vpack.c.bf16 %v594_v24, %v594_v24 }
 0x112   : > { %776 = vst.msk [vmem:[%s2241_s14 + $0xc] sm:$0xf] %vm637_vm0, %v2300_v22  ;;  %v513_v29 = vpop.f32.mrb[8].mxu0  ;;  %912 = vst.msk [vmem:[%s2263_s20 + $0x10] sm:$0xf] %vm637_vm0, %v2309_v26  ;;  %v2325_v30 = vpack.c.bf16 %v586_v27, %v586_v27 }
 0x113   : > { %920 = vrot.lane.b32.xlu0 %v2248_v63, %s2027_s7  ;;  %v514_v31 = vadd.f32 %v513_v29, %v2216_v43  ;;  %v515_v32 = vpop.f32.mrb[9].mxu0  ;;  %915 = vst.msk [vmem:[%s2263_s20 + $0x1c] sm:$0xf] %vm637_vm0, %v2318_v28 }
 0x114   : > { %v516_v33 = vadd.f32 %v515_v32, %v2218_v44  ;;  %v517_v34 = vpop.f32.mrb[10].mxu0  ;;  %913 = vst.msk [vmem:[%s2263_s20 + $0x14] sm:$0xf] %vm637_vm0, %v2325_v30 }
 0x115   : > { %955 = vrot.lane.b32.xlu1 %v1837_v4, %s2028_s16  ;;  %v2336_v35 = vpack.c.bf16 %v514_v31, %v514_v31  ;;  %v518_v36 = vadd.f32 %v517_v34, %v2216_v43  ;;  %v519_v37 = vpop.f32.mrb[11].mxu0 }
 0x116   : > { %v2339_v38 = vpack.c.bf16 %v516_v33, %v516_v33  ;;  %v520_v39 = vadd.f32 %v519_v37, %v2218_v44 }
 0x117   : > { %953 = vrot.lane.b32.xlu0 %v2248_v63, %s2028_s16  ;;  %642 = vst.msk [vmem:[%s2232_s18 + $0x10] sm:$0xf] %vm637_vm0, %v2336_v35  ;;  %v1823_v40 = vpack.c.bf16 %v518_v36, %v518_v36 }
 0x118   : > { %777 = vst.msk [vmem:[%s2241_s14 + $0x10] sm:$0xf] %vm637_vm0, %v2339_v38  ;;  %v2350_v41 = vpack.c.bf16 %v520_v39, %v520_v39 }
 0x119   : > { %988 = vrot.lane.b32.xlu1 %v1837_v4, %s2029_s27  ;;  %643 = vst.msk [vmem:[%s2232_s18 + $0x14] sm:$0xf] %vm637_vm0, %v1823_v40 }
 0x11a   : > { %778 = vst.msk [vmem:[%s2241_s14 + $0x14] sm:$0xf] %vm637_vm0, %v2350_v41  ;;  %v523_v42 = vpop.f32.mrb[12].mxu0 }
 0x11b   : > { %986 = vrot.lane.b32.xlu0 %v2248_v63, %s2029_s27  ;;  %v524_v45 = vadd.f32 %v523_v42, %v2216_v43  ;;  %v525_v46 = vpop.f32.mrb[13].mxu0 }
 0x11c   : > { %v526_v47 = vadd.f32 %v525_v46, %v2218_v44  ;;  %v527_v48 = vpop.f32.mrb[14].mxu0 }
 0x11d   : > { %783 = vrot.lane.b32.xlu1 %v2246_v62, %s2027_s7  ;;  %v2364_v49 = vpack.c.bf16 %v524_v45, %v524_v45  ;;  %v528_v50 = vadd.f32 %v527_v48, %v2216_v43  ;;  %v529_v51 = vpop.f32.mrb[15].mxu0 }
 0x11e   : > { %v2367_v52 = vpack.c.bf16 %v526_v47, %v526_v47  ;;  %v530_v53 = vadd.f32 %v529_v51, %v2218_v44 }
 0x11f   : > { %781 = vrot.lane.b32.xlu0 %v2227_v55, %s2027_s7  ;;  %644 = vst.msk [vmem:[%s2232_s18 + $0x18] sm:$0xf] %vm637_vm0, %v2364_v49  ;;  %v2375_v54 = vpack.c.bf16 %v528_v50, %v528_v50 }
 0x120   : > { %779 = vst.msk [vmem:[%s2241_s14 + $0x18] sm:$0xf] %vm637_vm0, %v2367_v52  ;;  %v2380_v56 = vpack.c.bf16 %v530_v53, %v530_v53 }
 0x121   : > { %816 = vrot.lane.b32.xlu1 %v2246_v62, %s2028_s16  ;;  %645 = vst.msk [vmem:[%s2232_s18 + $0x1c] sm:$0xf] %vm637_vm0, %v2375_v54 }
 0x122   : > { %780 = vst.msk [vmem:[%s2241_s14 + $0x1c] sm:$0xf] %vm637_vm0, %v2380_v56 }
 0x123   : > { %814 = vrot.lane.b32.xlu0 %v2227_v55, %s2028_s16 }
 0x125   : > { %849 = vrot.lane.b32.xlu1 %v2246_v62, %s2029_s27 }
 0x127   : > { %847 = vrot.lane.b32.xlu0 %v2227_v55, %s2029_s27 }
 0x129   : > { %918 = vrot.lane.b32.xlu1 %v2271_v6, %s2027_s7 }
 0x12b   : > { %916 = vrot.lane.b32.xlu0 %v2254_v2, %s2027_s7 }
 0x12d   : > { %951 = vrot.lane.b32.xlu1 %v2271_v6, %s2028_s16 }
 0x12f   : > { %949 = vrot.lane.b32.xlu0 %v2254_v2, %s2028_s16 }
 0x131   : > { %984 = vrot.lane.b32.xlu1 %v2271_v6, %s2029_s27 }
 0x133   : > { %982 = vrot.lane.b32.xlu0 %v2254_v2, %s2029_s27 }
 0x135   : > { %650 = vrot.lane.b32.xlu1 %v2283_v11, %s2027_s7 }
 0x137   : > { %648 = vrot.lane.b32.xlu0 %v2236_v59, %s2027_s7 }
 0x139   : > { %652 = vrot.lane.b32.xlu1 %v2294_v19, %s2027_s7 }
 0x13b   : > { %683 = vrot.lane.b32.xlu0 %v2283_v11, %s2028_s16 }
 0x13d   : > { %685 = vrot.lane.b32.xlu1 %v2294_v19, %s2028_s16 }
 0x13f   : > { %716 = vrot.lane.b32.xlu0 %v2283_v11, %s2029_s27 }
 0x141   : > { %718 = vrot.lane.b32.xlu1 %v2294_v19, %s2029_s27 }
 0x143   : > { %928 = vrot.lane.b32.xlu0 %v2302_v23, %s2027_s7 }
 0x145   : > { %930 = vrot.lane.b32.xlu1 %v2318_v28, %s2027_s7 }
 0x147   : > { %961 = vrot.lane.b32.xlu0 %v2302_v23, %s2028_s16 }
 0x149   : > { %963 = vrot.lane.b32.xlu1 %v2318_v28, %s2028_s16 }
 0x14b   : > { %785 = vrot.lane.b32.xlu0 %v2286_v15, %s2027_s7 }
 0x14d   : > { %787 = vrot.lane.b32.xlu1 %v2300_v22, %s2027_s7 }
 0x14f   : > { %818 = vrot.lane.b32.xlu0 %v2286_v15, %s2028_s16 }
 0x151   : > { %820 = vrot.lane.b32.xlu1 %v2300_v22, %s2028_s16 }
 0x153   : > { %851 = vrot.lane.b32.xlu0 %v2286_v15, %s2029_s27 }
 0x155   : > { %853 = vrot.lane.b32.xlu1 %v2300_v22, %s2029_s27 }
 0x157   : > { %924 = vrot.lane.b32.xlu0 %v2309_v26, %s2027_s7 }
 0x159   : > { %926 = vrot.lane.b32.xlu1 %v2325_v30, %s2027_s7 }
 0x15b   : > { %957 = vrot.lane.b32.xlu0 %v2309_v26, %s2028_s16 }
 0x15d   : > { %959 = vrot.lane.b32.xlu1 %v2325_v30, %s2028_s16 }
 0x15f   : > { %990 = vrot.lane.b32.xlu0 %v2309_v26, %s2029_s27 }
 0x161   : > { %992 = vrot.lane.b32.xlu1 %v2325_v30, %s2029_s27 }
 0x163   : > { %654 = vrot.lane.b32.xlu0 %v2336_v35, %s2027_s7 }
 0x165   : > { %656 = vrot.lane.b32.xlu1 %v1823_v40, %s2027_s7 }
 0x167   : > { %687 = vrot.lane.b32.xlu0 %v2336_v35, %s2028_s16 }
 0x169   : > { %689 = vrot.lane.b32.xlu1 %v1823_v40, %s2028_s16 }
 0x16b   : > { %720 = vrot.lane.b32.xlu0 %v2336_v35, %s2029_s27 }
 0x16d   : > { %722 = vrot.lane.b32.xlu1 %v1823_v40, %s2029_s27 }
 0x16f   : > { %789 = vrot.lane.b32.xlu0 %v2339_v38, %s2027_s7 }
 0x171   : > { %791 = vrot.lane.b32.xlu1 %v2350_v41, %s2027_s7 }
 0x173   : > { %822 = vrot.lane.b32.xlu0 %v2339_v38, %s2028_s16 }
 0x175   : > { %824 = vrot.lane.b32.xlu1 %v2350_v41, %s2028_s16 }
 0x177   : > { %855 = vrot.lane.b32.xlu0 %v2339_v38, %s2029_s27 }
 0x179   : > { %857 = vrot.lane.b32.xlu1 %v2350_v41, %s2029_s27  ;;  %v647_v43 = vpop.permute.xlu0 %646 }
 0x17a   : > { %1716 = vst.msk [vmem:[%s2232_s18 + $0x20] sm:$0xf] %vm637_vm0, %v647_v43 }
 0x17b   : > { %v682_v44 = vpop.permute.xlu1 %681  ;;  %658 = vrot.lane.b32.xlu0 %v2364_v49, %s2027_s7 }
 0x17c   : > { %1725 = vst.msk [vmem:[%s2232_s18 + $0x44] sm:$0xf] %vm637_vm0, %v682_v44 }
 0x17d   : > { %660 = vrot.lane.b32.xlu1 %v2375_v54, %s2027_s7  ;;  %v680_v55 = vpop.permute.xlu0 %679 }
 0x17e   : > { %1724 = vst.msk [vmem:[%s2232_s18 + $0x40] sm:$0xf] %vm637_vm0, %v680_v55 }
 0x17f   : > { %v715_v57 = vpop.permute.xlu1 %714  ;;  %691 = vrot.lane.b32.xlu0 %v2364_v49, %s2028_s16 }
 0x180   : > { %1733 = vst.msk [vmem:[%s2232_s18 + $0x64] sm:$0xf] %vm637_vm0, %v715_v57 }
 0x181   : > { %693 = vrot.lane.b32.xlu1 %v2375_v54, %s2028_s16  ;;  %v713_v58 = vpop.permute.xlu0 %712 }
 0x182   : > { %1732 = vst.msk [vmem:[%s2232_s18 + $0x60] sm:$0xf] %vm637_vm0, %v713_v58 }
 0x183   : > { %v923_v59 = vpop.permute.xlu1 %922  ;;  %724 = vrot.lane.b32.xlu0 %v2364_v49, %s2029_s27 }
 0x184   : > { %1783 = vst.msk [vmem:[%s2263_s20 + $0x2c] sm:$0xf] %vm637_vm0, %v923_v59 }
 0x185   : > { %726 = vrot.lane.b32.xlu1 %v2375_v54, %s2029_s27  ;;  %v921_v60 = vpop.permute.xlu0 %920 }
 0x186   : > { %1782 = vst.msk [vmem:[%s2263_s20 + $0x28] sm:$0xf] %vm637_vm0, %v921_v60 }
 0x187   : > { %v956_v61 = vpop.permute.xlu1 %955  ;;  %793 = vrot.lane.b32.xlu0 %v2367_v52, %s2027_s7 }
 0x188   : > { %1791 = vst.msk [vmem:[%s2263_s20 + $0x4c] sm:$0xf] %vm637_vm0, %v956_v61 }
 0x189   : > { %795 = vrot.lane.b32.xlu1 %v2380_v56, %s2027_s7  ;;  %v954_v62 = vpop.permute.xlu0 %953 }
 0x18a   : > { %1790 = vst.msk [vmem:[%s2263_s20 + $0x48] sm:$0xf] %vm637_vm0, %v954_v62  ;;  %v1050_v62 = vld [vmem:[%s2232_s18] sm:$0xff] (%p2104_p5)  }
 0x18b   : > { %v989_v63 = vpop.permute.xlu1 %988  ;;  %826 = vrot.lane.b32.xlu0 %v2367_v52, %s2028_s16  ;;  %1051 = vst [vmem:[%s1034_s12] sm:$0xff] (%p2104_p5), %v1050_v62  }
 0x18c   : > { %1799 = vst.msk [vmem:[%s2263_s20 + $0x6c] sm:$0xf] %vm637_vm0, %v989_v63  ;;  %v1054_v63 = vld [vmem:[%s2232_s18 + $0x8] sm:$0xff] (%p2104_p5)  }
 0x18d   : > { %828 = vrot.lane.b32.xlu1 %v2380_v56, %s2028_s16  ;;  %v987_v0 = vpop.permute.xlu0 %986  ;;  %1055 = vst [vmem:[%s1034_s12 + $0x8] sm:$0xff] (%p2104_p5), %v1054_v63  }
 0x18e   : > { %1798 = vst.msk [vmem:[%s2263_s20 + $0x68] sm:$0xf] %vm637_vm0, %v987_v0  ;;  %v1058_v0 = vld [vmem:[%s2232_s18 + $0x10] sm:$0xff] (%p2104_p5)  }
 0x18f   : > { %v784_v1 = vpop.permute.xlu1 %783  ;;  %859 = vrot.lane.b32.xlu0 %v2367_v52, %s2029_s27  ;;  %1059 = vst [vmem:[%s1034_s12 + $0x10] sm:$0xff] (%p2104_p5), %v1058_v0  }
 0x190   : > { %1749 = vst.msk [vmem:[%s2241_s14 + $0x24] sm:$0xf] %vm637_vm0, %v784_v1  ;;  %v1062_v1 = vld [vmem:[%s2232_s18 + $0x18] sm:$0xff] (%p2104_p5)  }
 0x191   : > { %861 = vrot.lane.b32.xlu1 %v2380_v56, %s2029_s27  ;;  %v782_v2 = vpop.permute.xlu0 %781  ;;  %1063 = vst [vmem:[%s1034_s12 + $0x18] sm:$0xff] (%p2104_p5), %v1062_v1  }
 0x192   : > { %1748 = vst.msk [vmem:[%s2241_s14 + $0x20] sm:$0xf] %vm637_vm0, %v782_v2 }
 0x193   : > { %v817_v3 = vpop.permute.xlu1 %816  ;;  %994 = vrot.lane.b32.xlu0 %v2302_v23, %s2029_s27 }
 0x194   : > { %1757 = vst.msk [vmem:[%s2241_s14 + $0x44] sm:$0xf] %vm637_vm0, %v817_v3 }
 0x195   : > { %996 = vrot.lane.b32.xlu1 %v2318_v28, %s2029_s27  ;;  %v815_v4 = vpop.permute.xlu0 %814 }
 0x196   : > { %1756 = vst.msk [vmem:[%s2241_s14 + $0x40] sm:$0xf] %vm637_vm0, %v815_v4 }
 0x197   : > { %v850_v5 = vpop.permute.xlu1 %849 }
 0x198   : > { %1765 = vst.msk [vmem:[%s2241_s14 + $0x64] sm:$0xf] %vm637_vm0, %v850_v5 }
 0x199   : > { %v848_v6 = vpop.permute.xlu0 %847 }
 0x19a   : > { %1764 = vst.msk [vmem:[%s2241_s14 + $0x60] sm:$0xf] %vm637_vm0, %v848_v6  ;;  %v1082_v6 = vld [vmem:[%s2232_s18 + $0x40] sm:$0xff] (%p2104_p5)  }
 0x19b   : > { %v919_v7 = vpop.permute.xlu1 %918  ;;  %1083 = vst [vmem:[%s1034_s12 + $0x100] sm:$0xff] (%p2104_p5), %v1082_v6  }
 0x19c   : > { %1781 = vst.msk [vmem:[%s2263_s20 + $0x24] sm:$0xf] %vm637_vm0, %v919_v7 }
 0x19d   : > { %v917_v8 = vpop.permute.xlu0 %916 }
 0x19e   : > { %1780 = vst.msk [vmem:[%s2263_s20 + $0x20] sm:$0xf] %vm637_vm0, %v917_v8 }
 0x19f   : > { %v952_v9 = vpop.permute.xlu1 %951 }
 0x1a0   : > { %1789 = vst.msk [vmem:[%s2263_s20 + $0x44] sm:$0xf] %vm637_vm0, %v952_v9 }
 0x1a1   : > { %v950_v10 = vpop.permute.xlu0 %949 }
 0x1a2   : > { %1788 = vst.msk [vmem:[%s2263_s20 + $0x40] sm:$0xf] %vm637_vm0, %v950_v10  ;;  %v1098_v10 = vld [vmem:[%s2232_s18 + $0x60] sm:$0xff] (%p2104_p5)  }
 0x1a3   : > { %v985_v11 = vpop.permute.xlu1 %984  ;;  %1099 = vst [vmem:[%s1034_s12 + $0x180] sm:$0xff] (%p2104_p5), %v1098_v10  }
 0x1a4   : > { %1797 = vst.msk [vmem:[%s2263_s20 + $0x64] sm:$0xf] %vm637_vm0, %v985_v11 }
 0x1a5   : > { %v983_v12 = vpop.permute.xlu0 %982 }
 0x1a6   : > { %1796 = vst.msk [vmem:[%s2263_s20 + $0x60] sm:$0xf] %vm637_vm0, %v983_v12 }
 0x1a7   : > { %v651_v13 = vpop.permute.xlu1 %650 }
 0x1a8   : > { %1718 = vst.msk [vmem:[%s2232_s18 + $0x28] sm:$0xf] %vm637_vm0, %v651_v13 }
 0x1a9   : > { %v649_v14 = vpop.permute.xlu0 %648 }
 0x1aa   : > { %1717 = vst.msk [vmem:[%s2232_s18 + $0x24] sm:$0xf] %vm637_vm0, %v649_v14 }
 0x1ab   : > { %v653_v15 = vpop.permute.xlu1 %652 }
 0x1ac   : > { %1719 = vst.msk [vmem:[%s2232_s18 + $0x2c] sm:$0xf] %vm637_vm0, %v653_v15 }
 0x1ad   : > { %v684_v16 = vpop.permute.xlu0 %683 }
 0x1ae   : > { %1726 = vst.msk [vmem:[%s2232_s18 + $0x48] sm:$0xf] %vm637_vm0, %v684_v16 }
 0x1af   : > { %v686_v17 = vpop.permute.xlu1 %685 }
 0x1b0   : > { %1727 = vst.msk [vmem:[%s2232_s18 + $0x4c] sm:$0xf] %vm637_vm0, %v686_v17 }
 0x1b1   : > { %v717_v18 = vpop.permute.xlu0 %716  ;;  %v1066_v2 = vld [vmem:[%s2232_s18 + $0x20] sm:$0xff] (%p2104_p5)  }
 0x1b2   : > { %1734 = vst.msk [vmem:[%s2232_s18 + $0x68] sm:$0xf] %vm637_vm0, %v717_v18  ;;  %1067 = vst [vmem:[%s1034_s12 + $0x80] sm:$0xff] (%p2104_p5), %v1066_v2  }
 0x1b3   : > { %v719_v19 = vpop.permute.xlu1 %718  ;;  %v1070_v3 = vld [vmem:[%s2232_s18 + $0x28] sm:$0xff] (%p2104_p5)  }
 0x1b4   : > { %1735 = vst.msk [vmem:[%s2232_s18 + $0x6c] sm:$0xf] %vm637_vm0, %v719_v19  ;;  %1071 = vst [vmem:[%s1034_s12 + $0x88] sm:$0xff] (%p2104_p5), %v1070_v3  }
 0x1b5   : > { %v929_v20 = vpop.permute.xlu0 %928 }
 0x1b6   : > { %1786 = vst.msk [vmem:[%s2263_s20 + $0x38] sm:$0xf] %vm637_vm0, %v929_v20 }
 0x1b7   : > { %v931_v21 = vpop.permute.xlu1 %930  ;;  %v1086_v7 = vld [vmem:[%s2232_s18 + $0x48] sm:$0xff] (%p2104_p5)  }
 0x1b8   : > { %1787 = vst.msk [vmem:[%s2263_s20 + $0x3c] sm:$0xf] %vm637_vm0, %v931_v21  ;;  %1087 = vst [vmem:[%s1034_s12 + $0x108] sm:$0xff] (%p2104_p5), %v1086_v7  }
 0x1b9   : > { %v962_v22 = vpop.permute.xlu0 %961 }
 0x1ba   : > { %1794 = vst.msk [vmem:[%s2263_s20 + $0x58] sm:$0xf] %vm637_vm0, %v962_v22 }
 0x1bb   : > { %v964_v23 = vpop.permute.xlu1 %963  ;;  %v1102_v11 = vld [vmem:[%s2232_s18 + $0x68] sm:$0xff] (%p2104_p5)  }
 0x1bc   : > { %1795 = vst.msk [vmem:[%s2263_s20 + $0x5c] sm:$0xf] %vm637_vm0, %v964_v23  ;;  %1103 = vst [vmem:[%s1034_s12 + $0x188] sm:$0xff] (%p2104_p5), %v1102_v11  }
 0x1bd   : > { %v786_v24 = vpop.permute.xlu0 %785 }
 0x1be   : > { %1750 = vst.msk [vmem:[%s2241_s14 + $0x28] sm:$0xf] %vm637_vm0, %v786_v24 }
 0x1bf   : > { %v788_v25 = vpop.permute.xlu1 %787 }
 0x1c0   : > { %1751 = vst.msk [vmem:[%s2241_s14 + $0x2c] sm:$0xf] %vm637_vm0, %v788_v25 }
 0x1c1   : > { %v819_v26 = vpop.permute.xlu0 %818 }
 0x1c2   : > { %1758 = vst.msk [vmem:[%s2241_s14 + $0x48] sm:$0xf] %vm637_vm0, %v819_v26 }
 0x1c3   : > { %v821_v27 = vpop.permute.xlu1 %820 }
 0x1c4   : > { %1759 = vst.msk [vmem:[%s2241_s14 + $0x4c] sm:$0xf] %vm637_vm0, %v821_v27 }
 0x1c5   : > { %v852_v28 = vpop.permute.xlu0 %851 }
 0x1c6   : > { %1766 = vst.msk [vmem:[%s2241_s14 + $0x68] sm:$0xf] %vm637_vm0, %v852_v28 }
 0x1c7   : > { %v854_v29 = vpop.permute.xlu1 %853 }
 0x1c8   : > { %1767 = vst.msk [vmem:[%s2241_s14 + $0x6c] sm:$0xf] %vm637_vm0, %v854_v29 }
 0x1c9   : > { %v925_v30 = vpop.permute.xlu0 %924 }
 0x1ca   : > { %1784 = vst.msk [vmem:[%s2263_s20 + $0x30] sm:$0xf] %vm637_vm0, %v925_v30 }
 0x1cb   : > { %v927_v31 = vpop.permute.xlu1 %926 }
 0x1cc   : > { %1785 = vst.msk [vmem:[%s2263_s20 + $0x34] sm:$0xf] %vm637_vm0, %v927_v31 }
 0x1cd   : > { %v958_v32 = vpop.permute.xlu0 %957 }
 0x1ce   : > { %1792 = vst.msk [vmem:[%s2263_s20 + $0x50] sm:$0xf] %vm637_vm0, %v958_v32 }
 0x1cf   : > { %v960_v33 = vpop.permute.xlu1 %959 }
 0x1d0   : > { %1793 = vst.msk [vmem:[%s2263_s20 + $0x54] sm:$0xf] %vm637_vm0, %v960_v33 }
 0x1d1   : > { %v991_v34 = vpop.permute.xlu0 %990 }
 0x1d2   : > { %1800 = vst.msk [vmem:[%s2263_s20 + $0x70] sm:$0xf] %vm637_vm0, %v991_v34 }
 0x1d3   : > { %v993_v35 = vpop.permute.xlu1 %992 }
 0x1d4   : > { %1801 = vst.msk [vmem:[%s2263_s20 + $0x74] sm:$0xf] %vm637_vm0, %v993_v35 }
 0x1d5   : > { %v655_v36 = vpop.permute.xlu0 %654 }
 0x1d6   : > { %1720 = vst.msk [vmem:[%s2232_s18 + $0x30] sm:$0xf] %vm637_vm0, %v655_v36 }
 0x1d7   : > { %v657_v37 = vpop.permute.xlu1 %656 }
 0x1d8   : > { %1721 = vst.msk [vmem:[%s2232_s18 + $0x34] sm:$0xf] %vm637_vm0, %v657_v37 }
 0x1d9   : > { %v688_v38 = vpop.permute.xlu0 %687 }
 0x1da   : > { %1728 = vst.msk [vmem:[%s2232_s18 + $0x50] sm:$0xf] %vm637_vm0, %v688_v38 }
 0x1db   : > { %v690_v39 = vpop.permute.xlu1 %689 }
 0x1dc   : > { %1729 = vst.msk [vmem:[%s2232_s18 + $0x54] sm:$0xf] %vm637_vm0, %v690_v39 }
 0x1dd   : > { %v721_v40 = vpop.permute.xlu0 %720 }
 0x1de   : > { %1736 = vst.msk [vmem:[%s2232_s18 + $0x70] sm:$0xf] %vm637_vm0, %v721_v40 }
 0x1df   : > { %v723_v41 = vpop.permute.xlu1 %722  ;;  %v1074_v4 = vld [vmem:[%s2232_s18 + $0x30] sm:$0xff] (%p2104_p5)  }
 0x1e0   : > { %1737 = vst.msk [vmem:[%s2232_s18 + $0x74] sm:$0xf] %vm637_vm0, %v723_v41  ;;  %1075 = vst [vmem:[%s1034_s12 + $0x90] sm:$0xff] (%p2104_p5), %v1074_v4  }
 0x1e1   : > { %v790_v42 = vpop.permute.xlu0 %789 }
 0x1e2   : > { %1752 = vst.msk [vmem:[%s2241_s14 + $0x30] sm:$0xf] %vm637_vm0, %v790_v42 }
 0x1e3   : > { %v792_v45 = vpop.permute.xlu1 %791  ;;  %v1090_v8 = vld [vmem:[%s2232_s18 + $0x50] sm:$0xff] (%p2104_p5)  }
 0x1e4   : > { %1753 = vst.msk [vmem:[%s2241_s14 + $0x34] sm:$0xf] %vm637_vm0, %v792_v45  ;;  %1091 = vst [vmem:[%s1034_s12 + $0x110] sm:$0xff] (%p2104_p5), %v1090_v8  }
 0x1e5   : > { %v823_v46 = vpop.permute.xlu0 %822 }
 0x1e6   : > { %1760 = vst.msk [vmem:[%s2241_s14 + $0x50] sm:$0xf] %vm637_vm0, %v823_v46 }
 0x1e7   : > { %v825_v47 = vpop.permute.xlu1 %824  ;;  %v1106_v12 = vld [vmem:[%s2232_s18 + $0x70] sm:$0xff] (%p2104_p5)  }
 0x1e8   : > { %1761 = vst.msk [vmem:[%s2241_s14 + $0x54] sm:$0xf] %vm637_vm0, %v825_v47  ;;  %1107 = vst [vmem:[%s1034_s12 + $0x190] sm:$0xff] (%p2104_p5), %v1106_v12  }
 0x1e9   : > { %v856_v48 = vpop.permute.xlu0 %855 }
 0x1ea   : > { %1768 = vst.msk [vmem:[%s2241_s14 + $0x70] sm:$0xf] %vm637_vm0, %v856_v48 }
 0x1eb   : > { %v858_v49 = vpop.permute.xlu1 %857 }
 0x1ec   : > { %1769 = vst.msk [vmem:[%s2241_s14 + $0x74] sm:$0xf] %vm637_vm0, %v858_v49 }
 0x1ed   : > { %v659_v50 = vpop.permute.xlu0 %658 }
 0x1ee   : > { %1722 = vst.msk [vmem:[%s2232_s18 + $0x38] sm:$0xf] %vm637_vm0, %v659_v50 }
 0x1ef   : > { %v661_v51 = vpop.permute.xlu1 %660 }
 0x1f0   : > { %1723 = vst.msk [vmem:[%s2232_s18 + $0x3c] sm:$0xf] %vm637_vm0, %v661_v51 }
 0x1f1   : > { %v692_v52 = vpop.permute.xlu0 %691 }
 0x1f2   : > { %1730 = vst.msk [vmem:[%s2232_s18 + $0x58] sm:$0xf] %vm637_vm0, %v692_v52 }
 0x1f3   : > { %v694_v53 = vpop.permute.xlu1 %693 }
 0x1f4   : > { %1731 = vst.msk [vmem:[%s2232_s18 + $0x5c] sm:$0xf] %vm637_vm0, %v694_v53 }
 0x1f5   : > { %v725_v54 = vpop.permute.xlu0 %724 }
 0x1f6   : > { %1738 = vst.msk [vmem:[%s2232_s18 + $0x78] sm:$0xf] %vm637_vm0, %v725_v54 }
 0x1f7   : > { %v727_v56 = vpop.permute.xlu1 %726  ;;  %v1078_v5 = vld [vmem:[%s2232_s18 + $0x38] sm:$0xff] (%p2104_p5)  }
 0x1f8   : > { %1739 = vst.msk [vmem:[%s2232_s18 + $0x7c] sm:$0xf] %vm637_vm0, %v727_v56  ;;  %1079 = vst [vmem:[%s1034_s12 + $0x98] sm:$0xff] (%p2104_p5), %v1078_v5  }
 0x1f9   : > { %v794_v43 = vpop.permute.xlu0 %793 }
 0x1fa   : > { %1754 = vst.msk [vmem:[%s2241_s14 + $0x38] sm:$0xf] %vm637_vm0, %v794_v43 }
 0x1fb   : > { %v796_v44 = vpop.permute.xlu1 %795  ;;  %v1094_v9 = vld [vmem:[%s2232_s18 + $0x58] sm:$0xff] (%p2104_p5)  }
 0x1fc   : > { %1755 = vst.msk [vmem:[%s2241_s14 + $0x3c] sm:$0xf] %vm637_vm0, %v796_v44  ;;  %1095 = vst [vmem:[%s1034_s12 + $0x118] sm:$0xff] (%p2104_p5), %v1094_v9  }
 0x1fd   : > { %v827_v55 = vpop.permute.xlu0 %826 }
 0x1fe   : > { %1762 = vst.msk [vmem:[%s2241_s14 + $0x58] sm:$0xf] %vm637_vm0, %v827_v55 }
 0x1ff   : > { %v829_v57 = vpop.permute.xlu1 %828  ;;  %v1110_v13 = vld [vmem:[%s2232_s18 + $0x78] sm:$0xff] (%p2104_p5)  }
 0x200   : > { %1763 = vst.msk [vmem:[%s2241_s14 + $0x5c] sm:$0xf] %vm637_vm0, %v829_v57  ;;  %1111 = vst [vmem:[%s1034_s12 + $0x198] sm:$0xff] (%p2104_p5), %v1110_v13  }
 0x201   : > { %v860_v58 = vpop.permute.xlu0 %859 }
 0x202   : > { %1770 = vst.msk [vmem:[%s2241_s14 + $0x78] sm:$0xf] %vm637_vm0, %v860_v58  ;;  %1029 = sbr.rel (!%p2104_p5) target bundleno = 521 (0x209), region = 36 }
 0x203   : > { %v862_v59 = vpop.permute.xlu1 %861 }
 0x204   : > { %1771 = vst.msk [vmem:[%s2241_s14 + $0x7c] sm:$0xf] %vm637_vm0, %v862_v59 }
 0x205   : > { %v995_v60 = vpop.permute.xlu0 %994 }
 0x206   : > { %1802 = vst.msk [vmem:[%s2263_s20 + $0x78] sm:$0xf] %vm637_vm0, %v995_v60 }
 0x207   : > { %v997_v61 = vpop.permute.xlu1 %996 }
 0x208   : > { %1803 = vst.msk [vmem:[%s2263_s20 + $0x7c] sm:$0xf] %vm637_vm0, %v997_v61 }
 0x209 PF: > { %1200 = sbr.rel (!%p2104_p5) target bundleno = 533 (0x215), region = 77  ;;  %s1811_s13 = sshll.u32 (%p2104_p5), %s2012_s21, 7  ;;  %v1221_v14 = vld [vmem:[%s2241_s14] sm:$0xff] (%p2104_p5)   ;;  %v1225_v15 = vld [vmem:[%s2241_s14 + $0x8] sm:$0xff] (%p2104_p5)   ;;  %v1229_v16 = vld [vmem:[%s2241_s14 + $0x10] sm:$0xff] (%p2104_p5)  }
 0x20a   : > { %s1203_s15 = sadd.s32 (%p2104_p5), %s1811_s13, %s2120_s11  ;;  %v1233_v17 = vld [vmem:[%s2241_s14 + $0x18] sm:$0xff] (%p2104_p5)   ;;  %v1237_v18 = vld [vmem:[%s2241_s14 + $0x20] sm:$0xff] (%p2104_p5)   ;;  %v1241_v19 = vld [vmem:[%s2241_s14 + $0x28] sm:$0xff] (%p2104_p5)  }
 0x20b   : > { %s1812_s17 = sshll.u32 (%p2104_p5), %s1203_s15, 2  ;;  %v1245_v20 = vld [vmem:[%s2241_s14 + $0x30] sm:$0xff] (%p2104_p5)   ;;  %v1249_v21 = vld [vmem:[%s2241_s14 + $0x38] sm:$0xff] (%p2104_p5)   ;;  %v1253_v22 = vld [vmem:[%s2241_s14 + $0x40] sm:$0xff] (%p2104_p5)  }
 0x20c   : > { %s1205_s16 = scalar_lea.vmem (%p2104_p5), %s2741_s4, %s1812_s17  ;;  %v1257_v23 = vld [vmem:[%s2241_s14 + $0x48] sm:$0xff] (%p2104_p5)   ;;  %v1261_v24 = vld [vmem:[%s2241_s14 + $0x50] sm:$0xff] (%p2104_p5)   ;;  %v1265_v25 = vld [vmem:[%s2241_s14 + $0x58] sm:$0xff] (%p2104_p5)  }
 0x20d   : > { %1222 = vst [vmem:[%s1205_s16] sm:$0xff] (%p2104_p5), %v1221_v14   ;;  %1226 = vst [vmem:[%s1205_s16 + $0x8] sm:$0xff] (%p2104_p5), %v1225_v15   ;;  %v1269_v26 = vld [vmem:[%s2241_s14 + $0x60] sm:$0xff] (%p2104_p5)   ;;  %v1273_v27 = vld [vmem:[%s2241_s14 + $0x68] sm:$0xff] (%p2104_p5)  }
 0x20e   : > { %1230 = vst [vmem:[%s1205_s16 + $0x10] sm:$0xff] (%p2104_p5), %v1229_v16   ;;  %1234 = vst [vmem:[%s1205_s16 + $0x18] sm:$0xff] (%p2104_p5), %v1233_v17   ;;  %v1277_v28 = vld [vmem:[%s2241_s14 + $0x70] sm:$0xff] (%p2104_p5)   ;;  %v1281_v29 = vld [vmem:[%s2241_s14 + $0x78] sm:$0xff] (%p2104_p5)  }
 0x20f   : > { %1238 = vst [vmem:[%s1205_s16 + $0x80] sm:$0xff] (%p2104_p5), %v1237_v18   ;;  %1242 = vst [vmem:[%s1205_s16 + $0x88] sm:$0xff] (%p2104_p5), %v1241_v19  }
 0x210   : > { %1246 = vst [vmem:[%s1205_s16 + $0x90] sm:$0xff] %v1245_v20   ;;  %1250 = vst [vmem:[%s1205_s16 + $0x98] sm:$0xff] %v1249_v21  }
 0x211   : > { %1254 = vst [vmem:[%s1205_s16 + $0x100] sm:$0xff] %v1253_v22   ;;  %1258 = vst [vmem:[%s1205_s16 + $0x108] sm:$0xff] %v1257_v23  }
 0x212   : > { %1262 = vst [vmem:[%s1205_s16 + $0x110] sm:$0xff] %v1261_v24   ;;  %1266 = vst [vmem:[%s1205_s16 + $0x118] sm:$0xff] %v1265_v25  }
 0x213   : > { %1270 = vst [vmem:[%s1205_s16 + $0x180] sm:$0xff] %v1269_v26   ;;  %1274 = vst [vmem:[%s1205_s16 + $0x188] sm:$0xff] %v1273_v27  }
 0x214   : > { %1278 = vst [vmem:[%s1205_s16 + $0x190] sm:$0xff] %v1277_v28   ;;  %1282 = vst [vmem:[%s1205_s16 + $0x198] sm:$0xff] %v1281_v29  }
 0x215 PF: > { %1371 = sbr.rel (!%p2104_p5) target bundleno = 545 (0x221), region = 118  ;;  %s1814_s14 = sshll.u32 (%p2104_p5), %s2012_s21, 7  ;;  %v1392_v30 = vld [vmem:[%s2263_s20] sm:$0xff] (%p2104_p5)   ;;  %v1396_v31 = vld [vmem:[%s2263_s20 + $0x8] sm:$0xff] (%p2104_p5)   ;;  %v1400_v32 = vld [vmem:[%s2263_s20 + $0x10] sm:$0xff] (%p2104_p5)  }
 0x216   : > { %s1374_s29 = sadd.s32 (%p2104_p5), %s1814_s14, %s2120_s11  ;;  %v1404_v33 = vld [vmem:[%s2263_s20 + $0x18] sm:$0xff] (%p2104_p5)   ;;  %v1408_v34 = vld [vmem:[%s2263_s20 + $0x20] sm:$0xff] (%p2104_p5)   ;;  %v1412_v35 = vld [vmem:[%s2263_s20 + $0x28] sm:$0xff] (%p2104_p5)  }
 0x217   : > { %s1815_s27 = sshll.u32 (%p2104_p5), %s1374_s29, 2  ;;  %v1416_v36 = vld [vmem:[%s2263_s20 + $0x30] sm:$0xff] (%p2104_p5)   ;;  %v1420_v37 = vld [vmem:[%s2263_s20 + $0x38] sm:$0xff] (%p2104_p5)   ;;  %v1424_v38 = vld [vmem:[%s2263_s20 + $0x40] sm:$0xff] (%p2104_p5)  }
 0x218   : > { %s1376_s28 = scalar_lea.vmem (%p2104_p5), %s2742_s5, %s1815_s27  ;;  %v1428_v39 = vld [vmem:[%s2263_s20 + $0x48] sm:$0xff] (%p2104_p5)   ;;  %v1432_v40 = vld [vmem:[%s2263_s20 + $0x50] sm:$0xff] (%p2104_p5)   ;;  %v1436_v41 = vld [vmem:[%s2263_s20 + $0x58] sm:$0xff] (%p2104_p5)  }
 0x219   : > { %1393 = vst [vmem:[%s1376_s28] sm:$0xff] (%p2104_p5), %v1392_v30   ;;  %1397 = vst [vmem:[%s1376_s28 + $0x8] sm:$0xff] (%p2104_p5), %v1396_v31   ;;  %v1440_v42 = vld [vmem:[%s2263_s20 + $0x60] sm:$0xff] (%p2104_p5)   ;;  %v1444_v45 = vld [vmem:[%s2263_s20 + $0x68] sm:$0xff] (%p2104_p5)  }
 0x21a   : > { %1401 = vst [vmem:[%s1376_s28 + $0x10] sm:$0xff] (%p2104_p5), %v1400_v32   ;;  %1405 = vst [vmem:[%s1376_s28 + $0x18] sm:$0xff] (%p2104_p5), %v1404_v33   ;;  %v1448_v46 = vld [vmem:[%s2263_s20 + $0x70] sm:$0xff] (%p2104_p5)   ;;  %v1452_v47 = vld [vmem:[%s2263_s20 + $0x78] sm:$0xff] (%p2104_p5)  }
 0x21b   : > { %1409 = vst [vmem:[%s1376_s28 + $0x80] sm:$0xff] (%p2104_p5), %v1408_v34   ;;  %1413 = vst [vmem:[%s1376_s28 + $0x88] sm:$0xff] (%p2104_p5), %v1412_v35  }
 0x21c   : > { %1417 = vst [vmem:[%s1376_s28 + $0x90] sm:$0xff] %v1416_v36   ;;  %1421 = vst [vmem:[%s1376_s28 + $0x98] sm:$0xff] %v1420_v37  }
 0x21d   : > { %1425 = vst [vmem:[%s1376_s28 + $0x100] sm:$0xff] %v1424_v38   ;;  %1429 = vst [vmem:[%s1376_s28 + $0x108] sm:$0xff] %v1428_v39  }
 0x21e   : > { %1433 = vst [vmem:[%s1376_s28 + $0x110] sm:$0xff] %v1432_v40   ;;  %1437 = vst [vmem:[%s1376_s28 + $0x118] sm:$0xff] %v1436_v41  }
 0x21f   : > { %1441 = vst [vmem:[%s1376_s28 + $0x180] sm:$0xff] %v1440_v42   ;;  %1445 = vst [vmem:[%s1376_s28 + $0x188] sm:$0xff] %v1444_v45  }
 0x220   : > { %1449 = vst [vmem:[%s1376_s28 + $0x190] sm:$0xff] %v1448_v46   ;;  %1453 = vst [vmem:[%s1376_s28 + $0x198] sm:$0xff] %v1452_v47  }
 0x221 PF: > { %s16_s24 = sadd.s32 1, %s2024_s24   ;;  %s2744_s18 = smov %s2004_s19 }
 0x222   : > { %p13_p11 = scmp.ge.s32.totalorder %s16_s24, 10   ;;  %s2745_s19 = smov %s2115_s8 }
 0x223   : > { %s2746_s20 = smov %s2016_s22  ;;  %s2747_s21 = smov %s2020_s23 }
 0x224   : > { %s2748_s22 = smov %s2751_s25  ;;  %s2749_s23 = smov %s2755_s26 }
 0x225   :  { %15 = sbr.rel (!%p13_p11) target bundleno = 4 (0x4), region = 218 }

// kernel: transformer_decoder_layer.12
= control target key start
LH: loop header
LB: loop body
LE: loop exit
PB: predicated region body
PF: predicated region fallthrough
CT: control target
= control target key end

     0   :  { %s1459_s15 = smov 0   ;;  %s1461_s16 = smov 0   ;;  %s1861_s0 = inlined_call_operand.vmem [shape: f32[2,128,128], index: 0, kind: input, shape index: {}]   ;;  %s1862_s1 = inlined_call_operand.vmem [shape: bf16[128,256], index: 1, kind: input, shape index: {}]   ;;  %s1863_s2 = inlined_call_operand.vmem [shape: f32[1,256], index: 2, kind: input, shape index: {}]   ;;  %s1864_s3 = inlined_call_operand.vmem [shape: bf16[2,4,128,32], index: 3, kind: output, shape index: {0}]   ;;  %s1865_s4 = inlined_call_operand.vmem [shape: bf16[2,4,128,32], index: 4, kind: output, shape index: {1}]  }
   0x1   :  { %s1463_s17 = smov 0   ;;  %s1465_s18 = smov 0  }
   0x2   :  { %s1467_s19 = smov 0   ;;  %s1469_s20 = smov 0  }
   0x3   :  { %s1471_s21 = smov 0  }
   0x4 LB: > { %s24_s22 = sadd.s32 1, %s1420_s19  ;;  %s27_s23 = sadd.s32 1, %s1424_s20  ;;  %s1428_s21 = sphi %s1471_s21, %s15_s21   ;;  %s1424_s20 = sphi %s1469_s20, %s1872_s20   ;;  %s1420_s19 = sphi %s1467_s19, %s1871_s19   ;;  %s1416_s18 = sphi %s1465_s18, %s1870_s18   ;;  %s1412_s17 = sphi %s1463_s17, %s1869_s17   ;;  %s1408_s16 = sphi %s1461_s16, %s1868_s16   ;;  %s1404_s15 = sphi %s1459_s15, %s1867_s15  }
   0x5   : > { %p25_p0 = scmp.ge.s32.totalorder %s24_s22, 2  ;;  %s1158_s24 = sadd.s32 4294967295, %s1428_s21  }
   0x6   : > { %p116_p1 = scmp.ne.s32.totalorder %s1408_s16, %s1404_s15  ;;  %p117_p2 = scmp.eq.s32.totalorder %s1158_s24, 3 }
   0x7   : > { %s1874_s22 = smov (%p25_p0, %s24_s22), 0  ;;  %s1876_s23 = smov (!%p25_p0, %s27_s23), %s1424_s20 }
   0x8   : > { %s102_s25 = ssub.s32 %s1420_s19, %s1874_s22  ;;  %p29_p3 = scmp.ge.s32.totalorder %s1876_s23, 2 }
   0x9   : > { %p1162_p4 = scmp.ge.s32.totalorder %s1428_s21, 1  ;;  %p1505_p5 = por %p117_p2, %p116_p1 }
   0xa   : > { %p188_p6 = scmp.lt.s32.totalorder %s1428_s21, 5  ;;  %s1878_s23 = smov (%p29_p3, %s1876_s23), 0 }
   0xb   : > { %s101_s27 = ssub.s32 %s1424_s20, %s1878_s23  ;;  %s106_s29 = sadd.s32 1, %s1408_s16 }
   0xc   : > { %p189_p7 = pnand %p1162_p4, %p188_p6  ;;  %s103_s28 = sor.u32 %s102_s25, %s101_s27 }
   0xd   : > { %p104_p8 = scmp.eq.s32.totalorder %s103_s28, 0  ;;  %v1350_v0 = vld [vmem:[%s1862_s1 + $0x4] ss:$8 sps:$4 sm:$0xff] (!%p189_p7)   ;;  %v1352_v1 = vld [vmem:[%s1862_s1] ss:$8 sps:$4 sm:$0xff] (!%p189_p7)   ;;  %v1430_v2 = vmov (!%p189_p7), 0   ;;  %v264_v29 = vlaneseq (!%p189_p7) }
   0xe   : > { %192 = sbr.rel (%p189_p7) target bundleno = 486 (0x1e6), region = 32  ;;  %386 = vmatprep.mubr.bf16.mxu0 (!%p189_p7), %v1430_v2  ;;  %406 = vmatprep.mubr.bf16.mxu1 (!%p189_p7), %v1430_v2  ;;  %v1353_v3 = vld [vmem:[%s1862_s1 + $0x14] ss:$8 sps:$4 sm:$0xff] (!%p189_p7)   ;;  %v1355_v4 = vld [vmem:[%s1862_s1 + $0x10] ss:$8 sps:$4 sm:$0xff] (!%p189_p7)   ;;  %s1536_s24 = sshll.u32 (!%p189_p7), %s1412_s17, 3 }
   0xf   : > { %s1516_s30 = scalar_select %p104_p8, %s1408_s16, %s106_s29  }
  0x10   : > { %354 = vmatprep.subr.bf16.mxu0 (!%p189_p7), %v1350_v0  ;;  %1274 = vmatprep.subr.bf16.mxu1 (!%p189_p7), %v1350_v0  ;;  %v1356_v5 = vld [vmem:[%s1862_s1 + $0x24] ss:$8 sps:$4 sm:$0xff] (!%p189_p7)   ;;  %p222_p9 = scmp.lt.s32.totalorder (!%p189_p7), %s1416_s18, 1  ;;  %v1358_v6 = vld [vmem:[%s1862_s1 + $0x20] ss:$8 sps:$4 sm:$0xff] (!%p189_p7)   ;;  %p224_p10 = scmp.lt.s32.totalorder (!%p189_p7), %s1536_s24, 15 }
  0x11   : > { %355 = vmatpush1.bf16.msra.mxu0 (!%p189_p7), %v1352_v1  ;;  %1282 = vmatpush1.bf16.msra.mxu1 (!%p189_p7), %v1352_v1  ;;  %v1359_v7 = vld [vmem:[%s1862_s1 + $0x34] ss:$8 sps:$4 sm:$0xff] (!%p189_p7)   ;;  %v1361_v8 = vld [vmem:[%s1862_s1 + $0x30] ss:$8 sps:$4 sm:$0xff] (!%p189_p7)   ;;  %v1362_v9 = vld [vmem:[%s1862_s1 + $0x44] ss:$8 sps:$4 sm:$0xff] (!%p189_p7)  }
  0x12   : > { %356 = vmatprep.subr.bf16.mxu0 (!%p189_p7), %v1353_v3  ;;  %1275 = vmatprep.subr.bf16.mxu1 (!%p189_p7), %v1353_v3  ;;  %v1364_v10 = vld [vmem:[%s1862_s1 + $0x40] ss:$8 sps:$4 sm:$0xff] (!%p189_p7)   ;;  %v1365_v11 = vld [vmem:[%s1862_s1 + $0x54] ss:$8 sps:$4 sm:$0xff] (!%p189_p7)   ;;  %v1367_v12 = vld [vmem:[%s1862_s1 + $0x50] ss:$8 sps:$4 sm:$0xff] (!%p189_p7)  }
  0x13   : > { %v1368_v13 = vld [vmem:[%s1862_s1 + $0x64] ss:$8 sps:$4 sm:$0xff] (!%p189_p7)   ;;  %v1370_v14 = vld [vmem:[%s1862_s1 + $0x60] ss:$8 sps:$4 sm:$0xff] (!%p189_p7)   ;;  %v1371_v15 = vld [vmem:[%s1862_s1 + $0x74] ss:$8 sps:$4 sm:$0xff] (!%p189_p7)  }
  0x14   : > { %v1373_v16 = vld [vmem:[%s1862_s1 + $0x70] ss:$8 sps:$4 sm:$0xff] (!%p189_p7)   ;;  %v265_v30 = vshrl.u32 (!%p189_p7), %v264_v29, 7  ;;  %v262_v32 = vld [vmem:[%s1863_s2] sm:$0x3] (!%p189_p7)  ;;  %s212_s28 = sand.u32 (!%p189_p7), 1, %s1404_s15  }
  0x15   : > { %357 = vmatpush1.bf16.msra.mxu0 %v1355_v4  ;;  %1283 = vmatpush1.bf16.msra.mxu1 %v1355_v4  ;;  %s223_s5 = scalar_select %p222_p9, %s1416_s18, 1  ;;  %vm463_vm0 = vcmask 257024  }
  0x16   : > { %358 = vmatprep.subr.bf16.mxu0 %v1356_v5  ;;  %1276 = vmatprep.subr.bf16.mxu1 %v1356_v5  ;;  %s225_s9 = scalar_select %p224_p10, %s1536_s24, 15  ;;  %v266_v31 = vsub.s32 0, %v265_v30  ;;  %v270_v33 = vsub.s32 1, %v265_v30 }
  0x17   : > { %s1166_s10 = sshll.u32 %s223_s5, 4  ;;  %s1163_s29 = sshll.u32 %s212_s28, 7 }
  0x18   : > { %s227_s25 = sadd.s32 %s1166_s10, %s225_s9  ;;  %v267_v34 = vrot.slane %v262_v32, %v266_v31  ;;  %v271_v35 = vrot.slane %v262_v32, %v270_v33  ;;  %s1592_s15 = scalar_lea.vmem [#allocation2], %s1163_s29 }
  0x19   : > { %359 = vmatpush1.bf16.msra.mxu0 %v1358_v6  ;;  %1284 = vmatpush1.bf16.msra.mxu1 %v1358_v6  ;;  %s1167_s17 = sshll.u32 %s227_s25, 3  ;;  %s1431_s5 = smov 96  }
  0x1a   : > { %360 = vmatprep.subr.bf16.mxu0 %v1359_v7  ;;  %1277 = vmatprep.subr.bf16.mxu1 %v1359_v7  ;;  %s229_s10 = scalar_lea.vmem %s1861_s0, %s1167_s17  ;;  %s1604_s17 = scalar_lea.vmem [#allocation3], %s1163_s29 }
  0x1b   : > { %v234_v17 = vld [vmem:[%s229_s10] sm:$0xff]  ;;  %v235_v18 = vld [vmem:[%s229_s10 + $0x8] sm:$0xff]  ;;  %v236_v23 = vld [vmem:[%s229_s10 + $0x10] sm:$0xff]  ;;  %s1432_s6 = smov 64   ;;  %s1433_s7 = smov 32  }
  0x1c   : > { %v238_v19 = vld [vmem:[%s229_s10 + $0x20] sm:$0xff]  ;;  %v239_v20 = vld [vmem:[%s229_s10 + $0x28] sm:$0xff]  ;;  %v242_v21 = vpack.c.bf16 %v235_v18, %v234_v17  ;;  %v237_v24 = vld [vmem:[%s229_s10 + $0x18] sm:$0xff]  ;;  %s1251_s8 = sshll.u32 (%p1505_p5), %s1416_s18, 6 }
  0x1d   : > { %361 = vmatpush1.bf16.msra.mxu0 %v1361_v8  ;;  %1285 = vmatpush1.bf16.msra.mxu1 %v1361_v8  ;;  %v244_v22 = vpack.c.bf16 %v239_v20, %v238_v19  ;;  %v240_v25 = vld [vmem:[%s229_s10 + $0x30] sm:$0xff]  ;;  %v241_v26 = vld [vmem:[%s229_s10 + $0x38] sm:$0xff]  ;;  %v243_v27 = vpack.c.bf16 %v237_v24, %v236_v23  ;;  %s719_s9 = sadd.s32 (%p1505_p5), %s1251_s8, %s1536_s24 }
  0x1e   : > { %362 = vmatprep.subr.bf16.mxu0 %v1362_v9  ;;  %1278 = vmatprep.subr.bf16.mxu1 %v1362_v9  ;;  %v245_v28 = vpack.c.bf16 %v241_v26, %v240_v25  ;;  %s1252_s10 = sshll.u32 (%p1505_p5), %s719_s9, 2 }
  0x1f   : > { %s721_s13 = scalar_lea.vmem (%p1505_p5), %s1864_s3, %s1252_s10 }
  0x21   : > { %363 = vmatpush1.bf16.msra.mxu0 %v1364_v10  ;;  %1286 = vmatpush1.bf16.msra.mxu1 %v1364_v10 }
  0x22   : > { %364 = vmatprep.subr.bf16.mxu0 %v1365_v11  ;;  %1279 = vmatprep.subr.bf16.mxu1 %v1365_v11 }
  0x25   : > { %365 = vmatpush1.bf16.msra.mxu0 %v1367_v12  ;;  %1287 = vmatpush1.bf16.msra.mxu1 %v1367_v12 }
  0x26   : > { %366 = vmatprep.subr.bf16.mxu0 %v1368_v13  ;;  %1280 = vmatprep.subr.bf16.mxu1 %v1368_v13 }
  0x29   : > { %367 = vmatpush1.bf16.msra.mxu0 %v1370_v14  ;;  %1288 = vmatpush1.bf16.msra.mxu1 %v1370_v14 }
  0x2a   : > { %368 = vmatprep.subr.bf16.mxu0 %v1371_v15  ;;  %1281 = vmatprep.subr.bf16.mxu1 %v1371_v15 }
  0x2d   : > { %369 = vmatpush1.bf16.msra.mxu0 %v1373_v16  ;;  %1289 = vmatpush1.bf16.msra.mxu1 %v1373_v16 }
  0x30   : > { %387 = vmatmul.mubr.bf16.vlgmr.msra.gmra.mrb[0].mxu0 %v242_v21  ;;  %407 = vmatmul.mubr.bf16.vlgmr.msra.gmra.mrb[0].mxu1 %v244_v22 }
  0x31   : > { %396 = vmatprep.mubr.bf16.mxu0 %v1430_v2  ;;  %416 = vmatprep.mubr.bf16.mxu1 %v1430_v2 }
  0x38   : > { %397 = vmatmul.mubr.bf16.gmra.mrb[4].mxu0 %v243_v27  ;;  %417 = vmatmul.mubr.bf16.gmra.mrb[4].mxu1 %v245_v28 }
 0x103   : > { %v388_v36 = vpop.f32.mrb[0].mxu0  ;;  %v408_v37 = vpop.f32.mrb[0].mxu1 }
 0x104   : > { %v389_v38 = vadd.f32 %v388_v36, %v267_v34  ;;  %v409_v39 = vadd.f32 %v408_v37, %v267_v34  ;;  %v390_v40 = vpop.f32.mrb[1].mxu0  ;;  %v410_v41 = vpop.f32.mrb[1].mxu1 }
 0x105   : > { %v391_v42 = vadd.f32 %v390_v40, %v271_v35  ;;  %v411_v43 = vadd.f32 %v410_v41, %v271_v35  ;;  %v392_v44 = vpop.f32.mrb[2].mxu0  ;;  %v412_v45 = vpop.f32.mrb[2].mxu1 }
 0x106   : > { %v1584_v46 = vpack.c.bf16 %v389_v38, %v389_v38  ;;  %v1586_v47 = vpack.c.bf16 %v409_v39, %v409_v39  ;;  %v393_v48 = vadd.f32 %v392_v44, %v267_v34  ;;  %v413_v49 = vadd.f32 %v412_v45, %v267_v34  ;;  %v394_v50 = vpop.f32.mrb[3].mxu0  ;;  %v414_v51 = vpop.f32.mrb[3].mxu1 }
 0x107   : > { %v1588_v52 = vpack.c.bf16 %v391_v42, %v391_v42  ;;  %v1590_v53 = vpack.c.bf16 %v411_v43, %v411_v43  ;;  %v395_v54 = vadd.f32 %v394_v50, %v271_v35  ;;  %v415_v55 = vadd.f32 %v414_v51, %v271_v35 }
 0x108   : > { %464 = vst.msk [vmem:[%s1592_s15] sm:$0xf] %vm463_vm0, %v1584_v46  ;;  %468 = vst.msk [vmem:[%s1592_s15 + $0x10] sm:$0xf] %vm463_vm0, %v1586_v47  ;;  %v1600_v56 = vpack.c.bf16 %v393_v48, %v393_v48  ;;  %v1263_v57 = vpack.c.bf16 %v413_v49, %v413_v49  ;;  %472 = vrot.lane.b32.xlu0 %v1584_v46, %s1431_s5 }
 0x109   : > { %599 = vst.msk [vmem:[%s1604_s17] sm:$0xf] %vm463_vm0, %v1588_v52  ;;  %603 = vst.msk [vmem:[%s1604_s17 + $0x10] sm:$0xf] %vm463_vm0, %v1590_v53  ;;  %v1267_v58 = vpack.c.bf16 %v395_v54, %v395_v54  ;;  %v1271_v59 = vpack.c.bf16 %v415_v55, %v415_v55 }
 0x10a   : > { %465 = vst.msk [vmem:[%s1592_s15 + $0x4] sm:$0xf] %vm463_vm0, %v1600_v56  ;;  %469 = vst.msk [vmem:[%s1592_s15 + $0x14] sm:$0xf] %vm463_vm0, %v1263_v57  ;;  %482 = vrot.lane.b32.xlu1 %v1263_v57, %s1431_s5 }
 0x10b   : > { %600 = vst.msk [vmem:[%s1604_s17 + $0x4] sm:$0xf] %vm463_vm0, %v1267_v58  ;;  %604 = vst.msk [vmem:[%s1604_s17 + $0x14] sm:$0xf] %vm463_vm0, %v1271_v59  ;;  %v398_v60 = vpop.f32.mrb[4].mxu0  ;;  %v418_v61 = vpop.f32.mrb[4].mxu1 }
 0x10c   : > { %480 = vrot.lane.b32.xlu0 %v1586_v47, %s1431_s5  ;;  %v399_v62 = vadd.f32 %v398_v60, %v267_v34  ;;  %v400_v63 = vpop.f32.mrb[5].mxu0  ;;  %v419_v0 = vadd.f32 %v418_v61, %v267_v34  ;;  %v420_v1 = vpop.f32.mrb[5].mxu1 }
 0x10d   : > { %v401_v2 = vadd.f32 %v400_v63, %v271_v35  ;;  %v402_v3 = vpop.f32.mrb[6].mxu0  ;;  %v421_v4 = vadd.f32 %v420_v1, %v271_v35  ;;  %v422_v5 = vpop.f32.mrb[6].mxu1 }
 0x10e   : > { %507 = vrot.lane.b32.xlu1 %v1600_v56, %s1432_s6  ;;  %v1260_v6 = vpack.c.bf16 %v399_v62, %v399_v62  ;;  %v403_v7 = vadd.f32 %v402_v3, %v267_v34  ;;  %v404_v8 = vpop.f32.mrb[7].mxu0  ;;  %v1264_v9 = vpack.c.bf16 %v419_v0, %v419_v0  ;;  %v423_v10 = vadd.f32 %v422_v5, %v267_v34  ;;  %v424_v11 = vpop.f32.mrb[7].mxu1 }
 0x10f   : > { %v1268_v12 = vpack.c.bf16 %v401_v2, %v401_v2  ;;  %v405_v13 = vadd.f32 %v404_v8, %v271_v35  ;;  %v1272_v14 = vpack.c.bf16 %v421_v4, %v421_v4  ;;  %v425_v15 = vadd.f32 %v424_v11, %v271_v35 }
 0x110   : > { %505 = vrot.lane.b32.xlu0 %v1584_v46, %s1432_s6  ;;  %466 = vst.msk [vmem:[%s1592_s15 + $0x8] sm:$0xf] %vm463_vm0, %v1260_v6  ;;  %v1261_v16 = vpack.c.bf16 %v403_v7, %v403_v7  ;;  %470 = vst.msk [vmem:[%s1592_s15 + $0x18] sm:$0xf] %vm463_vm0, %v1264_v9  ;;  %v1265_v17 = vpack.c.bf16 %v423_v10, %v423_v10 }
 0x111   : > { %601 = vst.msk [vmem:[%s1604_s17 + $0x8] sm:$0xf] %vm463_vm0, %v1268_v12  ;;  %v1269_v18 = vpack.c.bf16 %v405_v13, %v405_v13  ;;  %605 = vst.msk [vmem:[%s1604_s17 + $0x18] sm:$0xf] %vm463_vm0, %v1272_v14  ;;  %v1273_v19 = vpack.c.bf16 %v425_v15, %v425_v15  ;;  %v737_v4 = vld [vmem:[%s1592_s15] sm:$0xff] (%p1505_p5)  }
 0x112   : > { %515 = vrot.lane.b32.xlu1 %v1263_v57, %s1432_s6  ;;  %467 = vst.msk [vmem:[%s1592_s15 + $0xc] sm:$0xf] %vm463_vm0, %v1261_v16  ;;  %471 = vst.msk [vmem:[%s1592_s15 + $0x1c] sm:$0xf] %vm463_vm0, %v1265_v17 }
 0x113   : > { %602 = vst.msk [vmem:[%s1604_s17 + $0xc] sm:$0xf] %vm463_vm0, %v1269_v18  ;;  %606 = vst.msk [vmem:[%s1604_s17 + $0x1c] sm:$0xf] %vm463_vm0, %v1273_v19 }
 0x114   : > { %513 = vrot.lane.b32.xlu0 %v1586_v47, %s1432_s6  ;;  %738 = vst [vmem:[%s721_s13] sm:$0xff] (%p1505_p5), %v737_v4  }
 0x116   : > { %540 = vrot.lane.b32.xlu1 %v1600_v56, %s1433_s7 }
 0x118   : > { %538 = vrot.lane.b32.xlu0 %v1584_v46, %s1433_s7 }
 0x119   : > { %v741_v5 = vld [vmem:[%s1592_s15 + $0x8] sm:$0xff] (%p1505_p5)   ;;  %v749_v7 = vld [vmem:[%s1592_s15 + $0x18] sm:$0xff] (%p1505_p5)  }
 0x11a   : > { %548 = vrot.lane.b32.xlu1 %v1263_v57, %s1433_s7  ;;  %742 = vst [vmem:[%s721_s13 + $0x8] sm:$0xff] (%p1505_p5), %v741_v5   ;;  %750 = vst [vmem:[%s721_s13 + $0x18] sm:$0xff] (%p1505_p5), %v749_v7  }
 0x11c   : > { %546 = vrot.lane.b32.xlu0 %v1586_v47, %s1433_s7 }
 0x11e   : > { %609 = vrot.lane.b32.xlu1 %v1267_v58, %s1431_s5 }
 0x120   : > { %607 = vrot.lane.b32.xlu0 %v1588_v52, %s1431_s5 }
 0x122   : > { %617 = vrot.lane.b32.xlu1 %v1271_v59, %s1431_s5 }
 0x124   : > { %615 = vrot.lane.b32.xlu0 %v1590_v53, %s1431_s5 }
 0x126   : > { %642 = vrot.lane.b32.xlu1 %v1267_v58, %s1432_s6 }
 0x128   : > { %640 = vrot.lane.b32.xlu0 %v1588_v52, %s1432_s6 }
 0x12a   : > { %650 = vrot.lane.b32.xlu1 %v1271_v59, %s1432_s6 }
 0x12c   : > { %648 = vrot.lane.b32.xlu0 %v1590_v53, %s1432_s6 }
 0x12e   : > { %675 = vrot.lane.b32.xlu1 %v1267_v58, %s1433_s7 }
 0x130   : > { %673 = vrot.lane.b32.xlu0 %v1588_v52, %s1433_s7 }
 0x132   : > { %683 = vrot.lane.b32.xlu1 %v1271_v59, %s1433_s7 }
 0x134   : > { %681 = vrot.lane.b32.xlu0 %v1590_v53, %s1433_s7 }
 0x136   : > { %476 = vrot.lane.b32.xlu1 %v1260_v6, %s1431_s5 }
 0x138   : > { %474 = vrot.lane.b32.xlu0 %v1600_v56, %s1431_s5 }
 0x13a   : > { %478 = vrot.lane.b32.xlu1 %v1261_v16, %s1431_s5 }
 0x13c   : > { %484 = vrot.lane.b32.xlu0 %v1264_v9, %s1431_s5 }
 0x13e   : > { %486 = vrot.lane.b32.xlu1 %v1265_v17, %s1431_s5 }
 0x140   : > { %509 = vrot.lane.b32.xlu0 %v1260_v6, %s1432_s6 }
 0x142   : > { %511 = vrot.lane.b32.xlu1 %v1261_v16, %s1432_s6 }
 0x144   : > { %517 = vrot.lane.b32.xlu0 %v1264_v9, %s1432_s6 }
 0x146   : > { %519 = vrot.lane.b32.xlu1 %v1265_v17, %s1432_s6 }
 0x148   : > { %542 = vrot.lane.b32.xlu0 %v1260_v6, %s1433_s7  ;;  %v745_v6 = vld [vmem:[%s1592_s15 + $0x10] sm:$0xff] (%p1505_p5)  }
 0x149   : > { %746 = vst [vmem:[%s721_s13 + $0x10] sm:$0xff] (%p1505_p5), %v745_v6  }
 0x14a   : > { %544 = vrot.lane.b32.xlu1 %v1261_v16, %s1433_s7 }
 0x14c   : > { %550 = vrot.lane.b32.xlu0 %v1264_v9, %s1433_s7 }
 0x14e   : > { %552 = vrot.lane.b32.xlu1 %v1265_v17, %s1433_s7 }
 0x150   : > { %611 = vrot.lane.b32.xlu0 %v1268_v12, %s1431_s5 }
 0x152   : > { %613 = vrot.lane.b32.xlu1 %v1269_v18, %s1431_s5 }
 0x154   : > { %619 = vrot.lane.b32.xlu0 %v1272_v14, %s1431_s5 }
 0x156   : > { %621 = vrot.lane.b32.xlu1 %v1273_v19, %s1431_s5 }
 0x158   : > { %644 = vrot.lane.b32.xlu0 %v1268_v12, %s1432_s6 }
 0x15a   : > { %646 = vrot.lane.b32.xlu1 %v1269_v18, %s1432_s6 }
 0x15c   : > { %652 = vrot.lane.b32.xlu0 %v1272_v14, %s1432_s6 }
 0x15e   : > { %654 = vrot.lane.b32.xlu1 %v1273_v19, %s1432_s6 }
 0x160   : > { %677 = vrot.lane.b32.xlu0 %v1268_v12, %s1433_s7 }
 0x162   : > { %679 = vrot.lane.b32.xlu1 %v1269_v18, %s1433_s7 }
 0x164   : > { %685 = vrot.lane.b32.xlu0 %v1272_v14, %s1433_s7 }
 0x166   : > { %687 = vrot.lane.b32.xlu1 %v1273_v19, %s1433_s7 }
 0x17a   : > { %v473_v20 = vpop.permute.xlu0 %472 }
 0x17b   : > { %1192 = vst.msk [vmem:[%s1592_s15 + $0x20] sm:$0xf] %vm463_vm0, %v473_v20 }
 0x17c   : > { %v483_v21 = vpop.permute.xlu1 %482 }
 0x17d   : > { %1197 = vst.msk [vmem:[%s1592_s15 + $0x34] sm:$0xf] %vm463_vm0, %v483_v21 }
 0x17e   : > { %v481_v22 = vpop.permute.xlu0 %480 }
 0x17f   : > { %1196 = vst.msk [vmem:[%s1592_s15 + $0x30] sm:$0xf] %vm463_vm0, %v481_v22 }
 0x180   : > { %v508_v23 = vpop.permute.xlu1 %507 }
 0x181   : > { %1201 = vst.msk [vmem:[%s1592_s15 + $0x44] sm:$0xf] %vm463_vm0, %v508_v23 }
 0x182   : > { %v506_v24 = vpop.permute.xlu0 %505 }
 0x183   : > { %1200 = vst.msk [vmem:[%s1592_s15 + $0x40] sm:$0xf] %vm463_vm0, %v506_v24 }
 0x184   : > { %v516_v25 = vpop.permute.xlu1 %515 }
 0x185   : > { %1205 = vst.msk [vmem:[%s1592_s15 + $0x54] sm:$0xf] %vm463_vm0, %v516_v25 }
 0x186   : > { %v514_v26 = vpop.permute.xlu0 %513  ;;  %v761_v10 = vld [vmem:[%s1592_s15 + $0x30] sm:$0xff] (%p1505_p5)  }
 0x187   : > { %1204 = vst.msk [vmem:[%s1592_s15 + $0x50] sm:$0xf] %vm463_vm0, %v514_v26  ;;  %762 = vst [vmem:[%s721_s13 + $0x50] sm:$0xff] (%p1505_p5), %v761_v10  }
 0x188   : > { %v541_v27 = vpop.permute.xlu1 %540 }
 0x189   : > { %1209 = vst.msk [vmem:[%s1592_s15 + $0x64] sm:$0xf] %vm463_vm0, %v541_v27 }
 0x18a   : > { %v539_v28 = vpop.permute.xlu0 %538  ;;  %v769_v12 = vld [vmem:[%s1592_s15 + $0x40] sm:$0xff] (%p1505_p5)  }
 0x18b   : > { %1208 = vst.msk [vmem:[%s1592_s15 + $0x60] sm:$0xf] %vm463_vm0, %v539_v28  ;;  %770 = vst [vmem:[%s721_s13 + $0x80] sm:$0xff] (%p1505_p5), %v769_v12  }
 0x18c   : > { %v549_v29 = vpop.permute.xlu1 %548 }
 0x18d   : > { %1213 = vst.msk [vmem:[%s1592_s15 + $0x74] sm:$0xf] %vm463_vm0, %v549_v29 }
 0x18e   : > { %v547_v30 = vpop.permute.xlu0 %546  ;;  %v777_v14 = vld [vmem:[%s1592_s15 + $0x50] sm:$0xff] (%p1505_p5)  }
 0x18f   : > { %1212 = vst.msk [vmem:[%s1592_s15 + $0x70] sm:$0xf] %vm463_vm0, %v547_v30  ;;  %778 = vst [vmem:[%s721_s13 + $0x90] sm:$0xff] (%p1505_p5), %v777_v14  }
 0x190   : > { %v610_v31 = vpop.permute.xlu1 %609 }
 0x191   : > { %1225 = vst.msk [vmem:[%s1604_s17 + $0x24] sm:$0xf] %vm463_vm0, %v610_v31 }
 0x192   : > { %v608_v32 = vpop.permute.xlu0 %607  ;;  %v785_v16 = vld [vmem:[%s1592_s15 + $0x60] sm:$0xff] (%p1505_p5)  }
 0x193   : > { %1224 = vst.msk [vmem:[%s1604_s17 + $0x20] sm:$0xf] %vm463_vm0, %v608_v32  ;;  %786 = vst [vmem:[%s721_s13 + $0xc0] sm:$0xff] (%p1505_p5), %v785_v16  }
 0x194   : > { %v618_v33 = vpop.permute.xlu1 %617 }
 0x195   : > { %1229 = vst.msk [vmem:[%s1604_s17 + $0x34] sm:$0xf] %vm463_vm0, %v618_v33 }
 0x196   : > { %v616_v34 = vpop.permute.xlu0 %615  ;;  %v793_v18 = vld [vmem:[%s1592_s15 + $0x70] sm:$0xff] (%p1505_p5)  }
 0x197   : > { %1228 = vst.msk [vmem:[%s1604_s17 + $0x30] sm:$0xf] %vm463_vm0, %v616_v34  ;;  %794 = vst [vmem:[%s721_s13 + $0xd0] sm:$0xff] (%p1505_p5), %v793_v18  }
 0x198   : > { %v643_v35 = vpop.permute.xlu1 %642 }
 0x199   : > { %1233 = vst.msk [vmem:[%s1604_s17 + $0x44] sm:$0xf] %vm463_vm0, %v643_v35 }
 0x19a   : > { %v641_v36 = vpop.permute.xlu0 %640 }
 0x19b   : > { %1232 = vst.msk [vmem:[%s1604_s17 + $0x40] sm:$0xf] %vm463_vm0, %v641_v36 }
 0x19c   : > { %v651_v37 = vpop.permute.xlu1 %650 }
 0x19d   : > { %1237 = vst.msk [vmem:[%s1604_s17 + $0x54] sm:$0xf] %vm463_vm0, %v651_v37 }
 0x19e   : > { %v649_v38 = vpop.permute.xlu0 %648 }
 0x19f   : > { %1236 = vst.msk [vmem:[%s1604_s17 + $0x50] sm:$0xf] %vm463_vm0, %v649_v38 }
 0x1a0   : > { %v676_v39 = vpop.permute.xlu1 %675 }
 0x1a1   : > { %1241 = vst.msk [vmem:[%s1604_s17 + $0x64] sm:$0xf] %vm463_vm0, %v676_v39 }
 0x1a2   : > { %v674_v40 = vpop.permute.xlu0 %673 }
 0x1a3   : > { %1240 = vst.msk [vmem:[%s1604_s17 + $0x60] sm:$0xf] %vm463_vm0, %v674_v40 }
 0x1a4   : > { %v684_v41 = vpop.permute.xlu1 %683 }
 0x1a5   : > { %1245 = vst.msk [vmem:[%s1604_s17 + $0x74] sm:$0xf] %vm463_vm0, %v684_v41 }
 0x1a6   : > { %v682_v42 = vpop.permute.xlu0 %681 }
 0x1a7   : > { %1244 = vst.msk [vmem:[%s1604_s17 + $0x70] sm:$0xf] %vm463_vm0, %v682_v42 }
 0x1a8   : > { %v477_v43 = vpop.permute.xlu1 %476 }
 0x1a9   : > { %1194 = vst.msk [vmem:[%s1592_s15 + $0x28] sm:$0xf] %vm463_vm0, %v477_v43 }
 0x1aa   : > { %v475_v44 = vpop.permute.xlu0 %474 }
 0x1ab   : > { %1193 = vst.msk [vmem:[%s1592_s15 + $0x24] sm:$0xf] %vm463_vm0, %v475_v44 }
 0x1ac   : > { %v479_v45 = vpop.permute.xlu1 %478 }
 0x1ad   : > { %1195 = vst.msk [vmem:[%s1592_s15 + $0x2c] sm:$0xf] %vm463_vm0, %v479_v45 }
 0x1ae   : > { %v485_v46 = vpop.permute.xlu0 %484 }
 0x1af   : > { %1198 = vst.msk [vmem:[%s1592_s15 + $0x38] sm:$0xf] %vm463_vm0, %v485_v46 }
 0x1b0   : > { %v487_v47 = vpop.permute.xlu1 %486 }
 0x1b1   : > { %1199 = vst.msk [vmem:[%s1592_s15 + $0x3c] sm:$0xf] %vm463_vm0, %v487_v47 }
 0x1b2   : > { %v510_v48 = vpop.permute.xlu0 %509  ;;  %v753_v8 = vld [vmem:[%s1592_s15 + $0x20] sm:$0xff] (%p1505_p5)  }
 0x1b3   : > { %1202 = vst.msk [vmem:[%s1592_s15 + $0x48] sm:$0xf] %vm463_vm0, %v510_v48  ;;  %754 = vst [vmem:[%s721_s13 + $0x40] sm:$0xff] (%p1505_p5), %v753_v8  }
 0x1b4   : > { %v512_v49 = vpop.permute.xlu1 %511  ;;  %v757_v9 = vld [vmem:[%s1592_s15 + $0x28] sm:$0xff] (%p1505_p5)  }
 0x1b5   : > { %1203 = vst.msk [vmem:[%s1592_s15 + $0x4c] sm:$0xf] %vm463_vm0, %v512_v49  ;;  %758 = vst [vmem:[%s721_s13 + $0x48] sm:$0xff] (%p1505_p5), %v757_v9  }
 0x1b6   : > { %v518_v50 = vpop.permute.xlu0 %517 }
 0x1b7   : > { %1206 = vst.msk [vmem:[%s1592_s15 + $0x58] sm:$0xf] %vm463_vm0, %v518_v50 }
 0x1b8   : > { %v520_v51 = vpop.permute.xlu1 %519  ;;  %v765_v11 = vld [vmem:[%s1592_s15 + $0x38] sm:$0xff] (%p1505_p5)  }
 0x1b9   : > { %1207 = vst.msk [vmem:[%s1592_s15 + $0x5c] sm:$0xf] %vm463_vm0, %v520_v51  ;;  %766 = vst [vmem:[%s721_s13 + $0x58] sm:$0xff] (%p1505_p5), %v765_v11  }
 0x1ba   : > { %v543_v52 = vpop.permute.xlu0 %542 }
 0x1bb   : > { %1210 = vst.msk [vmem:[%s1592_s15 + $0x68] sm:$0xf] %vm463_vm0, %v543_v52 }
 0x1bc   : > { %v545_v53 = vpop.permute.xlu1 %544  ;;  %v773_v13 = vld [vmem:[%s1592_s15 + $0x48] sm:$0xff] (%p1505_p5)  }
 0x1bd   : > { %1211 = vst.msk [vmem:[%s1592_s15 + $0x6c] sm:$0xf] %vm463_vm0, %v545_v53  ;;  %774 = vst [vmem:[%s721_s13 + $0x88] sm:$0xff] (%p1505_p5), %v773_v13  }
 0x1be   : > { %v551_v54 = vpop.permute.xlu0 %550 }
 0x1bf   : > { %1214 = vst.msk [vmem:[%s1592_s15 + $0x78] sm:$0xf] %vm463_vm0, %v551_v54 }
 0x1c0   : > { %v553_v55 = vpop.permute.xlu1 %552  ;;  %v781_v15 = vld [vmem:[%s1592_s15 + $0x58] sm:$0xff] (%p1505_p5)  }
 0x1c1   : > { %1215 = vst.msk [vmem:[%s1592_s15 + $0x7c] sm:$0xf] %vm463_vm0, %v553_v55  ;;  %782 = vst [vmem:[%s721_s13 + $0x98] sm:$0xff] (%p1505_p5), %v781_v15  }
 0x1c2   : > { %v612_v56 = vpop.permute.xlu0 %611 }
 0x1c3   : > { %1226 = vst.msk [vmem:[%s1604_s17 + $0x28] sm:$0xf] %vm463_vm0, %v612_v56 }
 0x1c4   : > { %v614_v57 = vpop.permute.xlu1 %613  ;;  %v789_v17 = vld [vmem:[%s1592_s15 + $0x68] sm:$0xff] (%p1505_p5)  }
 0x1c5   : > { %1227 = vst.msk [vmem:[%s1604_s17 + $0x2c] sm:$0xf] %vm463_vm0, %v614_v57  ;;  %790 = vst [vmem:[%s721_s13 + $0xc8] sm:$0xff] (%p1505_p5), %v789_v17  }
 0x1c6   : > { %v620_v58 = vpop.permute.xlu0 %619 }
 0x1c7   : > { %1230 = vst.msk [vmem:[%s1604_s17 + $0x38] sm:$0xf] %vm463_vm0, %v620_v58 }
 0x1c8   : > { %v622_v59 = vpop.permute.xlu1 %621  ;;  %v797_v19 = vld [vmem:[%s1592_s15 + $0x78] sm:$0xff] (%p1505_p5)  }
 0x1c9   : > { %1231 = vst.msk [vmem:[%s1604_s17 + $0x3c] sm:$0xf] %vm463_vm0, %v622_v59  ;;  %798 = vst [vmem:[%s721_s13 + $0xd8] sm:$0xff] (%p1505_p5), %v797_v19  }
 0x1ca   : > { %v645_v60 = vpop.permute.xlu0 %644 }
 0x1cb   : > { %1234 = vst.msk [vmem:[%s1604_s17 + $0x48] sm:$0xf] %vm463_vm0, %v645_v60 }
 0x1cc   : > { %v647_v61 = vpop.permute.xlu1 %646 }
 0x1cd   : > { %1235 = vst.msk [vmem:[%s1604_s17 + $0x4c] sm:$0xf] %vm463_vm0, %v647_v61 }
 0x1ce   : > { %v653_v62 = vpop.permute.xlu0 %652 }
 0x1cf   : > { %1238 = vst.msk [vmem:[%s1604_s17 + $0x58] sm:$0xf] %vm463_vm0, %v653_v62 }
 0x1d0   : > { %v655_v63 = vpop.permute.xlu1 %654 }
 0x1d1   : > { %1239 = vst.msk [vmem:[%s1604_s17 + $0x5c] sm:$0xf] %vm463_vm0, %v655_v63 }
 0x1d2   : > { %v678_v0 = vpop.permute.xlu0 %677 }
 0x1d3   : > { %1242 = vst.msk [vmem:[%s1604_s17 + $0x68] sm:$0xf] %vm463_vm0, %v678_v0  ;;  %716 = sbr.rel (!%p1505_p5) target bundleno = 474 (0x1da), region = 36 }
 0x1d4   : > { %v680_v1 = vpop.permute.xlu1 %679 }
 0x1d5   : > { %1243 = vst.msk [vmem:[%s1604_s17 + $0x6c] sm:$0xf] %vm463_vm0, %v680_v1 }
 0x1d6   : > { %v686_v2 = vpop.permute.xlu0 %685 }
 0x1d7   : > { %1246 = vst.msk [vmem:[%s1604_s17 + $0x78] sm:$0xf] %vm463_vm0, %v686_v2 }
 0x1d8   : > { %v688_v3 = vpop.permute.xlu1 %687 }
 0x1d9   : > { %1247 = vst.msk [vmem:[%s1604_s17 + $0x7c] sm:$0xf] %vm463_vm0, %v688_v3 }
 0x1da PF: > { %887 = sbr.rel (!%p1505_p5) target bundleno = 486 (0x1e6), region = 77  ;;  %s1254_s14 = sshll.u32 (%p1505_p5), %s1416_s18, 6  ;;  %v908_v20 = vld [vmem:[%s1604_s17] sm:$0xff] (%p1505_p5)   ;;  %v912_v21 = vld [vmem:[%s1604_s17 + $0x8] sm:$0xff] (%p1505_p5)   ;;  %v916_v22 = vld [vmem:[%s1604_s17 + $0x10] sm:$0xff] (%p1505_p5)  }
 0x1db   : > { %s890_s26 = sadd.s32 (%p1505_p5), %s1254_s14, %s1536_s24  ;;  %v920_v23 = vld [vmem:[%s1604_s17 + $0x18] sm:$0xff] (%p1505_p5)   ;;  %v924_v24 = vld [vmem:[%s1604_s17 + $0x20] sm:$0xff] (%p1505_p5)   ;;  %v928_v25 = vld [vmem:[%s1604_s17 + $0x28] sm:$0xff] (%p1505_p5)  }
 0x1dc   : > { %s1255_s25 = sshll.u32 (%p1505_p5), %s890_s26, 2  ;;  %v932_v26 = vld [vmem:[%s1604_s17 + $0x30] sm:$0xff] (%p1505_p5)   ;;  %v936_v27 = vld [vmem:[%s1604_s17 + $0x38] sm:$0xff] (%p1505_p5)   ;;  %v940_v28 = vld [vmem:[%s1604_s17 + $0x40] sm:$0xff] (%p1505_p5)  }
 0x1dd   : > { %s892_s29 = scalar_lea.vmem (%p1505_p5), %s1865_s4, %s1255_s25  ;;  %v944_v29 = vld [vmem:[%s1604_s17 + $0x48] sm:$0xff] (%p1505_p5)   ;;  %v948_v30 = vld [vmem:[%s1604_s17 + $0x50] sm:$0xff] (%p1505_p5)   ;;  %v952_v31 = vld [vmem:[%s1604_s17 + $0x58] sm:$0xff] (%p1505_p5)  }
 0x1de   : > { %909 = vst [vmem:[%s892_s29] sm:$0xff] (%p1505_p5), %v908_v20   ;;  %913 = vst [vmem:[%s892_s29 + $0x8] sm:$0xff] (%p1505_p5), %v912_v21   ;;  %v956_v32 = vld [vmem:[%s1604_s17 + $0x60] sm:$0xff] (%p1505_p5)   ;;  %v960_v33 = vld [vmem:[%s1604_s17 + $0x68] sm:$0xff] (%p1505_p5)  }
 0x1df   : > { %917 = vst [vmem:[%s892_s29 + $0x10] sm:$0xff] (%p1505_p5), %v916_v22   ;;  %921 = vst [vmem:[%s892_s29 + $0x18] sm:$0xff] (%p1505_p5), %v920_v23   ;;  %v964_v34 = vld [vmem:[%s1604_s17 + $0x70] sm:$0xff] (%p1505_p5)  }
 0x1e0   : > { %925 = vst [vmem:[%s892_s29 + $0x40] sm:$0xff] (%p1505_p5), %v924_v24   ;;  %929 = vst [vmem:[%s892_s29 + $0x48] sm:$0xff] (%p1505_p5), %v928_v25   ;;  %v968_v35 = vld [vmem:[%s1604_s17 + $0x78] sm:$0xff] (%p1505_p5)  }
 0x1e1   : > { %933 = vst [vmem:[%s892_s29 + $0x50] sm:$0xff] %v932_v26   ;;  %937 = vst [vmem:[%s892_s29 + $0x58] sm:$0xff] %v936_v27  }
 0x1e2   : > { %941 = vst [vmem:[%s892_s29 + $0x80] sm:$0xff] %v940_v28   ;;  %945 = vst [vmem:[%s892_s29 + $0x88] sm:$0xff] %v944_v29  }
 0x1e3   : > { %949 = vst [vmem:[%s892_s29 + $0x90] sm:$0xff] %v948_v30   ;;  %953 = vst [vmem:[%s892_s29 + $0x98] sm:$0xff] %v952_v31  }
 0x1e4   : > { %957 = vst [vmem:[%s892_s29 + $0xc0] sm:$0xff] %v956_v32   ;;  %961 = vst [vmem:[%s892_s29 + $0xc8] sm:$0xff] %v960_v33  }
 0x1e5   : > { %965 = vst [vmem:[%s892_s29 + $0xd0] sm:$0xff] %v964_v34   ;;  %969 = vst [vmem:[%s892_s29 + $0xd8] sm:$0xff] %v968_v35  }
 0x1e6 PF: > { %s15_s21 = sadd.s32 1, %s1428_s21   ;;  %s1867_s15 = smov %s1408_s16 }
 0x1e7   : > { %p12_p11 = scmp.ge.s32.totalorder %s15_s21, 6   ;;  %s1868_s16 = smov %s1516_s30 }
 0x1e8   : > { %s1869_s17 = smov %s1420_s19  ;;  %s1870_s18 = smov %s1424_s20 }
 0x1e9   : > { %s1871_s19 = smov %s1874_s22  ;;  %s1872_s20 = smov %s1878_s23 }
 0x1ea   :  { %14 = sbr.rel (!%p12_p11) target bundleno = 4 (0x4), region = 162 }

// kernel: transformer_decoder_layer.9
= control target key start
LH: loop header
LB: loop body
LE: loop exit
PB: predicated region body
PF: predicated region fallthrough
CT: control target
= control target key end

     0   :  { %s6987_s0 = inlined_call_operand.vmem [shape: bf16[2,4,256,32], index: 0, kind: input, shape index: {}]   ;;  %s6988_s1 = inlined_call_operand.vmem [shape: bf16[2,4,256,32], index: 1, kind: input, shape index: {}]   ;;  %s6989_s2 = inlined_call_operand.vmem [shape: bf16[2,4,256,32], index: 2, kind: input, shape index: {}]   ;;  %s6990_s3 = inlined_call_operand.vmem [shape: s8[2,256,256], index: 3, kind: input, shape index: {}]   ;;  %s6991_s4 = inlined_call_operand.vmem [shape: bf16[2,4,256,32], index: 4, kind: output, shape index: {}]  }
   0x1   :  { %7033 = sst [smem:[#allocation53_spill]] %s6991_s4 }
   0x2   :  { %s5291_s15 = smov 0   ;;  %s5293_s16 = smov 0  }
   0x3   :  { %s5295_s17 = smov 0   ;;  %s5297_s18 = smov 0  }
   0x4   :  { %s5299_s19 = smov 0   ;;  %s5301_s20 = smov 0  }
   0x5   :  { %s5303_s21 = smov 0   ;;  %s5305_s22 = smov 0  }
   0x6   :  { %s5307_s23 = smov 0   ;;  %s5309_s24 = smov 0  }
   0x7   :  { %s5311_s25 = smov 0   ;;  %s5313_s26 = smov 0  }
   0x8   :  { %s5315_s27 = smov 0  }
   0x9 LB: > { %7034 = sst [smem:[#allocation10_spill]] %s5212_s15  ;;  %s26_s28 = sadd.s32 1, %s5248_s24  ;;  %s5260_s27 = sphi %s5315_s27, %s14_s27   ;;  %s5256_s26 = sphi %s5313_s26, %s7183_s26   ;;  %s5252_s25 = sphi %s5311_s25, %s7182_s25   ;;  %s5248_s24 = sphi %s5309_s24, %s7181_s24   ;;  %s5244_s23 = sphi %s5307_s23, %s7180_s23   ;;  %s5240_s22 = sphi %s5305_s22, %s7179_s22   ;;  %s5236_s21 = sphi %s5303_s21, %s7178_s21   ;;  %s5232_s20 = sphi %s5301_s20, %s7177_s20   ;;  %s5228_s19 = sphi %s5299_s19, %s7176_s19   ;;  %s5224_s18 = sphi %s5297_s18, %s7175_s18   ;;  %s5220_s17 = sphi %s5295_s17, %s7174_s17   ;;  %s5216_s16 = sphi %s5293_s16, %s7173_s16   ;;  %s5212_s15 = sphi %s5291_s15, %s7172_s15  }
   0xa   : > { %7035 = sst [smem:[#allocation11_spill]] %s5236_s21  ;;  %p27_p0 = scmp.ge.s32.totalorder %s26_s28, 2 }
   0xb   : > { %7036 = sst [smem:[#allocation12_spill]] %s5240_s22  ;;  %s29_s29 = sadd.s32 1, %s5252_s25 }
   0xc   : > { %7037 = sst [smem:[#allocation13_spill]] %s5244_s23  ;;  %s4258_s30 = sadd.s32 4294967295, %s5260_s27  }
   0xd   : > { %s33_s5 = sadd.s32 1, %s5256_s26  ;;  %s7185_s28 = smov (%p27_p0, %s26_s28), 0 }
   0xe   : > { %7038 = sst [smem:[#allocation14_spill]] %s7185_s28  ;;  %s7187_s29 = smov (!%p27_p0, %s29_s29), %s5252_s25 }
   0xf   : > { %p49_p1 = scmp.ne.s32.totalorder %s5232_s20, %s5228_s19  ;;  %p50_p2 = scmp.eq.s32.totalorder %s5260_s27, 0 }
  0x10   : > { %p31_p3 = scmp.ge.s32.totalorder %s7187_s29, 4  ;;  %s42_s6 = sadd.s32 1, %s5232_s20 }
  0x11   : > { %p5372_p4 = por %p50_p2, %p49_p1  ;;  %s66_s8 = ssub.s32 %s5248_s24, %s7185_s28 }
  0x12   : > { %s7189_s29 = smov (%p31_p3, %s7187_s29), 0  ;;  %s7191_s5 = smov (!%p31_p3, %s33_s5), %s5256_s26 }
  0x13   : > { %7040 = sst [smem:[#allocation15_spill]] %s7189_s29  ;;  %s70_s9 = sadd.s32 1, %s5224_s18 }
  0x14   : > { %p77_p5 = scmp.ne.s32.totalorder %s5224_s18, %s5220_s17  ;;  %p35_p6 = scmp.ge.s32.totalorder %s7191_s5, 2 }
  0x15   : > { %s38_s10 = ssub.s32 %s5252_s25, %s7189_s29  ;;  %p135_p8 = scmp.ne.s32.totalorder %s5216_s16, %s5212_s15 }
  0x16   : > { %p5388_p7 = por %p77_p5, %p50_p2  ;;  %s7193_s5 = smov (%p35_p6, %s7191_s5), 0 }
  0x17   : > { %p5398_p9 = por %p135_p8, %p50_p2  ;;  %p167_p10 = scmp.eq.s32.totalorder %s4258_s30, 15 }
  0x18   : > { %s37_s13 = ssub.s32 %s5256_s26, %s7193_s5  ;;  %s128_s14 = sadd.s32 1, %s5216_s16 }
  0x19   : > { %s39_s28 = sor.u32 %s38_s10, %s37_s13  ;;  %s67_s29 = sor.u32 %s66_s8, %s37_s13 }
  0x1a   : > { %p40_p11 = scmp.eq.s32.totalorder %s39_s28, 0  ;;  %p68_p12 = scmp.eq.s32.totalorder %s67_s29, 0 }
  0x1b   : > { %s125_s4 = sor.u32 %s66_s8, %s39_s28  ;;  %p5408_p13 = por %p167_p10, %p49_p1 }
  0x1c   : > { %s5413_s22 = scalar_select %p40_p11, %s5232_s20, %s42_s6  }
  0x1d   : > { %s5416_s21 = scalar_select %p68_p12, %s5224_s18, %s70_s9  }
  0x1e   : > { %p126_p0 = scmp.eq.s32.totalorder %s125_s4, 0  ;;  %p4261_p2 = scmp.ge.s32.totalorder %s5260_s27, 16 }
  0x20   : > { %s5419_s15 = scalar_select %p126_p0, %s5216_s16, %s128_s14  }
  0x21   : > { %189 = sbr.rel (%p4261_p2) target bundleno = 109 (0x6d), region = 16 }
  0x28   : > { %192 = sbr.rel (!%p5372_p4) target bundleno = 55 (0x37), region = 20  ;;  %s194_s28 = sand.u32 (%p5372_p4), 1, %s5232_s20  }
  0x29   : > { %s4263_s29 = sshll.u32 (%p5372_p4), %s5252_s25, 3  ;;  %s4262_s30 = sshll.u32 (%p5372_p4), %s194_s28, 7 }
  0x2a   : > { %s4264_s8 = sshll.u32 (%p5372_p4), %s5256_s26, 7  ;;  %s196_s7 = scalar_lea.vmem (%p5372_p4), [#allocation5], %s4262_s30 }
  0x2b   : > { %s199_s6 = sadd.s32 (%p5372_p4), %s4264_s8, %s4263_s29 }
  0x2c   : > { %s4265_s10 = sshll.u32 (%p5372_p4), %s199_s6, 2 }
  0x2d   : > { %s5430_s4 = scalar_lea.vmem (%p5372_p4), %s6987_s0, %s4265_s10 }
  0x2e   : > { %v217_v0 = vld [vmem:[%s5430_s4] sm:$0xff] (%p5372_p4)   ;;  %v221_v1 = vld [vmem:[%s5430_s4 + $0x8] sm:$0xff] (%p5372_p4)   ;;  %v225_v2 = vld [vmem:[%s5430_s4 + $0x10] sm:$0xff] (%p5372_p4)  }
  0x2f   : > { %218 = vst [vmem:[%s196_s7] sm:$0xff] %v217_v0   ;;  %222 = vst [vmem:[%s196_s7 + $0x8] sm:$0xff] %v221_v1   ;;  %v229_v3 = vld [vmem:[%s5430_s4 + $0x18] sm:$0xff]   ;;  %v233_v4 = vld [vmem:[%s5430_s4 + $0x80] sm:$0xff]  }
  0x30   : > { %226 = vst [vmem:[%s196_s7 + $0x10] sm:$0xff] %v225_v2   ;;  %v237_v5 = vld [vmem:[%s5430_s4 + $0x88] sm:$0xff]   ;;  %230 = vst [vmem:[%s196_s7 + $0x18] sm:$0xff] %v229_v3   ;;  %v241_v6 = vld [vmem:[%s5430_s4 + $0x90] sm:$0xff]  }
  0x31   : > { %234 = vst [vmem:[%s196_s7 + $0x20] sm:$0xff] %v233_v4   ;;  %238 = vst [vmem:[%s196_s7 + $0x28] sm:$0xff] %v237_v5   ;;  %v245_v7 = vld [vmem:[%s5430_s4 + $0x98] sm:$0xff]   ;;  %v249_v8 = vld [vmem:[%s5430_s4 + $0x100] sm:$0xff]  }
  0x32   : > { %242 = vst [vmem:[%s196_s7 + $0x30] sm:$0xff] %v241_v6   ;;  %246 = vst [vmem:[%s196_s7 + $0x38] sm:$0xff] %v245_v7   ;;  %v253_v9 = vld [vmem:[%s5430_s4 + $0x108] sm:$0xff]   ;;  %v257_v10 = vld [vmem:[%s5430_s4 + $0x110] sm:$0xff]  }
  0x33   : > { %250 = vst [vmem:[%s196_s7 + $0x40] sm:$0xff] %v249_v8   ;;  %v261_v11 = vld [vmem:[%s5430_s4 + $0x118] sm:$0xff]   ;;  %254 = vst [vmem:[%s196_s7 + $0x48] sm:$0xff] %v253_v9   ;;  %v265_v12 = vld [vmem:[%s5430_s4 + $0x180] sm:$0xff]  }
  0x34   : > { %258 = vst [vmem:[%s196_s7 + $0x50] sm:$0xff] %v257_v10   ;;  %262 = vst [vmem:[%s196_s7 + $0x58] sm:$0xff] %v261_v11   ;;  %v269_v13 = vld [vmem:[%s5430_s4 + $0x188] sm:$0xff]   ;;  %v273_v14 = vld [vmem:[%s5430_s4 + $0x190] sm:$0xff]  }
  0x35   : > { %266 = vst [vmem:[%s196_s7 + $0x60] sm:$0xff] %v265_v12   ;;  %270 = vst [vmem:[%s196_s7 + $0x68] sm:$0xff] %v269_v13   ;;  %v277_v15 = vld [vmem:[%s5430_s4 + $0x198] sm:$0xff]  }
  0x36   : > { %274 = vst [vmem:[%s196_s7 + $0x70] sm:$0xff] %v273_v14   ;;  %278 = vst [vmem:[%s196_s7 + $0x78] sm:$0xff] %v277_v15  }
  0x37 PF: > { %367 = sbr.rel (!%p5388_p7) target bundleno = 78 (0x4e), region = 61  ;;  %s369_s14 = sand.u32 (%p5388_p7), 1, %s5224_s18  }
  0x38   : > { %s4267_s28 = sshll.u32 (%p5388_p7), %s5248_s24, 4  ;;  %s4266_s29 = sshll.u32 (%p5388_p7), %s369_s14, 8 }
  0x39   : > { %s4268_s30 = sshll.u32 (%p5388_p7), %s5256_s26, 7  ;;  %s5461_s4 = scalar_lea.vmem (%p5388_p7), [#allocation6], %s4266_s29 }
  0x3a   : > { %s374_s8 = sadd.s32 (%p5388_p7), %s4268_s30, %s4267_s28 }
  0x3b   : > { %s4269_s6 = sshll.u32 (%p5388_p7), %s374_s8, 2 }
  0x3c   : > { %s5456_s13 = scalar_lea.vmem (%p5388_p7), %s6988_s1, %s4269_s6 }
  0x3d   : > { %v392_v16 = vld [vmem:[%s5456_s13] sm:$0xff] (%p5388_p7)   ;;  %v396_v17 = vld [vmem:[%s5456_s13 + $0x8] sm:$0xff] (%p5388_p7)   ;;  %v400_v18 = vld [vmem:[%s5456_s13 + $0x10] sm:$0xff] (%p5388_p7)  }
  0x3e   : > { %393 = vst [vmem:[%s5461_s4] sm:$0xff] %v392_v16   ;;  %397 = vst [vmem:[%s5461_s4 + $0x8] sm:$0xff] %v396_v17   ;;  %v404_v19 = vld [vmem:[%s5456_s13 + $0x18] sm:$0xff]   ;;  %v408_v20 = vld [vmem:[%s5456_s13 + $0x20] sm:$0xff]  }
  0x3f   : > { %401 = vst [vmem:[%s5461_s4 + $0x10] sm:$0xff] %v400_v18   ;;  %v412_v21 = vld [vmem:[%s5456_s13 + $0x28] sm:$0xff]   ;;  %405 = vst [vmem:[%s5461_s4 + $0x18] sm:$0xff] %v404_v19   ;;  %v416_v22 = vld [vmem:[%s5456_s13 + $0x30] sm:$0xff]  }
  0x40   : > { %409 = vst [vmem:[%s5461_s4 + $0x20] sm:$0xff] %v408_v20   ;;  %413 = vst [vmem:[%s5461_s4 + $0x28] sm:$0xff] %v412_v21   ;;  %v420_v23 = vld [vmem:[%s5456_s13 + $0x38] sm:$0xff]   ;;  %v424_v24 = vld [vmem:[%s5456_s13 + $0x80] sm:$0xff]  }
  0x41   : > { %417 = vst [vmem:[%s5461_s4 + $0x30] sm:$0xff] %v416_v22   ;;  %421 = vst [vmem:[%s5461_s4 + $0x38] sm:$0xff] %v420_v23   ;;  %v428_v25 = vld [vmem:[%s5456_s13 + $0x88] sm:$0xff]   ;;  %v432_v26 = vld [vmem:[%s5456_s13 + $0x90] sm:$0xff]  }
  0x42   : > { %425 = vst [vmem:[%s5461_s4 + $0x40] sm:$0xff] %v424_v24   ;;  %v436_v27 = vld [vmem:[%s5456_s13 + $0x98] sm:$0xff]   ;;  %429 = vst [vmem:[%s5461_s4 + $0x48] sm:$0xff] %v428_v25   ;;  %v440_v28 = vld [vmem:[%s5456_s13 + $0xa0] sm:$0xff]  }
  0x43   : > { %433 = vst [vmem:[%s5461_s4 + $0x50] sm:$0xff] %v432_v26   ;;  %437 = vst [vmem:[%s5461_s4 + $0x58] sm:$0xff] %v436_v27   ;;  %v444_v29 = vld [vmem:[%s5456_s13 + $0xa8] sm:$0xff]   ;;  %v448_v30 = vld [vmem:[%s5456_s13 + $0xb0] sm:$0xff]  }
  0x44   : > { %441 = vst [vmem:[%s5461_s4 + $0x60] sm:$0xff] %v440_v28   ;;  %445 = vst [vmem:[%s5461_s4 + $0x68] sm:$0xff] %v444_v29   ;;  %v452_v31 = vld [vmem:[%s5456_s13 + $0xb8] sm:$0xff]   ;;  %v456_v32 = vld [vmem:[%s5456_s13 + $0x100] sm:$0xff]  }
  0x45   : > { %449 = vst [vmem:[%s5461_s4 + $0x70] sm:$0xff] %v448_v30   ;;  %v460_v33 = vld [vmem:[%s5456_s13 + $0x108] sm:$0xff]   ;;  %453 = vst [vmem:[%s5461_s4 + $0x78] sm:$0xff] %v452_v31   ;;  %v464_v34 = vld [vmem:[%s5456_s13 + $0x110] sm:$0xff]  }
  0x46   : > { %457 = vst [vmem:[%s5461_s4 + $0x80] sm:$0xff] %v456_v32   ;;  %461 = vst [vmem:[%s5461_s4 + $0x88] sm:$0xff] %v460_v33   ;;  %v468_v35 = vld [vmem:[%s5456_s13 + $0x118] sm:$0xff]   ;;  %v472_v36 = vld [vmem:[%s5456_s13 + $0x120] sm:$0xff]  }
  0x47   : > { %465 = vst [vmem:[%s5461_s4 + $0x90] sm:$0xff] %v464_v34   ;;  %469 = vst [vmem:[%s5461_s4 + $0x98] sm:$0xff] %v468_v35   ;;  %v476_v37 = vld [vmem:[%s5456_s13 + $0x128] sm:$0xff]   ;;  %v480_v38 = vld [vmem:[%s5456_s13 + $0x130] sm:$0xff]  }
  0x48   : > { %473 = vst [vmem:[%s5461_s4 + $0xa0] sm:$0xff] %v472_v36   ;;  %v484_v39 = vld [vmem:[%s5456_s13 + $0x138] sm:$0xff]   ;;  %477 = vst [vmem:[%s5461_s4 + $0xa8] sm:$0xff] %v476_v37   ;;  %v488_v40 = vld [vmem:[%s5456_s13 + $0x180] sm:$0xff]  }
  0x49   : > { %481 = vst [vmem:[%s5461_s4 + $0xb0] sm:$0xff] %v480_v38   ;;  %485 = vst [vmem:[%s5461_s4 + $0xb8] sm:$0xff] %v484_v39   ;;  %v492_v41 = vld [vmem:[%s5456_s13 + $0x188] sm:$0xff]   ;;  %v496_v42 = vld [vmem:[%s5456_s13 + $0x190] sm:$0xff]  }
  0x4a   : > { %489 = vst [vmem:[%s5461_s4 + $0xc0] sm:$0xff] %v488_v40   ;;  %493 = vst [vmem:[%s5461_s4 + $0xc8] sm:$0xff] %v492_v41   ;;  %v500_v43 = vld [vmem:[%s5456_s13 + $0x198] sm:$0xff]   ;;  %v504_v44 = vld [vmem:[%s5456_s13 + $0x1a0] sm:$0xff]  }
  0x4b   : > { %497 = vst [vmem:[%s5461_s4 + $0xd0] sm:$0xff] %v496_v42   ;;  %v508_v45 = vld [vmem:[%s5456_s13 + $0x1a8] sm:$0xff]   ;;  %501 = vst [vmem:[%s5461_s4 + $0xd8] sm:$0xff] %v500_v43   ;;  %v512_v46 = vld [vmem:[%s5456_s13 + $0x1b0] sm:$0xff]  }
  0x4c   : > { %505 = vst [vmem:[%s5461_s4 + $0xe0] sm:$0xff] %v504_v44   ;;  %509 = vst [vmem:[%s5461_s4 + $0xe8] sm:$0xff] %v508_v45   ;;  %v516_v47 = vld [vmem:[%s5456_s13 + $0x1b8] sm:$0xff]  }
  0x4d   : > { %513 = vst [vmem:[%s5461_s4 + $0xf0] sm:$0xff] %v512_v46   ;;  %517 = vst [vmem:[%s5461_s4 + $0xf8] sm:$0xff] %v516_v47  }
  0x4e PF: > { %670 = sbr.rel (!%p5388_p7) target bundleno = 101 (0x65), region = 102  ;;  %s672_s7 = sand.u32 (%p5388_p7), 1, %s5224_s18  }
  0x4f   : > { %s4271_s14 = sshll.u32 (%p5388_p7), %s5248_s24, 4  ;;  %s4270_s28 = sshll.u32 (%p5388_p7), %s672_s7, 8 }
  0x50   : > { %s4272_s29 = sshll.u32 (%p5388_p7), %s5256_s26, 7  ;;  %s5537_s11 = scalar_lea.vmem (%p5388_p7), [#allocation7], %s4270_s28 }
  0x51   : > { %s677_s30 = sadd.s32 (%p5388_p7), %s4272_s29, %s4271_s14 }
  0x52   : > { %s4273_s8 = sshll.u32 (%p5388_p7), %s677_s30, 2 }
  0x53   : > { %s5532_s9 = scalar_lea.vmem (%p5388_p7), %s6989_s2, %s4273_s8 }
  0x54   : > { %v695_v48 = vld [vmem:[%s5532_s9] sm:$0xff] (%p5388_p7)   ;;  %v699_v49 = vld [vmem:[%s5532_s9 + $0x8] sm:$0xff] (%p5388_p7)   ;;  %v703_v50 = vld [vmem:[%s5532_s9 + $0x10] sm:$0xff] (%p5388_p7)  }
  0x55   : > { %696 = vst [vmem:[%s5537_s11] sm:$0xff] %v695_v48   ;;  %700 = vst [vmem:[%s5537_s11 + $0x8] sm:$0xff] %v699_v49   ;;  %v707_v51 = vld [vmem:[%s5532_s9 + $0x18] sm:$0xff]   ;;  %v711_v52 = vld [vmem:[%s5532_s9 + $0x20] sm:$0xff]  }
  0x56   : > { %704 = vst [vmem:[%s5537_s11 + $0x10] sm:$0xff] %v703_v50   ;;  %v715_v53 = vld [vmem:[%s5532_s9 + $0x28] sm:$0xff]   ;;  %708 = vst [vmem:[%s5537_s11 + $0x18] sm:$0xff] %v707_v51   ;;  %v719_v54 = vld [vmem:[%s5532_s9 + $0x30] sm:$0xff]  }
  0x57   : > { %712 = vst [vmem:[%s5537_s11 + $0x20] sm:$0xff] %v711_v52   ;;  %716 = vst [vmem:[%s5537_s11 + $0x28] sm:$0xff] %v715_v53   ;;  %v723_v55 = vld [vmem:[%s5532_s9 + $0x38] sm:$0xff]   ;;  %v727_v56 = vld [vmem:[%s5532_s9 + $0x80] sm:$0xff]  }
  0x58   : > { %720 = vst [vmem:[%s5537_s11 + $0x30] sm:$0xff] %v719_v54   ;;  %724 = vst [vmem:[%s5537_s11 + $0x38] sm:$0xff] %v723_v55   ;;  %v731_v57 = vld [vmem:[%s5532_s9 + $0x88] sm:$0xff]   ;;  %v735_v58 = vld [vmem:[%s5532_s9 + $0x90] sm:$0xff]  }
  0x59   : > { %728 = vst [vmem:[%s5537_s11 + $0x40] sm:$0xff] %v727_v56   ;;  %v739_v59 = vld [vmem:[%s5532_s9 + $0x98] sm:$0xff]   ;;  %732 = vst [vmem:[%s5537_s11 + $0x48] sm:$0xff] %v731_v57   ;;  %v743_v60 = vld [vmem:[%s5532_s9 + $0xa0] sm:$0xff]  }
  0x5a   : > { %736 = vst [vmem:[%s5537_s11 + $0x50] sm:$0xff] %v735_v58   ;;  %740 = vst [vmem:[%s5537_s11 + $0x58] sm:$0xff] %v739_v59   ;;  %v747_v61 = vld [vmem:[%s5532_s9 + $0xa8] sm:$0xff]   ;;  %v751_v62 = vld [vmem:[%s5532_s9 + $0xb0] sm:$0xff]  }
  0x5b   : > { %744 = vst [vmem:[%s5537_s11 + $0x60] sm:$0xff] %v743_v60   ;;  %748 = vst [vmem:[%s5537_s11 + $0x68] sm:$0xff] %v747_v61   ;;  %v755_v63 = vld [vmem:[%s5532_s9 + $0xb8] sm:$0xff]   ;;  %v759_v0 = vld [vmem:[%s5532_s9 + $0x100] sm:$0xff]  }
  0x5c   : > { %752 = vst [vmem:[%s5537_s11 + $0x70] sm:$0xff] %v751_v62   ;;  %v763_v1 = vld [vmem:[%s5532_s9 + $0x108] sm:$0xff]   ;;  %756 = vst [vmem:[%s5537_s11 + $0x78] sm:$0xff] %v755_v63   ;;  %v767_v2 = vld [vmem:[%s5532_s9 + $0x110] sm:$0xff]  }
  0x5d   : > { %760 = vst [vmem:[%s5537_s11 + $0x80] sm:$0xff] %v759_v0   ;;  %764 = vst [vmem:[%s5537_s11 + $0x88] sm:$0xff] %v763_v1   ;;  %v771_v3 = vld [vmem:[%s5532_s9 + $0x118] sm:$0xff]   ;;  %v775_v4 = vld [vmem:[%s5532_s9 + $0x120] sm:$0xff]  }
  0x5e   : > { %768 = vst [vmem:[%s5537_s11 + $0x90] sm:$0xff] %v767_v2   ;;  %772 = vst [vmem:[%s5537_s11 + $0x98] sm:$0xff] %v771_v3   ;;  %v779_v5 = vld [vmem:[%s5532_s9 + $0x128] sm:$0xff]   ;;  %v783_v6 = vld [vmem:[%s5532_s9 + $0x130] sm:$0xff]  }
  0x5f   : > { %776 = vst [vmem:[%s5537_s11 + $0xa0] sm:$0xff] %v775_v4   ;;  %v787_v7 = vld [vmem:[%s5532_s9 + $0x138] sm:$0xff]   ;;  %780 = vst [vmem:[%s5537_s11 + $0xa8] sm:$0xff] %v779_v5   ;;  %v791_v8 = vld [vmem:[%s5532_s9 + $0x180] sm:$0xff]  }
  0x60   : > { %784 = vst [vmem:[%s5537_s11 + $0xb0] sm:$0xff] %v783_v6   ;;  %788 = vst [vmem:[%s5537_s11 + $0xb8] sm:$0xff] %v787_v7   ;;  %v795_v9 = vld [vmem:[%s5532_s9 + $0x188] sm:$0xff]   ;;  %v799_v10 = vld [vmem:[%s5532_s9 + $0x190] sm:$0xff]  }
  0x61   : > { %792 = vst [vmem:[%s5537_s11 + $0xc0] sm:$0xff] %v791_v8   ;;  %796 = vst [vmem:[%s5537_s11 + $0xc8] sm:$0xff] %v795_v9   ;;  %v803_v11 = vld [vmem:[%s5532_s9 + $0x198] sm:$0xff]   ;;  %v807_v12 = vld [vmem:[%s5532_s9 + $0x1a0] sm:$0xff]  }
  0x62   : > { %800 = vst [vmem:[%s5537_s11 + $0xd0] sm:$0xff] %v799_v10   ;;  %v811_v13 = vld [vmem:[%s5532_s9 + $0x1a8] sm:$0xff]   ;;  %804 = vst [vmem:[%s5537_s11 + $0xd8] sm:$0xff] %v803_v11   ;;  %v815_v14 = vld [vmem:[%s5532_s9 + $0x1b0] sm:$0xff]  }
  0x63   : > { %808 = vst [vmem:[%s5537_s11 + $0xe0] sm:$0xff] %v807_v12   ;;  %812 = vst [vmem:[%s5537_s11 + $0xe8] sm:$0xff] %v811_v13   ;;  %v819_v15 = vld [vmem:[%s5532_s9 + $0x1b8] sm:$0xff]  }
  0x64   : > { %816 = vst [vmem:[%s5537_s11 + $0xf0] sm:$0xff] %v815_v14   ;;  %820 = vst [vmem:[%s5537_s11 + $0xf8] sm:$0xff] %v819_v15  }
  0x65 PF: > { %973 = sbr.rel (!%p5398_p9) target bundleno = 109 (0x6d), region = 143  ;;  %s975_s13 = sand.u32 (%p5398_p9), 1, %s5216_s16  }
  0x66   : > { %s4421_s4 = sshll.u32 (%p5398_p9), %s5252_s25, 2  ;;  %s4274_s7 = sshll.u32 (%p5398_p9), %s975_s13, 4 }
  0x67   : > { %s980_s14 = sadd.s32 (%p5398_p9), %s5248_s24, %s4421_s4  ;;  %s4277_s28 = sshll.u32 (%p5398_p9), %s5256_s26, 4 }
  0x68   : > { %s982_s29 = sadd.s32 (%p5398_p9), %s4277_s28, %s980_s14  ;;  %s977_s9 = scalar_lea.vmem (%p5398_p9), [#allocation8], %s4274_s7 }
  0x69   : > { %s4278_s30 = sshll.u32 (%p5398_p9), %s982_s29, 3 }
  0x6a   : > { %s984_s10 = scalar_lea.vmem (%p5398_p9), %s6990_s3, %s4278_s30 }
  0x6b   : > { %v1014_v16 = vld [vmem:[%s984_s10] sm:$0xff] (%p5398_p9)  ;;  %v1016_v17 = vld [vmem:[%s984_s10 + $0x10] sm:$0xff] (%p5398_p9) }
  0x6c   : > { %1015 = vst [vmem:[%s977_s9] sm:$0xff] %v1014_v16  ;;  %1017 = vst [vmem:[%s977_s9 + $0x8] sm:$0xff] %v1016_v17 }
  0x6d PF: > { %p4279_p1 = scmp.ge.s32.totalorder %s5260_s27, 1  ;;  %p1022_p3 = scmp.lt.s32.totalorder %s5260_s27, 17 }
  0x6f   : > { %p1023_p4 = pnand %p4279_p1, %p1022_p3 }
  0x71   : > { %1026 = sbr.rel (%p1023_p4) target bundleno = 1262 (0x4ee), region = 181 }
  0x78   : > { %s7044_s12 = sld [smem:[#allocation10_spill]]  ;;  %s1029_s11 = sand.u32 1, %s5228_s19  }
  0x79   : > { %s1036_s13 = sand.u32 1, %s5220_s17   ;;  %s4280_s4 = sshll.u32 %s1029_s11, 7 }
  0x7a   : > { %s4281_s14 = sshll.u32 %s1036_s13, 8  ;;  %s5616_s7 = scalar_lea.vmem [#allocation5], %s4280_s4 }
  0x7b   : > { %s5618_s30 = scalar_lea.vmem [#allocation6], %s4281_s14  ;;  %s5620_s8 = scalar_lea.vmem [#allocation7], %s4281_s14 }
  0x7c   : > { %s5623_s10 = scalar_lea.vmem [#allocation9], %s4280_s4  ;;  %s7045_s9 = sld [smem:[#allocation11_spill]] }
  0x7e   : > { %s1050_s28 = sand.u32 1, %s7044_s12  }
  0x7f   : > { %s5614_s29 = sshll.u32 %s1050_s28, 4 }
  0x80   : > { %s1052_s6 = scalar_lea.vmem [#allocation8], %s5614_s29 }
  0x82   : > { %p4285_p5 = scmp.ne.s32.totalorder %s7045_s9, 0 }
  0x83   : > { %vm1096_vm0 = vcmask (!%p4285_p5), 7168   ;;  %vm1161_vm1 = vcmask (!%p4285_p5), 261120   ;;  %v5262_v18 = vmov (!%p4285_p5), -1e+30   ;;  %v5263_v19 = vmov (!%p4285_p5), 0.0  }
  0x84   : > { %1095 = sbr.rel (%p4285_p5) target bundleno = 180 (0xb4), region = 201  ;;  %1097 = vst.msk [vmem:[#allocation2] sm:$0xff] (!%p4285_p5), %vm1096_vm0, %v5262_v18  ;;  %1098 = vst.msk [vmem:[#allocation2 + $0x8] sm:$0xff] (!%p4285_p5), %vm1096_vm0, %v5262_v18 }
  0x85   : > { %1099 = vst.msk [vmem:[#allocation2 + $0x10] sm:$0xff] (!%p4285_p5), %vm1096_vm0, %v5262_v18  ;;  %1100 = vst.msk [vmem:[#allocation2 + $0x18] sm:$0xff] (!%p4285_p5), %vm1096_vm0, %v5262_v18 }
  0x86   : > { %1101 = vst.msk [vmem:[#allocation2 + $0x20] sm:$0xff] (!%p4285_p5), %vm1096_vm0, %v5262_v18  ;;  %1102 = vst.msk [vmem:[#allocation2 + $0x28] sm:$0xff] (!%p4285_p5), %vm1096_vm0, %v5262_v18 }
  0x87   : > { %1103 = vst.msk [vmem:[#allocation2 + $0x30] sm:$0xff] (!%p4285_p5), %vm1096_vm0, %v5262_v18  ;;  %1104 = vst.msk [vmem:[#allocation2 + $0x38] sm:$0xff] (!%p4285_p5), %vm1096_vm0, %v5262_v18 }
  0x88   : > { %1105 = vst.msk [vmem:[#allocation2 + $0x40] sm:$0xff] (!%p4285_p5), %vm1096_vm0, %v5262_v18  ;;  %1106 = vst.msk [vmem:[#allocation2 + $0x48] sm:$0xff] (!%p4285_p5), %vm1096_vm0, %v5262_v18 }
  0x89   : > { %1107 = vst.msk [vmem:[#allocation2 + $0x50] sm:$0xff] (!%p4285_p5), %vm1096_vm0, %v5262_v18  ;;  %1108 = vst.msk [vmem:[#allocation2 + $0x58] sm:$0xff] (!%p4285_p5), %vm1096_vm0, %v5262_v18 }
  0x8a   : > { %1109 = vst.msk [vmem:[#allocation2 + $0x60] sm:$0xff] (!%p4285_p5), %vm1096_vm0, %v5262_v18  ;;  %1110 = vst.msk [vmem:[#allocation2 + $0x68] sm:$0xff] (!%p4285_p5), %vm1096_vm0, %v5262_v18 }
  0x8b   : > { %1111 = vst.msk [vmem:[#allocation2 + $0x70] sm:$0xff] %vm1096_vm0, %v5262_v18  ;;  %1112 = vst.msk [vmem:[#allocation2 + $0x78] sm:$0xff] %vm1096_vm0, %v5262_v18 }
  0x8c   : > { %1113 = vst.msk [vmem:[#allocation2 + $0x80] sm:$0xff] %vm1096_vm0, %v5262_v18  ;;  %1114 = vst.msk [vmem:[#allocation2 + $0x88] sm:$0xff] %vm1096_vm0, %v5262_v18 }
  0x8d   : > { %1115 = vst.msk [vmem:[#allocation2 + $0x90] sm:$0xff] %vm1096_vm0, %v5262_v18  ;;  %1116 = vst.msk [vmem:[#allocation2 + $0x98] sm:$0xff] %vm1096_vm0, %v5262_v18 }
  0x8e   : > { %1117 = vst.msk [vmem:[#allocation2 + $0xa0] sm:$0xff] %vm1096_vm0, %v5262_v18  ;;  %1118 = vst.msk [vmem:[#allocation2 + $0xa8] sm:$0xff] %vm1096_vm0, %v5262_v18 }
  0x8f   : > { %1119 = vst.msk [vmem:[#allocation2 + $0xb0] sm:$0xff] %vm1096_vm0, %v5262_v18  ;;  %1120 = vst.msk [vmem:[#allocation2 + $0xb8] sm:$0xff] %vm1096_vm0, %v5262_v18 }
  0x90   : > { %1121 = vst.msk [vmem:[#allocation2 + $0xc0] sm:$0xff] %vm1096_vm0, %v5262_v18  ;;  %1122 = vst.msk [vmem:[#allocation2 + $0xc8] sm:$0xff] %vm1096_vm0, %v5262_v18 }
  0x91   : > { %1123 = vst.msk [vmem:[#allocation2 + $0xd0] sm:$0xff] %vm1096_vm0, %v5262_v18  ;;  %1124 = vst.msk [vmem:[#allocation2 + $0xd8] sm:$0xff] %vm1096_vm0, %v5262_v18 }
  0x92   : > { %1125 = vst.msk [vmem:[#allocation2 + $0xe0] sm:$0xff] %vm1096_vm0, %v5262_v18  ;;  %1126 = vst.msk [vmem:[#allocation2 + $0xe8] sm:$0xff] %vm1096_vm0, %v5262_v18 }
  0x93   : > { %1127 = vst.msk [vmem:[#allocation2 + $0xf0] sm:$0xff] %vm1096_vm0, %v5262_v18  ;;  %1128 = vst.msk [vmem:[#allocation2 + $0xf8] sm:$0xff] %vm1096_vm0, %v5262_v18 }
  0x94   : > { %1129 = vst.msk [vmem:[#allocation3] sm:$0xff] %vm1096_vm0, %v5263_v19  ;;  %1130 = vst.msk [vmem:[#allocation3 + $0x8] sm:$0xff] %vm1096_vm0, %v5263_v19 }
  0x95   : > { %1131 = vst.msk [vmem:[#allocation3 + $0x10] sm:$0xff] %vm1096_vm0, %v5263_v19  ;;  %1132 = vst.msk [vmem:[#allocation3 + $0x18] sm:$0xff] %vm1096_vm0, %v5263_v19 }
  0x96   : > { %1133 = vst.msk [vmem:[#allocation3 + $0x20] sm:$0xff] %vm1096_vm0, %v5263_v19  ;;  %1134 = vst.msk [vmem:[#allocation3 + $0x28] sm:$0xff] %vm1096_vm0, %v5263_v19 }
  0x97   : > { %1135 = vst.msk [vmem:[#allocation3 + $0x30] sm:$0xff] %vm1096_vm0, %v5263_v19  ;;  %1136 = vst.msk [vmem:[#allocation3 + $0x38] sm:$0xff] %vm1096_vm0, %v5263_v19 }
  0x98   : > { %1137 = vst.msk [vmem:[#allocation3 + $0x40] sm:$0xff] %vm1096_vm0, %v5263_v19  ;;  %1138 = vst.msk [vmem:[#allocation3 + $0x48] sm:$0xff] %vm1096_vm0, %v5263_v19 }
  0x99   : > { %1139 = vst.msk [vmem:[#allocation3 + $0x50] sm:$0xff] %vm1096_vm0, %v5263_v19  ;;  %1140 = vst.msk [vmem:[#allocation3 + $0x58] sm:$0xff] %vm1096_vm0, %v5263_v19 }
  0x9a   : > { %1141 = vst.msk [vmem:[#allocation3 + $0x60] sm:$0xff] %vm1096_vm0, %v5263_v19  ;;  %1142 = vst.msk [vmem:[#allocation3 + $0x68] sm:$0xff] %vm1096_vm0, %v5263_v19 }
  0x9b   : > { %1143 = vst.msk [vmem:[#allocation3 + $0x70] sm:$0xff] %vm1096_vm0, %v5263_v19  ;;  %1144 = vst.msk [vmem:[#allocation3 + $0x78] sm:$0xff] %vm1096_vm0, %v5263_v19 }
  0x9c   : > { %1145 = vst.msk [vmem:[#allocation3 + $0x80] sm:$0xff] %vm1096_vm0, %v5263_v19  ;;  %1146 = vst.msk [vmem:[#allocation3 + $0x88] sm:$0xff] %vm1096_vm0, %v5263_v19 }
  0x9d   : > { %1147 = vst.msk [vmem:[#allocation3 + $0x90] sm:$0xff] %vm1096_vm0, %v5263_v19  ;;  %1148 = vst.msk [vmem:[#allocation3 + $0x98] sm:$0xff] %vm1096_vm0, %v5263_v19 }
  0x9e   : > { %1149 = vst.msk [vmem:[#allocation3 + $0xa0] sm:$0xff] %vm1096_vm0, %v5263_v19  ;;  %1150 = vst.msk [vmem:[#allocation3 + $0xa8] sm:$0xff] %vm1096_vm0, %v5263_v19 }
  0x9f   : > { %1151 = vst.msk [vmem:[#allocation3 + $0xb0] sm:$0xff] %vm1096_vm0, %v5263_v19  ;;  %1152 = vst.msk [vmem:[#allocation3 + $0xb8] sm:$0xff] %vm1096_vm0, %v5263_v19 }
  0xa0   : > { %1153 = vst.msk [vmem:[#allocation3 + $0xc0] sm:$0xff] %vm1096_vm0, %v5263_v19  ;;  %1154 = vst.msk [vmem:[#allocation3 + $0xc8] sm:$0xff] %vm1096_vm0, %v5263_v19 }
  0xa1   : > { %1155 = vst.msk [vmem:[#allocation3 + $0xd0] sm:$0xff] %vm1096_vm0, %v5263_v19  ;;  %1156 = vst.msk [vmem:[#allocation3 + $0xd8] sm:$0xff] %vm1096_vm0, %v5263_v19 }
  0xa2   : > { %1157 = vst.msk [vmem:[#allocation3 + $0xe0] sm:$0xff] %vm1096_vm0, %v5263_v19  ;;  %1158 = vst.msk [vmem:[#allocation3 + $0xe8] sm:$0xff] %vm1096_vm0, %v5263_v19 }
  0xa3   : > { %1159 = vst.msk [vmem:[#allocation3 + $0xf0] sm:$0xff] %vm1096_vm0, %v5263_v19  ;;  %1160 = vst.msk [vmem:[#allocation3 + $0xf8] sm:$0xff] %vm1096_vm0, %v5263_v19 }
  0xa4   : > { %1162 = vst.msk [vmem:[#allocation4] sm:$0xff] %vm1161_vm1, %v5263_v19  ;;  %1163 = vst.msk [vmem:[#allocation4 + $0x8] sm:$0xff] %vm1161_vm1, %v5263_v19 }
  0xa5   : > { %1164 = vst.msk [vmem:[#allocation4 + $0x10] sm:$0xff] %vm1161_vm1, %v5263_v19  ;;  %1165 = vst.msk [vmem:[#allocation4 + $0x18] sm:$0xff] %vm1161_vm1, %v5263_v19 }
  0xa6   : > { %1166 = vst.msk [vmem:[#allocation4 + $0x20] sm:$0xff] %vm1161_vm1, %v5263_v19  ;;  %1167 = vst.msk [vmem:[#allocation4 + $0x28] sm:$0xff] %vm1161_vm1, %v5263_v19 }
  0xa7   : > { %1168 = vst.msk [vmem:[#allocation4 + $0x30] sm:$0xff] %vm1161_vm1, %v5263_v19  ;;  %1169 = vst.msk [vmem:[#allocation4 + $0x38] sm:$0xff] %vm1161_vm1, %v5263_v19 }
  0xa8   : > { %1170 = vst.msk [vmem:[#allocation4 + $0x40] sm:$0xff] %vm1161_vm1, %v5263_v19  ;;  %1171 = vst.msk [vmem:[#allocation4 + $0x48] sm:$0xff] %vm1161_vm1, %v5263_v19 }
  0xa9   : > { %1172 = vst.msk [vmem:[#allocation4 + $0x50] sm:$0xff] %vm1161_vm1, %v5263_v19  ;;  %1173 = vst.msk [vmem:[#allocation4 + $0x58] sm:$0xff] %vm1161_vm1, %v5263_v19 }
  0xaa   : > { %1174 = vst.msk [vmem:[#allocation4 + $0x60] sm:$0xff] %vm1161_vm1, %v5263_v19  ;;  %1175 = vst.msk [vmem:[#allocation4 + $0x68] sm:$0xff] %vm1161_vm1, %v5263_v19 }
  0xab   : > { %1176 = vst.msk [vmem:[#allocation4 + $0x70] sm:$0xff] %vm1161_vm1, %v5263_v19  ;;  %1177 = vst.msk [vmem:[#allocation4 + $0x78] sm:$0xff] %vm1161_vm1, %v5263_v19 }
  0xac   : > { %1178 = vst.msk [vmem:[#allocation4 + $0x80] sm:$0xff] %vm1161_vm1, %v5263_v19  ;;  %1179 = vst.msk [vmem:[#allocation4 + $0x88] sm:$0xff] %vm1161_vm1, %v5263_v19 }
  0xad   : > { %1180 = vst.msk [vmem:[#allocation4 + $0x90] sm:$0xff] %vm1161_vm1, %v5263_v19  ;;  %1181 = vst.msk [vmem:[#allocation4 + $0x98] sm:$0xff] %vm1161_vm1, %v5263_v19 }
  0xae   : > { %1182 = vst.msk [vmem:[#allocation4 + $0xa0] sm:$0xff] %vm1161_vm1, %v5263_v19  ;;  %1183 = vst.msk [vmem:[#allocation4 + $0xa8] sm:$0xff] %vm1161_vm1, %v5263_v19 }
  0xaf   : > { %1184 = vst.msk [vmem:[#allocation4 + $0xb0] sm:$0xff] %vm1161_vm1, %v5263_v19  ;;  %1185 = vst.msk [vmem:[#allocation4 + $0xb8] sm:$0xff] %vm1161_vm1, %v5263_v19 }
  0xb0   : > { %1186 = vst.msk [vmem:[#allocation4 + $0xc0] sm:$0xff] %vm1161_vm1, %v5263_v19  ;;  %1187 = vst.msk [vmem:[#allocation4 + $0xc8] sm:$0xff] %vm1161_vm1, %v5263_v19 }
  0xb1   : > { %1188 = vst.msk [vmem:[#allocation4 + $0xd0] sm:$0xff] %vm1161_vm1, %v5263_v19  ;;  %1189 = vst.msk [vmem:[#allocation4 + $0xd8] sm:$0xff] %vm1161_vm1, %v5263_v19 }
  0xb2   : > { %1190 = vst.msk [vmem:[#allocation4 + $0xe0] sm:$0xff] %vm1161_vm1, %v5263_v19  ;;  %1191 = vst.msk [vmem:[#allocation4 + $0xe8] sm:$0xff] %vm1161_vm1, %v5263_v19 }
  0xb3   : > { %1192 = vst.msk [vmem:[#allocation4 + $0xf0] sm:$0xff] %vm1161_vm1, %v5263_v19  ;;  %1193 = vst.msk [vmem:[#allocation4 + $0xf8] sm:$0xff] %vm1161_vm1, %v5263_v19 }
  0xb4 PF: > { %v4884_v20 = vld [vmem:[%s5618_s30] sm:$0xff]   ;;  %vm1440_vm2 = vcmask 261120   ;;  %v4886_v23 = vld [vmem:[%s5618_s30 + $0x8] sm:$0xff]   ;;  %v4888_v27 = vld [vmem:[%s5618_s30 + $0x10] sm:$0xff]   ;;  %vm2665_vm3 = vcmask 7168   ;;  %s7164_s17 = sld [smem:[#allocation11_spill]] }
  0xb5   : > { %v4885_v21 = vld [vmem:[%s5618_s30 + $0x40] sm:$0xff]   ;;  %4742 = vmatprep.subr.msk.bf16.mxu0 %vm1440_vm2, %v4884_v20  ;;  %v1454_v22 = vsel %vm1440_vm2, %v4884_v20, 0  ;;  %v4887_v25 = vld [vmem:[%s5618_s30 + $0x48] sm:$0xff]   ;;  %v1457_v26 = vsel %vm1440_vm2, %v4886_v23, 0  ;;  %v4889_v29 = vld [vmem:[%s5618_s30 + $0x50] sm:$0xff]   ;;  %v1460_v32 = vsel %vm1440_vm2, %v4888_v27, 0 }
  0xb6   : > { %4750 = vmatprep.subr.msk.bf16.mxu1 %vm1440_vm2, %v4885_v21  ;;  %4551 = vmatpush3.bf16.xpose.msra.mxu0 %v1454_v22  ;;  %v1615_v24 = vsel %vm1440_vm2, %v4885_v21, 0  ;;  %v1618_v28 = vsel %vm1440_vm2, %v4887_v25, 0  ;;  %v4890_v30 = vld [vmem:[%s5618_s30 + $0x18] sm:$0xff]   ;;  %v4900_v33 = vld [vmem:[%s5616_s7] sm:$0xff]   ;;  %v1621_v34 = vsel %vm1440_vm2, %v4889_v29, 0  ;;  %v4894_v41 = vld [vmem:[%s5618_s30 + $0x28] sm:$0xff]  }
  0xb7   : > { %4575 = vmatpush3.bf16.xpose.msra.mxu1 %v1615_v24  ;;  %4743 = vmatprep.subr.msk.bf16.mxu0 %vm1440_vm2, %v4886_v23  ;;  %v4891_v31 = vld [vmem:[%s5618_s30 + $0x58] sm:$0xff]   ;;  %v4901_v35 = vld [vmem:[%s5616_s7 + $0x20] sm:$0xff]   ;;  %v1463_v36 = vsel %vm1440_vm2, %v4890_v30, 0  ;;  %v4895_v43 = vld [vmem:[%s5618_s30 + $0x68] sm:$0xff]   ;;  %v1469_v44 = vsel %vm1440_vm2, %v4894_v41, 0 }
  0xb8   : > { %4751 = vmatprep.subr.msk.bf16.mxu1 %vm1440_vm2, %v4887_v25  ;;  %4566 = vmatprep.mubr.msk.bf16.mxu0 %vm1440_vm2, %v4900_v33  ;;  %v4892_v37 = vld [vmem:[%s5618_s30 + $0x20] sm:$0xff]   ;;  %v1624_v38 = vsel %vm1440_vm2, %v4891_v31, 0  ;;  %v4896_v45 = vld [vmem:[%s5618_s30 + $0x30] sm:$0xff]   ;;  %v1630_v46 = vsel %vm1440_vm2, %v4895_v43, 0  ;;  %v4898_v48 = vld [vmem:[%s5618_s30 + $0x38] sm:$0xff]  }
  0xb9   : > { %4590 = vmatprep.mubr.msk.bf16.mxu1 %vm1440_vm2, %v4901_v35  ;;  %v4893_v39 = vld [vmem:[%s5618_s30 + $0x60] sm:$0xff]   ;;  %v1466_v40 = vsel %vm1440_vm2, %v4892_v37, 0  ;;  %v4897_v47 = vld [vmem:[%s5618_s30 + $0x70] sm:$0xff]   ;;  %v4899_v49 = vld [vmem:[%s5618_s30 + $0x78] sm:$0xff]   ;;  %v1472_v50 = vsel %vm1440_vm2, %v4896_v45, 0  ;;  %v1475_v52 = vsel %vm1440_vm2, %v4898_v48, 0 }
  0xba   : > { %v1627_v42 = vsel %vm1440_vm2, %v4893_v39, 0  ;;  %v1633_v51 = vsel %vm1440_vm2, %v4897_v47, 0  ;;  %v4904_v53 = vld [vmem:[%s5618_s30 + $0x80] sm:$0xff]   ;;  %v1636_v54 = vsel %vm1440_vm2, %v4899_v49, 0  ;;  %v4902_v58 = vld [vmem:[%s5616_s7 + $0x8] sm:$0xff]   ;;  %v4908_v62 = vld [vmem:[%s5616_s7 + $0x10] sm:$0xff]  }
  0xbb   : > { %v4905_v55 = vld [vmem:[%s5618_s30 + $0xc0] sm:$0xff]   ;;  %v1776_v56 = vsel %vm1440_vm2, %v4904_v53, 0  ;;  %v4903_v59 = vld [vmem:[%s5616_s7 + $0x28] sm:$0xff]   ;;  %v4911_v63 = vld [vmem:[%s5616_s7 + $0x30] sm:$0xff]   ;;  %p4382_p6 = scmp.ne.s32.totalorder %s7164_s17, 1 }
  0xbc   : > { %v1937_v57 = vsel %vm1440_vm2, %v4905_v55, 0  ;;  %v4906_v60 = vld [vmem:[%s5618_s30 + $0x88] sm:$0xff]   ;;  %v4909_v0 = vld [vmem:[%s5616_s7 + $0x18] sm:$0xff]   ;;  %v4910_v3 = vld [vmem:[%s5618_s30 + $0x90] sm:$0xff]   ;;  %vm3906_vm4 = vcmask (!%p4382_p6), 257024  }
  0xbd   : > { %v4907_v61 = vld [vmem:[%s5618_s30 + $0xc8] sm:$0xff]   ;;  %v4913_v1 = vld [vmem:[%s5616_s7 + $0x38] sm:$0xff]   ;;  %v1779_v2 = vsel %vm1440_vm2, %v4906_v60, 0  ;;  %v4912_v5 = vld [vmem:[%s5618_s30 + $0xd0] sm:$0xff]   ;;  %v1782_v8 = vsel %vm1440_vm2, %v4910_v3, 0 }
  0xbe   : > { %4553 = vmatpush3.bf16.xpose.msra.mxu0 %v1457_v26  ;;  %v1940_v4 = vsel %vm1440_vm2, %v4907_v61, 0  ;;  %v4924_v6 = vld [vmem:[%s5616_s7 + $0x40] sm:$0xff]   ;;  %v4914_v9 = vld [vmem:[%s5618_s30 + $0x98] sm:$0xff]   ;;  %v1943_v10 = vsel %vm1440_vm2, %v4912_v5, 0  ;;  %v4918_v17 = vld [vmem:[%s5618_s30 + $0xa8] sm:$0xff]  }
  0xbf   : > { %4577 = vmatpush3.bf16.xpose.msra.mxu1 %v1618_v28  ;;  %4744 = vmatprep.subr.msk.bf16.mxu0 %vm1440_vm2, %v4888_v27  ;;  %v4926_v7 = vld [vmem:[%s5616_s7 + $0x60] sm:$0xff]   ;;  %v4915_v11 = vld [vmem:[%s5618_s30 + $0xd8] sm:$0xff]   ;;  %v1785_v12 = vsel %vm1440_vm2, %v4914_v9, 0  ;;  %v4919_v19 = vld [vmem:[%s5618_s30 + $0xe8] sm:$0xff]   ;;  %v1791_v20 = vsel %vm1440_vm2, %v4918_v17, 0 }
  0xc0   : > { %4752 = vmatprep.subr.msk.bf16.mxu1 %vm1440_vm2, %v4889_v29  ;;  %v4916_v13 = vld [vmem:[%s5618_s30 + $0xa0] sm:$0xff]   ;;  %v1946_v14 = vsel %vm1440_vm2, %v4915_v11, 0  ;;  %v4920_v21 = vld [vmem:[%s5618_s30 + $0xb0] sm:$0xff]   ;;  %v1952_v22 = vsel %vm1440_vm2, %v4919_v19, 0  ;;  %v4922_v25 = vld [vmem:[%s5618_s30 + $0xb8] sm:$0xff]  }
  0xc1   : > { %v4917_v15 = vld [vmem:[%s5618_s30 + $0xe0] sm:$0xff]   ;;  %v1788_v16 = vsel %vm1440_vm2, %v4916_v13, 0  ;;  %v4921_v23 = vld [vmem:[%s5618_s30 + $0xf0] sm:$0xff]   ;;  %v1794_v24 = vsel %vm1440_vm2, %v4920_v21, 0  ;;  %v4923_v27 = vld [vmem:[%s5618_s30 + $0xf8] sm:$0xff]   ;;  %v1797_v28 = vsel %vm1440_vm2, %v4922_v25, 0 }
  0xc2   : > { %v1949_v18 = vsel %vm1440_vm2, %v4917_v15, 0  ;;  %v1955_v26 = vsel %vm1440_vm2, %v4921_v23, 0  ;;  %v1958_v29 = vsel %vm1440_vm2, %v4923_v27, 0  ;;  %v4930_v33 = vld [vmem:[%s5616_s7 + $0x70] sm:$0xff]   ;;  %v4931_v35 = vld [vmem:[%s5616_s7 + $0x78] sm:$0xff]  }
  0xc6   : > { %4555 = vmatpush3.bf16.xpose.msra.mxu0 %v1460_v32  ;;  %v4928_v32 = vld [vmem:[%s5616_s7 + $0x50] sm:$0xff]  }
  0xc7   : > { %4579 = vmatpush3.bf16.xpose.msra.mxu1 %v1621_v34  ;;  %4745 = vmatprep.subr.msk.bf16.mxu0 %vm1440_vm2, %v4890_v30  ;;  %v4925_v30 = vld [vmem:[%s5616_s7 + $0x48] sm:$0xff]   ;;  %v4929_v34 = vld [vmem:[%s5616_s7 + $0x58] sm:$0xff]  }
  0xc8   : > { %4753 = vmatprep.subr.msk.bf16.mxu1 %vm1440_vm2, %v4891_v31  ;;  %v4927_v31 = vld [vmem:[%s5616_s7 + $0x68] sm:$0xff]  }
  0xce   : > { %4557 = vmatpush3.bf16.xpose.msra.mxu0 %v1463_v36  ;;  %v1354_v36 = vld [vmem:[%s1052_s6] sm:$0xff] }
  0xcf   : > { %4581 = vmatpush3.bf16.xpose.msra.mxu1 %v1624_v38  ;;  %4746 = vmatprep.subr.msk.bf16.mxu0 %vm1440_vm2, %v4892_v37  ;;  %v1358_v37 = vunpack.c.2.s8 %v1354_v36 }
  0xd0   : > { %4754 = vmatprep.subr.msk.bf16.mxu1 %vm1440_vm2, %v4893_v39  ;;  %v1359_v39 = vunpack.c.3.s8 %v1354_v36 }
  0xd1   : > { %v1366_v38 = vcvt.s32.f32 %v1358_v37 }
  0xd6   : > { %4559 = vmatpush3.bf16.xpose.msra.mxu0 %v1466_v40  ;;  %v1356_v40 = vunpack.c.0.s8 %v1354_v36 }
  0xd7   : > { %4583 = vmatpush3.bf16.xpose.msra.mxu1 %v1627_v42  ;;  %4747 = vmatprep.subr.msk.bf16.mxu0 %vm1440_vm2, %v4894_v41  ;;  %v5916_v41 = vmul.f32 -1e+09, %v1366_v38  ;;  %v1367_v42 = vcvt.s32.f32 %v1359_v39 }
  0xd8   : > { %4755 = vmatprep.subr.msk.bf16.mxu1 %vm1440_vm2, %v4895_v43  ;;  %v1364_v43 = vcvt.s32.f32 %v1356_v40 }
  0xde   : > { %4561 = vmatpush3.bf16.xpose.msra.mxu0 %v1469_v44 }
  0xdf   : > { %4585 = vmatpush3.bf16.xpose.msra.mxu1 %v1630_v46  ;;  %4748 = vmatprep.subr.msk.bf16.mxu0 %vm1440_vm2, %v4896_v45  ;;  %v1355_v45 = vld [vmem:[%s1052_s6 + $0x8] sm:$0xff] }
  0xe0   : > { %4756 = vmatprep.subr.msk.bf16.mxu1 %vm1440_vm2, %v4897_v47 }
  0xe6   : > { %4563 = vmatpush3.bf16.xpose.msra.mxu0 %v1472_v50 }
  0xe7   : > { %4587 = vmatpush3.bf16.xpose.msra.mxu1 %v1633_v51  ;;  %4749 = vmatprep.subr.msk.bf16.mxu0 %vm1440_vm2, %v4898_v48  ;;  %v5928_v51 = vmul.f32 -1e+09, %v1364_v43 }
  0xe8   : > { %4757 = vmatprep.subr.msk.bf16.mxu1 %vm1440_vm2, %v4899_v49  ;;  %v5923_v49 = vmul.f32 -1e+09, %v1367_v42 }
  0xee   : > { %4565 = vmatpush3.bf16.xpose.msra.mxu0 %v1475_v52 }
  0xef   : > { %4589 = vmatpush3.bf16.xpose.msra.mxu1 %v1636_v54  ;;  %4758 = vmatprep.subr.msk.bf16.mxu0 %vm1440_vm2, %v4904_v53  ;;  %v1357_v54 = vunpack.c.1.s8 %v1354_v36 }
  0xf0   : > { %4766 = vmatprep.subr.msk.bf16.mxu1 %vm1440_vm2, %v4905_v55 }
  0xf5   : > { %4567 = vmatmul.mubr.msk.bf16.vlgmr.msra.gmra.mrb[0].mxu0 %vm1440_vm2, %v4902_v58 }
  0xf6   : > { %4591 = vmatmul.mubr.msk.bf16.vlgmr.msra.gmra.mrb[0].mxu1 %vm1440_vm2, %v4903_v59  ;;  %4599 = vmatpush3.bf16.xpose.msra.mxu0 %v1776_v56  ;;  %v1362_v59 = vunpack.c.2.s8 %v1355_v45 }
  0xf7   : > { %4623 = vmatpush3.bf16.xpose.msra.mxu1 %v1937_v57  ;;  %4759 = vmatprep.subr.msk.bf16.mxu0 %vm1440_vm2, %v4906_v60  ;;  %v1363_v57 = vunpack.c.3.s8 %v1355_v45 }
  0xf8   : > { %4767 = vmatprep.subr.msk.bf16.mxu1 %vm1440_vm2, %v4907_v61  ;;  %4570 = vmatprep.mubr.msk.bf16.mxu0 %vm1440_vm2, %v4908_v62  ;;  %v1365_v62 = vcvt.s32.f32 %v1357_v54 }
  0xf9   : > { %4594 = vmatprep.mubr.msk.bf16.mxu1 %vm1440_vm2, %v4911_v63  ;;  %v1371_v63 = vcvt.s32.f32 %v1363_v57 }
  0xfd   : > { %4571 = vmatmul.mubr.msk.bf16.gmra.mrb[4].mxu0 %vm1440_vm2, %v4909_v0  ;;  %v1370_v0 = vcvt.s32.f32 %v1362_v59 }
  0xfe   : > { %4601 = vmatpush3.bf16.xpose.msra.mxu0 %v1779_v2  ;;  %4595 = vmatmul.mubr.msk.bf16.gmra.mrb[4].mxu1 %vm1440_vm2, %v4913_v1 }
  0xff   : > { %4625 = vmatpush3.bf16.xpose.msra.mxu1 %v1940_v4  ;;  %4760 = vmatprep.subr.msk.bf16.mxu0 %vm1440_vm2, %v4910_v3 }
 0x100   : > { %4768 = vmatprep.subr.msk.bf16.mxu1 %vm1440_vm2, %v4912_v5  ;;  %4614 = vmatprep.mubr.msk.bf16.mxu0 %vm1440_vm2, %v4924_v6  ;;  %v5946_v6 = vmul.f32 -1e+09, %v1365_v62 }
 0x101   : > { %4638 = vmatprep.mubr.msk.bf16.mxu1 %vm1440_vm2, %v4926_v7 }
 0x106   : > { %4603 = vmatpush3.bf16.xpose.msra.mxu0 %v1782_v8 }
 0x107   : > { %4627 = vmatpush3.bf16.xpose.msra.mxu1 %v1943_v10  ;;  %4761 = vmatprep.subr.msk.bf16.mxu0 %vm1440_vm2, %v4914_v9  ;;  %v5949_v9 = vmul.f32 -1e+09, %v1371_v63 }
 0x108   : > { %4769 = vmatprep.subr.msk.bf16.mxu1 %vm1440_vm2, %v4915_v11  ;;  %v1361_v11 = vunpack.c.1.s8 %v1355_v45 }
 0x10e   : > { %4605 = vmatpush3.bf16.xpose.msra.mxu0 %v1785_v12 }
 0x10f   : > { %4629 = vmatpush3.bf16.xpose.msra.mxu1 %v1946_v14  ;;  %4762 = vmatprep.subr.msk.bf16.mxu0 %vm1440_vm2, %v4916_v13  ;;  %v5952_v13 = vmul.f32 -1e+09, %v1370_v0  ;;  %v1360_v14 = vunpack.c.0.s8 %v1355_v45 }
 0x110   : > { %4770 = vmatprep.subr.msk.bf16.mxu1 %vm1440_vm2, %v4917_v15 }
 0x116   : > { %4607 = vmatpush3.bf16.xpose.msra.mxu0 %v1788_v16 }
 0x117   : > { %4631 = vmatpush3.bf16.xpose.msra.mxu1 %v1949_v18  ;;  %4763 = vmatprep.subr.msk.bf16.mxu0 %vm1440_vm2, %v4918_v17 }
 0x118   : > { %4771 = vmatprep.subr.msk.bf16.mxu1 %vm1440_vm2, %v4919_v19  ;;  %v1369_v19 = vcvt.s32.f32 %v1361_v11  ;;  %v6060_v11 = vld [vmem:[#allocation2 + $0x18] sm:$0xff] }
 0x11e   : > { %4609 = vmatpush3.bf16.xpose.msra.mxu0 %v1791_v20 }
 0x11f   : > { %4633 = vmatpush3.bf16.xpose.msra.mxu1 %v1952_v22  ;;  %4764 = vmatprep.subr.msk.bf16.mxu0 %vm1440_vm2, %v4920_v21  ;;  %v1368_v21 = vcvt.s32.f32 %v1360_v14  ;;  %v6139_v14 = vld [vmem:[#allocation2 + $0x78] sm:$0xff] }
 0x120   : > { %4772 = vmatprep.subr.msk.bf16.mxu1 %vm1440_vm2, %v4921_v23  ;;  %v1377_v23 = vmul.f32 -1e+09, %v1369_v19 }
 0x126   : > { %4611 = vmatpush3.bf16.xpose.msra.mxu0 %v1794_v24  ;;  %v5264_v24 = vmov 0  }
 0x127   : > { %4635 = vmatpush3.bf16.xpose.msra.mxu1 %v1955_v26  ;;  %4765 = vmatprep.subr.msk.bf16.mxu0 %vm1440_vm2, %v4922_v25  ;;  %v1376_v25 = vmul.f32 -1e+09, %v1368_v21 }
 0x128   : > { %4773 = vmatprep.subr.msk.bf16.mxu1 %vm1440_vm2, %v4923_v27  ;;  %4883 = vset.pattern.permute.xlu0 %v5264_v24 }
 0x129   : > { %4882 = vset.pattern.permute.xlu1 %v5264_v24  ;;  %v6079_v24 = vld [vmem:[#allocation2 + $0x58] sm:$0xff] }
 0x12e   : > { %4613 = vmatpush3.bf16.xpose.msra.mxu0 %v1797_v28 }
 0x12f   : > { %4637 = vmatpush3.bf16.xpose.msra.mxu1 %v1958_v29 }
 0x135   : > { %4615 = vmatmul.mubr.msk.bf16.vlgmr.msra.gmra.mrb[8].mxu0 %vm1440_vm2, %v4925_v30 }
 0x136   : > { %4639 = vmatmul.mubr.msk.bf16.vlgmr.msra.gmra.mrb[8].mxu1 %vm1440_vm2, %v4927_v31  ;;  %4618 = vmatprep.mubr.msk.bf16.mxu0 %vm1440_vm2, %v4928_v32 }
 0x137   : > { %4642 = vmatprep.mubr.msk.bf16.mxu1 %vm1440_vm2, %v4930_v33 }
 0x13d   : > { %4619 = vmatmul.mubr.msk.bf16.gmra.mrb[12].mxu0 %vm1440_vm2, %v4929_v34 }
 0x13e   : > { %4643 = vmatmul.mubr.msk.bf16.gmra.mrb[12].mxu1 %vm1440_vm2, %v4931_v35 }
 0x1c8   : > { %v4568_v44 = vpop.f32.mrb[0].mxu0 }
 0x1c9   : > { %v5921_v46 = vadd.f32 %v4568_v44, %v5916_v41  ;;  %v4592_v47 = vpop.f32.mrb[0].mxu1  ;;  %v1511_v48 = vpop.f32.mrb[1].mxu0 }
 0x1ca   : > { %v5926_v50 = vadd.f32 %v4592_v47, %v5916_v41  ;;  %v4569_v52 = vpop.f32.mrb[2].mxu0  ;;  %v1672_v53 = vpop.f32.mrb[1].mxu1  ;;  %v5936_v61 = vadd.f32 %v1511_v48, %v5928_v51 }
 0x1cb   : > { %7046 = vst [vmem:[#allocation16_spill] sm:$0xff] %v5921_v46  ;;  %2061 = vmax.xlane.f32.xlu1 %v5921_v46  ;;  %v1514_v55 = vpop.f32.mrb[3].mxu0  ;;  %v4593_v56 = vpop.f32.mrb[2].mxu1  ;;  %v5933_v60 = vadd.f32 %v4569_v52, %v5923_v49  ;;  %v5944_v5 = vadd.f32 %v1672_v53, %v5928_v51 }
 0x1cc   : > { %7047 = vst [vmem:[#allocation17_spill] sm:$0xff] %v5926_v50  ;;  %2077 = vmax.xlane.f32.xlu0 %v5926_v50  ;;  %v1675_v58 = vpop.f32.mrb[3].mxu1  ;;  %7049 = vst [vmem:[#allocation19_spill] sm:$0xff] %v5936_v61  ;;  %v5941_v2 = vadd.f32 %v4593_v56, %v5923_v49  ;;  %v5958_v17 = vadd.f32 %v1514_v55, %v5946_v6 }
 0x1cd   : > { %7048 = vst [vmem:[#allocation18_spill] sm:$0xff] %v5933_v60  ;;  %7051 = vst [vmem:[#allocation21_spill] sm:$0xff] %v5944_v5  ;;  %v5955_v16 = vadd.f32 %v1675_v58, %v5946_v6 }
 0x1ce   : > { %7050 = vst [vmem:[#allocation20_spill] sm:$0xff] %v5941_v2  ;;  %7053 = vst [vmem:[#allocation23_spill] sm:$0xff] %v5958_v17 }
 0x1cf   : > { %2063 = vmax.xlane.f32.xlu1 %v5933_v60  ;;  %7052 = vst [vmem:[#allocation22_spill] sm:$0xff] %v5955_v16  ;;  %v6333_v60 = vld [vmem:[#allocation2 + $0xa8] sm:$0xff] }
 0x1d0   : > { %2057 = vmax.xlane.f32.xlu0 %v5936_v61  ;;  %v4572_v1 = vpop.f32.mrb[4].mxu0  ;;  %v6356_v61 = vld [vmem:[#allocation2 + $0xe8] sm:$0xff] }
 0x1d1   : > { %v1527_v3 = vpop.f32.mrb[5].mxu0  ;;  %v4596_v4 = vpop.f32.mrb[4].mxu1  ;;  %v5965_v20 = vadd.f32 %v4572_v1, %v5952_v13 }
 0x1d2   : > { %v4573_v7 = vpop.f32.mrb[6].mxu0  ;;  %v1688_v8 = vpop.f32.mrb[5].mxu1  ;;  %v5973_v26 = vadd.f32 %v4596_v4, %v5952_v13  ;;  %v5979_v28 = vadd.f32 %v1527_v3, %v1376_v25  ;;  %v6050_v4 = vld [vmem:[#allocation2 + $0x10] sm:$0xff] }
 0x1d3   : > { %2079 = vmax.xlane.f32.xlu1 %v5941_v2  ;;  %v4597_v10 = vpop.f32.mrb[6].mxu1  ;;  %v1530_v12 = vpop.f32.mrb[7].mxu0  ;;  %v5962_v18 = vadd.f32 %v4573_v7, %v5949_v9  ;;  %7055 = vst [vmem:[#allocation25_spill] sm:$0xff] %v5965_v20  ;;  %v5985_v30 = vadd.f32 %v1688_v8, %v1376_v25 }
 0x1d4   : > { %2073 = vmax.xlane.f32.xlu0 %v5944_v5  ;;  %v1691_v15 = vpop.f32.mrb[7].mxu1  ;;  %v5970_v22 = vadd.f32 %v4597_v10, %v5949_v9  ;;  %7057 = vst [vmem:[#allocation27_spill] sm:$0xff] %v5973_v26  ;;  %v5977_v27 = vadd.f32 %v1530_v12, %v1377_v23  ;;  %7059 = vst [vmem:[#allocation29_spill] sm:$0xff] %v5979_v28 }
 0x1d5   : > { %7054 = vst [vmem:[#allocation24_spill] sm:$0xff] %v5962_v18  ;;  %v5983_v29 = vadd.f32 %v1691_v15, %v1377_v23  ;;  %7061 = vst [vmem:[#allocation31_spill] sm:$0xff] %v5985_v30 }
 0x1d6   : > { %7056 = vst [vmem:[#allocation26_spill] sm:$0xff] %v5970_v22  ;;  %7058 = vst [vmem:[#allocation28_spill] sm:$0xff] %v5977_v27 }
 0x1d7   : > { %2075 = vmax.xlane.f32.xlu1 %v5955_v16  ;;  %7060 = vst [vmem:[#allocation30_spill] sm:$0xff] %v5983_v29  ;;  %v6313_v16 = vld [vmem:[#allocation2 + $0xf8] sm:$0xff] }
 0x1d8   : > { %2059 = vmax.xlane.f32.xlu0 %v5958_v17  ;;  %v6321_v17 = vld [vmem:[#allocation2 + $0xa0] sm:$0xff] }
 0x1db   : > { %2071 = vmax.xlane.f32.xlu1 %v5962_v18 }
 0x1dc   : > { %2069 = vmax.xlane.f32.xlu0 %v5965_v20  ;;  %v6305_v20 = vld [vmem:[#allocation2 + $0xf0] sm:$0xff] }
 0x1dd   : > { %7081 = vst [vmem:[#allocation51_spill] sm:$0xff] %v6305_v20 }
 0x1df   : > { %2087 = vmax.xlane.f32.xlu1 %v5970_v22 }
 0x1e0   : > { %2085 = vmax.xlane.f32.xlu0 %v5973_v26 }
 0x1e3   : > { %2067 = vmax.xlane.f32.xlu1 %v5977_v27 }
 0x1e4   : > { %2065 = vmax.xlane.f32.xlu0 %v5979_v28  ;;  %v6289_v28 = vld [vmem:[#allocation2 + $0xb0] sm:$0xff] }
 0x1e7   : > { %2083 = vmax.xlane.f32.xlu1 %v5983_v29  ;;  %v6297_v29 = vld [vmem:[#allocation2 + $0xb8] sm:$0xff] }
 0x1e8   : > { %2081 = vmax.xlane.f32.xlu0 %v5985_v30  ;;  %7080 = vst [vmem:[#allocation50_spill] sm:$0xff] %v6297_v29 }
 0x208   : > { %v4616_v31 = vpop.f32.mrb[8].mxu0 }
 0x209   : > { %v5991_v32 = vadd.f32 %v4616_v31, %v5916_v41  ;;  %v1833_v33 = vpop.f32.mrb[9].mxu0  ;;  %v4640_v34 = vpop.f32.mrb[8].mxu1  ;;  %v6086_v31 = vld [vmem:[#allocation2 + $0x40] sm:$0xff] }
 0x20a   : > { %v4617_v35 = vpop.f32.mrb[10].mxu0  ;;  %v1994_v36 = vpop.f32.mrb[9].mxu1  ;;  %v5994_v37 = vadd.f32 %v4640_v34, %v5916_v41  ;;  %v6006_v45 = vadd.f32 %v1833_v33, %v5928_v51  ;;  %v6161_v33 = vld [vmem:[#allocation2 + $0x28] sm:$0xff] }
 0x20b   : > { %7062 = vst [vmem:[#allocation32_spill] sm:$0xff] %v5991_v32  ;;  %v5997_v38 = vadd.f32 %v4617_v35, %v5923_v49  ;;  %v1836_v39 = vpop.f32.mrb[11].mxu0  ;;  %v4641_v40 = vpop.f32.mrb[10].mxu1  ;;  %2093 = vmax.xlane.f32.xlu0 %v5991_v32  ;;  %v6014_v56 = vadd.f32 %v1994_v36, %v5928_v51  ;;  %v4932_v35 = vld [vmem:[%s5620_s8] sm:$0xff]   ;;  %v6265_v32 = vld [vmem:[#allocation2 + $0x88] sm:$0xff] }
 0x20c   : > { %7063 = vst [vmem:[#allocation33_spill] sm:$0xff] %v5994_v37  ;;  %v1997_v42 = vpop.f32.mrb[11].mxu1  ;;  %v6002_v43 = vadd.f32 %v4641_v40, %v5923_v49  ;;  %7066 = vst [vmem:[#allocation36_spill] sm:$0xff] %v6006_v45  ;;  %v6010_v53 = vadd.f32 %v1836_v39, %v5946_v6  ;;  %4646 = vmatprep.subr.bf16.mxu0 %v4932_v35 }
 0x20d   : > { %7064 = vst [vmem:[#allocation34_spill] sm:$0xff] %v5997_v38  ;;  %2095 = vmax.xlane.f32.xlu1 %v5997_v38  ;;  %7068 = vst [vmem:[#allocation38_spill] sm:$0xff] %v6014_v56  ;;  %v6018_v57 = vadd.f32 %v1997_v42, %v5946_v6  ;;  %v6052_v6 = vld [vmem:[#allocation2 + $0x50] sm:$0xff]  ;;  %v6100_v42 = vld [vmem:[#allocation2 + $0x48] sm:$0xff]  ;;  %4647 = vmatpush3.bf16.msra.mxu0 %v4932_v35 }
 0x20e   : > { %7065 = vst [vmem:[#allocation35_spill] sm:$0xff] %v6002_v43  ;;  %7067 = vst [vmem:[#allocation37_spill] sm:$0xff] %v6010_v53 }
 0x20f   : > { %2109 = vmax.xlane.f32.xlu0 %v5994_v37  ;;  %7069 = vst [vmem:[#allocation39_spill] sm:$0xff] %v6018_v57  ;;  %v6248_v37 = vld [vmem:[#allocation2 + $0xd8] sm:$0xff] }
 0x210   : > { %v4620_v44 = vpop.f32.mrb[12].mxu0 }
 0x211   : > { %2111 = vmax.xlane.f32.xlu1 %v6002_v43  ;;  %v1849_v41 = vpop.f32.mrb[13].mxu0  ;;  %v4644_v47 = vpop.f32.mrb[12].mxu1  ;;  %v6021_v58 = vadd.f32 %v4620_v44, %v5952_v13 }
 0x212   : > { %v4621_v48 = vpop.f32.mrb[14].mxu0  ;;  %v2010_v52 = vpop.f32.mrb[13].mxu1  ;;  %v6029_v62 = vadd.f32 %v4644_v47, %v5952_v13  ;;  %v6037_v63 = vadd.f32 %v1849_v41, %v1376_v25  ;;  %v6067_v13 = vld [vmem:[#allocation2] sm:$0xff]  ;;  %v6106_v41 = vld [vmem:[#allocation2 + $0x8] sm:$0xff]  ;;  %v4937_v47 = vld [vmem:[%s5620_s8 + $0x18] sm:$0xff]  }
 0x213   : > { %2089 = vmax.xlane.f32.xlu0 %v6006_v45  ;;  %v1852_v54 = vpop.f32.mrb[15].mxu0  ;;  %v4645_v49 = vpop.f32.mrb[14].mxu1  ;;  %7070 = vst [vmem:[#allocation40_spill] sm:$0xff] %v6021_v58  ;;  %v6026_v59 = vadd.f32 %v4621_v48, %v5949_v9  ;;  %v6043_v1 = vadd.f32 %v2010_v52, %v1376_v25  ;;  %v4933_v52 = vld [vmem:[%s5620_s8 + $0x8] sm:$0xff]   ;;  %v6257_v45 = vld [vmem:[#allocation2 + $0x80] sm:$0xff] }
 0x214   : > { %v2013_v55 = vpop.f32.mrb[15].mxu1  ;;  %7072 = vst [vmem:[#allocation42_spill] sm:$0xff] %v6029_v62  ;;  %v6034_v51 = vadd.f32 %v4645_v49, %v5949_v9  ;;  %7074 = vst [vmem:[#allocation44_spill] sm:$0xff] %v6037_v63  ;;  %v6040_v0 = vadd.f32 %v1852_v54, %v1377_v23  ;;  %v4934_v54 = vld [vmem:[%s5620_s8 + $0x40] sm:$0xff]   ;;  %4648 = vmatprep.subr.bf16.mxu0 %v4933_v52 }
 0x215   : > { %2091 = vmax.xlane.f32.xlu1 %v6010_v53  ;;  %7071 = vst [vmem:[#allocation41_spill] sm:$0xff] %v6026_v59  ;;  %7076 = vst [vmem:[#allocation46_spill] sm:$0xff] %v6043_v1  ;;  %v6046_v3 = vadd.f32 %v2013_v55, %v1377_v23  ;;  %4670 = vmatprep.subr.bf16.mxu1 %v4934_v54 }
 0x216   : > { %7073 = vst [vmem:[#allocation43_spill] sm:$0xff] %v6034_v51  ;;  %7075 = vst [vmem:[#allocation45_spill] sm:$0xff] %v6040_v0  ;;  %4649 = vmatpush3.bf16.msra.mxu0 %v4933_v52  ;;  %4671 = vmatpush3.bf16.msra.mxu1 %v4934_v54  ;;  %v4938_v54 = vld [vmem:[%s5620_s8 + $0x50] sm:$0xff]  }
 0x217   : > { %2105 = vmax.xlane.f32.xlu0 %v6014_v56  ;;  %7077 = vst [vmem:[#allocation47_spill] sm:$0xff] %v6046_v3 }
 0x219   : > { %2107 = vmax.xlane.f32.xlu1 %v6018_v57  ;;  %v6237_v57 = vld [vmem:[#allocation2 + $0xd0] sm:$0xff] }
 0x21b   : > { %2101 = vmax.xlane.f32.xlu0 %v6021_v58 }
 0x21d   : > { %2103 = vmax.xlane.f32.xlu1 %v6026_v59 }
 0x21f   : > { %2117 = vmax.xlane.f32.xlu0 %v6029_v62 }
 0x221   : > { %2119 = vmax.xlane.f32.xlu1 %v6034_v51 }
 0x223   : > { %2097 = vmax.xlane.f32.xlu0 %v6037_v63 }
 0x225   : > { %2099 = vmax.xlane.f32.xlu1 %v6040_v0 }
 0x227   : > { %2113 = vmax.xlane.f32.xlu0 %v6043_v1  ;;  %v4942_v1 = vld [vmem:[%s5620_s8 + $0x60] sm:$0xff]  }
 0x229   : > { %2115 = vmax.xlane.f32.xlu1 %v6046_v3  ;;  %v6183_v3 = vld [vmem:[#allocation2 + $0x68] sm:$0xff] }
 0x258   : > { %v2062_v7 = vpop.xlane.xlu1 %2061 }
 0x259   : > { %v2078_v8 = vpop.xlane.xlu0 %2077  ;;  %v6055_v9 = vmax.f32 %v6050_v4, %v2062_v7 }
 0x25a   : > { %v6058_v10 = vmax.f32 %v6052_v6, %v2078_v8  ;;  %v6121_v8 = vld [vmem:[#allocation2 + $0x38] sm:$0xff] }
 0x25b   : > { %3456 = vst.msk [vmem:[#allocation2 + $0x10] sm:$0xff] %vm2665_vm3, %v6055_v9  ;;  %2261 = vperm.xlu1 %4882, %v6055_v9  }
 0x25c   : > { %3464 = vst.msk [vmem:[#allocation2 + $0x50] sm:$0xff] %vm2665_vm3, %v6058_v10  ;;  %v2064_v15 = vpop.xlane.xlu1 %2063 }
 0x25d   : > { %v6074_v19 = vmax.f32 %v6060_v11, %v2064_v15  ;;  %v2058_v21 = vpop.xlane.xlu0 %2057 }
 0x25e   : > { %v6077_v23 = vmax.f32 %v6067_v13, %v2058_v21  ;;  %v6127_v21 = vld [vmem:[#allocation2 + $0x30] sm:$0xff] }
 0x25f   : > { %3457 = vst.msk [vmem:[#allocation2 + $0x18] sm:$0xff] %vm2665_vm3, %v6074_v19  ;;  %2301 = vperm.xlu1 %4882, %v6058_v10  }
 0x260   : > { %3454 = vst.msk [vmem:[#allocation2] sm:$0xff] %vm2665_vm3, %v6077_v23  ;;  %2251 = vperm.xlu0 %4883, %v6077_v23   ;;  %v2080_v34 = vpop.xlane.xlu1 %2079 }
 0x261   : > { %v6095_v36 = vmax.f32 %v6079_v24, %v2080_v34  ;;  %v2074_v39 = vpop.xlane.xlu0 %2073  ;;  %v4939_v34 = vld [vmem:[%s5620_s8 + $0x20] sm:$0xff]  }
 0x262   : > { %v6098_v40 = vmax.f32 %v6086_v31, %v2074_v39  ;;  %v4935_v39 = vld [vmem:[%s5620_s8 + $0x10] sm:$0xff]  }
 0x263   : > { %3465 = vst.msk [vmem:[#allocation2 + $0x58] sm:$0xff] %vm2665_vm3, %v6095_v36  ;;  %4650 = vmatprep.subr.bf16.mxu0 %v4935_v39 }
 0x264   : > { %3462 = vst.msk [vmem:[#allocation2 + $0x40] sm:$0xff] %vm2665_vm3, %v6098_v40  ;;  %2291 = vperm.xlu1 %4882, %v6098_v40   ;;  %v2076_v48 = vpop.xlane.xlu1 %2075  ;;  %4651 = vmatpush3.bf16.msra.mxu0 %v4935_v39 }
 0x265   : > { %v6116_v49 = vmax.f32 %v6100_v42, %v2076_v48  ;;  %v2060_v55 = vpop.xlane.xlu0 %2059  ;;  %v4936_v48 = vld [vmem:[%s5620_s8 + $0x48] sm:$0xff]   ;;  %4652 = vmatprep.subr.bf16.mxu0 %v4937_v47 }
 0x266   : > { %v6119_v7 = vmax.f32 %v6106_v41, %v2060_v55  ;;  %4672 = vmatprep.subr.bf16.mxu1 %v4936_v48 }
 0x267   : > { %3463 = vst.msk [vmem:[#allocation2 + $0x48] sm:$0xff] %vm2665_vm3, %v6116_v49  ;;  %4673 = vmatpush3.bf16.msra.mxu1 %v4936_v48 }
 0x268   : > { %3455 = vst.msk [vmem:[#allocation2 + $0x8] sm:$0xff] %vm2665_vm3, %v6119_v7  ;;  %2266 = vperm.xlu1 %4882, %v6074_v19   ;;  %v2072_v35 = vpop.xlane.xlu1 %2071  ;;  %4674 = vmatprep.subr.bf16.mxu1 %v4938_v54  ;;  %v7083_v5 = vsub.f32 %v6106_v41, %v6119_v7  ;;  %v7085_v41 = vsub.f32 %v6050_v4, %v6055_v9 }
 0x269   : > { %v6137_v55 = vmax.f32 %v6121_v8, %v2072_v35  ;;  %v2070_v44 = vpop.xlane.xlu0 %2069  ;;  %v6149_v35 = vld [vmem:[#allocation2 + $0x70] sm:$0xff]  ;;  %4653 = vmatpush3.bf16.msra.mxu0 %v4937_v47 }
 0x26a   : > { %v6142_v52 = vmax.f32 %v6127_v21, %v2070_v44  ;;  %v4940_v44 = vld [vmem:[%s5620_s8 + $0x58] sm:$0xff]   ;;  %4654 = vmatprep.subr.bf16.mxu0 %v4939_v34  ;;  %v2187_v46 = vmul.f32 1.442695, %v7083_v5 }
 0x26b   : > { %3461 = vst.msk [vmem:[#allocation2 + $0x38] sm:$0xff] %vm2665_vm3, %v6137_v55  ;;  %2286 = vperm.xlu0 %4883, %v6137_v55   ;;  %4675 = vmatpush3.bf16.msra.mxu1 %v4938_v54  ;;  %v6193_v54 = vld [vmem:[#allocation2 + $0x60] sm:$0xff] }
 0x26c   : > { %2306 = vperm.xlu1 %4882, %v6095_v36   ;;  %v2088_v15 = vpop.xlane.xlu1 %2087  ;;  %3460 = vst.msk [vmem:[#allocation2 + $0x30] sm:$0xff] %vm2665_vm3, %v6142_v52  ;;  %4676 = vmatprep.subr.bf16.mxu1 %v4940_v44  ;;  %4964 = vpow2.f32 %v2187_v46 }
 0x26d   : > { %v6159_v25 = vmax.f32 %v6139_v14, %v2088_v15  ;;  %v2086_v12 = vpop.xlane.xlu0 %2085  ;;  %v6171_v15 = vld [vmem:[#allocation2 + $0x20] sm:$0xff]  ;;  %4655 = vmatpush3.bf16.msra.mxu0 %v4939_v34 }
 0x26e   : > { %v6164_v39 = vmax.f32 %v6149_v35, %v2086_v12  ;;  %v4941_v12 = vld [vmem:[%s5620_s8 + $0x28] sm:$0xff]  }
 0x26f   : > { %3469 = vst.msk [vmem:[#allocation2 + $0x78] sm:$0xff] %vm2665_vm3, %v6159_v25  ;;  %2326 = vperm.xlu0 %4883, %v6159_v25   ;;  %4677 = vmatpush3.bf16.msra.mxu1 %v4940_v44  ;;  %v4947_v44 = vld [vmem:[%s5620_s8 + $0x78] sm:$0xff]  }
 0x270   : > { %2256 = vperm.xlu1 %4882, %v6119_v7   ;;  %v2068_v48 = vpop.xlane.xlu1 %2067  ;;  %3468 = vst.msk [vmem:[#allocation2 + $0x70] sm:$0xff] %vm2665_vm3, %v6164_v39  ;;  %4656 = vmatprep.subr.bf16.mxu0 %v4941_v12  ;;  %v2189_v7 = vmul.f32 1.442695, %v7085_v41 }
 0x271   : > { %v6181_v51 = vmax.f32 %v6161_v33, %v2068_v48  ;;  %v2066_v62 = vpop.xlane.xlu0 %2065  ;;  %4678 = vmatprep.subr.bf16.mxu1 %v4942_v1  ;;  %4657 = vmatpush3.bf16.msra.mxu0 %v4941_v12  ;;  %v4945_v12 = vld [vmem:[%s5620_s8 + $0x38] sm:$0xff]  }
 0x272   : > { %v6186_v47 = vmax.f32 %v6171_v15, %v2066_v62  ;;  %v4946_v62 = vld [vmem:[%s5620_s8 + $0x70] sm:$0xff]  }
 0x273   : > { %3459 = vst.msk [vmem:[#allocation2 + $0x28] sm:$0xff] %vm2665_vm3, %v6181_v51  ;;  %2276 = vperm.xlu0 %4883, %v6181_v51   ;;  %4679 = vmatpush3.bf16.msra.mxu1 %v4942_v1  ;;  %v6226_v1 = vld [vmem:[#allocation2 + $0x90] sm:$0xff] }
 0x274   : > { %2296 = vperm.xlu1 %4882, %v6116_v49   ;;  %v2084_v48 = vpop.xlane.xlu1 %2083  ;;  %3458 = vst.msk [vmem:[#allocation2 + $0x20] sm:$0xff] %vm2665_vm3, %v6186_v47  ;;  %v7087_v4 = vsub.f32 %v6171_v15, %v6186_v47 }
 0x275   : > { %v6203_v0 = vmax.f32 %v6183_v3, %v2084_v48  ;;  %v2082_v63 = vpop.xlane.xlu0 %2081  ;;  %v4944_v48 = vld [vmem:[%s5620_s8 + $0x68] sm:$0xff]  }
 0x276   : > { %v6206_v34 = vmax.f32 %v6193_v54, %v2082_v63  ;;  %v4943_v63 = vld [vmem:[%s5620_s8 + $0x30] sm:$0xff]   ;;  %4680 = vmatprep.subr.bf16.mxu1 %v4944_v48  ;;  %v2193_v9 = vmul.f32 1.442695, %v7087_v4  ;;  %v6387_v15 = vpop.eup %4964 }
 0x277   : > { %3467 = vst.msk [vmem:[#allocation2 + $0x68] sm:$0xff] %vm2665_vm3, %v6203_v0  ;;  %2316 = vperm.xlu0 %4883, %v6203_v0   ;;  %4658 = vmatprep.subr.bf16.mxu0 %v4943_v63  ;;  %v7096_v4 = vsub.f32 %v6183_v3, %v6203_v0  ;;  %v7098_v0 = vsub.f32 %v6139_v14, %v6159_v25 }
 0x278   : > { %2281 = vperm.xlu1 %4882, %v6142_v52   ;;  %3466 = vst.msk [vmem:[#allocation2 + $0x60] sm:$0xff] %vm2665_vm3, %v6206_v34  ;;  %4659 = vmatpush3.bf16.msra.mxu0 %v4943_v63  ;;  %v6229_v63 = vld [vmem:[%s5620_s8 + $0x80] sm:$0xff]  }
 0x279   : > { %4681 = vmatpush3.bf16.msra.mxu1 %v4944_v48  ;;  %4660 = vmatprep.subr.bf16.mxu0 %v4945_v12  ;;  %7078 = vst [vmem:[#allocation48_spill] sm:$0xff] %v6229_v63  ;;  %v6231_v48 = vld [vmem:[#allocation2 + $0x98] sm:$0xff]  ;;  %v2215_v3 = vmul.f32 1.442695, %v7098_v0 }
 0x27a   : > { %4682 = vmatprep.subr.bf16.mxu1 %v4946_v62  ;;  %v7101_v0 = vld [vmem:[#allocation19_spill] sm:$0xff] }
 0x27c   : > { %2321 = vperm.xlu1 %4882, %v6164_v39   ;;  %4661 = vmatpush3.bf16.msra.mxu0 %v4945_v12 }
 0x27d   : > { %4683 = vmatpush3.bf16.msra.mxu1 %v4946_v62  ;;  %4694 = vmatprep.subr.bf16.mxu0 %v6229_v63  ;;  %v6240_v62 = vld [vmem:[%s5620_s8 + $0xc0] sm:$0xff]   ;;  %v6281_v63 = vld [vmem:[#allocation2 + $0xc8] sm:$0xff] }
 0x27e   : > { %4684 = vmatprep.subr.bf16.mxu1 %v4947_v44  ;;  %7079 = vst [vmem:[#allocation49_spill] sm:$0xff] %v6240_v62 }
 0x280   : > { %2271 = vperm.xlu1 %4882, %v6186_v47   ;;  %v7090_v47 = vsub.f32 %v6121_v8, %v6137_v55  ;;  %v7093_v55 = vsub.f32 %v6052_v6, %v6058_v10 }
 0x281   : > { %4685 = vmatpush3.bf16.msra.mxu1 %v4947_v44 }
 0x282   : > { %4718 = vmatprep.subr.bf16.mxu1 %v6240_v62  ;;  %v6273_v62 = vld [vmem:[#allocation2 + $0xc0] sm:$0xff] }
 0x284   : > { %2311 = vperm.xlu1 %4882, %v6206_v34  }
 0x298   : > { %v2094_v58 = vpop.xlane.xlu0 %2093 }
 0x299   : > { %v6235_v59 = vmax.f32 %v6226_v1, %v2094_v58 }
 0x29a   : > { %v2096_v12 = vpop.xlane.xlu1 %2095 }
 0x29b   : > { %3472 = vst.msk [vmem:[#allocation2 + $0x90] sm:$0xff] %vm2665_vm3, %v6235_v59  ;;  %v6245_v44 = vmax.f32 %v6231_v48, %v2096_v12  ;;  %2341 = vperm.xlu1 %4882, %v6235_v59  }
 0x29c   : > { %v2110_v56 = vpop.xlane.xlu0 %2109 }
 0x29d   : > { %3473 = vst.msk [vmem:[#allocation2 + $0x98] sm:$0xff] %vm2665_vm3, %v6245_v44  ;;  %v6254_v58 = vmax.f32 %v6237_v57, %v2110_v56  ;;  %2346 = vperm.xlu0 %4883, %v6245_v44  }
 0x29e   : > { %v2112_v53 = vpop.xlane.xlu1 %2111 }
 0x29f   : > { %3480 = vst.msk [vmem:[#allocation2 + $0xd0] sm:$0xff] %vm2665_vm3, %v6254_v58  ;;  %v6262_v12 = vmax.f32 %v6248_v37, %v2112_v53  ;;  %2381 = vperm.xlu1 %4882, %v6254_v58  }
 0x2a0   : > { %v2090_v43 = vpop.xlane.xlu0 %2089 }
 0x2a1   : > { %3481 = vst.msk [vmem:[#allocation2 + $0xd8] sm:$0xff] %vm2665_vm3, %v6262_v12  ;;  %v6270_v56 = vmax.f32 %v6257_v45, %v2090_v43  ;;  %2386 = vperm.xlu0 %4883, %v6262_v12   ;;  %v2180_v25 = vsub.f32 %v6248_v37, %v6262_v12 }
 0x2a2   : > { %v2092_v38 = vpop.xlane.xlu1 %2091 }
 0x2a3   : > { %3470 = vst.msk [vmem:[#allocation2 + $0x80] sm:$0xff] %vm2665_vm3, %v6270_v56  ;;  %v6278_v53 = vmax.f32 %v6265_v32, %v2092_v38  ;;  %2331 = vperm.xlu1 %4882, %v6270_v56  }
 0x2a4   : > { %v2106_v30 = vpop.xlane.xlu0 %2105 }
 0x2a5   : > { %3471 = vst.msk [vmem:[#allocation2 + $0x88] sm:$0xff] %vm2665_vm3, %v6278_v53  ;;  %v6286_v43 = vmax.f32 %v6273_v62, %v2106_v30  ;;  %2336 = vperm.xlu0 %4883, %v6278_v53  }
 0x2a6   : > { %v2108_v22 = vpop.xlane.xlu1 %2107 }
 0x2a7   : > { %3478 = vst.msk [vmem:[#allocation2 + $0xc0] sm:$0xff] %vm2665_vm3, %v6286_v43  ;;  %v6294_v38 = vmax.f32 %v6281_v63, %v2108_v22  ;;  %2371 = vperm.xlu1 %4882, %v6286_v43  }
 0x2a8   : > { %v2102_v26 = vpop.xlane.xlu0 %2101 }
 0x2a9   : > { %3479 = vst.msk [vmem:[#allocation2 + $0xc8] sm:$0xff] %vm2665_vm3, %v6294_v38  ;;  %v6302_v30 = vmax.f32 %v6289_v28, %v2102_v26  ;;  %2376 = vperm.xlu0 %4883, %v6294_v38  }
 0x2aa   : > { %v2104_v18 = vpop.xlane.xlu1 %2103 }
 0x2ab   : > { %3476 = vst.msk [vmem:[#allocation2 + $0xb0] sm:$0xff] %vm2665_vm3, %v6302_v30  ;;  %v6310_v22 = vmax.f32 %v6297_v29, %v2104_v18  ;;  %2361 = vperm.xlu1 %4882, %v6302_v30  }
 0x2ac   : > { %v2118_v27 = vpop.xlane.xlu0 %2117 }
 0x2ad   : > { %7082 = vst [vmem:[#allocation52_spill] sm:$0xff] %v6310_v22  ;;  %3477 = vst.msk [vmem:[#allocation2 + $0xb8] sm:$0xff] %vm2665_vm3, %v6310_v22  ;;  %v6318_v26 = vmax.f32 %v6305_v20, %v2118_v27  ;;  %2366 = vperm.xlu0 %4883, %v6310_v22   ;;  %v6345_v22 = vld [vmem:[#allocation2 + $0xe0] sm:$0xff] }
 0x2ae   : > { %v2120_v50 = vpop.xlane.xlu1 %2119 }
 0x2af   : > { %3484 = vst.msk [vmem:[#allocation2 + $0xf0] sm:$0xff] %vm2665_vm3, %v6318_v26  ;;  %v6328_v2 = vmax.f32 %v6313_v16, %v2120_v50  ;;  %v7084_v50 = vsub.f32 %v6067_v13, %v6077_v23 }
 0x2b0   : > { %v2098_v27 = vpop.xlane.xlu0 %2097 }
 0x2b1   : > { %3485 = vst.msk [vmem:[#allocation2 + $0xf8] sm:$0xff] %vm2665_vm3, %v6328_v2  ;;  %v6340_v18 = vmax.f32 %v6321_v17, %v2098_v27  ;;  %v2185_v20 = vmul.f32 1.442695, %v7084_v50 }
 0x2b2   : > { %v2100_v29 = vpop.xlane.xlu1 %2099 }
 0x2b3   : > { %3474 = vst.msk [vmem:[#allocation2 + $0xa0] sm:$0xff] %vm2665_vm3, %v6340_v18  ;;  %v6350_v5 = vmax.f32 %v6333_v60, %v2100_v29  ;;  %2351 = vperm.xlu1 %4882, %v6340_v18   ;;  %v7086_v29 = vsub.f32 %v6060_v11, %v6074_v19  ;;  %4966 = vpow2.f32 %v2185_v20  ;;  %v7088_v20 = vsub.f32 %v6161_v33, %v6181_v51 }
 0x2b4   : > { %v2114_v27 = vpop.xlane.xlu0 %2113  ;;  %4968 = vpow2.f32 %v2189_v7  ;;  %v7089_v19 = vsub.f32 %v6127_v21, %v6142_v52  ;;  %v2199_v7 = vmul.f32 1.442695, %v7090_v47  ;;  %v7091_v33 = vsub.f32 %v6086_v31, %v6098_v40 }
 0x2b5   : > { %3475 = vst.msk [vmem:[#allocation2 + $0xa8] sm:$0xff] %vm2665_vm3, %v6350_v5  ;;  %v6361_v13 = vmax.f32 %v6345_v22, %v2114_v27  ;;  %2356 = vperm.xlu0 %4883, %v6350_v5   ;;  %v2191_v23 = vmul.f32 1.442695, %v7086_v29  ;;  %v2195_v11 = vmul.f32 1.442695, %v7088_v20  ;;  %v7092_v52 = vsub.f32 %v6100_v42, %v6116_v49 }
 0x2b6   : > { %v2116_v50 = vpop.xlane.xlu1 %2115  ;;  %v2197_v41 = vmul.f32 1.442695, %v7089_v19  ;;  %v2201_v27 = vmul.f32 1.442695, %v7091_v33  ;;  %v7094_v40 = vsub.f32 %v6079_v24, %v6095_v36  ;;  %v7095_v49 = vsub.f32 %v6193_v54, %v6206_v34 }
 0x2b7   : > { %3482 = vst.msk [vmem:[#allocation2 + $0xe0] sm:$0xff] %vm2665_vm3, %v6361_v13  ;;  %v6370_v46 = vmax.f32 %v6356_v61, %v2116_v50  ;;  %2391 = vperm.xlu1 %4882, %v6361_v13   ;;  %4970 = vpow2.f32 %v2191_v23  ;;  %v2203_v29 = vmul.f32 1.442695, %v7092_v52  ;;  %v2205_v23 = vmul.f32 1.442695, %v7093_v55  ;;  %v7099_v52 = vld [vmem:[#allocation52_spill] sm:$0xff] }
 0x2b8   : > { %4972 = vpow2.f32 %v2193_v9  ;;  %v2207_v50 = vmul.f32 1.442695, %v7094_v40  ;;  %v2209_v6 = vmul.f32 1.442695, %v7095_v49  ;;  %v2211_v24 = vmul.f32 1.442695, %v7096_v4 }
 0x2b9   : > { %3483 = vst.msk [vmem:[#allocation2 + $0xe8] sm:$0xff] %vm2665_vm3, %v6370_v46  ;;  %2396 = vperm.xlu0 %4883, %v6370_v46   ;;  %4974 = vpow2.f32 %v2195_v11  ;;  %v7097_v9 = vsub.f32 %v6149_v35, %v6164_v39  ;;  %v2171_v54 = vsub.f32 %v6226_v1, %v6235_v59  ;;  %v2172_v11 = vsub.f32 %v6231_v48, %v6245_v44 }
 0x2ba   : > { %4976 = vpow2.f32 %v2197_v41  ;;  %v2179_v59 = vsub.f32 %v6237_v57, %v6254_v58  ;;  %v2169_v19 = vsub.f32 %v6257_v45, %v6270_v56  ;;  %v2239_v58 = vmul.f32 1.442695, %v2180_v25 }
 0x2bb   : > { %2401 = vperm.xlu1 %4882, %v6318_v26   ;;  %4978 = vpow2.f32 %v2199_v7  ;;  %v2213_v20 = vmul.f32 1.442695, %v7097_v9  ;;  %v2221_v39 = vmul.f32 1.442695, %v2171_v54  ;;  %v2223_v14 = vmul.f32 1.442695, %v2172_v11 }
 0x2bc   : > { %4980 = vpow2.f32 %v2201_v27  ;;  %v2237_v44 = vmul.f32 1.442695, %v2179_v59  ;;  %v2170_v41 = vsub.f32 %v6265_v32, %v6278_v53  ;;  %v2217_v12 = vmul.f32 1.442695, %v2169_v19 }
 0x2bd   : > { %2406 = vperm.xlu0 %4883, %v6328_v2   ;;  %v6393_v51 = vpop.eup %4966  ;;  %4982 = vpow2.f32 %v2203_v29  ;;  %v2177_v47 = vsub.f32 %v6273_v62, %v6286_v43  ;;  %v2178_v7 = vsub.f32 %v6281_v63, %v6294_v38  ;;  %v2175_v62 = vsub.f32 %v6289_v28, %v6302_v30  ;;  %v7100_v29 = vld [vmem:[#allocation50_spill] sm:$0xff] }
 0x2be   : > { %v6399_v21 = vpop.eup %4968  ;;  %4984 = vpow2.f32 %v2205_v23  ;;  %v2219_v56 = vmul.f32 1.442695, %v2170_v41  ;;  %v2176_v63 = vsub.f32 %v7100_v29, %v7099_v52  ;;  %v2173_v28 = vsub.f32 %v6321_v17, %v6340_v18  ;;  %v7107_v29 = vld [vmem:[#allocation17_spill] sm:$0xff] }
 0x2bf   : > { %2737 = vperm.xlu1 %4882, %v6387_v15   ;;  %4986 = vpow2.f32 %v2207_v50  ;;  %v2233_v53 = vmul.f32 1.442695, %v2177_v47  ;;  %v2235_v27 = vmul.f32 1.442695, %v2178_v7  ;;  %v2229_v23 = vmul.f32 1.442695, %v2175_v62 }
 0x2c0   : > { %4988 = vpow2.f32 %v2209_v6  ;;  %v2231_v40 = vmul.f32 1.442695, %v2176_v63  ;;  %v2174_v50 = vsub.f32 %v6333_v60, %v6350_v5  ;;  %v2225_v4 = vmul.f32 1.442695, %v2173_v28  ;;  %v7105_v47 = vld [vmem:[#allocation20_spill] sm:$0xff] }
 0x2c1   : > { %2732 = vperm.xlu0 %4883, %v6393_v51   ;;  %v6405_v8 = vpop.eup %4970  ;;  %4990 = vpow2.f32 %v2211_v24  ;;  %v2181_v24 = vsub.f32 %v6345_v22, %v6361_v13  ;;  %v2182_v9 = vsub.f32 %v6356_v61, %v6370_v46 }
 0x2c2   : > { %v6411_v31 = vpop.eup %4972  ;;  %4992 = vpow2.f32 %v2213_v20  ;;  %v2227_v18 = vmul.f32 1.442695, %v2174_v50 }
 0x2c3   : > { %2742 = vperm.xlu1 %4882, %v6399_v21   ;;  %v6417_v42 = vpop.eup %4974  ;;  %4994 = vpow2.f32 %v2215_v3  ;;  %v2241_v54 = vmul.f32 1.442695, %v2181_v24  ;;  %v2243_v13 = vmul.f32 1.442695, %v2182_v9  ;;  %v7108_v24 = vld [vmem:[#allocation22_spill] sm:$0xff] }
 0x2c4   : > { %v6423_v10 = vpop.eup %4976  ;;  %4996 = vpow2.f32 %v2221_v39  ;;  %v7102_v39 = vld [vmem:[#allocation18_spill] sm:$0xff] }
 0x2c5   : > { %2747 = vperm.xlu0 %4883, %v6405_v8   ;;  %v6429_v36 = vpop.eup %4978  ;;  %4998 = vpow2.f32 %v2223_v14  ;;  %v7103_v14 = vld [vmem:[#allocation16_spill] sm:$0xff] }
 0x2c6   : > { %v6437_v34 = vpop.eup %4980  ;;  %5000 = vpow2.f32 %v2237_v44 }
 0x2c7   : > { %2752 = vperm.xlu1 %4882, %v6411_v31   ;;  %v6445_v35 = vpop.eup %4982  ;;  %5002 = vpow2.f32 %v2239_v58  ;;  %v7104_v58 = vld [vmem:[#allocation21_spill] sm:$0xff] }
 0x2c8   : > { %v6450_v1 = vpop.eup %4984  ;;  %5004 = vpow2.f32 %v2217_v12 }
 0x2c9   : > { %2757 = vperm.xlu0 %4883, %v6417_v42   ;;  %v6455_v48 = vpop.eup %4986  ;;  %5006 = vpow2.f32 %v2219_v56 }
 0x2ca   : > { %v6460_v57 = vpop.eup %4988  ;;  %5008 = vpow2.f32 %v2233_v53 }
 0x2cb   : > { %2762 = vperm.xlu1 %4882, %v6423_v10   ;;  %v6465_v37 = vpop.eup %4990  ;;  %5010 = vpow2.f32 %v2235_v27  ;;  %v7106_v27 = vld [vmem:[#allocation23_spill] sm:$0xff] }
 0x2cc   : > { %v6470_v45 = vpop.eup %4992  ;;  %5012 = vpow2.f32 %v2229_v23 }
 0x2cd   : > { %2767 = vperm.xlu0 %4883, %v6429_v36   ;;  %v6477_v32 = vpop.eup %4994  ;;  %5014 = vpow2.f32 %v2231_v40 }
 0x2ce   : > { %v6482_v43 = vpop.eup %4996  ;;  %5016 = vpow2.f32 %v2225_v4 }
 0x2cf   : > { %2772 = vperm.xlu1 %4882, %v6437_v34   ;;  %v6489_v55 = vpop.eup %4998  ;;  %5018 = vpow2.f32 %v2227_v18 }
 0x2d0   : > { %v6494_v30 = vpop.eup %5000  ;;  %5020 = vpow2.f32 %v2241_v54 }
 0x2d1   : > { %2777 = vperm.xlu0 %4883, %v6445_v35   ;;  %v6499_v6 = vpop.eup %5002  ;;  %5022 = vpow2.f32 %v2243_v13 }
 0x2d2   : > { %v6504_v17 = vpop.eup %5004 }
 0x2d3   : > { %2782 = vperm.xlu1 %4882, %v6450_v1   ;;  %v6509_v20 = vpop.eup %5006 }
 0x2d4   : > { %v6512_v22 = vpop.eup %5008 }
 0x2d5   : > { %2787 = vperm.xlu0 %4883, %v6455_v48   ;;  %v6519_v59 = vpop.eup %5010 }
 0x2d6   : > { %v6524_v44 = vpop.eup %5012 }
 0x2d7   : > { %2792 = vperm.xlu1 %4882, %v6460_v57   ;;  %v6531_v62 = vpop.eup %5014 }
 0x2d8   : > { %v6537_v23 = vpop.eup %5016 }
 0x2d9   : > { %2797 = vperm.xlu0 %4883, %v6465_v37   ;;  %v6540_v4 = vpop.eup %5018 }
 0x2da   : > { %v6474_v33 = vpop.permute.xlu1 %2261 }
 0x2db   : > { %2802 = vperm.xlu1 %4882, %v6470_v45   ;;  %v2411_v25 = vsub.f32 %v7103_v14, %v6474_v33 }
 0x2dd   : > { %2807 = vperm.xlu0 %4883, %v6477_v32   ;;  %v2445_v52 = vmul.f32 1.442695, %v2411_v25 }
 0x2de   : > { %v6486_v38 = vpop.permute.xlu1 %2301 }
 0x2df   : > { %2822 = vperm.xlu1 %4882, %v6482_v43   ;;  %v2252_v60 = vpop.permute.xlu0 %2251  ;;  %v2419_v63 = vsub.f32 %v7107_v29, %v6486_v38 }
 0x2e0   : > { %v2409_v3 = vsub.f32 %v7101_v0, %v2252_v60  ;;  %v6544_v60 = vpop.eup %5020  ;;  %v7110_v0 = vld [vmem:[#allocation28_spill] sm:$0xff] }
 0x2e1   : > { %2827 = vperm.xlu0 %4883, %v6489_v55   ;;  %v2461_v9 = vmul.f32 1.442695, %v2419_v63  ;;  %v6547_v13 = vpop.eup %5022 }
 0x2e2   : > { %v2441_v19 = vmul.f32 1.442695, %v2409_v3  ;;  %7109 = vst [vmem:[#allocation52_spill] sm:$0xff] %v6547_v13 }
 0x2e3   : > { %v2292_v49 = vpop.permute.xlu1 %2291  ;;  %2862 = vperm.xlu1 %4882, %v6494_v30  }
 0x2e4   : > { %v2417_v41 = vsub.f32 %v7104_v58, %v2292_v49  ;;  %5024 = vpow2.f32 %v2441_v19  ;;  %v7112_v58 = vld [vmem:[#allocation24_spill] sm:$0xff] }
 0x2e5   : > { %2867 = vperm.xlu0 %4883, %v6499_v6  }
 0x2e6   : > { %v2457_v28 = vmul.f32 1.442695, %v2417_v41 }
 0x2e7   : > { %v2267_v5 = vpop.permute.xlu1 %2266  ;;  %2812 = vperm.xlu1 %4882, %v6504_v17  }
 0x2e8   : > { %v2412_v61 = vsub.f32 %v7102_v39, %v2267_v5  ;;  %v7111_v39 = vld [vmem:[#allocation25_spill] sm:$0xff] }
 0x2e9   : > { %2817 = vperm.xlu0 %4883, %v6509_v20  }
 0x2ea   : > { %v6515_v11 = vpop.permute.xlu0 %2286  ;;  %v2447_v12 = vmul.f32 1.442695, %v2412_v61 }
 0x2eb   : > { %v2307_v46 = vpop.permute.xlu1 %2306  ;;  %2852 = vperm.xlu1 %4882, %v6512_v22   ;;  %v2416_v41 = vsub.f32 %v7112_v58, %v6515_v11  ;;  %v7117_v58 = vld [vmem:[#allocation48_spill] sm:$0xff] }
 0x2ec   : > { %v2420_v56 = vsub.f32 %v7105_v47, %v2307_v46  ;;  %5026 = vpow2.f32 %v2447_v12 }
 0x2ed   : > { %2857 = vperm.xlu0 %4883, %v6519_v59  }
 0x2ee   : > { %v6528_v53 = vpop.permute.xlu0 %2326  ;;  %v2463_v50 = vmul.f32 1.442695, %v2420_v56  ;;  %v6552_v25 = vpop.eup %5024  ;;  %v7113_v56 = vld [vmem:[#allocation30_spill] sm:$0xff] }
 0x2ef   : > { %v2257_v7 = vpop.permute.xlu1 %2256  ;;  %2842 = vperm.xlu1 %4882, %v6524_v44  }
 0x2f0   : > { %v2410_v33 = vsub.f32 %v7106_v27, %v2257_v7 }
 0x2f1   : > { %2847 = vperm.xlu0 %4883, %v6531_v62  }
 0x2f2   : > { %v2443_v40 = vmul.f32 1.442695, %v2410_v33  ;;  %v2277_v38 = vpop.permute.xlu0 %2276 }
 0x2f3   : > { %v2297_v49 = vpop.permute.xlu1 %2296  ;;  %2832 = vperm.xlu1 %4882, %v6537_v23   ;;  %v2414_v3 = vsub.f32 %v7110_v0, %v2277_v38  ;;  %v7116_v38 = vld [vmem:[#allocation26_spill] sm:$0xff] }
 0x2f4   : > { %5028 = vpow2.f32 %v2443_v40  ;;  %v2418_v18 = vsub.f32 %v7108_v24, %v2297_v49  ;;  %v4950_v24 = vld [vmem:[%s5620_s8 + $0x88] sm:$0xff]  }
 0x2f5   : > { %5030 = vpow2.f32 %v2445_v52  ;;  %2837 = vperm.xlu0 %4883, %v6540_v4   ;;  %v2451_v47 = vmul.f32 1.442695, %v2414_v3  ;;  %v7114_v52 = vld [vmem:[#allocation27_spill] sm:$0xff] }
 0x2f6   : > { %5032 = vpow2.f32 %v2457_v28  ;;  %v2459_v5 = vmul.f32 1.442695, %v2418_v18  ;;  %v2317_v46 = vpop.permute.xlu0 %2316  ;;  %v6554_v19 = vpop.eup %5026 }
 0x2f7   : > { %5034 = vpow2.f32 %v2463_v50  ;;  %v2282_v54 = vpop.permute.xlu1 %2281  ;;  %2872 = vperm.xlu1 %4882, %v6544_v60   ;;  %v2422_v7 = vsub.f32 %v7113_v56, %v2317_v46  ;;  %v7115_v50 = vld [vmem:[#allocation29_spill] sm:$0xff] }
 0x2f8   : > { %5036 = vpow2.f32 %v2459_v5  ;;  %v2415_v61 = vsub.f32 %v7111_v39, %v2282_v54  ;;  %v2424_v5 = vsub.f32 %v7116_v38, %v6528_v53  ;;  %v7118_v53 = vld [vmem:[#allocation31_spill] sm:$0xff] }
 0x2f9   : > { %5038 = vpow2.f32 %v2461_v9  ;;  %2877 = vperm.xlu0 %4883, %v6547_v13   ;;  %v2455_v9 = vmul.f32 1.442695, %v2416_v41  ;;  %v2467_v0 = vmul.f32 1.442695, %v2422_v7  ;;  %v4952_v7 = vld [vmem:[%s5620_s8 + $0x90] sm:$0xff]  }
 0x2fa   : > { %v2453_v33 = vmul.f32 1.442695, %v2415_v61  ;;  %5040 = vpow2.f32 %v2451_v47  ;;  %v4951_v47 = vld [vmem:[%s5620_s8 + $0xc8] sm:$0xff]  }
 0x2fb   : > { %v2322_v14 = vpop.permute.xlu1 %2321 }
 0x2fc   : > { %v2423_v29 = vsub.f32 %v7114_v52, %v2322_v14  ;;  %5042 = vpow2.f32 %v2453_v33  ;;  %v2471_v33 = vmul.f32 1.442695, %v2424_v5 }
 0x2fe   : > { %v6558_v12 = vpop.eup %5028  ;;  %v2469_v61 = vmul.f32 1.442695, %v2423_v29  ;;  %v7119_v29 = vld [vmem:[#allocation49_spill] sm:$0xff] }
 0x2ff   : > { %v6561_v27 = vpop.eup %5030  ;;  %v2272_v63 = vpop.permute.xlu1 %2271  ;;  %v2922_v28 = vpack.c.bf16 %v6558_v12, %v6552_v25 }
 0x300   : > { %v6566_v40 = vpop.eup %5032  ;;  %v2413_v49 = vsub.f32 %v7115_v50, %v2272_v63  ;;  %v2923_v11 = vpack.c.bf16 %v6554_v19, %v6561_v27  ;;  %v4953_v63 = vld [vmem:[%s5620_s8 + $0xd0] sm:$0xff]  }
 0x301   : > { %v6572_v18 = vpop.eup %5034  ;;  %4662 = vmatprep.mubr.bf16.mxu0 %v2922_v28  ;;  %v4954_v28 = vld [vmem:[%s5620_s8 + $0x98] sm:$0xff]  }
 0x302   : > { %v6576_v54 = vpop.eup %5036  ;;  %v2449_v3 = vmul.f32 1.442695, %v2413_v49  ;;  %4663 = vmatmul.mubr.bf16.vlgmr.msra.gmra.mrb[16].mxu0 %v2923_v11  ;;  %v4955_v49 = vld [vmem:[%s5620_s8 + $0xd8] sm:$0xff]   ;;  %v4956_v11 = vld [vmem:[%s5620_s8 + $0xa0] sm:$0xff]  }
 0x303   : > { %v6578_v39 = vpop.eup %5038  ;;  %v2312_v46 = vpop.permute.xlu1 %2311  ;;  %v2926_v14 = vpack.c.bf16 %v6576_v54, %v6566_v40  ;;  %4695 = vmatpush3.bf16.msra.mxu0 %v7117_v58 }
 0x304   : > { %5044 = vpow2.f32 %v2449_v3  ;;  %v2421_v41 = vsub.f32 %v7118_v53, %v2312_v46  ;;  %v2927_v56 = vpack.c.bf16 %v6572_v18, %v6578_v39  ;;  %4696 = vmatprep.subr.bf16.mxu0 %v4950_v24  ;;  %v6591_v50 = vpop.eup %5040  ;;  %v4958_v46 = vld [vmem:[%s5620_s8 + $0xe0] sm:$0xff]  }
 0x305   : > { %5046 = vpow2.f32 %v2455_v9  ;;  %4686 = vmatprep.mubr.bf16.mxu1 %v2926_v14 }
 0x306   : > { %5048 = vpow2.f32 %v2467_v0  ;;  %v2465_v52 = vmul.f32 1.442695, %v2421_v41  ;;  %4687 = vmatmul.mubr.bf16.vlgmr.msra.gmra.mrb[16].mxu1 %v2927_v56  ;;  %v6595_v9 = vpop.eup %5042 }
 0x307   : > { %5050 = vpow2.f32 %v2469_v61  ;;  %4697 = vmatpush3.bf16.msra.mxu0 %v4950_v24  ;;  %4719 = vmatpush3.bf16.msra.mxu1 %v7119_v29  ;;  %v4957_v61 = vld [vmem:[%s5620_s8 + $0xa8] sm:$0xff]  }
 0x308   : > { %5052 = vpow2.f32 %v2465_v52  ;;  %4720 = vmatprep.subr.bf16.mxu1 %v4951_v47  ;;  %4698 = vmatprep.subr.bf16.mxu0 %v4952_v7  ;;  %v4962_v52 = vld [vmem:[%s5620_s8 + $0xf0] sm:$0xff]  }
 0x309   : > { %5054 = vpow2.f32 %v2471_v33  ;;  %v4961_v33 = vld [vmem:[%s5620_s8 + $0xb8] sm:$0xff]  }
 0x30b   : > { %4699 = vmatpush3.bf16.msra.mxu0 %v4952_v7  ;;  %4721 = vmatpush3.bf16.msra.mxu1 %v4951_v47  ;;  %v4959_v47 = vld [vmem:[%s5620_s8 + $0xb0] sm:$0xff]   ;;  %v4960_v7 = vld [vmem:[%s5620_s8 + $0xe8] sm:$0xff]  }
 0x30c   : > { %4722 = vmatprep.subr.bf16.mxu1 %v4953_v63  ;;  %4700 = vmatprep.subr.bf16.mxu0 %v4954_v28 }
 0x30e   : > { %v6597_v24 = vpop.eup %5044 }
 0x30f   : > { %v6599_v38 = vpop.eup %5046  ;;  %v2924_v5 = vpack.c.bf16 %v6591_v50, %v6597_v24  ;;  %4701 = vmatpush3.bf16.msra.mxu0 %v4954_v28  ;;  %4723 = vmatpush3.bf16.msra.mxu1 %v4953_v63  ;;  %v4963_v28 = vld [vmem:[%s5620_s8 + $0xf8] sm:$0xff]  }
 0x310   : > { %v6603_v0 = vpop.eup %5048  ;;  %v2925_v3 = vpack.c.bf16 %v6599_v38, %v6595_v9  ;;  %4724 = vmatprep.subr.bf16.mxu1 %v4955_v49  ;;  %4702 = vmatprep.subr.bf16.mxu0 %v4956_v11 }
 0x311   : > { %v6609_v14 = vpop.eup %5050  ;;  %4666 = vmatprep.mubr.bf16.mxu0 %v2924_v5 }
 0x312   : > { %v6611_v58 = vpop.eup %5052  ;;  %4667 = vmatmul.mubr.bf16.gmra.mrb[20].mxu0 %v2925_v3 }
 0x313   : > { %v6613_v53 = vpop.eup %5054  ;;  %v2928_v41 = vpack.c.bf16 %v6603_v0, %v6611_v58  ;;  %4725 = vmatpush3.bf16.msra.mxu1 %v4955_v49  ;;  %4703 = vmatpush3.bf16.msra.mxu0 %v4956_v11  ;;  %v7120_v11 = vld [vmem:[#allocation34_spill] sm:$0xff] }
 0x314   : > { %v2929_v56 = vpack.c.bf16 %v6613_v53, %v6609_v14  ;;  %4704 = vmatprep.subr.bf16.mxu0 %v4957_v61  ;;  %4726 = vmatprep.subr.bf16.mxu1 %v4958_v46 }
 0x315   : > { %4690 = vmatprep.mubr.bf16.mxu1 %v2928_v41 }
 0x316   : > { %4691 = vmatmul.mubr.bf16.gmra.mrb[20].mxu1 %v2929_v56  ;;  %v7123_v56 = vld [vmem:[#allocation36_spill] sm:$0xff] }
 0x317   : > { %4727 = vmatpush3.bf16.msra.mxu1 %v4958_v46  ;;  %4705 = vmatpush3.bf16.msra.mxu0 %v4957_v61  ;;  %v7122_v46 = vld [vmem:[#allocation35_spill] sm:$0xff] }
 0x318   : > { %2573 = vadd.xlane.f32.xlu0 %v6561_v27  ;;  %4706 = vmatprep.subr.bf16.mxu0 %v4959_v47 }
 0x319   : > { %4728 = vmatprep.subr.bf16.mxu1 %v4960_v7 }
 0x31a   : > { %v2342_v29 = vpop.permute.xlu1 %2341 }
 0x31b   : > { %2569 = vadd.xlane.f32.xlu1 %v6552_v25  ;;  %4729 = vmatpush3.bf16.msra.mxu1 %v4960_v7  ;;  %v7121_v25 = vld [vmem:[#allocation32_spill] sm:$0xff] }
 0x31c   : > { %2589 = vadd.xlane.f32.xlu0 %v6578_v39  ;;  %v2347_v63 = vpop.permute.xlu0 %2346  ;;  %4707 = vmatpush3.bf16.msra.mxu0 %v4959_v47  ;;  %v2427_v3 = vsub.f32 %v7121_v25, %v2342_v29  ;;  %v7126_v25 = vld [vmem:[#allocation38_spill] sm:$0xff] }
 0x31d   : > { %4708 = vmatprep.subr.bf16.mxu0 %v4961_v33  ;;  %4730 = vmatprep.subr.bf16.mxu1 %v4962_v52  ;;  %v2428_v5 = vsub.f32 %v7120_v11, %v2347_v63 }
 0x31e   : > { %v2382_v49 = vpop.permute.xlu1 %2381  ;;  %v2477_v63 = vmul.f32 1.442695, %v2427_v3 }
 0x31f   : > { %2575 = vadd.xlane.f32.xlu1 %v6554_v19  ;;  %4731 = vmatpush3.bf16.msra.mxu1 %v4962_v52  ;;  %v2479_v39 = vmul.f32 1.442695, %v2428_v5  ;;  %v7124_v52 = vld [vmem:[#allocation37_spill] sm:$0xff] }
 0x320   : > { %2585 = vadd.xlane.f32.xlu0 %v6566_v40  ;;  %v2387_v27 = vpop.permute.xlu0 %2386  ;;  %4709 = vmatpush3.bf16.msra.mxu0 %v4961_v33  ;;  %v7125_v33 = vld [vmem:[#allocation33_spill] sm:$0xff] }
 0x321   : > { %4732 = vmatprep.subr.bf16.mxu1 %v4963_v28  ;;  %v2436_v41 = vsub.f32 %v7122_v46, %v2387_v27  ;;  %v2435_v11 = vsub.f32 %v7125_v33, %v2382_v49  ;;  %5056 = vpow2.f32 %v2479_v39  ;;  %v7128_v39 = vld [vmem:[#allocation41_spill] sm:$0xff] }
 0x322   : > { %v2332_v61 = vpop.permute.xlu1 %2331 }
 0x323   : > { %v2425_v47 = vsub.f32 %v7123_v56, %v2332_v61  ;;  %2591 = vadd.xlane.f32.xlu1 %v6572_v18  ;;  %4733 = vmatpush3.bf16.msra.mxu1 %v4963_v28  ;;  %v2495_v29 = vmul.f32 1.442695, %v2436_v41  ;;  %v7127_v28 = vld [vmem:[#allocation39_spill] sm:$0xff]  ;;  %v2493_v3 = vmul.f32 1.442695, %v2435_v11  ;;  %v7129_v56 = vld [vmem:[#allocation40_spill] sm:$0xff] }
 0x324   : > { %2571 = vadd.xlane.f32.xlu0 %v6558_v12  ;;  %v2337_v19 = vpop.permute.xlu0 %2336 }
 0x325   : > { %v2473_v7 = vmul.f32 1.442695, %v2425_v47  ;;  %v2426_v40 = vsub.f32 %v7124_v52, %v2337_v19  ;;  %v7130_v52 = vld [vmem:[#allocation44_spill] sm:$0xff] }
 0x326   : > { %v2372_v13 = vpop.permute.xlu1 %2371 }
 0x327   : > { %v2475_v5 = vmul.f32 1.442695, %v2426_v40  ;;  %v2433_v27 = vsub.f32 %v7126_v25, %v2372_v13  ;;  %2587 = vadd.xlane.f32.xlu1 %v6576_v54  ;;  %5058 = vpow2.f32 %v2473_v7 }
 0x328   : > { %2581 = vadd.xlane.f32.xlu0 %v6595_v9  ;;  %v2377_v18 = vpop.permute.xlu0 %2376 }
 0x329   : > { %5060 = vpow2.f32 %v2475_v5  ;;  %v2489_v12 = vmul.f32 1.442695, %v2433_v27  ;;  %v2434_v61 = vsub.f32 %v7127_v28, %v2377_v18 }
 0x32a   : > { %5062 = vpow2.f32 %v2477_v63  ;;  %v2362_v54 = vpop.permute.xlu1 %2361 }
 0x32b   : > { %5064 = vpow2.f32 %v2495_v29  ;;  %v2491_v49 = vmul.f32 1.442695, %v2434_v61  ;;  %2583 = vadd.xlane.f32.xlu1 %v6599_v38  ;;  %v5057_v46 = vpop.eup %5056  ;;  %v2431_v47 = vsub.f32 %v7129_v56, %v2362_v54  ;;  %v7131_v29 = vld [vmem:[#allocation45_spill] sm:$0xff]  ;;  %v7132_v61 = vld [vmem:[#allocation46_spill] sm:$0xff]  ;;  %v7133_v54 = vld [vmem:[#allocation47_spill] sm:$0xff] }
 0x32c   : > { %5066 = vpow2.f32 %v2489_v12  ;;  %2597 = vadd.xlane.f32.xlu0 %v6609_v14  ;;  %v2367_v13 = vpop.permute.xlu0 %2366 }
 0x32d   : > { %5068 = vpow2.f32 %v2491_v49  ;;  %v2432_v9 = vsub.f32 %v7128_v39, %v2367_v13  ;;  %v2485_v27 = vmul.f32 1.442695, %v2431_v47 }
 0x32e   : > { %5070 = vpow2.f32 %v2493_v3 }
 0x32f   : > { %2599 = vadd.xlane.f32.xlu1 %v6613_v53  ;;  %v2487_v38 = vmul.f32 1.442695, %v2432_v9 }
 0x330   : > { %2577 = vadd.xlane.f32.xlu0 %v6597_v24 }
 0x331   : > { %v5059_v41 = vpop.eup %5058  ;;  %5072 = vpow2.f32 %v2487_v38 }
 0x332   : > { %v2352_v19 = vpop.permute.xlu1 %2351 }
 0x333   : > { %v5061_v7 = vpop.eup %5060  ;;  %v2429_v40 = vsub.f32 %v7130_v52, %v2352_v19  ;;  %2579 = vadd.xlane.f32.xlu1 %v6591_v50  ;;  %v7134_v19 = vld [vmem:[#allocation42_spill] sm:$0xff] }
 0x334   : > { %v5063_v14 = vpop.eup %5062  ;;  %2593 = vadd.xlane.f32.xlu0 %v6611_v58  ;;  %v2357_v63 = vpop.permute.xlu0 %2356  ;;  %v2930_v33 = vpack.c.bf16 %v5061_v7, %v5059_v41 }
 0x335   : > { %v5065_v11 = vpop.eup %5064  ;;  %v2481_v53 = vmul.f32 1.442695, %v2429_v40  ;;  %v2430_v24 = vsub.f32 %v7131_v29, %v2357_v63  ;;  %v2931_v5 = vpack.c.bf16 %v5057_v46, %v5063_v14  ;;  %v7135_v40 = vld [vmem:[#allocation43_spill] sm:$0xff] }
 0x336   : > { %v5067_v25 = vpop.eup %5066  ;;  %v2392_v18 = vpop.permute.xlu1 %2391  ;;  %4710 = vmatprep.mubr.bf16.mxu0 %v2930_v33 }
 0x337   : > { %v5069_v12 = vpop.eup %5068  ;;  %v2483_v28 = vmul.f32 1.442695, %v2430_v24  ;;  %v2437_v3 = vsub.f32 %v7132_v61, %v2392_v18  ;;  %2595 = vadd.xlane.f32.xlu1 %v6603_v0  ;;  %4711 = vmatmul.mubr.bf16.vlgmr.msra.gmra.mrb[24].mxu0 %v2931_v5  ;;  %5074 = vpow2.f32 %v2481_v53 }
 0x338   : > { %v5071_v50 = vpop.eup %5070  ;;  %2605 = vadd.xlane.f32.xlu0 %v5063_v14  ;;  %v2397_v58 = vpop.permute.xlu0 %2396  ;;  %v2934_v49 = vpack.c.bf16 %v5069_v12, %v5067_v25 }
 0x339   : > { %5076 = vpow2.f32 %v2483_v28  ;;  %v2497_v13 = vmul.f32 1.442695, %v2437_v3  ;;  %v2438_v39 = vsub.f32 %v7133_v54, %v2397_v58  ;;  %v2935_v9 = vpack.c.bf16 %v5065_v11, %v5071_v50 }
 0x33a   : > { %5078 = vpow2.f32 %v2485_v27  ;;  %v2402_v56 = vpop.permute.xlu1 %2401  ;;  %4734 = vmatprep.mubr.bf16.mxu1 %v2934_v49  ;;  %v7138_v54 = vsub.f32 %v6313_v16, %v6328_v2 }
 0x33b   : > { %v2499_v47 = vmul.f32 1.442695, %v2438_v39  ;;  %v2439_v38 = vsub.f32 %v7134_v19, %v2402_v56  ;;  %2607 = vadd.xlane.f32.xlu1 %v5057_v46  ;;  %4735 = vmatmul.mubr.bf16.vlgmr.msra.gmra.mrb[24].mxu1 %v2935_v9  ;;  %5080 = vpow2.f32 %v2497_v13  ;;  %v5073_v33 = vpop.eup %5072 }
 0x33c   : > { %2621 = vadd.xlane.f32.xlu0 %v5071_v50  ;;  %v2407_v0 = vpop.permute.xlu0 %2406  ;;  %v7136_v50 = vld [vmem:[#allocation51_spill] sm:$0xff]  ;;  %v2247_v39 = vmul.f32 1.442695, %v7138_v54 }
 0x33d   : > { %5082 = vpow2.f32 %v2499_v47  ;;  %v2501_v52 = vmul.f32 1.442695, %v2439_v38  ;;  %v2440_v14 = vsub.f32 %v7135_v40, %v2407_v0  ;;  %v7137_v58 = vsub.f32 %v7136_v50, %v6318_v26 }
 0x33f   : > { %v2503_v63 = vmul.f32 1.442695, %v2440_v14  ;;  %2623 = vadd.xlane.f32.xlu1 %v5065_v11  ;;  %5084 = vpow2.f32 %v2501_v52  ;;  %v2245_v49 = vmul.f32 1.442695, %v7137_v58  ;;  %v2507_v58 = vld [vmem:[#allocation3 + $0x10] sm:$0xff] }
 0x340   : > { %2601 = vadd.xlane.f32.xlu0 %v5059_v41  ;;  %v6656_v3 = vpop.permute.xlu0 %2732  ;;  %v2539_v54 = vmul.f32 %v6399_v21, %v2507_v58 }
 0x341   : > { %5086 = vpow2.f32 %v2503_v63  ;;  %v5075_v53 = vpop.eup %5074 }
 0x342   : > { %5088 = vpow2.f32 %v2245_v49 }
 0x343   : > { %v5077_v29 = vpop.eup %5076  ;;  %2603 = vadd.xlane.f32.xlu1 %v5061_v7  ;;  %v6658_v7 = vpop.permute.xlu1 %2737  ;;  %5090 = vpow2.f32 %v2247_v39  ;;  %v2505_v39 = vld [vmem:[#allocation3] sm:$0xff] }
 0x344   : > { %v5079_v24 = vpop.eup %5078  ;;  %2617 = vadd.xlane.f32.xlu0 %v5067_v25  ;;  %v2932_v46 = vpack.c.bf16 %v5077_v29, %v5075_v53  ;;  %v6660_v25 = vpop.permute.xlu0 %2747 }
 0x345   : > { %v2933_v5 = vpack.c.bf16 %v5073_v33, %v5079_v24  ;;  %v5081_v27 = vpop.eup %5080 }
 0x346   : > { %4714 = vmatprep.mubr.bf16.mxu0 %v2932_v46 }
 0x347   : > { %v5083_v18 = vpop.eup %5082  ;;  %2619 = vadd.xlane.f32.xlu1 %v5069_v12  ;;  %4715 = vmatmul.mubr.bf16.gmra.mrb[28].mxu0 %v2933_v5  ;;  %v6662_v12 = vpop.permute.xlu1 %2742 }
 0x348   : > { %2613 = vadd.xlane.f32.xlu0 %v5079_v24  ;;  %v2936_v28 = vpack.c.bf16 %v5083_v18, %v5081_v27  ;;  %v6667_v13 = vpop.permute.xlu0 %2757 }
 0x349   : > { %v5085_v61 = vpop.eup %5084 }
 0x34a   : > { %4738 = vmatprep.mubr.bf16.mxu1 %v2936_v28 }
 0x34b   : > { %v5087_v11 = vpop.eup %5086  ;;  %2615 = vadd.xlane.f32.xlu1 %v5073_v33  ;;  %v6672_v9 = vpop.permute.xlu1 %2752 }
 0x34c   : > { %2629 = vadd.xlane.f32.xlu0 %v5085_v61  ;;  %v2937_v41 = vpack.c.bf16 %v5087_v11, %v5085_v61  ;;  %v6674_v56 = vpop.permute.xlu0 %2767  ;;  %v6680_v38 = vpop.eup %5088 }
 0x34d   : > { %v6685_v0 = vpop.eup %5090 }
 0x34e   : > { %4739 = vmatmul.mubr.bf16.gmra.mrb[28].mxu1 %v2937_v41 }
 0x34f   : > { %2631 = vadd.xlane.f32.xlu1 %v5087_v11  ;;  %v6676_v47 = vpop.permute.xlu1 %2762 }
 0x350   : > { %2609 = vadd.xlane.f32.xlu0 %v5075_v53  ;;  %v6678_v19 = vpop.permute.xlu0 %2777 }
 0x353   : > { %2611 = vadd.xlane.f32.xlu1 %v5077_v29  ;;  %v6682_v26 = vpop.permute.xlu1 %2772 }
 0x354   : > { %2625 = vadd.xlane.f32.xlu0 %v5081_v27  ;;  %v6688_v2 = vpop.permute.xlu0 %2787 }
 0x357   : > { %2627 = vadd.xlane.f32.xlu1 %v5083_v18  ;;  %v6690_v16 = vpop.permute.xlu1 %2782 }
 0x358   : > { %v6692_v52 = vpop.permute.xlu0 %2797 }
 0x35b   : > { %v6694_v40 = vpop.permute.xlu1 %2792 }
 0x35c   : > { %v6696_v14 = vpop.permute.xlu0 %2807 }
 0x35f   : > { %v6698_v63 = vpop.permute.xlu1 %2802 }
 0x360   : > { %v6700_v33 = vpop.permute.xlu0 %2827 }
 0x361   : > { %7139 = vst [vmem:[#allocation50_spill] sm:$0xff] %v6700_v33 }
 0x363   : > { %v6702_v53 = vpop.permute.xlu1 %2822 }
 0x364   : > { %v6704_v29 = vpop.permute.xlu0 %2867 }
 0x365   : > { %7140 = vst [vmem:[#allocation19_spill] sm:$0xff] %v6704_v29 }
 0x367   : > { %v6706_v24 = vpop.permute.xlu1 %2862 }
 0x368   : > { %2882 = vperm.xlu1 %4882, %v6680_v38   ;;  %7141 = vst [vmem:[#allocation18_spill] sm:$0xff] %v6706_v24  ;;  %v6708_v46 = vpop.permute.xlu0 %2817 }
 0x369   : > { %7142 = vst [vmem:[#allocation16_spill] sm:$0xff] %v6708_v46 }
 0x36a   : > { %2887 = vperm.xlu0 %4883, %v6685_v0  }
 0x36b   : > { %v6710_v5 = vpop.permute.xlu1 %2812 }
 0x36c   : > { %v6712_v27 = vpop.permute.xlu0 %2857 }
 0x36d   : > { %7143 = vst [vmem:[#allocation21_spill] sm:$0xff] %v6712_v27  ;;  %v2515_v27 = vld [vmem:[#allocation3 + $0x50] sm:$0xff] }
 0x36f   : > { %v6714_v18 = vpop.permute.xlu1 %2852 }
 0x370   : > { %7144 = vst [vmem:[#allocation20_spill] sm:$0xff] %v6714_v18  ;;  %v6716_v28 = vpop.permute.xlu0 %2847  ;;  %v2537_v18 = vmul.f32 %v6393_v51, %v2505_v39  ;;  %v2516_v51 = vld [vmem:[#allocation3 + $0x58] sm:$0xff]  ;;  %v2506_v39 = vld [vmem:[#allocation3 + $0x8] sm:$0xff] }
 0x371   : > { %7145 = vst [vmem:[#allocation23_spill] sm:$0xff] %v6716_v28 }
 0x373   : > { %v6718_v61 = vpop.permute.xlu1 %2842 }
 0x374   : > { %7146 = vst [vmem:[#allocation17_spill] sm:$0xff] %v6718_v61  ;;  %v6720_v11 = vpop.permute.xlu0 %2837  ;;  %v2508_v61 = vld [vmem:[#allocation3 + $0x18] sm:$0xff] }
 0x375   : > { %7147 = vst [vmem:[#allocation22_spill] sm:$0xff] %v6720_v11  ;;  %v2547_v11 = vmul.f32 %v6450_v1, %v2515_v27  ;;  %v2540_v21 = vmul.f32 %v6405_v8, %v2508_v61  ;;  %v2548_v1 = vmul.f32 %v6455_v48, %v2516_v51  ;;  %v2538_v27 = vmul.f32 %v6387_v15, %v2506_v39  ;;  %v2514_v8 = vld [vmem:[#allocation3 + $0x48] sm:$0xff]  ;;  %v2512_v48 = vld [vmem:[#allocation3 + $0x38] sm:$0xff]  ;;  %v2509_v39 = vld [vmem:[#allocation3 + $0x20] sm:$0xff] }
 0x376   : > { %v2544_v15 = vmul.f32 %v6429_v36, %v2512_v48  ;;  %v2510_v36 = vld [vmem:[#allocation3 + $0x28] sm:$0xff]  ;;  %v2523_v48 = vld [vmem:[#allocation3 + $0x90] sm:$0xff] }
 0x377   : > { %v6722_v41 = vpop.permute.xlu1 %2832 }
 0x378   : > { %7148 = vst [vmem:[#allocation28_spill] sm:$0xff] %v6722_v41  ;;  %v6724_v50 = vpop.permute.xlu0 %2877 }
 0x379   : > { %7149 = vst [vmem:[#allocation25_spill] sm:$0xff] %v6724_v50  ;;  %v2513_v50 = vld [vmem:[#allocation3 + $0x40] sm:$0xff] }
 0x37b   : > { %v6726_v49 = vpop.permute.xlu1 %2872 }
 0x37c   : > { %7150 = vst [vmem:[#allocation24_spill] sm:$0xff] %v6726_v49 }
 0x3a5   : > { %v2574_v29 = vpop.xlane.xlu0 %2573 }
 0x3a6   : > { %v2635_v24 = vadd.f32 %v2574_v29, %v2539_v54  ;;  %v2545_v29 = vmul.f32 %v6437_v34, %v2513_v50  ;;  %v2546_v34 = vmul.f32 %v6445_v35, %v2514_v8  ;;  %v2520_v35 = vld [vmem:[#allocation3 + $0x78] sm:$0xff] }
 0x3a8   : > { %2668 = vst.msk [vmem:[#allocation3 + $0x10] sm:$0xff] %vm2665_vm3, %v2635_v24  ;;  %v2570_v28 = vpop.xlane.xlu1 %2569 }
 0x3a9   : > { %v2633_v41 = vadd.f32 %v2570_v28, %v2537_v18  ;;  %v2590_v46 = vpop.xlane.xlu0 %2589  ;;  %v2511_v28 = vld [vmem:[#allocation3 + $0x30] sm:$0xff] }
 0x3aa   : > { %v2643_v33 = vadd.f32 %v2590_v46, %v2547_v11 }
 0x3ab   : > { %2666 = vst.msk [vmem:[#allocation3] sm:$0xff] %vm2665_vm3, %v2633_v41  ;;  %v2543_v41 = vmul.f32 %v6423_v10, %v2511_v28  ;;  %v2552_v10 = vmul.f32 %v6477_v32, %v2520_v35  ;;  %v2518_v32 = vld [vmem:[#allocation3 + $0x68] sm:$0xff] }
 0x3ac   : > { %2676 = vst.msk [vmem:[#allocation3 + $0x50] sm:$0xff] %vm2665_vm3, %v2643_v33  ;;  %v2576_v58 = vpop.xlane.xlu1 %2575 }
 0x3ad   : > { %v2636_v54 = vadd.f32 %v2576_v58, %v2540_v21  ;;  %v2586_v24 = vpop.xlane.xlu0 %2585  ;;  %v2519_v21 = vld [vmem:[#allocation3 + $0x70] sm:$0xff] }
 0x3ae   : > { %v2641_v49 = vadd.f32 %v2586_v24, %v2545_v29  ;;  %v2551_v51 = vmul.f32 %v6470_v45, %v2519_v21  ;;  %v2542_v45 = vmul.f32 %v6417_v42, %v2510_v36  ;;  %v2555_v21 = vmul.f32 %v6482_v43, %v2523_v48  ;;  %v2524_v42 = vld [vmem:[#allocation3 + $0x98] sm:$0xff] }
 0x3af   : > { %2669 = vst.msk [vmem:[#allocation3 + $0x18] sm:$0xff] %vm2665_vm3, %v2636_v54  ;;  %v2701_v48 = vld [vmem:[#allocation4 + $0x18] sm:$0xff] }
 0x3b0   : > { %2674 = vst.msk [vmem:[#allocation3 + $0x40] sm:$0xff] %vm2665_vm3, %v2641_v49  ;;  %v2592_v46 = vpop.xlane.xlu1 %2591 }
 0x3b1   : > { %v2644_v18 = vadd.f32 %v2592_v46, %v2548_v1  ;;  %v2572_v33 = vpop.xlane.xlu0 %2571 }
 0x3b2   : > { %v2634_v61 = vadd.f32 %v2572_v33, %v2538_v27  ;;  %v2541_v27 = vmul.f32 %v6411_v31, %v2509_v39  ;;  %v2517_v33 = vld [vmem:[#allocation3 + $0x60] sm:$0xff]  ;;  %v2550_v31 = vmul.f32 %v6465_v37, %v2518_v32  ;;  %v2532_v37 = vld [vmem:[#allocation3 + $0xd8] sm:$0xff] }
 0x3b3   : > { %2677 = vst.msk [vmem:[#allocation3 + $0x58] sm:$0xff] %vm2665_vm3, %v2644_v18  ;;  %v2564_v43 = vmul.f32 %v6499_v6, %v2532_v37  ;;  %v2530_v6 = vld [vmem:[#allocation3 + $0xc8] sm:$0xff] }
 0x3b4   : > { %2667 = vst.msk [vmem:[#allocation3 + $0x8] sm:$0xff] %vm2665_vm3, %v2634_v61  ;;  %v2588_v11 = vpop.xlane.xlu1 %2587 }
 0x3b5   : > { %v2642_v50 = vadd.f32 %v2588_v11, %v2546_v34  ;;  %v2582_v49 = vpop.xlane.xlu0 %2581  ;;  %v2549_v34 = vmul.f32 %v6460_v57, %v2517_v33  ;;  %v2556_v57 = vmul.f32 %v6489_v55, %v2524_v42  ;;  %v2522_v55 = vld [vmem:[#allocation3 + $0x88] sm:$0xff] }
 0x3b6   : > { %v2639_v58 = vadd.f32 %v2582_v49, %v2543_v41 }
 0x3b7   : > { %2675 = vst.msk [vmem:[#allocation3 + $0x48] sm:$0xff] %vm2665_vm3, %v2642_v50 }
 0x3b8   : > { %2672 = vst.msk [vmem:[#allocation3 + $0x30] sm:$0xff] %vm2665_vm3, %v2639_v58  ;;  %v2584_v29 = vpop.xlane.xlu1 %2583 }
 0x3b9   : > { %v2640_v54 = vadd.f32 %v2584_v29, %v2544_v15  ;;  %v2598_v24 = vpop.xlane.xlu0 %2597  ;;  %v2531_v29 = vld [vmem:[#allocation3 + $0xd0] sm:$0xff] }
 0x3ba   : > { %v2647_v1 = vadd.f32 %v2598_v24, %v2551_v51 }
 0x3bb   : > { %2673 = vst.msk [vmem:[#allocation3 + $0x38] sm:$0xff] %vm2665_vm3, %v2640_v54  ;;  %v2563_v54 = vmul.f32 %v6494_v30, %v2531_v29  ;;  %v2554_v30 = vmul.f32 %v6509_v20, %v2522_v55 }
 0x3bc   : > { %2680 = vst.msk [vmem:[#allocation3 + $0x70] sm:$0xff] %vm2665_vm3, %v2647_v1  ;;  %v2600_v46 = vpop.xlane.xlu1 %2599  ;;  %v2521_v1 = vld [vmem:[#allocation3 + $0x80] sm:$0xff] }
 0x3bd   : > { %v2648_v8 = vadd.f32 %v2600_v46, %v2552_v10  ;;  %v2578_v18 = vpop.xlane.xlu0 %2577 }
 0x3be   : > { %v2637_v28 = vadd.f32 %v2578_v18, %v2541_v27  ;;  %v2553_v27 = vmul.f32 %v6504_v17, %v2521_v1  ;;  %v2529_v18 = vld [vmem:[#allocation3 + $0xc0] sm:$0xff] }
 0x3bf   : > { %2681 = vst.msk [vmem:[#allocation3 + $0x78] sm:$0xff] %vm2665_vm3, %v2648_v8  ;;  %v2698_v17 = vld [vmem:[#allocation4] sm:$0xff] }
 0x3c0   : > { %2670 = vst.msk [vmem:[#allocation3 + $0x20] sm:$0xff] %vm2665_vm3, %v2637_v28  ;;  %v2580_v61 = vpop.xlane.xlu1 %2579  ;;  %v2890_v42 = vmul.f32 %v6656_v3, %v2698_v17 }
 0x3c1   : > { %v2638_v11 = vadd.f32 %v2580_v61, %v2542_v45  ;;  %v2594_v41 = vpop.xlane.xlu0 %2593  ;;  %v2561_v45 = vmul.f32 %v6512_v22, %v2529_v18  ;;  %v2700_v61 = vld [vmem:[#allocation4 + $0x10] sm:$0xff] }
 0x3c2   : > { %v2645_v50 = vadd.f32 %v2594_v41, %v2549_v34  ;;  %v2892_v20 = vmul.f32 %v6662_v12, %v2700_v61 }
 0x3c3   : > { %2671 = vst.msk [vmem:[#allocation3 + $0x28] sm:$0xff] %vm2665_vm3, %v2638_v11  ;;  %v2527_v11 = vld [vmem:[#allocation3 + $0xb0] sm:$0xff] }
 0x3c4   : > { %2678 = vst.msk [vmem:[#allocation3 + $0x60] sm:$0xff] %vm2665_vm3, %v2645_v50  ;;  %v2596_v49 = vpop.xlane.xlu1 %2595  ;;  %v2562_v50 = vmul.f32 %v6519_v59, %v2530_v6  ;;  %v2559_v22 = vmul.f32 %v6524_v44, %v2527_v11 }
 0x3c5   : > { %v2646_v58 = vadd.f32 %v2596_v49, %v2550_v31  ;;  %v2606_v15 = vpop.xlane.xlu0 %2605  ;;  %v2699_v31 = vld [vmem:[#allocation4 + $0x8] sm:$0xff] }
 0x3c6   : > { %v2651_v51 = vadd.f32 %v2606_v15, %v2555_v21  ;;  %v2528_v21 = vld [vmem:[#allocation3 + $0xb8] sm:$0xff]  ;;  %v2891_v12 = vmul.f32 %v6658_v7, %v2699_v31  ;;  %v2533_v31 = vld [vmem:[#allocation3 + $0xe0] sm:$0xff] }
 0x3c7   : > { %2679 = vst.msk [vmem:[#allocation3 + $0x68] sm:$0xff] %vm2665_vm3, %v2646_v58  ;;  %v2708_v58 = vld [vmem:[#allocation4 + $0x50] sm:$0xff]  ;;  %v2560_v3 = vmul.f32 %v6531_v62, %v2528_v21  ;;  %v2536_v7 = vld [vmem:[#allocation3 + $0xf8] sm:$0xff] }
 0x3c8   : > { %2684 = vst.msk [vmem:[#allocation3 + $0x90] sm:$0xff] %vm2665_vm3, %v2651_v51  ;;  %v2608_v35 = vpop.xlane.xlu1 %2607  ;;  %v2704_v21 = vld [vmem:[#allocation4 + $0x30] sm:$0xff] }
 0x3c9   : > { %v2652_v24 = vadd.f32 %v2608_v35, %v2556_v57  ;;  %v2622_v39 = vpop.xlane.xlu0 %2621  ;;  %v2535_v57 = vld [vmem:[#allocation3 + $0xf0] sm:$0xff]  ;;  %v2893_v35 = vmul.f32 %v6660_v25, %v2701_v48 }
 0x3ca   : > { %v2659_v10 = vadd.f32 %v2622_v39, %v2563_v54  ;;  %v2706_v54 = vld [vmem:[#allocation4 + $0x40] sm:$0xff]  ;;  %v2709_v39 = vld [vmem:[#allocation4 + $0x58] sm:$0xff]  ;;  %v2567_v55 = vmul.f32 %v6680_v38, %v2535_v57 }
 0x3cb   : > { %2685 = vst.msk [vmem:[#allocation3 + $0x98] sm:$0xff] %vm2665_vm3, %v2652_v24  ;;  %v7151_v57 = vld [vmem:[#allocation52_spill] sm:$0xff] }
 0x3cc   : > { %2692 = vst.msk [vmem:[#allocation3 + $0xd0] sm:$0xff] %vm2665_vm3, %v2659_v10  ;;  %v2624_v46 = vpop.xlane.xlu1 %2623  ;;  %v2707_v10 = vld [vmem:[#allocation4 + $0x48] sm:$0xff] }
 0x3cd   : > { %v2660_v36 = vadd.f32 %v2624_v46, %v2564_v43  ;;  %v2602_v8 = vpop.xlane.xlu0 %2601  ;;  %v2900_v43 = vmul.f32 %v6690_v16, %v2708_v58  ;;  %v2901_v16 = vmul.f32 %v6688_v2, %v2709_v39  ;;  %v2899_v61 = vmul.f32 %v6678_v19, %v2707_v10 }
 0x3ce   : > { %v2649_v33 = vadd.f32 %v2602_v8, %v2553_v27 }
 0x3cf   : > { %2693 = vst.msk [vmem:[#allocation3 + $0xd8] sm:$0xff] %vm2665_vm3, %v2660_v36  ;;  %v2898_v36 = vmul.f32 %v6682_v26, %v2706_v54  ;;  %v2703_v54 = vld [vmem:[#allocation4 + $0x28] sm:$0xff] }
 0x3d0   : > { %2682 = vst.msk [vmem:[#allocation3 + $0x80] sm:$0xff] %vm2665_vm3, %v2649_v33  ;;  %v2604_v28 = vpop.xlane.xlu1 %2603  ;;  %v2895_v10 = vmul.f32 %v6667_v13, %v2703_v54 }
 0x3d1   : > { %v2650_v34 = vadd.f32 %v2604_v28, %v2554_v30  ;;  %v2618_v32 = vpop.xlane.xlu0 %2617  ;;  %v2525_v30 = vld [vmem:[#allocation3 + $0xa0] sm:$0xff] }
 0x3d2   : > { %v2657_v41 = vadd.f32 %v2618_v32, %v2561_v45  ;;  %v2557_v17 = vmul.f32 %v6537_v23, %v2525_v30  ;;  %v2565_v23 = vmul.f32 %v6544_v60, %v2533_v31  ;;  %v2712_v60 = vld [vmem:[#allocation4 + $0x70] sm:$0xff] }
 0x3d3   : > { %2683 = vst.msk [vmem:[#allocation3 + $0x88] sm:$0xff] %vm2665_vm3, %v2650_v34  ;;  %v2568_v34 = vmul.f32 %v6685_v0, %v2536_v7 }
 0x3d4   : > { %2690 = vst.msk [vmem:[#allocation3 + $0xc0] sm:$0xff] %vm2665_vm3, %v2657_v41  ;;  %v2620_v49 = vpop.xlane.xlu1 %2619  ;;  %v2526_v41 = vld [vmem:[#allocation3 + $0xa8] sm:$0xff] }
 0x3d5   : > { %v4664_v15 = vpop.f32.mrb[16].mxu0  ;;  %v2658_v29 = vadd.f32 %v2620_v49, %v2562_v50  ;;  %v2614_v51 = vpop.xlane.xlu0 %2613  ;;  %v2558_v0 = vmul.f32 %v6540_v4, %v2526_v41  ;;  %v2725_v41 = vld [vmem:[#allocation4 + $0xd8] sm:$0xff] }
 0x3d6   : > { %v3392_v59 = vadd.f32 %v4664_v15, %v2892_v20  ;;  %v3020_v37 = vpop.f32.mrb[17].mxu0  ;;  %v2655_v24 = vadd.f32 %v2614_v51, %v2559_v22  ;;  %v2534_v22 = vld [vmem:[#allocation3 + $0xe8] sm:$0xff]  ;;  %v2702_v15 = vld [vmem:[#allocation4 + $0x20] sm:$0xff]  ;;  %v2705_v51 = vld [vmem:[#allocation4 + $0x38] sm:$0xff] }
 0x3d7   : > { %2691 = vst.msk [vmem:[#allocation3 + $0xc8] sm:$0xff] %vm2665_vm3, %v2658_v29  ;;  %v3390_v44 = vadd.f32 %v3020_v37, %v2890_v42  ;;  %v4665_v1 = vpop.f32.mrb[18].mxu0  ;;  %v2894_v37 = vmul.f32 %v6672_v9, %v2702_v15  ;;  %v2897_v39 = vmul.f32 %v6674_v56, %v2705_v51 }
 0x3d8   : > { %3424 = vst.msk [vmem:[#allocation4 + $0x10] sm:$0xff] %vm1440_vm2, %v3392_v59  ;;  %v3393_v25 = vadd.f32 %v4665_v1, %v2893_v35  ;;  %v3023_v46 = vpop.f32.mrb[19].mxu0  ;;  %v2616_v27 = vpop.xlane.xlu1 %2615  ;;  %v2566_v35 = vmul.f32 %v7151_v57, %v2534_v22  ;;  %v2896_v59 = vmul.f32 %v6676_v47, %v2704_v21  ;;  %v7155_v22 = vld [vmem:[#allocation20_spill] sm:$0xff]  ;;  %v7157_v57 = vld [vmem:[#allocation21_spill] sm:$0xff] }
 0x3d9   : > { %2688 = vst.msk [vmem:[#allocation3 + $0xb0] sm:$0xff] %vm2665_vm3, %v2655_v24  ;;  %v3391_v8 = vadd.f32 %v3023_v46, %v2891_v12  ;;  %v4688_v18 = vpop.f32.mrb[16].mxu1  ;;  %v2656_v62 = vadd.f32 %v2616_v27, %v2560_v3  ;;  %v2630_v33 = vpop.xlane.xlu0 %2629  ;;  %v2711_v46 = vld [vmem:[#allocation4 + $0x68] sm:$0xff]  ;;  %v2904_v27 = vmul.f32 %v6698_v63, %v2712_v60 }
 0x3da   : > { %3422 = vst.msk [vmem:[#allocation4] sm:$0xff] %vm1440_vm2, %v3390_v44  ;;  %3425 = vst.msk [vmem:[#allocation4 + $0x18] sm:$0xff] %vm1440_vm2, %v3393_v25  ;;  %v3400_v28 = vadd.f32 %v4688_v18, %v2900_v43  ;;  %v3133_v45 = vpop.f32.mrb[17].mxu1  ;;  %v2663_v6 = vadd.f32 %v2630_v33, %v2567_v55  ;;  %v2710_v44 = vld [vmem:[#allocation4 + $0x60] sm:$0xff]  ;;  %v2713_v43 = vld [vmem:[#allocation4 + $0x78] sm:$0xff] }
 0x3db   : > { %3423 = vst.msk [vmem:[#allocation4 + $0x8] sm:$0xff] %vm1440_vm2, %v3391_v8  ;;  %v3398_v38 = vadd.f32 %v3133_v45, %v2898_v36  ;;  %v4689_v26 = vpop.f32.mrb[18].mxu1  ;;  %v2902_v7 = vmul.f32 %v6694_v40, %v2710_v44  ;;  %v2905_v13 = vmul.f32 %v6696_v14, %v2713_v43  ;;  %v2716_v14 = vld [vmem:[#allocation4 + $0x90] sm:$0xff]  ;;  %v2717_v45 = vld [vmem:[#allocation4 + $0x98] sm:$0xff]  ;;  %v7158_v44 = vld [vmem:[#allocation17_spill] sm:$0xff] }
 0x3dc   : > { %2689 = vst.msk [vmem:[#allocation3 + $0xb8] sm:$0xff] %vm2665_vm3, %v2656_v62  ;;  %2696 = vst.msk [vmem:[#allocation3 + $0xf0] sm:$0xff] %vm2665_vm3, %v2663_v6  ;;  %v3401_v2 = vadd.f32 %v4689_v26, %v2901_v16  ;;  %v3136_v32 = vpop.f32.mrb[19].mxu1  ;;  %v2632_v11 = vpop.xlane.xlu1 %2631  ;;  %v2903_v62 = vmul.f32 %v6692_v52, %v2711_v46  ;;  %v2908_v52 = vmul.f32 %v6702_v53, %v2716_v14  ;;  %v2715_v6 = vld [vmem:[#allocation4 + $0x88] sm:$0xff] }
 0x3dd   : > { %3432 = vst.msk [vmem:[#allocation4 + $0x50] sm:$0xff] %vm1440_vm2, %v3400_v28  ;;  %3430 = vst.msk [vmem:[#allocation4 + $0x40] sm:$0xff] %vm1440_vm2, %v3398_v38  ;;  %v3399_v19 = vadd.f32 %v3136_v32, %v2899_v61  ;;  %v2664_v48 = vadd.f32 %v2632_v11, %v2568_v34  ;;  %v2610_v50 = vpop.xlane.xlu0 %2609  ;;  %v2714_v28 = vld [vmem:[#allocation4 + $0x80] sm:$0xff]  ;;  %v2724_v61 = vld [vmem:[#allocation4 + $0xd0] sm:$0xff] }
 0x3de   : > { %3433 = vst.msk [vmem:[#allocation4 + $0x58] sm:$0xff] %vm1440_vm2, %v3401_v2  ;;  %v2653_v20 = vadd.f32 %v2610_v50, %v2557_v17  ;;  %v2906_v38 = vmul.f32 %v6710_v5, %v2714_v28  ;;  %v7152_v34 = vld [vmem:[#allocation50_spill] sm:$0xff]  ;;  %v2722_v32 = vld [vmem:[#allocation4 + $0xc0] sm:$0xff] }
 0x3df   : > { %3431 = vst.msk [vmem:[#allocation4 + $0x48] sm:$0xff] %vm1440_vm2, %v3399_v19  ;;  %v2909_v2 = vmul.f32 %v7152_v34, %v2717_v45  ;;  %v7153_v19 = vld [vmem:[#allocation16_spill] sm:$0xff]  ;;  %v2914_v5 = vmul.f32 %v7155_v22, %v2722_v32 }
 0x3e0   : > { %2697 = vst.msk [vmem:[#allocation3 + $0xf8] sm:$0xff] %vm2665_vm3, %v2664_v48  ;;  %2686 = vst.msk [vmem:[#allocation3 + $0xa0] sm:$0xff] %vm2665_vm3, %v2653_v20  ;;  %v2612_v49 = vpop.xlane.xlu1 %2611  ;;  %v2907_v48 = vmul.f32 %v7153_v19, %v2715_v6  ;;  %v7154_v20 = vld [vmem:[#allocation18_spill] sm:$0xff]  ;;  %v7162_v28 = vld [vmem:[#allocation24_spill] sm:$0xff] }
 0x3e1   : > { %v2654_v42 = vadd.f32 %v2612_v49, %v2558_v0  ;;  %v2626_v58 = vpop.xlane.xlu0 %2625  ;;  %v2916_v0 = vmul.f32 %v7154_v20, %v2724_v61  ;;  %v2723_v49 = vld [vmem:[#allocation4 + $0xc8] sm:$0xff]  ;;  %v3492_v19 = vld [vmem:[#allocation3 + $0x10] sm:$0xff] (!%p4382_p6) }
 0x3e2   : > { %v2661_v29 = vadd.f32 %v2626_v58, %v2565_v23  ;;  %v7156_v58 = vld [vmem:[#allocation19_spill] sm:$0xff]  ;;  %5094 = vrcp.f32 (!%p4382_p6), %v3492_v19  ;;  %v3491_v20 = vld [vmem:[#allocation3 + $0x8] sm:$0xff] (!%p4382_p6) }
 0x3e3   : > { %2687 = vst.msk [vmem:[#allocation3 + $0xa8] sm:$0xff] %vm2665_vm3, %v2654_v42  ;;  %v2917_v15 = vmul.f32 %v7156_v58, %v2725_v41  ;;  %v3498_v58 = vld [vmem:[#allocation3 + $0x40] sm:$0xff] (!%p4382_p6) }
 0x3e4   : > { %2694 = vst.msk [vmem:[#allocation3 + $0xe0] sm:$0xff] %vm2665_vm3, %v2661_v29  ;;  %v2628_v4 = vpop.xlane.xlu1 %2627 }
 0x3e5   : > { %v4668_v24 = vpop.f32.mrb[20].mxu0  ;;  %v2662_v12 = vadd.f32 %v2628_v4, %v2566_v35  ;;  %v2915_v35 = vmul.f32 %v7157_v57, %v2723_v49  ;;  %v3494_v49 = vld [vmem:[#allocation3 + $0x20] sm:$0xff] (!%p4382_p6)  ;;  %v3500_v57 = vld [vmem:[#allocation3 + $0x50] sm:$0xff] (!%p4382_p6) }
 0x3e6   : > { %v3396_v1 = vadd.f32 %v4668_v24, %v2896_v59  ;;  %v3036_v3 = vpop.f32.mrb[21].mxu0  ;;  %v2720_v24 = vld [vmem:[#allocation4 + $0xb0] sm:$0xff] }
 0x3e7   : > { %2695 = vst.msk [vmem:[#allocation3 + $0xe8] sm:$0xff] %vm2665_vm3, %v2662_v12  ;;  %v3394_v25 = vadd.f32 %v3036_v3, %v2894_v37  ;;  %v4669_v47 = vpop.f32.mrb[22].mxu0  ;;  %v2718_v12 = vld [vmem:[#allocation4 + $0xa0] sm:$0xff]  ;;  %v2719_v3 = vld [vmem:[#allocation4 + $0xa8] sm:$0xff] }
 0x3e8   : > { %3428 = vst.msk [vmem:[#allocation4 + $0x30] sm:$0xff] %vm1440_vm2, %v3396_v1  ;;  %v3397_v9 = vadd.f32 %v4669_v47, %v2897_v39  ;;  %v3039_v55 = vpop.f32.mrb[23].mxu0  ;;  %v2721_v39 = vld [vmem:[#allocation4 + $0xb8] sm:$0xff]  ;;  %v2912_v1 = vmul.f32 %v7158_v44, %v2720_v24  ;;  %v3507_v44 = vld [vmem:[#allocation3 + $0x88] sm:$0xff] (!%p4382_p6) }
 0x3e9   : > { %3426 = vst.msk [vmem:[#allocation4 + $0x20] sm:$0xff] %vm1440_vm2, %v3394_v25  ;;  %v3395_v56 = vadd.f32 %v3039_v55, %v2895_v10  ;;  %v4692_v36 = vpop.f32.mrb[20].mxu1  ;;  %v7159_v10 = vld [vmem:[#allocation28_spill] sm:$0xff]  ;;  %v7160_v47 = vld [vmem:[#allocation23_spill] sm:$0xff]  ;;  %v7161_v55 = vld [vmem:[#allocation22_spill] sm:$0xff] }
 0x3ea   : > { %3429 = vst.msk [vmem:[#allocation4 + $0x38] sm:$0xff] %vm1440_vm2, %v3397_v9  ;;  %v3404_v8 = vadd.f32 %v4692_v36, %v2904_v27  ;;  %v3149_v18 = vpop.f32.mrb[21].mxu1  ;;  %v2910_v43 = vmul.f32 %v7159_v10, %v2718_v12  ;;  %v2913_v46 = vmul.f32 %v7160_v47, %v2721_v39  ;;  %v3504_v12 = vld [vmem:[#allocation3 + $0x70] sm:$0xff] (!%p4382_p6) }
 0x3eb   : > { %3427 = vst.msk [vmem:[#allocation4 + $0x28] sm:$0xff] %vm1440_vm2, %v3395_v56  ;;  %v3402_v63 = vadd.f32 %v3149_v18, %v2902_v7  ;;  %v4693_v33 = vpop.f32.mrb[22].mxu1  ;;  %v2911_v7 = vmul.f32 %v7161_v55, %v2719_v3  ;;  %v3506_v3 = vld [vmem:[#allocation3 + $0x80] sm:$0xff] (!%p4382_p6)  ;;  %v3508_v47 = vld [vmem:[#allocation3 + $0x90] sm:$0xff] (!%p4382_p6) }
 0x3ec   : > { %3436 = vst.msk [vmem:[#allocation4 + $0x70] sm:$0xff] %vm1440_vm2, %v3404_v8  ;;  %v3405_v30 = vadd.f32 %v4693_v33, %v2905_v13  ;;  %v3152_v40 = vpop.f32.mrb[23].mxu1  ;;  %v2728_v13 = vld [vmem:[#allocation4 + $0xf0] sm:$0xff]  ;;  %v2883_v8 = vpop.permute.xlu1 %2882  ;;  %v3510_v55 = vld [vmem:[#allocation3 + $0xa0] sm:$0xff] (!%p4382_p6) }
 0x3ed   : > { %3434 = vst.msk [vmem:[#allocation4 + $0x60] sm:$0xff] %vm1440_vm2, %v3402_v63  ;;  %v3403_v16 = vadd.f32 %v3152_v40, %v2903_v62  ;;  %v2726_v63 = vld [vmem:[#allocation4 + $0xe0] sm:$0xff]  ;;  %v2888_v40 = vpop.permute.xlu0 %2887  ;;  %v2920_v14 = vmul.f32 %v2883_v8, %v2728_v13  ;;  %v5095_v22 = vpop.eup (!%p4382_p6), %5094  ;;  %v3512_v13 = vld [vmem:[#allocation3 + $0xb0] sm:$0xff] (!%p4382_p6) }
 0x3ee   : > { %3437 = vst.msk [vmem:[#allocation4 + $0x78] sm:$0xff] %vm1440_vm2, %v3405_v30  ;;  %v2729_v30 = vld [vmem:[#allocation4 + $0xf8] sm:$0xff]  ;;  %v2918_v45 = vmul.f32 %v7162_v28, %v2726_v63  ;;  %v3514_v63 = vld [vmem:[#allocation3 + $0xc0] sm:$0xff] (!%p4382_p6)  ;;  %v3519_v28 = vld [vmem:[#allocation3 + $0xe8] sm:$0xff] (!%p4382_p6) }
 0x3ef   : > { %3435 = vst.msk [vmem:[#allocation4 + $0x68] sm:$0xff] %vm1440_vm2, %v3403_v16  ;;  %v2727_v16 = vld [vmem:[#allocation4 + $0xe8] sm:$0xff]  ;;  %v2921_v6 = vmul.f32 %v2888_v40, %v2729_v30  ;;  %v3517_v30 = vld [vmem:[#allocation3 + $0xd8] sm:$0xff] (!%p4382_p6) }
 0x40a   : > { %v4712_v26 = vpop.f32.mrb[24].mxu0 }
 0x40b   : > { %v3408_v11 = vadd.f32 %v4712_v26, %v2908_v52  ;;  %v3246_v17 = vpop.f32.mrb[25].mxu0  ;;  %v7163_v26 = vld [vmem:[#allocation25_spill] sm:$0xff] }
 0x40c   : > { %v3406_v50 = vadd.f32 %v3246_v17, %v2906_v38  ;;  %v4713_v31 = vpop.f32.mrb[26].mxu0  ;;  %v2919_v34 = vmul.f32 %v7163_v26, %v2727_v16  ;;  %v3516_v16 = vld [vmem:[#allocation3 + $0xd0] sm:$0xff] (!%p4382_p6) }
 0x40d   : > { %3440 = vst.msk [vmem:[#allocation4 + $0x90] sm:$0xff] %vm1440_vm2, %v3408_v11  ;;  %v3409_v53 = vadd.f32 %v4713_v31, %v2909_v2  ;;  %v3249_v23 = vpop.f32.mrb[27].mxu0  ;;  %v5265_v31 = vmov (!%p4382_p6), 0   ;;  %v3520_v26 = vld [vmem:[#allocation3 + $0xf0] sm:$0xff] (!%p4382_p6) }
 0x40e   : > { %3438 = vst.msk [vmem:[#allocation4 + $0x80] sm:$0xff] %vm1440_vm2, %v3406_v50  ;;  %v3407_v21 = vadd.f32 %v3249_v23, %v2907_v48  ;;  %v4736_v42 = vpop.f32.mrb[24].mxu1  ;;  %v3490_v48 = vld [vmem:[#allocation3] sm:$0xff] (!%p4382_p6)  ;;  %v3493_v50 = vld [vmem:[#allocation3 + $0x18] sm:$0xff] (!%p4382_p6)  ;;  %5093 = vset.pattern.permute.xlu1 (!%p4382_p6), %v5265_v31  ;;  %5092 = vset.pattern.permute.xlu0 (!%p4382_p6), %v5265_v31  ;;  %v3496_v23 = vld [vmem:[#allocation3 + $0x30] sm:$0xff] (!%p4382_p6) }
 0x40f   : > { %3441 = vst.msk [vmem:[#allocation4 + $0x98] sm:$0xff] %vm1440_vm2, %v3409_v53  ;;  %v3416_v29 = vadd.f32 %v4736_v42, %v2916_v0  ;;  %v3359_v51 = vpop.f32.mrb[25].mxu1  ;;  %5096 = vrcp.f32 (!%p4382_p6), %v3490_v48  ;;  %v3495_v0 = vld [vmem:[#allocation3 + $0x28] sm:$0xff] (!%p4382_p6)  ;;  %v3497_v53 = vld [vmem:[#allocation3 + $0x38] sm:$0xff] (!%p4382_p6)  ;;  %3598 = vperm.xlu1 (!%p4382_p6), %5093, %v5095_v22   ;;  %v3556_v48 = vld [vmem:[#allocation4 + $0x10] sm:$0xff] (!%p4382_p6) }
 0x410   : > { %3439 = vst.msk [vmem:[#allocation4 + $0x88] sm:$0xff] %vm1440_vm2, %v3407_v21  ;;  %v3414_v54 = vadd.f32 %v3359_v51, %v2914_v5  ;;  %v4737_v59 = vpop.f32.mrb[26].mxu1  ;;  %5098 = vrcp.f32 (!%p4382_p6), %v3493_v50  ;;  %v3499_v21 = vld [vmem:[#allocation3 + $0x48] sm:$0xff] (!%p4382_p6)  ;;  %v3554_v50 = vld [vmem:[#allocation4] sm:$0xff] (!%p4382_p6) }
 0x411   : > { %3448 = vst.msk [vmem:[#allocation4 + $0xd0] sm:$0xff] %vm1440_vm2, %v3416_v29  ;;  %v3417_v4 = vadd.f32 %v4737_v59, %v2917_v15  ;;  %v3362_v37 = vpop.f32.mrb[27].mxu1  ;;  %5100 = vrcp.f32 (!%p4382_p6), %v3491_v20  ;;  %v3501_v29 = vld [vmem:[#allocation3 + $0x58] sm:$0xff] (!%p4382_p6)  ;;  %v3555_v22 = vld [vmem:[#allocation4 + $0x8] sm:$0xff] (!%p4382_p6) }
 0x412   : > { %3446 = vst.msk [vmem:[#allocation4 + $0xc0] sm:$0xff] %vm1440_vm2, %v3414_v54  ;;  %v3415_v60 = vadd.f32 %v3362_v37, %v2915_v35  ;;  %5102 = vrcp.f32 (!%p4382_p6), %v3495_v0  ;;  %v3503_v54 = vld [vmem:[#allocation3 + $0x68] sm:$0xff] (!%p4382_p6) }
 0x413   : > { %3449 = vst.msk [vmem:[#allocation4 + $0xd8] sm:$0xff] %vm1440_vm2, %v3417_v4  ;;  %5104 = vrcp.f32 (!%p4382_p6), %v3494_v49  ;;  %v3502_v4 = vld [vmem:[#allocation3 + $0x60] sm:$0xff] (!%p4382_p6) }
 0x414   : > { %3447 = vst.msk [vmem:[#allocation4 + $0xc8] sm:$0xff] %vm1440_vm2, %v3415_v60  ;;  %5106 = vrcp.f32 (!%p4382_p6), %v3497_v53  ;;  %v3505_v60 = vld [vmem:[#allocation3 + $0x78] sm:$0xff] (!%p4382_p6) }
 0x415   : > { %5108 = vrcp.f32 (!%p4382_p6), %v3496_v23  ;;  %v3557_v53 = vld [vmem:[#allocation4 + $0x18] sm:$0xff] (!%p4382_p6) }
 0x416   : > { %5110 = vrcp.f32 (!%p4382_p6), %v3499_v21 }
 0x417   : > { %5112 = vrcp.f32 (!%p4382_p6), %v3498_v58 }
 0x418   : > { %5114 = vrcp.f32 (!%p4382_p6), %v3501_v29  ;;  %v3559_v29 = vld [vmem:[#allocation4 + $0x28] sm:$0xff] (!%p4382_p6) }
 0x419   : > { %v5097_v5 = vpop.eup (!%p4382_p6), %5096  ;;  %5116 = vrcp.f32 (!%p4382_p6), %v3500_v57  ;;  %v3558_v57 = vld [vmem:[#allocation4 + $0x20] sm:$0xff] (!%p4382_p6) }
 0x41a   : > { %v4716_v25 = vpop.f32.mrb[28].mxu0  ;;  %v5099_v42 = vpop.eup (!%p4382_p6), %5098  ;;  %3588 = vperm.xlu0 (!%p4382_p6), %5092, %v5097_v5   ;;  %5118 = vrcp.f32 (!%p4382_p6), %v3503_v54 }
 0x41b   : > { %v3412_v27 = vadd.f32 %v4716_v25, %v2912_v1  ;;  %v3262_v9 = vpop.f32.mrb[29].mxu0  ;;  %v5101_v15 = vpop.eup (!%p4382_p6), %5100  ;;  %3603 = vperm.xlu1 (!%p4382_p6), %5093, %v5099_v42   ;;  %5120 = vrcp.f32 (!%p4382_p6), %v3502_v4 }
 0x41c   : > { %v3410_v56 = vadd.f32 %v3262_v9, %v2910_v43  ;;  %v4717_v36 = vpop.f32.mrb[30].mxu0  ;;  %v5103_v51 = vpop.eup (!%p4382_p6), %5102  ;;  %5122 = vrcp.f32 (!%p4382_p6), %v3505_v60  ;;  %v3509_v43 = vld [vmem:[#allocation3 + $0x98] sm:$0xff] (!%p4382_p6) }
 0x41d   : > { %3444 = vst.msk [vmem:[#allocation4 + $0xb0] sm:$0xff] %vm1440_vm2, %v3412_v27  ;;  %v3413_v18 = vadd.f32 %v4717_v36, %v2913_v46  ;;  %v3265_v62 = vpop.f32.mrb[31].mxu0  ;;  %v5105_v35 = vpop.eup (!%p4382_p6), %5104  ;;  %5124 = vrcp.f32 (!%p4382_p6), %v3504_v12  ;;  %v3511_v27 = vld [vmem:[#allocation3 + $0xa8] sm:$0xff] (!%p4382_p6)  ;;  %v3561_v60 = vld [vmem:[#allocation4 + $0x38] sm:$0xff] (!%p4382_p6)  ;;  %v3560_v12 = vld [vmem:[#allocation4 + $0x30] sm:$0xff] (!%p4382_p6) }
 0x41e   : > { %3442 = vst.msk [vmem:[#allocation4 + $0xa0] sm:$0xff] %vm1440_vm2, %v3410_v56  ;;  %v3411_v33 = vadd.f32 %v3265_v62, %v2911_v7  ;;  %3593 = vperm.xlu0 (!%p4382_p6), %5092, %v5101_v15   ;;  %v5107_v59 = vpop.eup (!%p4382_p6), %5106  ;;  %5126 = vrcp.f32 (!%p4382_p6), %v3507_v44  ;;  %v3513_v56 = vld [vmem:[#allocation3 + $0xb8] sm:$0xff] (!%p4382_p6) }
 0x41f   : > { %3445 = vst.msk [vmem:[#allocation4 + $0xb8] sm:$0xff] %vm1440_vm2, %v3413_v18  ;;  %3613 = vperm.xlu1 (!%p4382_p6), %5093, %v5103_v51   ;;  %v5109_v37 = vpop.eup (!%p4382_p6), %5108  ;;  %5128 = vrcp.f32 (!%p4382_p6), %v3506_v3  ;;  %v3515_v18 = vld [vmem:[#allocation3 + $0xc8] sm:$0xff] (!%p4382_p6) }
 0x420   : > { %3443 = vst.msk [vmem:[#allocation4 + $0xa8] sm:$0xff] %vm1440_vm2, %v3411_v33  ;;  %v5111_v24 = vpop.eup (!%p4382_p6), %5110  ;;  %5130 = vrcp.f32 (!%p4382_p6), %v3509_v43  ;;  %v3563_v43 = vld [vmem:[#allocation4 + $0x48] sm:$0xff] (!%p4382_p6) }
 0x421   : > { %v4740_v52 = vpop.f32.mrb[28].mxu1  ;;  %3489 = sbr.rel (%p4382_p6) target bundleno = 1243 (0x4db), region = 205  ;;  %v5113_v39 = vpop.eup (!%p4382_p6), %5112  ;;  %5132 = vrcp.f32 (!%p4382_p6), %v3508_v47  ;;  %v3562_v47 = vld [vmem:[#allocation4 + $0x40] sm:$0xff] (!%p4382_p6) }
 0x422   : > { %v3420_v61 = vadd.f32 %v4740_v52, %v2920_v14  ;;  %v3375_v38 = vpop.f32.mrb[29].mxu1  ;;  %3608 = vperm.xlu0 (!%p4382_p6), %5092, %v5105_v35   ;;  %v5115_v1 = vpop.eup (!%p4382_p6), %5114  ;;  %5134 = vrcp.f32 (!%p4382_p6), %v3511_v27  ;;  %v3518_v52 = vld [vmem:[#allocation3 + $0xe0] sm:$0xff] (!%p4382_p6) }
 0x423   : > { %v3418_v2 = vadd.f32 %v3375_v38, %v2918_v45  ;;  %v4741_v32 = vpop.f32.mrb[30].mxu1  ;;  %3623 = vperm.xlu1 (!%p4382_p6), %5093, %v5107_v59   ;;  %v5117_v10 = vpop.eup (!%p4382_p6), %5116  ;;  %5136 = vrcp.f32 (!%p4382_p6), %v3510_v55 }
 0x424   : > { %3452 = vst.msk [vmem:[#allocation4 + $0xf0] sm:$0xff] %vm1440_vm2, %v3420_v61  ;;  %v3421_v11 = vadd.f32 %v4741_v32, %v2921_v6  ;;  %v3378_v17 = vpop.f32.mrb[31].mxu1  ;;  %v5119_v25 = vpop.eup (!%p4382_p6), %5118  ;;  %5138 = vrcp.f32 (!%p4382_p6), %v3513_v56  ;;  %v3521_v61 = vld [vmem:[#allocation3 + $0xf8] sm:$0xff] (!%p4382_p6) }
 0x425   : > { %3450 = vst.msk [vmem:[#allocation4 + $0xe0] sm:$0xff] %vm1440_vm2, %v3418_v2  ;;  %v3419_v41 = vadd.f32 %v3378_v17, %v2919_v34  ;;  %v5121_v46 = vpop.eup (!%p4382_p6), %5120  ;;  %5140 = vrcp.f32 (!%p4382_p6), %v3512_v13  ;;  %v3565_v56 = vld [vmem:[#allocation4 + $0x58] sm:$0xff] (!%p4382_p6)  ;;  %v3564_v13 = vld [vmem:[#allocation4 + $0x50] sm:$0xff] (!%p4382_p6) }
 0x426   : > { %3453 = vst.msk [vmem:[#allocation4 + $0xf8] sm:$0xff] %vm1440_vm2, %v3421_v11  ;;  %3618 = vperm.xlu0 (!%p4382_p6), %5092, %v5109_v37   ;;  %v5123_v9 = vpop.eup (!%p4382_p6), %5122  ;;  %5142 = vrcp.f32 (!%p4382_p6), %v3515_v18 }
 0x427   : > { %3451 = vst.msk [vmem:[#allocation4 + $0xe8] sm:$0xff] %vm1440_vm2, %v3419_v41  ;;  %3633 = vperm.xlu1 (!%p4382_p6), %5093, %v5111_v24   ;;  %v5125_v7 = vpop.eup (!%p4382_p6), %5124  ;;  %5144 = vrcp.f32 (!%p4382_p6), %v3514_v63 }
 0x428   : > { %v5127_v36 = vpop.eup %5126  ;;  %5146 = vrcp.f32 %v3517_v30  ;;  %v3567_v30 = vld [vmem:[#allocation4 + $0x68] sm:$0xff] }
 0x429   : > { %v5129_v8 = vpop.eup %5128  ;;  %5148 = vrcp.f32 %v3516_v16  ;;  %v3566_v16 = vld [vmem:[#allocation4 + $0x60] sm:$0xff] }
 0x42a   : > { %3628 = vperm.xlu0 %5092, %v5113_v39   ;;  %v5131_v62 = vpop.eup %5130  ;;  %5150 = vrcp.f32 %v3519_v28 }
 0x42b   : > { %3643 = vperm.xlu1 %5093, %v5115_v1   ;;  %v5133_v33 = vpop.eup %5132  ;;  %5152 = vrcp.f32 %v3518_v52 }
 0x42c   : > { %v5135_v40 = vpop.eup %5134  ;;  %5154 = vrcp.f32 %v3521_v61  ;;  %v3569_v61 = vld [vmem:[#allocation4 + $0x78] sm:$0xff] }
 0x42d   : > { %v5137_v14 = vpop.eup %5136  ;;  %5156 = vrcp.f32 %v3520_v26  ;;  %v3568_v26 = vld [vmem:[#allocation4 + $0x70] sm:$0xff] }
 0x42e   : > { %3638 = vperm.xlu0 %5092, %v5117_v10   ;;  %v5139_v45 = vpop.eup %5138 }
 0x42f   : > { %3653 = vperm.xlu1 %5093, %v5119_v25   ;;  %v5141_v6 = vpop.eup %5140 }
 0x430   : > { %v5143_v38 = vpop.eup %5142 }
 0x431   : > { %v5145_v34 = vpop.eup %5144 }
 0x432   : > { %3648 = vperm.xlu0 %5092, %v5121_v46   ;;  %v5147_v2 = vpop.eup %5146 }
 0x433   : > { %3663 = vperm.xlu1 %5093, %v5123_v9   ;;  %v5149_v32 = vpop.eup %5148 }
 0x434   : > { %v5151_v11 = vpop.eup %5150 }
 0x435   : > { %v5153_v17 = vpop.eup %5152 }
 0x436   : > { %3658 = vperm.xlu0 %5092, %v5125_v7   ;;  %v5155_v41 = vpop.eup %5154 }
 0x437   : > { %3673 = vperm.xlu1 %5093, %v5127_v36   ;;  %v5157_v19 = vpop.eup %5156 }
 0x43a   : > { %3668 = vperm.xlu0 %5092, %v5129_v8  }
 0x43b   : > { %3683 = vperm.xlu1 %5093, %v5131_v62  }
 0x43e   : > { %3678 = vperm.xlu0 %5092, %v5133_v33  }
 0x43f   : > { %3693 = vperm.xlu1 %5093, %v5135_v40  }
 0x442   : > { %3688 = vperm.xlu0 %5092, %v5137_v14  }
 0x443   : > { %3703 = vperm.xlu1 %5093, %v5139_v45  }
 0x446   : > { %3698 = vperm.xlu0 %5092, %v5141_v6  }
 0x447   : > { %3713 = vperm.xlu1 %5093, %v5143_v38  }
 0x44a   : > { %3708 = vperm.xlu0 %5092, %v5145_v34  }
 0x44b   : > { %3723 = vperm.xlu1 %5093, %v5147_v2  }
 0x44e   : > { %3718 = vperm.xlu0 %5092, %v5149_v32  }
 0x44f   : > { %3733 = vperm.xlu1 %5093, %v5151_v11  }
 0x452   : > { %3728 = vperm.xlu0 %5092, %v5153_v17  }
 0x453   : > { %3743 = vperm.xlu1 %5093, %v5155_v41   ;;  %v3571_v41 = vld [vmem:[#allocation4 + $0x88] sm:$0xff] }
 0x456   : > { %3738 = vperm.xlu0 %5092, %v5157_v19  }
 0x48e   : > { %v3599_v31 = vpop.permute.xlu1 %3598 }
 0x48f   : > { %v3748_v20 = vmul.f32 %v3599_v31, %v3556_v48  ;;  %v3570_v48 = vld [vmem:[#allocation4 + $0x80] sm:$0xff] }
 0x491   : > { %v4424_v23 = vpack.c.bf16 %v3748_v20, %v3748_v20 }
 0x493   : > { %3909 = vst.msk [vmem:[%s5623_s10 + $0x8] sm:$0xf] %vm3906_vm4, %v4424_v23 }
 0x499   : > { %v3589_v0 = vpop.permute.xlu0 %3588 }
 0x49a   : > { %v3746_v49 = vmul.f32 %v3589_v0, %v3554_v50  ;;  %v3604_v21 = vpop.permute.xlu1 %3603 }
 0x49b   : > { %v3749_v42 = vmul.f32 %v3604_v21, %v3557_v53  ;;  %v3573_v53 = vld [vmem:[#allocation4 + $0x98] sm:$0xff] }
 0x49c   : > { %v4422_v5 = vpack.c.bf16 %v3746_v49, %v3746_v49 }
 0x49d   : > { %v3594_v58 = vpop.permute.xlu0 %3593  ;;  %v4425_v51 = vpack.c.bf16 %v3749_v42, %v3749_v42 }
 0x49e   : > { %3907 = vst.msk [vmem:[%s5623_s10] sm:$0xf] %vm3906_vm4, %v4422_v5  ;;  %v3747_v15 = vmul.f32 %v3594_v58, %v3555_v22  ;;  %v3614_v54 = vpop.permute.xlu1 %3613  ;;  %v3572_v22 = vld [vmem:[#allocation4 + $0x90] sm:$0xff] }
 0x49f   : > { %3910 = vst.msk [vmem:[%s5623_s10 + $0xc] sm:$0xf] %vm3906_vm4, %v4425_v51  ;;  %v3751_v59 = vmul.f32 %v3614_v54, %v3559_v29  ;;  %v3575_v29 = vld [vmem:[#allocation4 + $0xa8] sm:$0xff] }
 0x4a0   : > { %v4423_v35 = vpack.c.bf16 %v3747_v15, %v3747_v15 }
 0x4a1   : > { %v3609_v4 = vpop.permute.xlu0 %3608  ;;  %v4427_v24 = vpack.c.bf16 %v3751_v59, %v3751_v59 }
 0x4a2   : > { %3908 = vst.msk [vmem:[%s5623_s10 + $0x4] sm:$0xf] %vm3906_vm4, %v4423_v35  ;;  %v3750_v37 = vmul.f32 %v3609_v4, %v3558_v57  ;;  %v3624_v44 = vpop.permute.xlu1 %3623  ;;  %v3574_v57 = vld [vmem:[#allocation4 + $0xa0] sm:$0xff] }
 0x4a3   : > { %3912 = vst.msk [vmem:[%s5623_s10 + $0x14] sm:$0xf] %vm3906_vm4, %v4427_v24  ;;  %v3753_v1 = vmul.f32 %v3624_v44, %v3561_v60  ;;  %v3577_v60 = vld [vmem:[#allocation4 + $0xb8] sm:$0xff] }
 0x4a4   : > { %v4426_v39 = vpack.c.bf16 %v3750_v37, %v3750_v37 }
 0x4a5   : > { %v3619_v3 = vpop.permute.xlu0 %3618  ;;  %v4429_v25 = vpack.c.bf16 %v3753_v1, %v3753_v1 }
 0x4a6   : > { %3911 = vst.msk [vmem:[%s5623_s10 + $0x10] sm:$0xf] %vm3906_vm4, %v4426_v39  ;;  %v3752_v10 = vmul.f32 %v3619_v3, %v3560_v12  ;;  %v3634_v27 = vpop.permute.xlu1 %3633  ;;  %v3576_v12 = vld [vmem:[#allocation4 + $0xb0] sm:$0xff] }
 0x4a7   : > { %3914 = vst.msk [vmem:[%s5623_s10 + $0x1c] sm:$0xf] %vm3906_vm4, %v4429_v25  ;;  %v3755_v9 = vmul.f32 %v3634_v27, %v3563_v43  ;;  %v3579_v43 = vld [vmem:[#allocation4 + $0xc8] sm:$0xff] }
 0x4a8   : > { %v4428_v46 = vpack.c.bf16 %v3752_v10, %v3752_v10 }
 0x4a9   : > { %v3629_v55 = vpop.permute.xlu0 %3628  ;;  %v4431_v36 = vpack.c.bf16 %v3755_v9, %v3755_v9 }
 0x4aa   : > { %3913 = vst.msk [vmem:[%s5623_s10 + $0x18] sm:$0xf] %vm3906_vm4, %v4428_v46  ;;  %v3754_v7 = vmul.f32 %v3629_v55, %v3562_v47  ;;  %v3644_v18 = vpop.permute.xlu1 %3643  ;;  %v3578_v47 = vld [vmem:[#allocation4 + $0xc0] sm:$0xff] }
 0x4ab   : > { %3916 = vst.msk [vmem:[%s5623_s10 + $0x24] sm:$0xf] %vm3906_vm4, %v4431_v36  ;;  %v3757_v62 = vmul.f32 %v3644_v18, %v3565_v56  ;;  %v3581_v56 = vld [vmem:[#allocation4 + $0xd8] sm:$0xff] }
 0x4ac   : > { %v4430_v8 = vpack.c.bf16 %v3754_v7, %v3754_v7 }
 0x4ad   : > { %v3639_v63 = vpop.permute.xlu0 %3638  ;;  %v4433_v40 = vpack.c.bf16 %v3757_v62, %v3757_v62 }
 0x4ae   : > { %3915 = vst.msk [vmem:[%s5623_s10 + $0x20] sm:$0xf] %vm3906_vm4, %v4430_v8  ;;  %v3756_v33 = vmul.f32 %v3639_v63, %v3564_v13  ;;  %v3654_v28 = vpop.permute.xlu1 %3653  ;;  %v3580_v13 = vld [vmem:[#allocation4 + $0xd0] sm:$0xff] }
 0x4af   : > { %3918 = vst.msk [vmem:[%s5623_s10 + $0x2c] sm:$0xf] %vm3906_vm4, %v4433_v40  ;;  %v3759_v45 = vmul.f32 %v3654_v28, %v3567_v30  ;;  %v3583_v30 = vld [vmem:[#allocation4 + $0xe8] sm:$0xff] }
 0x4b0   : > { %v4432_v14 = vpack.c.bf16 %v3756_v33, %v3756_v33 }
 0x4b1   : > { %v3649_v52 = vpop.permute.xlu0 %3648  ;;  %v4435_v38 = vpack.c.bf16 %v3759_v45, %v3759_v45 }
 0x4b2   : > { %3917 = vst.msk [vmem:[%s5623_s10 + $0x28] sm:$0xf] %vm3906_vm4, %v4432_v14  ;;  %v3758_v6 = vmul.f32 %v3649_v52, %v3566_v16  ;;  %v3664_v2 = vpop.permute.xlu1 %3663  ;;  %v3582_v16 = vld [vmem:[#allocation4 + $0xe0] sm:$0xff] }
 0x4b3   : > { %3920 = vst.msk [vmem:[%s5623_s10 + $0x34] sm:$0xf] %vm3906_vm4, %v4435_v38  ;;  %v3761_v32 = vmul.f32 %v3664_v2, %v3569_v61  ;;  %v3585_v61 = vld [vmem:[#allocation4 + $0xf8] sm:$0xff] }
 0x4b4   : > { %v4434_v34 = vpack.c.bf16 %v3758_v6, %v3758_v6 }
 0x4b5   : > { %v3659_v11 = vpop.permute.xlu0 %3658  ;;  %v4437_v19 = vpack.c.bf16 %v3761_v32, %v3761_v32 }
 0x4b6   : > { %3919 = vst.msk [vmem:[%s5623_s10 + $0x30] sm:$0xf] %vm3906_vm4, %v4434_v34  ;;  %v3760_v17 = vmul.f32 %v3659_v11, %v3568_v26  ;;  %v3674_v31 = vpop.permute.xlu1 %3673  ;;  %v3584_v26 = vld [vmem:[#allocation4 + $0xf0] sm:$0xff] }
 0x4b7   : > { %3922 = vst.msk [vmem:[%s5623_s10 + $0x3c] sm:$0xf] %vm3906_vm4, %v4437_v19  ;;  %v3763_v20 = vmul.f32 %v3674_v31, %v3571_v41 }
 0x4b8   : > { %v4436_v50 = vpack.c.bf16 %v3760_v17, %v3760_v17 }
 0x4b9   : > { %v3669_v0 = vpop.permute.xlu0 %3668  ;;  %v4439_v23 = vpack.c.bf16 %v3763_v20, %v3763_v20 }
 0x4ba   : > { %3921 = vst.msk [vmem:[%s5623_s10 + $0x38] sm:$0xf] %vm3906_vm4, %v4436_v50  ;;  %v3762_v49 = vmul.f32 %v3669_v0, %v3570_v48  ;;  %v3684_v21 = vpop.permute.xlu1 %3683 }
 0x4bb   : > { %3924 = vst.msk [vmem:[%s5623_s10 + $0x44] sm:$0xf] %vm3906_vm4, %v4439_v23  ;;  %v3765_v42 = vmul.f32 %v3684_v21, %v3573_v53 }
 0x4bc   : > { %v4438_v5 = vpack.c.bf16 %v3762_v49, %v3762_v49 }
 0x4bd   : > { %v3679_v58 = vpop.permute.xlu0 %3678  ;;  %v4441_v51 = vpack.c.bf16 %v3765_v42, %v3765_v42 }
 0x4be   : > { %3923 = vst.msk [vmem:[%s5623_s10 + $0x40] sm:$0xf] %vm3906_vm4, %v4438_v5  ;;  %v3764_v15 = vmul.f32 %v3679_v58, %v3572_v22  ;;  %v3694_v54 = vpop.permute.xlu1 %3693 }
 0x4bf   : > { %3926 = vst.msk [vmem:[%s5623_s10 + $0x4c] sm:$0xf] %vm3906_vm4, %v4441_v51  ;;  %v3767_v59 = vmul.f32 %v3694_v54, %v3575_v29 }
 0x4c0   : > { %v4440_v35 = vpack.c.bf16 %v3764_v15, %v3764_v15 }
 0x4c1   : > { %v3689_v4 = vpop.permute.xlu0 %3688  ;;  %v4443_v24 = vpack.c.bf16 %v3767_v59, %v3767_v59 }
 0x4c2   : > { %3925 = vst.msk [vmem:[%s5623_s10 + $0x48] sm:$0xf] %vm3906_vm4, %v4440_v35  ;;  %v3766_v37 = vmul.f32 %v3689_v4, %v3574_v57  ;;  %v3704_v44 = vpop.permute.xlu1 %3703 }
 0x4c3   : > { %3928 = vst.msk [vmem:[%s5623_s10 + $0x54] sm:$0xf] %vm3906_vm4, %v4443_v24  ;;  %v3769_v1 = vmul.f32 %v3704_v44, %v3577_v60 }
 0x4c4   : > { %v4442_v39 = vpack.c.bf16 %v3766_v37, %v3766_v37 }
 0x4c5   : > { %v3699_v3 = vpop.permute.xlu0 %3698  ;;  %v4445_v25 = vpack.c.bf16 %v3769_v1, %v3769_v1 }
 0x4c6   : > { %3927 = vst.msk [vmem:[%s5623_s10 + $0x50] sm:$0xf] %vm3906_vm4, %v4442_v39  ;;  %v3768_v10 = vmul.f32 %v3699_v3, %v3576_v12  ;;  %v3714_v27 = vpop.permute.xlu1 %3713 }
 0x4c7   : > { %3930 = vst.msk [vmem:[%s5623_s10 + $0x5c] sm:$0xf] %vm3906_vm4, %v4445_v25  ;;  %v3771_v9 = vmul.f32 %v3714_v27, %v3579_v43 }
 0x4c8   : > { %v4444_v46 = vpack.c.bf16 %v3768_v10, %v3768_v10 }
 0x4c9   : > { %v3709_v55 = vpop.permute.xlu0 %3708  ;;  %v4447_v36 = vpack.c.bf16 %v3771_v9, %v3771_v9 }
 0x4ca   : > { %3929 = vst.msk [vmem:[%s5623_s10 + $0x58] sm:$0xf] %vm3906_vm4, %v4444_v46  ;;  %v3770_v7 = vmul.f32 %v3709_v55, %v3578_v47  ;;  %v3724_v18 = vpop.permute.xlu1 %3723 }
 0x4cb   : > { %3932 = vst.msk [vmem:[%s5623_s10 + $0x64] sm:$0xf] %vm3906_vm4, %v4447_v36  ;;  %v3773_v62 = vmul.f32 %v3724_v18, %v3581_v56 }
 0x4cc   : > { %v4446_v8 = vpack.c.bf16 %v3770_v7, %v3770_v7 }
 0x4cd   : > { %v3719_v63 = vpop.permute.xlu0 %3718  ;;  %v4449_v40 = vpack.c.bf16 %v3773_v62, %v3773_v62 }
 0x4ce   : > { %3931 = vst.msk [vmem:[%s5623_s10 + $0x60] sm:$0xf] %vm3906_vm4, %v4446_v8  ;;  %v3772_v33 = vmul.f32 %v3719_v63, %v3580_v13  ;;  %v3734_v28 = vpop.permute.xlu1 %3733 }
 0x4cf   : > { %3934 = vst.msk [vmem:[%s5623_s10 + $0x6c] sm:$0xf] %vm3906_vm4, %v4449_v40  ;;  %v3775_v45 = vmul.f32 %v3734_v28, %v3583_v30 }
 0x4d0   : > { %v4448_v14 = vpack.c.bf16 %v3772_v33, %v3772_v33 }
 0x4d1   : > { %v3729_v52 = vpop.permute.xlu0 %3728  ;;  %v4451_v38 = vpack.c.bf16 %v3775_v45, %v3775_v45 }
 0x4d2   : > { %3933 = vst.msk [vmem:[%s5623_s10 + $0x68] sm:$0xf] %vm3906_vm4, %v4448_v14  ;;  %v3774_v6 = vmul.f32 %v3729_v52, %v3582_v16  ;;  %v3744_v2 = vpop.permute.xlu1 %3743 }
 0x4d3   : > { %3936 = vst.msk [vmem:[%s5623_s10 + $0x74] sm:$0xf] %vm3906_vm4, %v4451_v38  ;;  %v3777_v32 = vmul.f32 %v3744_v2, %v3585_v61 }
 0x4d4   : > { %v4450_v34 = vpack.c.bf16 %v3774_v6, %v3774_v6 }
 0x4d5   : > { %v3739_v11 = vpop.permute.xlu0 %3738  ;;  %v4453_v41 = vpack.c.bf16 %v3777_v32, %v3777_v32 }
 0x4d6   : > { %3935 = vst.msk [vmem:[%s5623_s10 + $0x70] sm:$0xf] %vm3906_vm4, %v4450_v34  ;;  %v3776_v17 = vmul.f32 %v3739_v11, %v3584_v26 }
 0x4d7   : > { %3938 = vst.msk [vmem:[%s5623_s10 + $0x7c] sm:$0xf] %vm3906_vm4, %v4453_v41 }
 0x4d8   : > { %v4452_v19 = vpack.c.bf16 %v3776_v17, %v3776_v17 }
 0x4da   : > { %3937 = vst.msk [vmem:[%s5623_s10 + $0x78] sm:$0xf] %vm3906_vm4, %v4452_v19 }
 0x4db PF: > { %3945 = sbr.rel (!%p5408_p13) target bundleno = 1262 (0x4ee), region = 209  ;;  %s7165_s19 = sld [smem:[#allocation12_spill]] (%p5408_p13)  ;;  %v3966_v48 = vld [vmem:[%s5623_s10] sm:$0xff] (%p5408_p13)   ;;  %v3970_v50 = vld [vmem:[%s5623_s10 + $0x8] sm:$0xff] (%p5408_p13)   ;;  %v3974_v31 = vld [vmem:[%s5623_s10 + $0x10] sm:$0xff] (%p5408_p13)  }
 0x4dc   : > { %s7166_s12 = sld [smem:[#allocation13_spill]] (%p5408_p13)  ;;  %v3978_v20 = vld [vmem:[%s5623_s10 + $0x18] sm:$0xff] (%p5408_p13)   ;;  %v3982_v0 = vld [vmem:[%s5623_s10 + $0x20] sm:$0xff] (%p5408_p13)   ;;  %v3986_v49 = vld [vmem:[%s5623_s10 + $0x28] sm:$0xff] (%p5408_p13)   ;;  %s7167_s29 = sld [smem:[#allocation53_spill]] (%p5408_p13) }
 0x4dd   : > { %v3990_v53 = vld [vmem:[%s5623_s10 + $0x30] sm:$0xff] (%p5408_p13)   ;;  %v3994_v23 = vld [vmem:[%s5623_s10 + $0x38] sm:$0xff] (%p5408_p13)   ;;  %v3998_v22 = vld [vmem:[%s5623_s10 + $0x40] sm:$0xff] (%p5408_p13)  }
 0x4de   : > { %v4002_v5 = vld [vmem:[%s5623_s10 + $0x48] sm:$0xff] (%p5408_p13)   ;;  %v4006_v21 = vld [vmem:[%s5623_s10 + $0x50] sm:$0xff] (%p5408_p13)   ;;  %v4010_v42 = vld [vmem:[%s5623_s10 + $0x58] sm:$0xff] (%p5408_p13)  }
 0x4df   : > { %v4014_v58 = vld [vmem:[%s5623_s10 + $0x60] sm:$0xff] (%p5408_p13)   ;;  %v4018_v15 = vld [vmem:[%s5623_s10 + $0x68] sm:$0xff] (%p5408_p13)   ;;  %v4022_v29 = vld [vmem:[%s5623_s10 + $0x70] sm:$0xff] (%p5408_p13)  }
 0x4e1   : > { %s4416_s11 = sshll.u32 (%p5408_p13), %s7165_s19, 3  ;;  %v4026_v51 = vld [vmem:[%s5623_s10 + $0x78] sm:$0xff] (%p5408_p13)  }
 0x4e2   : > { %s4417_s13 = sshll.u32 %s7166_s12, 7 }
 0x4e3   : > { %s3948_s23 = sadd.s32 %s4417_s13, %s4416_s11 }
 0x4e4   : > { %s4418_s4 = sshll.u32 %s3948_s23, 2 }
 0x4e5   : > { %s3950_s7 = scalar_lea.vmem %s7167_s29, %s4418_s4 }
 0x4e6   : > { %3967 = vst [vmem:[%s3950_s7] sm:$0xff] %v3966_v48   ;;  %3971 = vst [vmem:[%s3950_s7 + $0x8] sm:$0xff] %v3970_v50  }
 0x4e7   : > { %3975 = vst [vmem:[%s3950_s7 + $0x10] sm:$0xff] %v3974_v31   ;;  %3979 = vst [vmem:[%s3950_s7 + $0x18] sm:$0xff] %v3978_v20  }
 0x4e8   : > { %3983 = vst [vmem:[%s3950_s7 + $0x80] sm:$0xff] %v3982_v0   ;;  %3987 = vst [vmem:[%s3950_s7 + $0x88] sm:$0xff] %v3986_v49  }
 0x4e9   : > { %3991 = vst [vmem:[%s3950_s7 + $0x90] sm:$0xff] %v3990_v53   ;;  %3995 = vst [vmem:[%s3950_s7 + $0x98] sm:$0xff] %v3994_v23  }
 0x4ea   : > { %3999 = vst [vmem:[%s3950_s7 + $0x100] sm:$0xff] %v3998_v22   ;;  %4003 = vst [vmem:[%s3950_s7 + $0x108] sm:$0xff] %v4002_v5  }
 0x4eb   : > { %4007 = vst [vmem:[%s3950_s7 + $0x110] sm:$0xff] %v4006_v21   ;;  %4011 = vst [vmem:[%s3950_s7 + $0x118] sm:$0xff] %v4010_v42  }
 0x4ec   : > { %4015 = vst [vmem:[%s3950_s7 + $0x180] sm:$0xff] %v4014_v58   ;;  %4019 = vst [vmem:[%s3950_s7 + $0x188] sm:$0xff] %v4018_v15  }
 0x4ed   : > { %4023 = vst [vmem:[%s3950_s7 + $0x190] sm:$0xff] %v4022_v29   ;;  %4027 = vst [vmem:[%s3950_s7 + $0x198] sm:$0xff] %v4026_v51  }
 0x4ee PF: > { %s14_s27 = sadd.s32 1, %s5260_s27   ;;  %s7169_s8 = smov %s5419_s15 }
 0x4ef   : > { %p6943_p7 = scmp.ge.s32.totalorder %s14_s27, 18   ;;  %s7170_s6 = sld [smem:[#allocation14_spill]] }
 0x4f0   : > { %s7171_s10 = sld [smem:[#allocation15_spill]]  ;;  %s7172_s15 = smov %s5216_s16 }
 0x4f1   : > { %s7173_s16 = smov %s7169_s8  ;;  %s7174_s17 = smov %s5224_s18 }
 0x4f2   : > { %s7175_s18 = smov %s5416_s21  ;;  %s7176_s19 = smov %s5232_s20 }
 0x4f3   : > { %s7177_s20 = smov %s5413_s22  ;;  %s7178_s21 = smov %s5248_s24 }
 0x4f4   : > { %s7179_s22 = smov %s5252_s25  ;;  %s7180_s23 = smov %s5256_s26 }
 0x4f5   : > { %s7181_s24 = smov %s7170_s6  ;;  %s7183_s26 = smov %s7193_s5 }
 0x4f6   : > { %s7182_s25 = smov %s7171_s10  ;;  %13 = sbr.rel (!%p6943_p7) target bundleno = 9 (0x9), region = 305 }

// kernel: transformer_decoder_layer.15
= control target key start
LH: loop header
LB: loop body
LE: loop exit
PB: predicated region body
PF: predicated region fallthrough
CT: control target
= control target key end

     0   :  { %12 = vsyncpa [#allocation3], 0  ;;  %s1674_s0 = inlined_call_operand.vmem [shape: f32[2,256,128], index: 0, kind: input, shape index: {}]   ;;  %s1675_s1 = inlined_call_operand.vmem [shape: bf16[128,256], index: 1, kind: input, shape index: {}]   ;;  %s1676_s2 = inlined_call_operand.vmem [shape: f32[1,256], index: 2, kind: input, shape index: {}]   ;;  %s1677_s3 = inlined_call_operand.vmem [shape: bf16[256,128], index: 3, kind: input, shape index: {}]   ;;  %s1678_s4 = inlined_call_operand.vmem [shape: f32[1,128], index: 4, kind: input, shape index: {}]   ;;  %s1679_s5 = inlined_call_operand.vmem [shape: f32[1,128], index: 5, kind: input, shape index: {}]   ;;  %s1680_s6 = inlined_call_operand.vmem [shape: f32[1,128], index: 6, kind: input, shape index: {}]   ;;  %s1681_s7 = inlined_call_operand.hbm [shape: f32[2,256,128], index: 7, kind: output, shape index: {}]  }
   0x1   :  { %14 = vsyncpa [#allocation3 + $0x1], 0  ;;  %s1327_s24 = smov 0   ;;  %s1329_s25 = smov 0  }
   0x2   :  { %s1331_s26 = smov 0   ;;  %s1333_s27 = smov 0  }
   0x3   :  { %s1335_s28 = smov 0   ;;  %s1337_s29 = smov 0  }
   0x4   :  { %s1339_s30 = smov 0   ;;  %s1341_s8 = smov 0  }
   0x5 LB: > { %1685 = sst [smem:[#allocation5_spill]] %s1277_s30  ;;  %s967_s9 = sadd.s32 4294967295, %s1281_s8   ;;  %s1281_s8 = sphi %s1341_s8, %s20_s8   ;;  %s1277_s30 = sphi %s1339_s30, %s1692_s30   ;;  %s1273_s29 = sphi %s1337_s29, %s1697_s29   ;;  %s1269_s28 = sphi %s1335_s28, %s1690_s28   ;;  %s1265_s27 = sphi %s1333_s27, %s1696_s27   ;;  %s1261_s26 = sphi %s1331_s26, %s1695_s26   ;;  %s1257_s25 = sphi %s1329_s25, %s1694_s25   ;;  %s1253_s24 = sphi %s1327_s24, %s1693_s24  }
   0x6   : > { %s968_s10 = sadd.s32 4294967294, %s1281_s8   ;;  %s29_s11 = sadd.s32 1, %s1273_s29 }
   0x7   : > { %p30_p0 = scmp.ge.s32.totalorder %s29_s11, 4  ;;  %s32_s12 = sadd.s32 1, %s1277_s30 }
   0x8   : > { %p205_p1 = scmp.ne.s32.totalorder %s1261_s26, %s1257_s25  ;;  %p206_p2 = scmp.eq.s32.totalorder %s967_s9, 7 }
   0x9   : > { %s1699_s11 = smov (%p30_p0, %s29_s11), 0  ;;  %s1701_s12 = smov (!%p30_p0, %s32_s12), %s1277_s30 }
   0xa   : > { %1686 = sst [smem:[#allocation6_spill]] %s1699_s11  ;;  %s191_s13 = ssub.s32 %s1273_s29, %s1699_s11 }
   0xb   : > { %p1378_p3 = por %p206_p2, %p205_p1  ;;  %p34_p4 = scmp.ge.s32.totalorder %s1701_s12, 2 }
   0xc   : > { %p211_p5 = scmp.ne.s32.totalorder %s1257_s25, %s1253_s24  ;;  %p212_p6 = scmp.eq.s32.totalorder %s968_s10, 7 }
   0xd   : > { %p971_p7 = scmp.ge.s32.totalorder %s1281_s8, 1  ;;  %s1703_s12 = smov (%p34_p4, %s1701_s12), 0 }
   0xe   : > { %1688 = sst [smem:[#allocation7_spill]] %s1703_s12  ;;  %p1387_p8 = por %p212_p6, %p211_p5 }
   0xf   : > { %p261_p9 = scmp.lt.s32.totalorder %s1281_s8, 9  ;;  %s190_s16 = ssub.s32 %s1277_s30, %s1703_s12 }
  0x10   : > { %s195_s17 = sadd.s32 1, %s1261_s26  ;;  %s192_s18 = sor.u32 %s191_s13, %s190_s16 }
  0x11   : > { %p262_p10 = pnand %p971_p7, %p261_p9  ;;  %p193_p11 = scmp.eq.s32.totalorder %s192_s18, 0 }
  0x12   : > { %v1131_v0 = vld [vmem:[%s1675_s1 + $0x4] ss:$8 sps:$4 sm:$0xff] (!%p262_p10)   ;;  %v1133_v1 = vld [vmem:[%s1675_s1] ss:$8 sps:$4 sm:$0xff] (!%p262_p10)   ;;  %v1283_v2 = vmov (!%p262_p10), 0   ;;  %s1415_s20 = sshll.u32 (!%p262_p10), %s1265_s27, 3  ;;  %v339_v45 = vlaneseq (!%p262_p10) }
  0x13   : > { %s1396_s19 = scalar_select %p193_p11, %s1261_s26, %s195_s17  }
  0x14   : > { %265 = sbr.rel (%p262_p10) target bundleno = 847 (0x34f), region = 48  ;;  %461 = vmatprep.mubr.bf16.mxu0 (!%p262_p10), %v1283_v2  ;;  %429 = vmatprep.subr.bf16.mxu0 (!%p262_p10), %v1131_v0  ;;  %v1134_v3 = vld [vmem:[%s1675_s1 + $0x14] ss:$8 sps:$4 sm:$0xff] (!%p262_p10)   ;;  %v1136_v4 = vld [vmem:[%s1675_s1 + $0x10] ss:$8 sps:$4 sm:$0xff] (!%p262_p10)   ;;  %p298_p12 = scmp.lt.s32.totalorder (!%p262_p10), %s1269_s28, 1 }
  0x15   : > { %430 = vmatpush1.bf16.msra.mxu0 (!%p262_p10), %v1133_v1  ;;  %v1137_v5 = vld [vmem:[%s1675_s1 + $0x24] ss:$8 sps:$4 sm:$0xff] (!%p262_p10)   ;;  %v1139_v6 = vld [vmem:[%s1675_s1 + $0x20] ss:$8 sps:$4 sm:$0xff] (!%p262_p10)   ;;  %p300_p13 = scmp.lt.s32.totalorder (!%p262_p10), %s1415_s20, 31  ;;  %v1159_v17 = vld [vmem:[%s1677_s3 + $0x50] sm:$0xff] (!%p262_p10)  }
  0x16   : > { %431 = vmatprep.subr.bf16.mxu0 (!%p262_p10), %v1134_v3  ;;  %v1140_v7 = vld [vmem:[%s1675_s1 + $0x34] ss:$8 sps:$4 sm:$0xff] (!%p262_p10)   ;;  %v1142_v8 = vld [vmem:[%s1675_s1 + $0x30] ss:$8 sps:$4 sm:$0xff] (!%p262_p10)   ;;  %v1143_v9 = vld [vmem:[%s1675_s1 + $0x44] ss:$8 sps:$4 sm:$0xff] (!%p262_p10)  }
  0x17   : > { %v1145_v10 = vld [vmem:[%s1675_s1 + $0x40] ss:$8 sps:$4 sm:$0xff] (!%p262_p10)   ;;  %v1146_v11 = vld [vmem:[%s1675_s1 + $0x54] ss:$8 sps:$4 sm:$0xff] (!%p262_p10)   ;;  %v1148_v15 = vld [vmem:[%s1675_s1 + $0x50] ss:$8 sps:$4 sm:$0xff] (!%p262_p10)  }
  0x18   : > { %v1155_v12 = vld [vmem:[%s1677_s3 + $0x40] sm:$0xff] (!%p262_p10)   ;;  %v1157_v14 = vld [vmem:[%s1677_s3 + $0x48] sm:$0xff] (!%p262_p10)   ;;  %v1160_v20 = vld [vmem:[%s1677_s3 + $0x10] sm:$0xff] (!%p262_p10)   ;;  %v340_v46 = vshrl.u32 (!%p262_p10), %v339_v45, 7  ;;  %s1013_s12 = sshll.u32 (!%p262_p10), %s1269_s28, 5  ;;  %s1284_s16 = smov (!%p262_p10), [#allocation2]  }
  0x19   : > { %432 = vmatpush1.bf16.msra.mxu0 (!%p262_p10), %v1136_v4  ;;  %v1156_v13 = vld [vmem:[%s1677_s3] sm:$0xff] (!%p262_p10)   ;;  %1017 = vmatprep.subr.bf16.mxu1 (!%p262_p10), %v1155_v12  ;;  %v1158_v16 = vld [vmem:[%s1677_s3 + $0x8] sm:$0xff] (!%p262_p10)   ;;  %v1161_v21 = vld [vmem:[%s1677_s3 + $0x58] sm:$0xff] (!%p262_p10)   ;;  %s882_s22 = sadd.s32 (!%p262_p10), %s1013_s12, %s1415_s20 }
  0x1a   : > { %433 = vmatprep.subr.bf16.mxu0 (!%p262_p10), %v1137_v5  ;;  %1018 = vmatpush3.bf16.msra.mxu1 (!%p262_p10), %v1156_v13  ;;  %v1149_v18 = vld [vmem:[%s1675_s1 + $0x64] ss:$8 sps:$4 sm:$0xff] (!%p262_p10)   ;;  %v1151_v19 = vld [vmem:[%s1675_s1 + $0x60] ss:$8 sps:$4 sm:$0xff] (!%p262_p10)   ;;  %v1152_v22 = vld [vmem:[%s1675_s1 + $0x74] ss:$8 sps:$4 sm:$0xff] (!%p262_p10)  }
  0x1b   : > { %s299_s10 = scalar_select %p298_p12, %s1269_s28, 1  ;;  %1019 = vmatprep.subr.bf16.mxu1 %v1157_v14  ;;  %v1162_v23 = vld [vmem:[%s1677_s3 + $0x18] sm:$0xff]   ;;  %v1163_v24 = vld [vmem:[%s1677_s3 + $0x60] sm:$0xff]   ;;  %v1165_v30 = vld [vmem:[%s1677_s3 + $0x68] sm:$0xff]   ;;  %v341_v47 = vsub.s32 0, %v340_v46  ;;  %v345_v49 = vsub.s32 1, %v340_v46 }
  0x1c   : > { %s301_s27 = scalar_select %p300_p13, %s1415_s20, 31  ;;  %v1154_v25 = vld [vmem:[%s1675_s1 + $0x70] ss:$8 sps:$4 sm:$0xff]   ;;  %v1164_v28 = vld [vmem:[%s1677_s3 + $0x20] sm:$0xff]   ;;  %v1166_v40 = vld [vmem:[%s1677_s3 + $0x28] sm:$0xff]  }
  0x1d   : > { %434 = vmatpush1.bf16.msra.mxu0 %v1139_v6  ;;  %s974_s21 = sshll.u32 %s299_s10, 5  ;;  %v1167_v41 = vld [vmem:[%s1677_s3 + $0x70] sm:$0xff]   ;;  %v1169_v43 = vld [vmem:[%s1677_s3 + $0x78] sm:$0xff]   ;;  %v337_v48 = vld [vmem:[%s1676_s2] sm:$0x3]  ;;  %s1014_s11 = sshll.u32 %s882_s22, 7 }
  0x1e   : > { %435 = vmatprep.subr.bf16.mxu0 %v1140_v7  ;;  %s303_s17 = sadd.s32 %s974_s21, %s301_s27  ;;  %1020 = vmatpush3.bf16.msra.mxu1 %v1158_v16  ;;  %v1168_v42 = vld [vmem:[%s1677_s3 + $0x30] sm:$0xff]   ;;  %v1170_v44 = vld [vmem:[%s1677_s3 + $0x38] sm:$0xff]   ;;  %v342_v50 = vrot.slane %v337_v48, %v341_v47  ;;  %v346_v51 = vrot.slane %v337_v48, %v345_v49  ;;  %s294_s21 = sand.u32 1, %s1257_s25  }
  0x1f   : > { %s975_s27 = sshll.u32 %s303_s17, 3  ;;  %1021 = vmatprep.subr.bf16.mxu1 %v1159_v17  ;;  %s972_s10 = sshll.u32 %s294_s21, 6 }
  0x20   : > { %s1469_s30 = scalar_lea.vmem %s1674_s0, %s975_s27  ;;  %s1594_s18 = scalar_lea.vmem [#allocation2], %s972_s10 }
  0x21   : > { %436 = vmatpush1.bf16.msra.mxu0 %v1142_v8  ;;  %v1487_v26 = vld [vmem:[%s1469_s30] sm:$0xff]  ;;  %v1490_v27 = vld [vmem:[%s1469_s30 + $0x8] sm:$0xff]  ;;  %v1502_v31 = vld [vmem:[%s1469_s30 + $0x10] sm:$0xff]  ;;  %s885_s17 = sshll.u32 %s1594_s18, 4  ;;  %s1614_s9 = scalar_lea.hbm %s1681_s7, %s1014_s11  ;;  %s1616_s17 = int_to_ptr.vmem [resolvable:$true] %s885_s17 }
  0x22   : > { %437 = vmatprep.subr.bf16.mxu0 %v1143_v9  ;;  %1022 = vmatpush3.bf16.msra.mxu1 %v1160_v20  ;;  %v317_v29 = vpack.c.bf16 %v1490_v27, %v1487_v26  ;;  %v1505_v32 = vld [vmem:[%s1469_s30 + $0x18] sm:$0xff]  ;;  %v1511_v34 = vld [vmem:[%s1469_s30 + $0x20] sm:$0xff]  ;;  %v1514_v35 = vld [vmem:[%s1469_s30 + $0x28] sm:$0xff]  ;;  %s1622_s20 = scalar_lea.sflag [#allocation3], %s294_s21  ;;  %s1187_s13 = scalar_lea.vmem %s1616_s17, 1024 }
  0x23   : > { %1023 = vmatprep.subr.bf16.mxu1 %v1161_v21  ;;  %v318_v33 = vpack.c.bf16 %v1505_v32, %v1502_v31  ;;  %v319_v36 = vpack.c.bf16 %v1514_v35, %v1511_v34  ;;  %v1520_v37 = vld [vmem:[%s1469_s30 + $0x30] sm:$0xff]  ;;  %v1523_v38 = vld [vmem:[%s1469_s30 + $0x38] sm:$0xff]  ;;  %p1188_p0 = scmp.ne.s32.totalorder %s1616_s17, %s1187_s13  ;;  %s1191_s10 = sshll.u32 %s1284_s16, 4  ;;  %s1192_s10 = int_to_ptr.vmem [resolvable:$false] %s1191_s10 }
  0x24   : > { %v320_v39 = vpack.c.bf16 %v1523_v38, %v1520_v37  ;;  %s1193_s27 = scalar_lea.vmem %s1192_s10, 2048  ;;  %p1194_p4 = scmp.lt.s32.totalorder %s1616_s17, %s1192_s10 }
  0x25   : > { %438 = vmatpush1.bf16.msra.mxu0 %v1145_v10  ;;  %p1189_p1 = pnand %p1188_p0, %p1378_p3  ;;  %p1195_p5 = scmp.lt.s32.totalorder %s1193_s27, %s1187_s13 }
  0x26   : > { %439 = vmatprep.subr.bf16.mxu0 %v1146_v11  ;;  %1024 = vmatpush3.bf16.msra.mxu1 %v1162_v23 }
  0x27   : > { %1025 = vmatprep.subr.bf16.mxu1 %v1163_v24  ;;  %p1190_p2 = pneg %p1189_p1  ;;  %p1196_p6 = por %p1195_p5, %p1194_p4 }
  0x29   : > { %440 = vmatpush1.bf16.msra.mxu0 %v1148_v15  ;;  %p1197_p7 = pnand %p1196_p6, %p1190_p2 }
  0x2a   : > { %441 = vmatprep.subr.bf16.mxu0 %v1149_v18  ;;  %1026 = vmatpush3.bf16.msra.mxu1 %v1164_v28 }
  0x2b   : > { %1027 = vmatprep.subr.bf16.mxu1 %v1165_v30 }
  0x2d   : > { %442 = vmatpush1.bf16.msra.mxu0 %v1151_v19 }
  0x2e   : > { %443 = vmatprep.subr.bf16.mxu0 %v1152_v22  ;;  %1028 = vmatpush3.bf16.msra.mxu1 %v1166_v40 }
  0x2f   : > { %1029 = vmatprep.subr.bf16.mxu1 %v1167_v41 }
  0x31   : > { %444 = vmatpush1.bf16.msra.mxu0 %v1154_v25 }
  0x32   : > { %1030 = vmatpush3.bf16.msra.mxu1 %v1168_v42 }
  0x33   : > { %1031 = vmatprep.subr.bf16.mxu1 %v1169_v43 }
  0x34   : > { %462 = vmatmul.mubr.bf16.vlgmr.msra.gmra.mrb[0].mxu0 %v317_v29 }
  0x35   : > { %471 = vmatprep.mubr.bf16.mxu0 %v1283_v2 }
  0x36   : > { %1032 = vmatpush3.bf16.msra.mxu1 %v1170_v44 }
  0x3c   : > { %472 = vmatmul.mubr.bf16.gmra.mrb[4].mxu0 %v318_v33 }
  0x3d   : > { %481 = vmatprep.mubr.bf16.mxu0 %v1283_v2 }
  0x44   : > { %482 = vmatmul.mubr.bf16.gmra.mrb[8].mxu0 %v319_v36 }
  0x45   : > { %491 = vmatprep.mubr.bf16.mxu0 %v1283_v2 }
  0x4c   : > { %492 = vmatmul.mubr.bf16.gmra.mrb[12].mxu0 %v320_v39 }
 0x107   : > { %v463_v52 = vpop.f32.mrb[0].mxu0 }
 0x108   : > { %v464_v53 = vadd.f32 %v463_v52, %v342_v50  ;;  %v465_v54 = vpop.f32.mrb[1].mxu0 }
 0x109   : > { %v466_v55 = vadd.f32 %v465_v54, %v346_v51  ;;  %v467_v56 = vpop.f32.mrb[2].mxu0 }
 0x10a   : > { %v468_v57 = vadd.f32 %v467_v56, %v342_v50  ;;  %v469_v58 = vpop.f32.mrb[3].mxu0  ;;  %v502_v60 = vmax.f32 %v464_v53, 0.0 }
 0x10b   : > { %v470_v59 = vadd.f32 %v469_v58, %v346_v51  ;;  %v503_v62 = vmax.f32 %v466_v55, 0.0  ;;  %v992_v55 = vld [vmem:[%s1678_s4] ss:$0 sm:$0xff] }
 0x10c   : > { %v504_v61 = vmax.f32 %v468_v57, 0.0 }
 0x10d   : > { %v505_v63 = vmax.f32 %v470_v59, 0.0 }
 0x10e   : > { %v518_v0 = vpack.c.bf16 %v504_v61, %v502_v60 }
 0x10f   : > { %v473_v1 = vpop.f32.mrb[4].mxu0  ;;  %v519_v2 = vpack.c.bf16 %v505_v63, %v503_v62 }
 0x110   : > { %v474_v3 = vadd.f32 %v473_v1, %v342_v50  ;;  %v475_v4 = vpop.f32.mrb[5].mxu0 }
 0x111   : > { %v476_v5 = vadd.f32 %v475_v4, %v346_v51  ;;  %v477_v6 = vpop.f32.mrb[6].mxu0  ;;  %693 = vmatprep.mubr.bf16.mxu1 %v519_v2 }
 0x112   : > { %v478_v7 = vadd.f32 %v477_v6, %v342_v50  ;;  %v479_v8 = vpop.f32.mrb[7].mxu0  ;;  %694 = vmatmul.mubr.bf16.vlgmr.msra.gmra.mrb[0].mxu1 %v518_v0  ;;  %v506_v10 = vmax.f32 %v474_v3, 0.0 }
 0x113   : > { %v480_v9 = vadd.f32 %v479_v8, %v346_v51  ;;  %v507_v12 = vmax.f32 %v476_v5, 0.0 }
 0x114   : > { %v508_v11 = vmax.f32 %v478_v7, 0.0 }
 0x115   : > { %v509_v13 = vmax.f32 %v480_v9, 0.0 }
 0x116   : > { %v520_v14 = vpack.c.bf16 %v508_v11, %v506_v10 }
 0x117   : > { %v521_v15 = vpack.c.bf16 %v509_v13, %v507_v12  ;;  %v483_v16 = vpop.f32.mrb[8].mxu0 }
 0x118   : > { %v484_v17 = vadd.f32 %v483_v16, %v342_v50  ;;  %v485_v18 = vpop.f32.mrb[9].mxu0 }
 0x119   : > { %v486_v19 = vadd.f32 %v485_v18, %v346_v51  ;;  %v487_v20 = vpop.f32.mrb[10].mxu0  ;;  %701 = vmatprep.mubr.bf16.mxu1 %v521_v15 }
 0x11a   : > { %v488_v21 = vadd.f32 %v487_v20, %v342_v50  ;;  %v489_v22 = vpop.f32.mrb[11].mxu0  ;;  %702 = vmatmul.mubr.bf16.gmra.mrb[4].mxu1 %v520_v14  ;;  %v510_v24 = vmax.f32 %v484_v17, 0.0 }
 0x11b   : > { %v490_v23 = vadd.f32 %v489_v22, %v346_v51  ;;  %v511_v28 = vmax.f32 %v486_v19, 0.0 }
 0x11c   : > { %v512_v25 = vmax.f32 %v488_v21, 0.0 }
 0x11d   : > { %v513_v29 = vmax.f32 %v490_v23, 0.0 }
 0x11e   : > { %v522_v30 = vpack.c.bf16 %v512_v25, %v510_v24 }
 0x11f   : > { %v523_v33 = vpack.c.bf16 %v513_v29, %v511_v28  ;;  %v493_v36 = vpop.f32.mrb[12].mxu0 }
 0x120   : > { %v494_v39 = vadd.f32 %v493_v36, %v342_v50  ;;  %v495_v40 = vpop.f32.mrb[13].mxu0 }
 0x121   : > { %v496_v41 = vadd.f32 %v495_v40, %v346_v51  ;;  %v497_v42 = vpop.f32.mrb[14].mxu0  ;;  %709 = vmatprep.mubr.bf16.mxu1 %v523_v33 }
 0x122   : > { %v498_v43 = vadd.f32 %v497_v42, %v342_v50  ;;  %v499_v44 = vpop.f32.mrb[15].mxu0  ;;  %710 = vmatmul.mubr.bf16.gmra.mrb[8].mxu1 %v522_v30  ;;  %v514_v46 = vmax.f32 %v494_v39, 0.0 }
 0x123   : > { %v500_v45 = vadd.f32 %v499_v44, %v346_v51  ;;  %v515_v48 = vmax.f32 %v496_v41, 0.0 }
 0x124   : > { %v516_v47 = vmax.f32 %v498_v43, 0.0 }
 0x125   : > { %v517_v49 = vmax.f32 %v500_v45, 0.0 }
 0x126   : > { %v524_v52 = vpack.c.bf16 %v516_v47, %v514_v46 }
 0x127   : > { %v525_v53 = vpack.c.bf16 %v517_v49, %v515_v48 }
 0x129   : > { %717 = vmatprep.mubr.bf16.mxu1 %v525_v53 }
 0x12a   : > { %718 = vmatmul.mubr.bf16.gmra.mrb[12].mxu1 %v524_v52 }
 0x1e5   : > { %v1033_v54 = vpop.f32.mrb[0].mxu1 }
 0x1e6   : > { %v1034_v56 = vpop.f32.mrb[1].mxu1 }
 0x1e7   : > { %v1035_v57 = vadd.f32 %v1034_v56, %v1033_v54  ;;  %v1036_v58 = vpop.f32.mrb[2].mxu1 }
 0x1e8   : > { %v1037_v50 = vpop.f32.mrb[3].mxu1 }
 0x1e9   : > { %v696_v59 = vadd.f32 %v1035_v57, %v992_v55  ;;  %v1038_v60 = vadd.f32 %v1037_v50, %v1036_v58 }
 0x1eb   : > { %v726_v51 = vmax.f32 %v696_v59, 0.0  ;;  %v699_v61 = vadd.f32 %v1038_v60, %v992_v55 }
 0x1ed   : > { %v727_v62 = vmax.f32 %v699_v61, 0.0  ;;  %v1039_v63 = vpop.f32.mrb[4].mxu1  ;;  %v734_v0 = vadd.f32 %v726_v51, %v1487_v26 }
 0x1ee   : > { %v1040_v1 = vpop.f32.mrb[5].mxu1 }
 0x1ef   : > { %v1041_v2 = vadd.f32 %v1040_v1, %v1039_v63  ;;  %v1042_v3 = vpop.f32.mrb[6].mxu1  ;;  %742 = vadd.xlane.f32.xlu0 %v734_v0  ;;  %v735_v7 = vadd.f32 %v727_v62, %v1490_v27 }
 0x1f0   : > { %v1043_v4 = vpop.f32.mrb[7].mxu1 }
 0x1f1   : > { %v704_v5 = vadd.f32 %v1041_v2, %v992_v55  ;;  %v1044_v6 = vadd.f32 %v1043_v4, %v1042_v3 }
 0x1f3   : > { %v728_v8 = vmax.f32 %v704_v5, 0.0  ;;  %v707_v9 = vadd.f32 %v1044_v6, %v992_v55  ;;  %744 = vadd.xlane.f32.xlu0 %v735_v7 }
 0x1f5   : > { %v729_v10 = vmax.f32 %v707_v9, 0.0  ;;  %v1045_v11 = vpop.f32.mrb[8].mxu1  ;;  %v736_v12 = vadd.f32 %v728_v8, %v1502_v31 }
 0x1f6   : > { %v1046_v13 = vpop.f32.mrb[9].mxu1 }
 0x1f7   : > { %v1047_v14 = vadd.f32 %v1046_v13, %v1045_v11  ;;  %v1048_v15 = vpop.f32.mrb[10].mxu1  ;;  %746 = vadd.xlane.f32.xlu1 %v736_v12  ;;  %v737_v18 = vadd.f32 %v729_v10, %v1505_v32 }
 0x1f8   : > { %v1049_v26 = vpop.f32.mrb[11].mxu1 }
 0x1f9   : > { %v712_v16 = vadd.f32 %v1047_v14, %v992_v55  ;;  %v1050_v17 = vadd.f32 %v1049_v26, %v1048_v15 }
 0x1fb   : > { %v730_v19 = vmax.f32 %v712_v16, 0.0  ;;  %v715_v20 = vadd.f32 %v1050_v17, %v992_v55  ;;  %748 = vadd.xlane.f32.xlu1 %v737_v18  ;;  %v1009_v16 = vld [vmem:[%s1679_s5] ss:$0 sm:$0xff] }
 0x1fd   : > { %v731_v27 = vmax.f32 %v715_v20, 0.0  ;;  %v1051_v21 = vpop.f32.mrb[12].mxu1  ;;  %v738_v22 = vadd.f32 %v730_v19, %v1511_v34  ;;  %v1010_v20 = vld [vmem:[%s1680_s6] ss:$0 sm:$0xff] }
 0x1fe   : > { %v1052_v23 = vpop.f32.mrb[13].mxu1 }
 0x1ff   : > { %v1053_v24 = vadd.f32 %v1052_v23, %v1051_v21  ;;  %v1054_v25 = vpop.f32.mrb[14].mxu1  ;;  %750 = vadd.xlane.f32.xlu0 %v738_v22  ;;  %v739_v31 = vadd.f32 %v731_v27, %v1514_v35 }
 0x200   : > { %v1055_v28 = vpop.f32.mrb[15].mxu1 }
 0x201   : > { %v720_v29 = vadd.f32 %v1053_v24, %v992_v55  ;;  %v1056_v30 = vadd.f32 %v1055_v28, %v1054_v25  ;;  %752 = vadd.xlane.f32.xlu1 %v739_v31 }
 0x203   : > { %v732_v33 = vmax.f32 %v720_v29, 0.0  ;;  %v723_v36 = vadd.f32 %v1056_v30, %v992_v55 }
 0x205   : > { %v733_v32 = vmax.f32 %v723_v36, 0.0  ;;  %v740_v39 = vadd.f32 %v732_v33, %v1520_v37 }
 0x207   : > { %754 = vadd.xlane.f32.xlu0 %v740_v39  ;;  %v741_v40 = vadd.f32 %v733_v32, %v1523_v38 }
 0x209   : > { %756 = vadd.xlane.f32.xlu1 %v741_v40 }
 0x27c   : > { %v743_v34 = vpop.xlane.xlu0 %742 }
 0x27d   : > { %v759_v41 = vmul.f32 0.0078125, %v743_v34 }
 0x27f   : > { %v767_v42 = vsub.f32 %v734_v0, %v759_v41 }
 0x280   : > { %v745_v43 = vpop.xlane.xlu0 %744 }
 0x281   : > { %v760_v44 = vmul.f32 0.0078125, %v745_v43  ;;  %v775_v45 = vmul.f32 %v767_v42, %v767_v42 }
 0x283   : > { %v1556_v35 = vsub.f32 %v735_v7, %v760_v44  ;;  %783 = vadd.xlane.f32.xlu0 %v775_v45 }
 0x284   : > { %v747_v46 = vpop.xlane.xlu1 %746 }
 0x285   : > { %v761_v47 = vmul.f32 0.0078125, %v747_v46  ;;  %v776_v48 = vmul.f32 %v1556_v35, %v1556_v35 }
 0x287   : > { %v1560_v49 = vsub.f32 %v736_v12, %v761_v47  ;;  %785 = vadd.xlane.f32.xlu1 %v776_v48 }
 0x288   : > { %v749_v37 = vpop.xlane.xlu1 %748 }
 0x289   : > { %v762_v38 = vmul.f32 0.0078125, %v749_v37  ;;  %v777_v52 = vmul.f32 %v1560_v49, %v1560_v49 }
 0x28b   : > { %v1564_v53 = vsub.f32 %v737_v18, %v762_v38  ;;  %787 = vadd.xlane.f32.xlu0 %v777_v52 }
 0x28c   : > { %v751_v54 = vpop.xlane.xlu0 %750 }
 0x28d   : > { %v763_v55 = vmul.f32 0.0078125, %v751_v54  ;;  %v778_v56 = vmul.f32 %v1564_v53, %v1564_v53 }
 0x28e   : > { %v753_v57 = vpop.xlane.xlu1 %752 }
 0x28f   : > { %v1568_v58 = vsub.f32 %v738_v22, %v763_v55  ;;  %v764_v50 = vmul.f32 0.0078125, %v753_v57  ;;  %789 = vadd.xlane.f32.xlu1 %v778_v56 }
 0x291   : > { %v1570_v59 = vsub.f32 %v739_v31, %v764_v50  ;;  %v779_v60 = vmul.f32 %v1568_v58, %v1568_v58 }
 0x293   : > { %791 = vadd.xlane.f32.xlu0 %v779_v60  ;;  %v780_v51 = vmul.f32 %v1570_v59, %v1570_v59 }
 0x294   : > { %v755_v61 = vpop.xlane.xlu0 %754 }
 0x295   : > { %v765_v62 = vmul.f32 0.0078125, %v755_v61  ;;  %793 = vadd.xlane.f32.xlu1 %v780_v51 }
 0x296   : > { %v757_v63 = vpop.xlane.xlu1 %756 }
 0x297   : > { %v1576_v0 = vsub.f32 %v740_v39, %v765_v62  ;;  %v766_v1 = vmul.f32 0.0078125, %v757_v63 }
 0x299   : > { %v1578_v2 = vsub.f32 %v741_v40, %v766_v1  ;;  %v781_v3 = vmul.f32 %v1576_v0, %v1576_v0 }
 0x29b   : > { %795 = vadd.xlane.f32.xlu0 %v781_v3  ;;  %v782_v4 = vmul.f32 %v1578_v2, %v1578_v2 }
 0x29d   : > { %797 = vadd.xlane.f32.xlu1 %v782_v4 }
 0x310   : > { %v784_v5 = vpop.xlane.xlu0 %783 }
 0x311   : > { %v799_v6 = vmul.f32 0.0078125, %v784_v5 }
 0x313   : > { %v807_v7 = vadd.f32 1e-05, %v799_v6 }
 0x314   : > { %v786_v8 = vpop.xlane.xlu1 %785 }
 0x315   : > { %1171 = vrsqrt.f32 %v807_v7  ;;  %v800_v9 = vmul.f32 0.0078125, %v786_v8 }
 0x317   : > { %v808_v10 = vadd.f32 1e-05, %v800_v9 }
 0x318   : > { %v788_v11 = vpop.xlane.xlu0 %787 }
 0x319   : > { %1173 = vrsqrt.f32 %v808_v10  ;;  %v801_v12 = vmul.f32 0.0078125, %v788_v11 }
 0x31b   : > { %v809_v13 = vadd.f32 1e-05, %v801_v12 }
 0x31c   : > { %v790_v14 = vpop.xlane.xlu1 %789 }
 0x31d   : > { %1175 = vrsqrt.f32 %v809_v13  ;;  %v802_v15 = vmul.f32 0.0078125, %v790_v14 }
 0x31f   : > { %v1172_v26 = vpop.eup %1171  ;;  %v810_v17 = vadd.f32 1e-05, %v802_v15 }
 0x320   : > { %v823_v18 = vmul.f32 %v1172_v26, %v767_v42  ;;  %v792_v19 = vpop.xlane.xlu0 %791 }
 0x321   : > { %1177 = vrsqrt.f32 %v810_v17  ;;  %v803_v27 = vmul.f32 0.0078125, %v792_v19 }
 0x322   : > { %v838_v21 = vmul.f32 %v1009_v16, %v823_v18  ;;  %v794_v22 = vpop.xlane.xlu1 %793 }
 0x323   : > { %v1174_v23 = vpop.eup %1173  ;;  %v811_v24 = vadd.f32 1e-05, %v803_v27  ;;  %v804_v25 = vmul.f32 0.0078125, %v794_v22 }
 0x324   : > { %v853_v31 = vadd.f32 %v1010_v20, %v838_v21  ;;  %v824_v28 = vmul.f32 %v1174_v23, %v1556_v35 }
 0x325   : > { %1179 = vrsqrt.f32 %v811_v24  ;;  %v812_v29 = vadd.f32 1e-05, %v804_v25 }
 0x326   : > { %861 = vst [vmem:[%s1594_s18] sm:$0xff] %v853_v31  ;;  %v839_v30 = vmul.f32 %v1009_v16, %v824_v28 }
 0x327   : > { %v1176_v33 = vpop.eup %1175  ;;  %1181 = vrsqrt.f32 %v812_v29 }
 0x328   : > { %v854_v36 = vadd.f32 %v1010_v20, %v839_v30  ;;  %v825_v32 = vmul.f32 %v1176_v33, %v1560_v49  ;;  %v796_v39 = vpop.xlane.xlu0 %795 }
 0x329   : > { %v805_v40 = vmul.f32 0.0078125, %v796_v39 }
 0x32a   : > { %862 = vst [vmem:[%s1594_s18 + $0x8] sm:$0xff] %v854_v36  ;;  %v840_v34 = vmul.f32 %v1009_v16, %v825_v32  ;;  %v798_v41 = vpop.xlane.xlu1 %797 }
 0x32b   : > { %v1178_v42 = vpop.eup %1177  ;;  %v813_v43 = vadd.f32 1e-05, %v805_v40  ;;  %v806_v44 = vmul.f32 0.0078125, %v798_v41 }
 0x32c   : > { %v855_v45 = vadd.f32 %v1010_v20, %v840_v34  ;;  %v826_v35 = vmul.f32 %v1178_v42, %v1564_v53 }
 0x32d   : > { %1183 = vrsqrt.f32 %v813_v43  ;;  %v814_v46 = vadd.f32 1e-05, %v806_v44 }
 0x32e   : > { %863 = vst [vmem:[%s1594_s18 + $0x10] sm:$0xff] %v855_v45  ;;  %v841_v47 = vmul.f32 %v1009_v16, %v826_v35 }
 0x32f   : > { %v1180_v48 = vpop.eup %1179  ;;  %1185 = vrsqrt.f32 %v814_v46 }
 0x330   : > { %v856_v49 = vadd.f32 %v1010_v20, %v841_v47  ;;  %v827_v37 = vmul.f32 %v1180_v48, %v1568_v58 }
 0x331   : > { %v1182_v38 = vpop.eup %1181 }
 0x332   : > { %864 = vst [vmem:[%s1594_s18 + $0x18] sm:$0xff] %v856_v49  ;;  %v842_v52 = vmul.f32 %v1009_v16, %v827_v37  ;;  %v828_v54 = vmul.f32 %v1182_v38, %v1570_v59 }
 0x334   : > { %v857_v53 = vadd.f32 %v1010_v20, %v842_v52  ;;  %v843_v55 = vmul.f32 %v1009_v16, %v828_v54 }
 0x336   : > { %865 = vst [vmem:[%s1594_s18 + $0x20] sm:$0xff] %v857_v53  ;;  %v858_v56 = vadd.f32 %v1010_v20, %v843_v55 }
 0x337   : > { %v1184_v57 = vpop.eup %1183 }
 0x338   : > { %866 = vst [vmem:[%s1594_s18 + $0x28] sm:$0xff] %v858_v56  ;;  %v829_v50 = vmul.f32 %v1184_v57, %v1576_v0 }
 0x339   : > { %v1186_v58 = vpop.eup %1185 }
 0x33a   : > { %v844_v60 = vmul.f32 %v1009_v16, %v829_v50  ;;  %v830_v51 = vmul.f32 %v1186_v58, %v1578_v2 }
 0x33c   : > { %v859_v59 = vadd.f32 %v1010_v20, %v844_v60  ;;  %v845_v61 = vmul.f32 %v1009_v16, %v830_v51 }
 0x33e   : > { %867 = vst [vmem:[%s1594_s18 + $0x30] sm:$0xff] %v859_v59  ;;  %v860_v62 = vadd.f32 %v1010_v20, %v845_v61 }
 0x340   : > { %868 = vst [vmem:[%s1594_s18 + $0x38] sm:$0xff] %v860_v62 }
 0x341   : > { %1200 = shalt.err (!%p1197_p7)
}
 0x342   : > { %s1201_s21 = scalar_lea.hbm %s1614_s9, 1024  ;;  %s1205_s12 = scalar_lea.hbm %s1681_s7, 8192 }
 0x343   : > { %p1202_p9 = scmp.ne.s32.totalorder %s1614_s9, %s1201_s21  ;;  %p1206_p12 = scmp.lt.u32.totalorder %s1614_s9, %s1681_s7 }
 0x344   : > { %p1207_p13 = scmp.lt.u32.totalorder %s1205_s12, %s1201_s21  ;;  %p1209_p1 = scmp.lt.u32.totalorder %s1201_s21, %s1614_s9 }
 0x345   : > { %p1203_p10 = pnand %p1202_p9, %p1378_p3 }
 0x346   : > { %p1208_p0 = por %p1207_p13, %p1206_p12 }
 0x347   : > { %p1204_p11 = pneg %p1203_p10 }
 0x348   : > { %p1210_p2 = por %p1209_p1, %p1208_p0 }
 0x34a   : > { %p1211_p4 = pnand %p1210_p2, %p1204_p11 }
 0x34c   : > { %1214 = shalt.err (!%p1211_p4)
}
 0x34d   : > { %s1285_s28 = smov 128   ;;  %s1286_s23 = smov 8  }
 0x34e   : > { %1057 = dma.vmem_to_hbm [thread:$0]  (%p1378_p3), %s1616_s17, 1024, %s1614_s9, %s1622_s20, %s1285_s28, %s1285_s28, %s1286_s23  }
 0x34f PF: > { %p1063_p5 = scmp.ge.s32.totalorder %s1281_s8, 2  ;;  %s900_s13 = sand.u32 1, %s1253_s24  }
 0x350   : > { %s901_s16 = scalar_lea.sflag [#allocation3], %s900_s13 }
 0x351   : > { %p1060_p6 = pnand %p1063_p5, %p1387_p8 }
 0x353   : > { %1248 = dma.done.wait (!%p1060_p6), %s901_s16, 1024  }
 0x354   : > { %1250 = vsyncadd (!%p1060_p6), %s901_s16, 4294966272  ;;  %s20_s8 = sadd.s32 1, %s1281_s8   ;;  %s1690_s28 = sld [smem:[#allocation5_spill]] }
 0x355   : > { %p17_p7 = scmp.ge.s32.totalorder %s20_s8, 10   ;;  %s1691_s14 = sld [smem:[#allocation6_spill]] }
 0x356   : > { %s1692_s30 = sld [smem:[#allocation7_spill]]  ;;  %s1693_s24 = smov %s1257_s25 }
 0x357   : > { %s1694_s25 = smov %s1261_s26  ;;  %s1695_s26 = smov %s1396_s19 }
 0x358   : > { %s1696_s27 = smov %s1273_s29  ;;  %19 = sbr.rel (!%p17_p7) target bundleno = 5 (0x5), region = 83 }
 0x35b   : > { %s1697_s29 = smov %s1691_s14 }
 0x35f   :  { %906 = vsyncpa [#allocation3], 1 }
 0x360   :  { %908 = vsyncpa [#allocation3 + $0x1], 1 }

// kernel: transformer_decoder_layer.13
= control target key start
LH: loop header
LB: loop body
LE: loop exit
PB: predicated region body
PF: predicated region fallthrough
CT: control target
= control target key end

     0   :  { %s4583_s15 = smov 0   ;;  %s4585_s16 = smov 0   ;;  %s6045_s0 = inlined_call_operand.vmem [shape: bf16[2,4,256,32], index: 0, kind: input, shape index: {}]   ;;  %s6046_s1 = inlined_call_operand.vmem [shape: bf16[2,4,128,32], index: 1, kind: input, shape index: {}]   ;;  %s6047_s2 = inlined_call_operand.vmem [shape: bf16[2,4,128,32], index: 2, kind: input, shape index: {}]   ;;  %s6048_s3 = inlined_call_operand.vmem [shape: s8[2,256,128], index: 3, kind: input, shape index: {}]   ;;  %s6049_s4 = inlined_call_operand.vmem [shape: bf16[2,4,256,32], index: 4, kind: output, shape index: {}]  }
   0x1   :  { %s4587_s17 = smov 0   ;;  %s4589_s18 = smov 0  }
   0x2   :  { %s4591_s19 = smov 0   ;;  %s4593_s20 = smov 0  }
   0x3   :  { %s4595_s21 = smov 0  }
   0x4 LB: > { %s29_s22 = sadd.s32 1, %s4545_s19  ;;  %s33_s23 = sadd.s32 1, %s4549_s20  ;;  %s4553_s21 = sphi %s4595_s21, %s14_s21   ;;  %s4549_s20 = sphi %s4593_s20, %s6215_s20   ;;  %s4545_s19 = sphi %s4591_s19, %s6214_s19   ;;  %s4541_s18 = sphi %s4589_s18, %s6213_s18   ;;  %s4537_s17 = sphi %s4587_s17, %s6212_s17   ;;  %s4533_s16 = sphi %s4585_s16, %s6211_s16   ;;  %s4529_s15 = sphi %s4583_s15, %s6210_s15  }
   0x5   : > { %p31_p0 = scmp.ge.s32.totalorder %s29_s22, 4  ;;  %s3660_s24 = sadd.s32 4294967295, %s4553_s21  }
   0x6   : > { %p49_p1 = scmp.ne.s32.totalorder %s4533_s16, %s4529_s15  ;;  %p50_p2 = scmp.eq.s32.totalorder %s4553_s21, 0 }
   0x7   : > { %s6217_s22 = smov (%p31_p0, %s29_s22), 0  ;;  %s6219_s23 = smov (!%p31_p0, %s33_s23), %s4549_s20 }
   0x8   : > { %p35_p3 = scmp.ge.s32.totalorder %s6219_s23, 2  ;;  %p167_p4 = scmp.eq.s32.totalorder %s3660_s24, 7 }
   0x9   : > { %s38_s25 = ssub.s32 %s4545_s19, %s6217_s22  ;;  %p51_p5 = por %p50_p2, %p49_p1 }
   0xa   : > { %s6221_s23 = smov (%p35_p3, %s6219_s23), 0  ;;  %p4631_p6 = por %p167_p4, %p49_p1 }
   0xb   : > { %s37_s27 = ssub.s32 %s4549_s20, %s6221_s23  ;;  %s42_s29 = sadd.s32 1, %s4533_s16 }
   0xc   : > { %s39_s28 = sor.u32 %s38_s25, %s37_s27  ;;  %p3663_p8 = scmp.ge.s32.totalorder %s4553_s21, 8 }
   0xd   : > { %p40_p7 = scmp.eq.s32.totalorder %s39_s28, 0 }
   0xe   : > { %189 = sbr.rel (%p3663_p8) target bundleno = 36 (0x24), region = 16 }
   0xf   : > { %s4639_s30 = scalar_select %p40_p7, %s4533_s16, %s42_s29  }
  0x15   : > { %192 = sbr.rel (!%p51_p5) target bundleno = 36 (0x24), region = 20  ;;  %s194_s5 = sand.u32 (%p51_p5), 1, %s4533_s16  }
  0x16   : > { %s3665_s6 = sshll.u32 (%p51_p5), %s4545_s19, 3  ;;  %s3664_s7 = sshll.u32 (%p51_p5), %s194_s5, 7 }
  0x17   : > { %s3666_s8 = sshll.u32 (%p51_p5), %s4549_s20, 7  ;;  %s196_s14 = scalar_lea.vmem (%p51_p5), [#allocation5], %s3664_s7 }
  0x18   : > { %s199_s9 = sadd.s32 (%p51_p5), %s3666_s8, %s3665_s6 }
  0x19   : > { %s3667_s10 = sshll.u32 (%p51_p5), %s199_s9, 2 }
  0x1a   : > { %s4648_s13 = scalar_lea.vmem (%p51_p5), %s6045_s0, %s3667_s10 }
  0x1b   : > { %v217_v0 = vld [vmem:[%s4648_s13] sm:$0xff] (%p51_p5)   ;;  %v221_v1 = vld [vmem:[%s4648_s13 + $0x8] sm:$0xff] (%p51_p5)   ;;  %v225_v2 = vld [vmem:[%s4648_s13 + $0x10] sm:$0xff] (%p51_p5)  }
  0x1c   : > { %218 = vst [vmem:[%s196_s14] sm:$0xff] %v217_v0   ;;  %222 = vst [vmem:[%s196_s14 + $0x8] sm:$0xff] %v221_v1   ;;  %v229_v3 = vld [vmem:[%s4648_s13 + $0x18] sm:$0xff]   ;;  %v233_v4 = vld [vmem:[%s4648_s13 + $0x80] sm:$0xff]  }
  0x1d   : > { %226 = vst [vmem:[%s196_s14 + $0x10] sm:$0xff] %v225_v2   ;;  %v237_v5 = vld [vmem:[%s4648_s13 + $0x88] sm:$0xff]   ;;  %230 = vst [vmem:[%s196_s14 + $0x18] sm:$0xff] %v229_v3   ;;  %v241_v6 = vld [vmem:[%s4648_s13 + $0x90] sm:$0xff]  }
  0x1e   : > { %234 = vst [vmem:[%s196_s14 + $0x20] sm:$0xff] %v233_v4   ;;  %238 = vst [vmem:[%s196_s14 + $0x28] sm:$0xff] %v237_v5   ;;  %v245_v7 = vld [vmem:[%s4648_s13 + $0x98] sm:$0xff]   ;;  %v249_v8 = vld [vmem:[%s4648_s13 + $0x100] sm:$0xff]  }
  0x1f   : > { %242 = vst [vmem:[%s196_s14 + $0x30] sm:$0xff] %v241_v6   ;;  %246 = vst [vmem:[%s196_s14 + $0x38] sm:$0xff] %v245_v7   ;;  %v253_v9 = vld [vmem:[%s4648_s13 + $0x108] sm:$0xff]   ;;  %v257_v10 = vld [vmem:[%s4648_s13 + $0x110] sm:$0xff]  }
  0x20   : > { %250 = vst [vmem:[%s196_s14 + $0x40] sm:$0xff] %v249_v8   ;;  %v261_v11 = vld [vmem:[%s4648_s13 + $0x118] sm:$0xff]   ;;  %254 = vst [vmem:[%s196_s14 + $0x48] sm:$0xff] %v253_v9   ;;  %v265_v12 = vld [vmem:[%s4648_s13 + $0x180] sm:$0xff]  }
  0x21   : > { %258 = vst [vmem:[%s196_s14 + $0x50] sm:$0xff] %v257_v10   ;;  %262 = vst [vmem:[%s196_s14 + $0x58] sm:$0xff] %v261_v11   ;;  %v269_v13 = vld [vmem:[%s4648_s13 + $0x188] sm:$0xff]   ;;  %v273_v14 = vld [vmem:[%s4648_s13 + $0x190] sm:$0xff]  }
  0x22   : > { %266 = vst [vmem:[%s196_s14 + $0x60] sm:$0xff] %v265_v12   ;;  %270 = vst [vmem:[%s196_s14 + $0x68] sm:$0xff] %v269_v13   ;;  %v277_v15 = vld [vmem:[%s4648_s13 + $0x198] sm:$0xff]  }
  0x23   : > { %274 = vst [vmem:[%s196_s14 + $0x70] sm:$0xff] %v273_v14   ;;  %278 = vst [vmem:[%s196_s14 + $0x78] sm:$0xff] %v277_v15  }
  0x24 PF: > { %p3668_p9 = scmp.ge.s32.totalorder %s4553_s21, 1  ;;  %p408_p10 = scmp.lt.s32.totalorder %s4553_s21, 9 }
  0x26   : > { %p409_p11 = pnand %p3668_p9, %p408_p10 }
  0x28   : > { %412 = sbr.rel (%p409_p11) target bundleno = 1041 (0x411), region = 73 }
  0x2f   : > { %p471_p12 = scmp.lt.s32.totalorder %s4541_s18, 1  ;;  %s415_s24 = sand.u32 1, %s4529_s15   ;;  %vm574_vm0 = vcmask 261120   ;;  %vm509_vm1 = vcmask 7168   ;;  %vm3318_vm2 = vcmask 257024  }
  0x30   : > { %s4670_s25 = sshll.u32 %s415_s24, 7  ;;  %s3675_s10 = sshll.u32 %s4537_s17, 1 }
  0x31   : > { %s4673_s27 = scalar_select %p471_p12, %s4541_s18, 1 }
  0x32   : > { %s4677_s29 = scalar_lea.vmem [#allocation5], %s4670_s25  ;;  %p4824_p13 = scmp.lt.s32.totalorder %s3675_s10, 7 }
  0x33   : > { %s3812_s28 = sshll.u32 %s4673_s27, 8  ;;  %v4243_v16 = vld [vmem:[%s4677_s29] sm:$0xff]   ;;  %v4245_v54 = vld [vmem:[%s4677_s29 + $0x8] sm:$0xff]   ;;  %v4251_v58 = vld [vmem:[%s4677_s29 + $0x10] sm:$0xff]   ;;  %s3676_s12 = sshll.u32 %s4673_s27, 3 }
  0x34   : > { %s4685_s7 = scalar_lea.vmem %s6046_s1, %s3812_s28  ;;  %v4244_v17 = vld [vmem:[%s4677_s29 + $0x20] sm:$0xff]   ;;  %3958 = vmatprep.mubr.msk.bf16.mxu0 %vm574_vm0, %v4243_v16  ;;  %s4738_s9 = scalar_lea.vmem %s6047_s2, %s3812_s28  ;;  %v4246_v55 = vld [vmem:[%s4677_s29 + $0x28] sm:$0xff]   ;;  %v4254_v59 = vld [vmem:[%s4677_s29 + $0x30] sm:$0xff]  }
  0x35   : > { %v4227_v18 = vld [vmem:[%s4685_s7] sm:$0xff]   ;;  %3982 = vmatprep.mubr.msk.bf16.mxu1 %vm574_vm0, %v4244_v17  ;;  %v4229_v21 = vld [vmem:[%s4685_s7 + $0x8] sm:$0xff]   ;;  %v4231_v25 = vld [vmem:[%s4685_s7 + $0x10] sm:$0xff]   ;;  %s6223_s10 = smov (!%p4824_p13, %s3675_s10), 7  ;;  %s5935_s27 = scalar_lea.vmem [#allocation6], %s4670_s25 }
  0x36   : > { %v4228_v19 = vld [vmem:[%s4685_s7 + $0x40] sm:$0xff]   ;;  %4134 = vmatprep.subr.msk.bf16.mxu0 %vm574_vm0, %v4227_v18  ;;  %v867_v20 = vsel %vm574_vm0, %v4227_v18, 0  ;;  %v4230_v23 = vld [vmem:[%s4685_s7 + $0x48] sm:$0xff]   ;;  %v870_v24 = vsel %vm574_vm0, %v4229_v21, 0  ;;  %v4232_v27 = vld [vmem:[%s4685_s7 + $0x50] sm:$0xff]   ;;  %v873_v28 = vsel %vm574_vm0, %v4231_v25, 0  ;;  %s499_s13 = sadd.s32 %s3676_s12, %s6223_s10 }
  0x37   : > { %4142 = vmatprep.subr.msk.bf16.mxu1 %vm574_vm0, %v4228_v19  ;;  %3943 = vmatpush3.bf16.xpose.msra.mxu0 %v867_v20  ;;  %v1028_v22 = vsel %vm574_vm0, %v4228_v19, 0  ;;  %v1031_v26 = vsel %vm574_vm0, %v4230_v23, 0  ;;  %v4233_v29 = vld [vmem:[%s4685_s7 + $0x18] sm:$0xff]   ;;  %v1034_v30 = vsel %vm574_vm0, %v4232_v27, 0  ;;  %v4235_v33 = vld [vmem:[%s4685_s7 + $0x20] sm:$0xff]   ;;  %v4237_v37 = vld [vmem:[%s4685_s7 + $0x28] sm:$0xff]  }
  0x38   : > { %3967 = vmatpush3.bf16.xpose.msra.mxu1 %v1028_v22  ;;  %4135 = vmatprep.subr.msk.bf16.mxu0 %vm574_vm0, %v4229_v21  ;;  %v4234_v31 = vld [vmem:[%s4685_s7 + $0x58] sm:$0xff]   ;;  %v876_v32 = vsel %vm574_vm0, %v4233_v29, 0  ;;  %v4236_v35 = vld [vmem:[%s4685_s7 + $0x60] sm:$0xff]   ;;  %v879_v36 = vsel %vm574_vm0, %v4235_v33, 0  ;;  %v4238_v39 = vld [vmem:[%s4685_s7 + $0x68] sm:$0xff]   ;;  %v882_v41 = vsel %vm574_vm0, %v4237_v37, 0 }
  0x39   : > { %4143 = vmatprep.subr.msk.bf16.mxu1 %vm574_vm0, %v4230_v23  ;;  %v1037_v34 = vsel %vm574_vm0, %v4234_v31, 0  ;;  %v1040_v38 = vsel %vm574_vm0, %v4236_v35, 0  ;;  %v4239_v40 = vld [vmem:[%s4685_s7 + $0x30] sm:$0xff]   ;;  %v1043_v43 = vsel %vm574_vm0, %v4238_v39, 0  ;;  %v4241_v44 = vld [vmem:[%s4685_s7 + $0x38] sm:$0xff]   ;;  %v4247_v49 = vld [vmem:[%s4685_s7 + $0x80] sm:$0xff]  }
  0x3a   : > { %v4240_v42 = vld [vmem:[%s4685_s7 + $0x70] sm:$0xff]   ;;  %v4242_v45 = vld [vmem:[%s4685_s7 + $0x78] sm:$0xff]   ;;  %v885_v46 = vsel %vm574_vm0, %v4239_v40, 0  ;;  %v888_v48 = vsel %vm574_vm0, %v4241_v44, 0  ;;  %v4248_v51 = vld [vmem:[%s4685_s7 + $0xc0] sm:$0xff]   ;;  %v1189_v52 = vsel %vm574_vm0, %v4247_v49, 0 }
  0x3b   : > { %v1046_v47 = vsel %vm574_vm0, %v4240_v42, 0  ;;  %v1049_v50 = vsel %vm574_vm0, %v4242_v45, 0  ;;  %v1350_v53 = vsel %vm574_vm0, %v4248_v51, 0  ;;  %v4249_v56 = vld [vmem:[%s4685_s7 + $0x88] sm:$0xff]   ;;  %v4252_v60 = vld [vmem:[%s4677_s29 + $0x18] sm:$0xff]   ;;  %v4253_v63 = vld [vmem:[%s4685_s7 + $0x90] sm:$0xff]  }
  0x3c   : > { %v4250_v57 = vld [vmem:[%s4685_s7 + $0xc8] sm:$0xff]   ;;  %v4256_v61 = vld [vmem:[%s4677_s29 + $0x38] sm:$0xff]   ;;  %v1192_v62 = vsel %vm574_vm0, %v4249_v56, 0  ;;  %v4255_v1 = vld [vmem:[%s4685_s7 + $0xd0] sm:$0xff]   ;;  %v1195_v4 = vsel %vm574_vm0, %v4253_v63, 0  ;;  %s3677_s14 = sshll.u32 %s499_s13, 3 }
  0x3d   : > { %v1353_v0 = vsel %vm574_vm0, %v4250_v57, 0  ;;  %v4267_v2 = vld [vmem:[%s4677_s29 + $0x40] sm:$0xff]   ;;  %v4257_v5 = vld [vmem:[%s4685_s7 + $0x98] sm:$0xff]   ;;  %v1356_v6 = vsel %vm574_vm0, %v4255_v1, 0  ;;  %v4261_v13 = vld [vmem:[%s4685_s7 + $0xa8] sm:$0xff]   ;;  %s3807_s25 = sshll.u32 (%p4631_p6), %s4537_s17, 3 }
  0x3e   : > { %v4269_v3 = vld [vmem:[%s4677_s29 + $0x60] sm:$0xff]   ;;  %v4258_v7 = vld [vmem:[%s4685_s7 + $0xd8] sm:$0xff]   ;;  %v1198_v8 = vsel %vm574_vm0, %v4257_v5, 0  ;;  %v4262_v15 = vld [vmem:[%s4685_s7 + $0xe8] sm:$0xff]   ;;  %v1204_v16 = vsel %vm574_vm0, %v4261_v13, 0  ;;  %s3808_s5 = sshll.u32 (%p4631_p6), %s4541_s18, 7 }
  0x3f   : > { %3945 = vmatpush3.bf16.xpose.msra.mxu0 %v870_v24  ;;  %v4259_v9 = vld [vmem:[%s4685_s7 + $0xa0] sm:$0xff]   ;;  %v1359_v10 = vsel %vm574_vm0, %v4258_v7, 0  ;;  %v4263_v17 = vld [vmem:[%s4685_s7 + $0xb0] sm:$0xff]   ;;  %v1365_v18 = vsel %vm574_vm0, %v4262_v15, 0  ;;  %v4265_v21 = vld [vmem:[%s4685_s7 + $0xb8] sm:$0xff]   ;;  %s3360_s26 = sadd.s32 (%p4631_p6), %s3808_s5, %s3807_s25 }
  0x40   : > { %3969 = vmatpush3.bf16.xpose.msra.mxu1 %v1031_v26  ;;  %4136 = vmatprep.subr.msk.bf16.mxu0 %vm574_vm0, %v4231_v25  ;;  %v4260_v11 = vld [vmem:[%s4685_s7 + $0xe0] sm:$0xff]   ;;  %v1201_v12 = vsel %vm574_vm0, %v4259_v9, 0  ;;  %v4264_v19 = vld [vmem:[%s4685_s7 + $0xf0] sm:$0xff]   ;;  %v1207_v20 = vsel %vm574_vm0, %v4263_v17, 0  ;;  %v4266_v23 = vld [vmem:[%s4685_s7 + $0xf8] sm:$0xff]   ;;  %v1210_v24 = vsel %vm574_vm0, %v4265_v21, 0 }
  0x41   : > { %4144 = vmatprep.subr.msk.bf16.mxu1 %vm574_vm0, %v4232_v27  ;;  %v1362_v14 = vsel %vm574_vm0, %v4260_v11, 0  ;;  %v1368_v22 = vsel %vm574_vm0, %v4264_v19, 0  ;;  %v1371_v25 = vsel %vm574_vm0, %v4266_v23, 0  ;;  %v4268_v26 = vld [vmem:[%s4677_s29 + $0x48] sm:$0xff]   ;;  %s3809_s6 = sshll.u32 (%p4631_p6), %s3360_s26, 2 }
  0x42   : > { %v4270_v27 = vld [vmem:[%s4677_s29 + $0x68] sm:$0xff]   ;;  %s3362_s8 = scalar_lea.vmem (%p4631_p6), %s6049_s4, %s3809_s6 }
  0x47   : > { %3947 = vmatpush3.bf16.xpose.msra.mxu0 %v873_v28  ;;  %v4271_v28 = vld [vmem:[%s4677_s29 + $0x50] sm:$0xff]  }
  0x48   : > { %3971 = vmatpush3.bf16.xpose.msra.mxu1 %v1034_v30  ;;  %4137 = vmatprep.subr.msk.bf16.mxu0 %vm574_vm0, %v4233_v29  ;;  %v4273_v29 = vld [vmem:[%s4677_s29 + $0x70] sm:$0xff]   ;;  %v4272_v30 = vld [vmem:[%s4677_s29 + $0x58] sm:$0xff]  }
  0x49   : > { %4145 = vmatprep.subr.msk.bf16.mxu1 %vm574_vm0, %v4234_v31  ;;  %v4274_v31 = vld [vmem:[%s4677_s29 + $0x78] sm:$0xff]   ;;  %s501_s29 = scalar_lea.vmem %s6048_s3, %s3677_s14 }
  0x4f   : > { %3949 = vmatpush3.bf16.xpose.msra.mxu0 %v876_v32  ;;  %v4555_v32 = vmov -1e+30  }
  0x50   : > { %3973 = vmatpush3.bf16.xpose.msra.mxu1 %v1037_v34  ;;  %4138 = vmatprep.subr.msk.bf16.mxu0 %vm574_vm0, %v4235_v33  ;;  %520 = vst.msk [vmem:[#allocation2 + $0x50] sm:$0xff] %vm509_vm1, %v4555_v32  ;;  %510 = vst.msk [vmem:[#allocation2] sm:$0xff] %vm509_vm1, %v4555_v32  ;;  %v767_v33 = vld [vmem:[%s501_s29] sm:$0xff] }
  0x51   : > { %4146 = vmatprep.subr.msk.bf16.mxu1 %vm574_vm0, %v4236_v35  ;;  %511 = vst.msk [vmem:[#allocation2 + $0x8] sm:$0xff] %vm509_vm1, %v4555_v32  ;;  %512 = vst.msk [vmem:[#allocation2 + $0x10] sm:$0xff] %vm509_vm1, %v4555_v32  ;;  %v771_v34 = vunpack.c.2.s8 %v767_v33 }
  0x52   : > { %513 = vst.msk [vmem:[#allocation2 + $0x18] sm:$0xff] %vm509_vm1, %v4555_v32  ;;  %514 = vst.msk [vmem:[#allocation2 + $0x20] sm:$0xff] %vm509_vm1, %v4555_v32 }
  0x53   : > { %515 = vst.msk [vmem:[#allocation2 + $0x28] sm:$0xff] %vm509_vm1, %v4555_v32  ;;  %516 = vst.msk [vmem:[#allocation2 + $0x30] sm:$0xff] %vm509_vm1, %v4555_v32  ;;  %v779_v35 = vcvt.s32.f32 %v771_v34 }
  0x54   : > { %517 = vst.msk [vmem:[#allocation2 + $0x38] sm:$0xff] %vm509_vm1, %v4555_v32  ;;  %518 = vst.msk [vmem:[#allocation2 + $0x40] sm:$0xff] %vm509_vm1, %v4555_v32 }
  0x55   : > { %519 = vst.msk [vmem:[#allocation2 + $0x48] sm:$0xff] %vm509_vm1, %v4555_v32  ;;  %521 = vst.msk [vmem:[#allocation2 + $0x58] sm:$0xff] %vm509_vm1, %v4555_v32 }
  0x56   : > { %522 = vst.msk [vmem:[#allocation2 + $0x60] sm:$0xff] %vm509_vm1, %v4555_v32  ;;  %523 = vst.msk [vmem:[#allocation2 + $0x68] sm:$0xff] %vm509_vm1, %v4555_v32 }
  0x57   : > { %3951 = vmatpush3.bf16.xpose.msra.mxu0 %v879_v36  ;;  %524 = vst.msk [vmem:[#allocation2 + $0x70] sm:$0xff] %vm509_vm1, %v4555_v32  ;;  %525 = vst.msk [vmem:[#allocation2 + $0x78] sm:$0xff] %vm509_vm1, %v4555_v32  ;;  %v772_v36 = vunpack.c.3.s8 %v767_v33 }
  0x58   : > { %3975 = vmatpush3.bf16.xpose.msra.mxu1 %v1040_v38  ;;  %4139 = vmatprep.subr.msk.bf16.mxu0 %vm574_vm0, %v4237_v37  ;;  %526 = vst.msk [vmem:[#allocation2 + $0x80] sm:$0xff] %vm509_vm1, %v4555_v32  ;;  %527 = vst.msk [vmem:[#allocation2 + $0x88] sm:$0xff] %vm509_vm1, %v4555_v32  ;;  %v769_v37 = vunpack.c.0.s8 %v767_v33  ;;  %v4868_v38 = vmul.f32 -1e+09, %v779_v35 }
  0x59   : > { %4147 = vmatprep.subr.msk.bf16.mxu1 %vm574_vm0, %v4238_v39  ;;  %528 = vst.msk [vmem:[#allocation2 + $0x90] sm:$0xff] %vm509_vm1, %v4555_v32  ;;  %529 = vst.msk [vmem:[#allocation2 + $0x98] sm:$0xff] %vm509_vm1, %v4555_v32  ;;  %v780_v39 = vcvt.s32.f32 %v772_v36 }
  0x5a   : > { %530 = vst.msk [vmem:[#allocation2 + $0xa0] sm:$0xff] %vm509_vm1, %v4555_v32  ;;  %531 = vst.msk [vmem:[#allocation2 + $0xa8] sm:$0xff] %vm509_vm1, %v4555_v32 }
  0x5b   : > { %532 = vst.msk [vmem:[#allocation2 + $0xb0] sm:$0xff] %vm509_vm1, %v4555_v32  ;;  %533 = vst.msk [vmem:[#allocation2 + $0xb8] sm:$0xff] %vm509_vm1, %v4555_v32 }
  0x5c   : > { %534 = vst.msk [vmem:[#allocation2 + $0xc0] sm:$0xff] %vm509_vm1, %v4555_v32  ;;  %535 = vst.msk [vmem:[#allocation2 + $0xc8] sm:$0xff] %vm509_vm1, %v4555_v32 }
  0x5d   : > { %536 = vst.msk [vmem:[#allocation2 + $0xd0] sm:$0xff] %vm509_vm1, %v4555_v32  ;;  %537 = vst.msk [vmem:[#allocation2 + $0xd8] sm:$0xff] %vm509_vm1, %v4555_v32 }
  0x5e   : > { %538 = vst.msk [vmem:[#allocation2 + $0xe0] sm:$0xff] %vm509_vm1, %v4555_v32  ;;  %539 = vst.msk [vmem:[#allocation2 + $0xe8] sm:$0xff] %vm509_vm1, %v4555_v32 }
  0x5f   : > { %3953 = vmatpush3.bf16.xpose.msra.mxu0 %v882_v41  ;;  %540 = vst.msk [vmem:[#allocation2 + $0xf0] sm:$0xff] %vm509_vm1, %v4555_v32  ;;  %541 = vst.msk [vmem:[#allocation2 + $0xf8] sm:$0xff] %vm509_vm1, %v4555_v32 }
  0x60   : > { %3977 = vmatpush3.bf16.xpose.msra.mxu1 %v1043_v43  ;;  %4140 = vmatprep.subr.msk.bf16.mxu0 %vm574_vm0, %v4239_v40  ;;  %v777_v40 = vcvt.s32.f32 %v769_v37 }
  0x61   : > { %4148 = vmatprep.subr.msk.bf16.mxu1 %vm574_vm0, %v4240_v42  ;;  %v768_v42 = vld [vmem:[%s501_s29 + $0x8] sm:$0xff] }
  0x67   : > { %3955 = vmatpush3.bf16.xpose.msra.mxu0 %v885_v46  ;;  %v4873_v46 = vmul.f32 -1e+09, %v780_v39 }
  0x68   : > { %3979 = vmatpush3.bf16.xpose.msra.mxu1 %v1046_v47  ;;  %4141 = vmatprep.subr.msk.bf16.mxu0 %vm574_vm0, %v4241_v44 }
  0x69   : > { %4149 = vmatprep.subr.msk.bf16.mxu1 %vm574_vm0, %v4242_v45 }
  0x6f   : > { %3957 = vmatpush3.bf16.xpose.msra.mxu0 %v888_v48  ;;  %v4878_v48 = vmul.f32 -1e+09, %v777_v40 }
  0x70   : > { %3981 = vmatpush3.bf16.xpose.msra.mxu1 %v1049_v50  ;;  %4150 = vmatprep.subr.msk.bf16.mxu0 %vm574_vm0, %v4247_v49 }
  0x71   : > { %4158 = vmatprep.subr.msk.bf16.mxu1 %vm574_vm0, %v4248_v51  ;;  %v770_v51 = vunpack.c.1.s8 %v767_v33 }
  0x76   : > { %3959 = vmatmul.mubr.msk.bf16.vlgmr.msra.gmra.mrb[0].mxu0 %vm574_vm0, %v4245_v54  ;;  %v776_v54 = vunpack.c.3.s8 %v768_v42 }
  0x77   : > { %3983 = vmatmul.mubr.msk.bf16.vlgmr.msra.gmra.mrb[0].mxu1 %vm574_vm0, %v4246_v55  ;;  %3991 = vmatpush3.bf16.xpose.msra.mxu0 %v1189_v52 }
  0x78   : > { %4015 = vmatpush3.bf16.xpose.msra.mxu1 %v1350_v53  ;;  %4151 = vmatprep.subr.msk.bf16.mxu0 %vm574_vm0, %v4249_v56  ;;  %v775_v56 = vunpack.c.2.s8 %v768_v42 }
  0x79   : > { %4159 = vmatprep.subr.msk.bf16.mxu1 %vm574_vm0, %v4250_v57  ;;  %3962 = vmatprep.mubr.msk.bf16.mxu0 %vm574_vm0, %v4251_v58 }
  0x7a   : > { %3986 = vmatprep.mubr.msk.bf16.mxu1 %vm574_vm0, %v4254_v59  ;;  %v778_v59 = vcvt.s32.f32 %v770_v51 }
  0x7e   : > { %3963 = vmatmul.mubr.msk.bf16.gmra.mrb[4].mxu0 %vm574_vm0, %v4252_v60  ;;  %v784_v60 = vcvt.s32.f32 %v776_v54 }
  0x7f   : > { %3993 = vmatpush3.bf16.xpose.msra.mxu0 %v1192_v62  ;;  %3987 = vmatmul.mubr.msk.bf16.gmra.mrb[4].mxu1 %vm574_vm0, %v4256_v61  ;;  %v783_v61 = vcvt.s32.f32 %v775_v56 }
  0x80   : > { %4017 = vmatpush3.bf16.xpose.msra.mxu1 %v1353_v0  ;;  %4152 = vmatprep.subr.msk.bf16.mxu0 %vm574_vm0, %v4253_v63 }
  0x81   : > { %4160 = vmatprep.subr.msk.bf16.mxu1 %vm574_vm0, %v4255_v1  ;;  %4006 = vmatprep.mubr.msk.bf16.mxu0 %vm574_vm0, %v4267_v2 }
  0x82   : > { %4030 = vmatprep.mubr.msk.bf16.mxu1 %vm574_vm0, %v4269_v3  ;;  %v4896_v3 = vmul.f32 -1e+09, %v778_v59 }
  0x87   : > { %3995 = vmatpush3.bf16.xpose.msra.mxu0 %v1195_v4 }
  0x88   : > { %4019 = vmatpush3.bf16.xpose.msra.mxu1 %v1356_v6  ;;  %4153 = vmatprep.subr.msk.bf16.mxu0 %vm574_vm0, %v4257_v5  ;;  %v4899_v6 = vmul.f32 -1e+09, %v784_v60 }
  0x89   : > { %4161 = vmatprep.subr.msk.bf16.mxu1 %vm574_vm0, %v4258_v7 }
  0x8f   : > { %3997 = vmatpush3.bf16.xpose.msra.mxu0 %v1198_v8  ;;  %v774_v8 = vunpack.c.1.s8 %v768_v42 }
  0x90   : > { %4021 = vmatpush3.bf16.xpose.msra.mxu1 %v1359_v10  ;;  %4154 = vmatprep.subr.msk.bf16.mxu0 %vm574_vm0, %v4259_v9  ;;  %v4902_v10 = vmul.f32 -1e+09, %v783_v61 }
  0x91   : > { %4162 = vmatprep.subr.msk.bf16.mxu1 %vm574_vm0, %v4260_v11  ;;  %v773_v11 = vunpack.c.0.s8 %v768_v42 }
  0x97   : > { %3999 = vmatpush3.bf16.xpose.msra.mxu0 %v1201_v12 }
  0x98   : > { %4023 = vmatpush3.bf16.xpose.msra.mxu1 %v1362_v14  ;;  %4155 = vmatprep.subr.msk.bf16.mxu0 %vm574_vm0, %v4261_v13 }
  0x99   : > { %4163 = vmatprep.subr.msk.bf16.mxu1 %vm574_vm0, %v4262_v15 }
  0x9f   : > { %4001 = vmatpush3.bf16.xpose.msra.mxu0 %v1204_v16  ;;  %v782_v16 = vcvt.s32.f32 %v774_v8 }
  0xa0   : > { %4025 = vmatpush3.bf16.xpose.msra.mxu1 %v1365_v18  ;;  %4156 = vmatprep.subr.msk.bf16.mxu0 %vm574_vm0, %v4263_v17  ;;  %v781_v18 = vcvt.s32.f32 %v773_v11  ;;  %v4285_v11 = vld [vmem:[%s4738_s9 + $0x68] sm:$0xff]  }
  0xa1   : > { %4164 = vmatprep.subr.msk.bf16.mxu1 %vm574_vm0, %v4264_v19 }
  0xa7   : > { %4003 = vmatpush3.bf16.xpose.msra.mxu0 %v1207_v20  ;;  %v4922_v20 = vmul.f32 -1e+09, %v782_v16  ;;  %v5235_v16 = vld [vmem:[#allocation2 + $0x78] sm:$0xff] }
  0xa8   : > { %4027 = vmatpush3.bf16.xpose.msra.mxu1 %v1368_v22  ;;  %4157 = vmatprep.subr.msk.bf16.mxu0 %vm574_vm0, %v4265_v21  ;;  %v4556_v21 = vmov 0   ;;  %v4924_v22 = vmul.f32 -1e+09, %v781_v18 }
  0xa9   : > { %4165 = vmatprep.subr.msk.bf16.mxu1 %vm574_vm0, %v4266_v23  ;;  %4226 = vset.pattern.permute.xlu0 %v4556_v21 }
  0xaa   : > { %4225 = vset.pattern.permute.xlu1 %v4556_v21  ;;  %v4277_v21 = vld [vmem:[%s4738_s9 + $0x48] sm:$0xff]  }
  0xaf   : > { %4005 = vmatpush3.bf16.xpose.msra.mxu0 %v1210_v24 }
  0xb0   : > { %4029 = vmatpush3.bf16.xpose.msra.mxu1 %v1371_v25 }
  0xb6   : > { %4007 = vmatmul.mubr.msk.bf16.vlgmr.msra.gmra.mrb[8].mxu0 %vm574_vm0, %v4268_v26 }
  0xb7   : > { %4031 = vmatmul.mubr.msk.bf16.vlgmr.msra.gmra.mrb[8].mxu1 %vm574_vm0, %v4270_v27  ;;  %4010 = vmatprep.mubr.msk.bf16.mxu0 %vm574_vm0, %v4271_v28  ;;  %v4557_v28 = vmov 0.0  }
  0xb8   : > { %4034 = vmatprep.mubr.msk.bf16.mxu1 %vm574_vm0, %v4273_v29  ;;  %576 = vst.msk [vmem:[#allocation4 + $0x8] sm:$0xff] %vm574_vm0, %v4557_v28  ;;  %575 = vst.msk [vmem:[#allocation4] sm:$0xff] %vm574_vm0, %v4557_v28 }
  0xb9   : > { %542 = vst.msk [vmem:[#allocation3] sm:$0xff] %vm509_vm1, %v4557_v28  ;;  %543 = vst.msk [vmem:[#allocation3 + $0x8] sm:$0xff] %vm509_vm1, %v4557_v28 }
  0xba   : > { %544 = vst.msk [vmem:[#allocation3 + $0x10] sm:$0xff] %vm509_vm1, %v4557_v28  ;;  %545 = vst.msk [vmem:[#allocation3 + $0x18] sm:$0xff] %vm509_vm1, %v4557_v28 }
  0xbb   : > { %546 = vst.msk [vmem:[#allocation3 + $0x20] sm:$0xff] %vm509_vm1, %v4557_v28  ;;  %547 = vst.msk [vmem:[#allocation3 + $0x28] sm:$0xff] %vm509_vm1, %v4557_v28 }
  0xbc   : > { %548 = vst.msk [vmem:[#allocation3 + $0x30] sm:$0xff] %vm509_vm1, %v4557_v28  ;;  %549 = vst.msk [vmem:[#allocation3 + $0x38] sm:$0xff] %vm509_vm1, %v4557_v28 }
  0xbd   : > { %550 = vst.msk [vmem:[#allocation3 + $0x40] sm:$0xff] %vm509_vm1, %v4557_v28  ;;  %551 = vst.msk [vmem:[#allocation3 + $0x48] sm:$0xff] %vm509_vm1, %v4557_v28 }
  0xbe   : > { %4011 = vmatmul.mubr.msk.bf16.gmra.mrb[12].mxu0 %vm574_vm0, %v4272_v30  ;;  %552 = vst.msk [vmem:[#allocation3 + $0x50] sm:$0xff] %vm509_vm1, %v4557_v28  ;;  %553 = vst.msk [vmem:[#allocation3 + $0x58] sm:$0xff] %vm509_vm1, %v4557_v28 }
  0xbf   : > { %4035 = vmatmul.mubr.msk.bf16.gmra.mrb[12].mxu1 %vm574_vm0, %v4274_v31  ;;  %554 = vst.msk [vmem:[#allocation3 + $0x60] sm:$0xff] %vm509_vm1, %v4557_v28  ;;  %555 = vst.msk [vmem:[#allocation3 + $0x68] sm:$0xff] %vm509_vm1, %v4557_v28 }
  0xc0   : > { %556 = vst.msk [vmem:[#allocation3 + $0x70] sm:$0xff] %vm509_vm1, %v4557_v28  ;;  %557 = vst.msk [vmem:[#allocation3 + $0x78] sm:$0xff] %vm509_vm1, %v4557_v28 }
  0xc1   : > { %558 = vst.msk [vmem:[#allocation3 + $0x80] sm:$0xff] %vm509_vm1, %v4557_v28  ;;  %559 = vst.msk [vmem:[#allocation3 + $0x88] sm:$0xff] %vm509_vm1, %v4557_v28 }
  0xc2   : > { %560 = vst.msk [vmem:[#allocation3 + $0x90] sm:$0xff] %vm509_vm1, %v4557_v28  ;;  %561 = vst.msk [vmem:[#allocation3 + $0x98] sm:$0xff] %vm509_vm1, %v4557_v28 }
  0xc3   : > { %562 = vst.msk [vmem:[#allocation3 + $0xa0] sm:$0xff] %vm509_vm1, %v4557_v28  ;;  %563 = vst.msk [vmem:[#allocation3 + $0xa8] sm:$0xff] %vm509_vm1, %v4557_v28 }
  0xc4   : > { %564 = vst.msk [vmem:[#allocation3 + $0xb0] sm:$0xff] %vm509_vm1, %v4557_v28  ;;  %565 = vst.msk [vmem:[#allocation3 + $0xb8] sm:$0xff] %vm509_vm1, %v4557_v28 }
  0xc5   : > { %566 = vst.msk [vmem:[#allocation3 + $0xc0] sm:$0xff] %vm509_vm1, %v4557_v28  ;;  %567 = vst.msk [vmem:[#allocation3 + $0xc8] sm:$0xff] %vm509_vm1, %v4557_v28 }
  0xc6   : > { %568 = vst.msk [vmem:[#allocation3 + $0xd0] sm:$0xff] %vm509_vm1, %v4557_v28  ;;  %569 = vst.msk [vmem:[#allocation3 + $0xd8] sm:$0xff] %vm509_vm1, %v4557_v28 }
  0xc7   : > { %570 = vst.msk [vmem:[#allocation3 + $0xe0] sm:$0xff] %vm509_vm1, %v4557_v28  ;;  %571 = vst.msk [vmem:[#allocation3 + $0xe8] sm:$0xff] %vm509_vm1, %v4557_v28 }
  0xc8   : > { %572 = vst.msk [vmem:[#allocation3 + $0xf0] sm:$0xff] %vm509_vm1, %v4557_v28  ;;  %573 = vst.msk [vmem:[#allocation3 + $0xf8] sm:$0xff] %vm509_vm1, %v4557_v28 }
  0xc9   : > { %577 = vst.msk [vmem:[#allocation4 + $0x10] sm:$0xff] %vm574_vm0, %v4557_v28  ;;  %578 = vst.msk [vmem:[#allocation4 + $0x18] sm:$0xff] %vm574_vm0, %v4557_v28 }
  0xca   : > { %579 = vst.msk [vmem:[#allocation4 + $0x20] sm:$0xff] %vm574_vm0, %v4557_v28  ;;  %580 = vst.msk [vmem:[#allocation4 + $0x28] sm:$0xff] %vm574_vm0, %v4557_v28 }
  0xcb   : > { %581 = vst.msk [vmem:[#allocation4 + $0x30] sm:$0xff] %vm574_vm0, %v4557_v28  ;;  %582 = vst.msk [vmem:[#allocation4 + $0x38] sm:$0xff] %vm574_vm0, %v4557_v28 }
  0xcc   : > { %583 = vst.msk [vmem:[#allocation4 + $0x40] sm:$0xff] %vm574_vm0, %v4557_v28  ;;  %584 = vst.msk [vmem:[#allocation4 + $0x48] sm:$0xff] %vm574_vm0, %v4557_v28 }
  0xcd   : > { %585 = vst.msk [vmem:[#allocation4 + $0x50] sm:$0xff] %vm574_vm0, %v4557_v28  ;;  %586 = vst.msk [vmem:[#allocation4 + $0x58] sm:$0xff] %vm574_vm0, %v4557_v28 }
  0xce   : > { %587 = vst.msk [vmem:[#allocation4 + $0x60] sm:$0xff] %vm574_vm0, %v4557_v28  ;;  %588 = vst.msk [vmem:[#allocation4 + $0x68] sm:$0xff] %vm574_vm0, %v4557_v28 }
  0xcf   : > { %589 = vst.msk [vmem:[#allocation4 + $0x70] sm:$0xff] %vm574_vm0, %v4557_v28  ;;  %590 = vst.msk [vmem:[#allocation4 + $0x78] sm:$0xff] %vm574_vm0, %v4557_v28 }
  0xd0   : > { %591 = vst.msk [vmem:[#allocation4 + $0x80] sm:$0xff] %vm574_vm0, %v4557_v28  ;;  %592 = vst.msk [vmem:[#allocation4 + $0x88] sm:$0xff] %vm574_vm0, %v4557_v28 }
  0xd1   : > { %593 = vst.msk [vmem:[#allocation4 + $0x90] sm:$0xff] %vm574_vm0, %v4557_v28  ;;  %594 = vst.msk [vmem:[#allocation4 + $0x98] sm:$0xff] %vm574_vm0, %v4557_v28 }
  0xd2   : > { %595 = vst.msk [vmem:[#allocation4 + $0xa0] sm:$0xff] %vm574_vm0, %v4557_v28  ;;  %596 = vst.msk [vmem:[#allocation4 + $0xa8] sm:$0xff] %vm574_vm0, %v4557_v28 }
  0xd3   : > { %597 = vst.msk [vmem:[#allocation4 + $0xb0] sm:$0xff] %vm574_vm0, %v4557_v28  ;;  %598 = vst.msk [vmem:[#allocation4 + $0xb8] sm:$0xff] %vm574_vm0, %v4557_v28 }
  0xd4   : > { %599 = vst.msk [vmem:[#allocation4 + $0xc0] sm:$0xff] %vm574_vm0, %v4557_v28  ;;  %600 = vst.msk [vmem:[#allocation4 + $0xc8] sm:$0xff] %vm574_vm0, %v4557_v28 }
  0xd5   : > { %601 = vst.msk [vmem:[#allocation4 + $0xd0] sm:$0xff] %vm574_vm0, %v4557_v28  ;;  %602 = vst.msk [vmem:[#allocation4 + $0xd8] sm:$0xff] %vm574_vm0, %v4557_v28 }
  0xd6   : > { %603 = vst.msk [vmem:[#allocation4 + $0xe0] sm:$0xff] %vm574_vm0, %v4557_v28  ;;  %604 = vst.msk [vmem:[#allocation4 + $0xe8] sm:$0xff] %vm574_vm0, %v4557_v28 }
  0xd7   : > { %605 = vst.msk [vmem:[#allocation4 + $0xf0] sm:$0xff] %vm574_vm0, %v4557_v28  ;;  %606 = vst.msk [vmem:[#allocation4 + $0xf8] sm:$0xff] %vm574_vm0, %v4557_v28 }
 0x149   : > { %v3960_v41 = vpop.f32.mrb[0].mxu0 }
 0x14a   : > { %v4871_v43 = vadd.f32 %v3960_v41, %v4868_v38  ;;  %v3984_v44 = vpop.f32.mrb[0].mxu1  ;;  %v924_v45 = vpop.f32.mrb[1].mxu0 }
 0x14b   : > { %v4876_v47 = vadd.f32 %v3984_v44, %v4868_v38  ;;  %v3961_v49 = vpop.f32.mrb[2].mxu0  ;;  %v1085_v50 = vpop.f32.mrb[1].mxu1  ;;  %v4886_v58 = vadd.f32 %v924_v45, %v4878_v48 }
 0x14c   : > { %6091 = vst [vmem:[#allocation7_spill] sm:$0xff] %v4871_v43  ;;  %1474 = vmax.xlane.f32.xlu1 %v4871_v43  ;;  %v927_v52 = vpop.f32.mrb[3].mxu0  ;;  %v3985_v53 = vpop.f32.mrb[2].mxu1  ;;  %v4883_v57 = vadd.f32 %v3961_v49, %v4873_v46  ;;  %v4894_v2 = vadd.f32 %v1085_v50, %v4878_v48 }
 0x14d   : > { %6092 = vst [vmem:[#allocation8_spill] sm:$0xff] %v4876_v47  ;;  %1490 = vmax.xlane.f32.xlu0 %v4876_v47  ;;  %v1088_v55 = vpop.f32.mrb[3].mxu1  ;;  %6094 = vst [vmem:[#allocation10_spill] sm:$0xff] %v4886_v58  ;;  %v4891_v63 = vadd.f32 %v3985_v53, %v4873_v46  ;;  %v4908_v14 = vadd.f32 %v927_v52, %v4896_v3 }
 0x14e   : > { %6093 = vst [vmem:[#allocation9_spill] sm:$0xff] %v4883_v57  ;;  %6096 = vst [vmem:[#allocation12_spill] sm:$0xff] %v4894_v2  ;;  %v4905_v13 = vadd.f32 %v1088_v55, %v4896_v3 }
 0x14f   : > { %6095 = vst [vmem:[#allocation11_spill] sm:$0xff] %v4891_v63  ;;  %6098 = vst [vmem:[#allocation14_spill] sm:$0xff] %v4908_v14 }
 0x150   : > { %1476 = vmax.xlane.f32.xlu1 %v4883_v57  ;;  %6097 = vst [vmem:[#allocation13_spill] sm:$0xff] %v4905_v13 }
 0x151   : > { %1470 = vmax.xlane.f32.xlu0 %v4886_v58  ;;  %v3964_v62 = vpop.f32.mrb[4].mxu0 }
 0x152   : > { %v940_v0 = vpop.f32.mrb[5].mxu0  ;;  %v3988_v1 = vpop.f32.mrb[4].mxu1  ;;  %v4915_v17 = vadd.f32 %v3964_v62, %v4902_v10 }
 0x153   : > { %v3965_v4 = vpop.f32.mrb[6].mxu0  ;;  %v1101_v5 = vpop.f32.mrb[5].mxu1  ;;  %v4927_v23 = vadd.f32 %v3988_v1, %v4902_v10  ;;  %v4935_v25 = vadd.f32 %v940_v0, %v4924_v22 }
 0x154   : > { %1492 = vmax.xlane.f32.xlu1 %v4891_v63  ;;  %v3989_v7 = vpop.f32.mrb[6].mxu1  ;;  %v943_v9 = vpop.f32.mrb[7].mxu0  ;;  %v4912_v15 = vadd.f32 %v3965_v4, %v4899_v6  ;;  %6100 = vst [vmem:[#allocation16_spill] sm:$0xff] %v4915_v17  ;;  %v4943_v27 = vadd.f32 %v1101_v5, %v4924_v22  ;;  %v5142_v4 = vld [vmem:[#allocation2 + $0x50] sm:$0xff]  ;;  %v4275_v5 = vld [vmem:[%s4738_s9 + $0x40] sm:$0xff]  }
 0x155   : > { %1486 = vmax.xlane.f32.xlu0 %v4894_v2  ;;  %v1104_v12 = vpop.f32.mrb[7].mxu1  ;;  %v4920_v19 = vadd.f32 %v3989_v7, %v4899_v6  ;;  %6102 = vst [vmem:[#allocation18_spill] sm:$0xff] %v4927_v23  ;;  %v4932_v24 = vadd.f32 %v943_v9, %v4922_v20  ;;  %6104 = vst [vmem:[#allocation20_spill] sm:$0xff] %v4935_v25  ;;  %4062 = vmatprep.subr.bf16.mxu1 %v4275_v5  ;;  %v5421_v2 = vld [vmem:[#allocation2 + $0xa8] sm:$0xff] }
 0x156   : > { %6099 = vst [vmem:[#allocation15_spill] sm:$0xff] %v4912_v15  ;;  %v4940_v26 = vadd.f32 %v1104_v12, %v4922_v20  ;;  %6106 = vst [vmem:[#allocation22_spill] sm:$0xff] %v4943_v27  ;;  %4063 = vmatpush3.bf16.msra.mxu1 %v4275_v5  ;;  %v5158_v12 = vld [vmem:[#allocation2] sm:$0xff] }
 0x157   : > { %6101 = vst [vmem:[#allocation17_spill] sm:$0xff] %v4920_v19  ;;  %6103 = vst [vmem:[#allocation19_spill] sm:$0xff] %v4932_v24  ;;  %4064 = vmatprep.subr.bf16.mxu1 %v4277_v21 }
 0x158   : > { %1488 = vmax.xlane.f32.xlu1 %v4905_v13  ;;  %6105 = vst [vmem:[#allocation21_spill] sm:$0xff] %v4940_v26  ;;  %v5411_v13 = vld [vmem:[#allocation2 + $0xa0] sm:$0xff] }
 0x159   : > { %1472 = vmax.xlane.f32.xlu0 %v4908_v14  ;;  %v5403_v14 = vld [vmem:[#allocation2 + $0xf8] sm:$0xff] }
 0x15a   : > { %4065 = vmatpush3.bf16.msra.mxu1 %v4277_v21  ;;  %v5216_v21 = vld [vmem:[#allocation2 + $0x38] sm:$0xff] }
 0x15c   : > { %1484 = vmax.xlane.f32.xlu1 %v4912_v15  ;;  %v5371_v15 = vld [vmem:[#allocation2 + $0xc8] sm:$0xff] }
 0x15d   : > { %1482 = vmax.xlane.f32.xlu0 %v4915_v17 }
 0x160   : > { %1500 = vmax.xlane.f32.xlu1 %v4920_v19 }
 0x161   : > { %1498 = vmax.xlane.f32.xlu0 %v4927_v23 }
 0x164   : > { %1480 = vmax.xlane.f32.xlu1 %v4932_v24  ;;  %v5363_v24 = vld [vmem:[#allocation2 + $0xc0] sm:$0xff] }
 0x165   : > { %1478 = vmax.xlane.f32.xlu0 %v4935_v25  ;;  %v5379_v25 = vld [vmem:[#allocation2 + $0xb0] sm:$0xff] }
 0x168   : > { %1496 = vmax.xlane.f32.xlu1 %v4940_v26  ;;  %v5395_v26 = vld [vmem:[#allocation2 + $0xf0] sm:$0xff] }
 0x169   : > { %1494 = vmax.xlane.f32.xlu0 %v4943_v27  ;;  %v5387_v27 = vld [vmem:[#allocation2 + $0xb8] sm:$0xff]  ;;  %6126 = vst [vmem:[#allocation42_spill] sm:$0xff] %v5395_v26 }
 0x16a   : > { %6125 = vst [vmem:[#allocation41_spill] sm:$0xff] %v5387_v27 }
 0x189   : > { %v4008_v29 = vpop.f32.mrb[8].mxu0 }
 0x18a   : > { %v5077_v30 = vadd.f32 %v4008_v29, %v4868_v38  ;;  %v1246_v31 = vpop.f32.mrb[9].mxu0  ;;  %v4032_v32 = vpop.f32.mrb[8].mxu1 }
 0x18b   : > { %v4009_v33 = vpop.f32.mrb[10].mxu0  ;;  %v1407_v34 = vpop.f32.mrb[9].mxu1  ;;  %v5080_v35 = vadd.f32 %v4032_v32, %v4868_v38  ;;  %v5092_v44 = vadd.f32 %v1246_v31, %v4878_v48  ;;  %v5172_v31 = vld [vmem:[#allocation2 + $0x58] sm:$0xff]  ;;  %v4284_v32 = vld [vmem:[%s4738_s9 + $0x20] sm:$0xff]  }
 0x18c   : > { %6107 = vst [vmem:[#allocation23_spill] sm:$0xff] %v5077_v30  ;;  %v5083_v36 = vadd.f32 %v4009_v33, %v4873_v46  ;;  %v1249_v37 = vpop.f32.mrb[11].mxu0  ;;  %v4033_v39 = vpop.f32.mrb[10].mxu1  ;;  %1506 = vmax.xlane.f32.xlu0 %v5077_v30  ;;  %v5100_v54 = vadd.f32 %v1407_v34, %v4878_v48  ;;  %v5179_v33 = vld [vmem:[#allocation2 + $0x40] sm:$0xff]  ;;  %v5256_v34 = vld [vmem:[#allocation2 + $0x28] sm:$0xff] }
 0x18d   : > { %6108 = vst [vmem:[#allocation24_spill] sm:$0xff] %v5080_v35  ;;  %v1410_v40 = vpop.f32.mrb[11].mxu1  ;;  %v5088_v41 = vadd.f32 %v4033_v39, %v4873_v46  ;;  %6111 = vst [vmem:[#allocation27_spill] sm:$0xff] %v5092_v44  ;;  %v5096_v51 = vadd.f32 %v1249_v37, %v4896_v3  ;;  %v4278_v39 = vld [vmem:[%s4738_s9 + $0x8] sm:$0xff]  }
 0x18e   : > { %6109 = vst [vmem:[#allocation25_spill] sm:$0xff] %v5083_v36  ;;  %1508 = vmax.xlane.f32.xlu1 %v5083_v36  ;;  %6113 = vst [vmem:[#allocation29_spill] sm:$0xff] %v5100_v54  ;;  %v5104_v55 = vadd.f32 %v1410_v40, %v4896_v3  ;;  %v5140_v3 = vld [vmem:[#allocation2 + $0x10] sm:$0xff]  ;;  %v5355_v30 = vld [vmem:[#allocation2 + $0x88] sm:$0xff] }
 0x18f   : > { %6110 = vst [vmem:[#allocation26_spill] sm:$0xff] %v5088_v41  ;;  %6112 = vst [vmem:[#allocation28_spill] sm:$0xff] %v5096_v51  ;;  %v4279_v40 = vld [vmem:[%s4738_s9 + $0x50] sm:$0xff]  }
 0x190   : > { %1522 = vmax.xlane.f32.xlu0 %v5080_v35  ;;  %6114 = vst [vmem:[#allocation30_spill] sm:$0xff] %v5104_v55  ;;  %4066 = vmatprep.subr.bf16.mxu1 %v4279_v40  ;;  %v5338_v35 = vld [vmem:[#allocation2 + $0xd8] sm:$0xff] }
 0x191   : > { %v4012_v42 = vpop.f32.mrb[12].mxu0  ;;  %4067 = vmatpush3.bf16.msra.mxu1 %v4279_v40 }
 0x192   : > { %1524 = vmax.xlane.f32.xlu1 %v5088_v41  ;;  %v1262_v38 = vpop.f32.mrb[13].mxu0  ;;  %v4036_v45 = vpop.f32.mrb[12].mxu1  ;;  %v5107_v56 = vadd.f32 %v4012_v42, %v4902_v10 }
 0x193   : > { %v4013_v49 = vpop.f32.mrb[14].mxu0  ;;  %v1423_v50 = vpop.f32.mrb[13].mxu1  ;;  %v5115_v60 = vadd.f32 %v4036_v45, %v4902_v10  ;;  %v5124_v61 = vadd.f32 %v1262_v38, %v4924_v22  ;;  %v5151_v10 = vld [vmem:[#allocation2 + $0x18] sm:$0xff] }
 0x194   : > { %1502 = vmax.xlane.f32.xlu0 %v5092_v44  ;;  %v1265_v52 = vpop.f32.mrb[15].mxu0  ;;  %v4037_v46 = vpop.f32.mrb[14].mxu1  ;;  %6115 = vst [vmem:[#allocation31_spill] sm:$0xff] %v5107_v56  ;;  %v5112_v59 = vadd.f32 %v4013_v49, %v4899_v6  ;;  %v5132_v0 = vadd.f32 %v1423_v50, %v4924_v22  ;;  %v5194_v49 = vld [vmem:[#allocation2 + $0x48] sm:$0xff]  ;;  %v4283_v50 = vld [vmem:[%s4738_s9 + $0x60] sm:$0xff]  }
 0x195   : > { %v1426_v53 = vpop.f32.mrb[15].mxu1  ;;  %6117 = vst [vmem:[#allocation33_spill] sm:$0xff] %v5115_v60  ;;  %v5120_v48 = vadd.f32 %v4037_v46, %v4899_v6  ;;  %6119 = vst [vmem:[#allocation35_spill] sm:$0xff] %v5124_v61  ;;  %v5128_v62 = vadd.f32 %v1265_v52, %v4922_v20  ;;  %v5200_v52 = vld [vmem:[#allocation2 + $0x8] sm:$0xff] }
 0x196   : > { %1504 = vmax.xlane.f32.xlu1 %v5096_v51  ;;  %6116 = vst [vmem:[#allocation32_spill] sm:$0xff] %v5112_v59  ;;  %6121 = vst [vmem:[#allocation37_spill] sm:$0xff] %v5132_v0  ;;  %v5136_v1 = vadd.f32 %v1426_v53, %v4922_v20  ;;  %v4276_v20 = vld [vmem:[%s4738_s9] sm:$0xff]  }
 0x197   : > { %6118 = vst [vmem:[#allocation34_spill] sm:$0xff] %v5120_v48  ;;  %6120 = vst [vmem:[#allocation36_spill] sm:$0xff] %v5128_v62  ;;  %4038 = vmatprep.subr.bf16.mxu0 %v4276_v20 }
 0x198   : > { %1518 = vmax.xlane.f32.xlu0 %v5100_v54  ;;  %6122 = vst [vmem:[#allocation38_spill] sm:$0xff] %v5136_v1  ;;  %4039 = vmatpush3.bf16.msra.mxu0 %v4276_v20 }
 0x199   : > { %4040 = vmatprep.subr.bf16.mxu0 %v4278_v39 }
 0x19a   : > { %1520 = vmax.xlane.f32.xlu1 %v5104_v55  ;;  %v5336_v55 = vld [vmem:[%s4738_s9 + $0xc0] sm:$0xff]  }
 0x19b   : > { %6124 = vst [vmem:[#allocation40_spill] sm:$0xff] %v5336_v55 }
 0x19c   : > { %1514 = vmax.xlane.f32.xlu0 %v5107_v56  ;;  %4041 = vmatpush3.bf16.msra.mxu0 %v4278_v39 }
 0x19e   : > { %1516 = vmax.xlane.f32.xlu1 %v5112_v59 }
 0x1a0   : > { %1530 = vmax.xlane.f32.xlu0 %v5115_v60  ;;  %v4287_v60 = vld [vmem:[%s4738_s9 + $0x70] sm:$0xff]  }
 0x1a2   : > { %1532 = vmax.xlane.f32.xlu1 %v5120_v48  ;;  %v4286_v48 = vld [vmem:[%s4738_s9 + $0x28] sm:$0xff]  }
 0x1a4   : > { %1510 = vmax.xlane.f32.xlu0 %v5124_v61  ;;  %v4289_v61 = vld [vmem:[%s4738_s9 + $0x78] sm:$0xff]  }
 0x1a6   : > { %1512 = vmax.xlane.f32.xlu1 %v5128_v62  ;;  %v4288_v62 = vld [vmem:[%s4738_s9 + $0x30] sm:$0xff]  }
 0x1a8   : > { %1526 = vmax.xlane.f32.xlu0 %v5132_v0 }
 0x1aa   : > { %1528 = vmax.xlane.f32.xlu1 %v5136_v1  ;;  %v5278_v1 = vld [vmem:[#allocation2 + $0x68] sm:$0xff] }
 0x1d9   : > { %v1475_v6 = vpop.xlane.xlu1 %1474 }
 0x1da   : > { %v1491_v7 = vpop.xlane.xlu0 %1490  ;;  %v5146_v8 = vmax.f32 %v5140_v3, %v1475_v6 }
 0x1db   : > { %v5149_v9 = vmax.f32 %v5142_v4, %v1491_v7  ;;  %v4280_v7 = vld [vmem:[%s4738_s9 + $0x10] sm:$0xff]  }
 0x1dc   : > { %2869 = vst.msk [vmem:[#allocation2 + $0x10] sm:$0xff] %vm509_vm1, %v5146_v8  ;;  %1674 = vperm.xlu1 %4225, %v5146_v8   ;;  %4042 = vmatprep.subr.bf16.mxu0 %v4280_v7 }
 0x1dd   : > { %2877 = vst.msk [vmem:[#allocation2 + $0x50] sm:$0xff] %vm509_vm1, %v5149_v9  ;;  %v1477_v18 = vpop.xlane.xlu1 %1476  ;;  %4043 = vmatpush3.bf16.msra.mxu0 %v4280_v7 }
 0x1de   : > { %v5167_v22 = vmax.f32 %v5151_v10, %v1477_v18  ;;  %v1471_v28 = vpop.xlane.xlu0 %1470  ;;  %v4281_v18 = vld [vmem:[%s4738_s9 + $0x58] sm:$0xff]  }
 0x1df   : > { %v5170_v29 = vmax.f32 %v5158_v12, %v1471_v28  ;;  %4068 = vmatprep.subr.bf16.mxu1 %v4281_v18 }
 0x1e0   : > { %2870 = vst.msk [vmem:[#allocation2 + $0x18] sm:$0xff] %vm509_vm1, %v5167_v22  ;;  %1714 = vperm.xlu1 %4225, %v5149_v9   ;;  %4069 = vmatpush3.bf16.msra.mxu1 %v4281_v18 }
 0x1e1   : > { %2867 = vst.msk [vmem:[#allocation2] sm:$0xff] %vm509_vm1, %v5170_v29  ;;  %1664 = vperm.xlu0 %4226, %v5170_v29   ;;  %v1493_v37 = vpop.xlane.xlu1 %1492  ;;  %4070 = vmatprep.subr.bf16.mxu1 %v4283_v50 }
 0x1e2   : > { %v5189_v42 = vmax.f32 %v5172_v31, %v1493_v37  ;;  %v1487_v38 = vpop.xlane.xlu0 %1486  ;;  %v5222_v37 = vld [vmem:[#allocation2 + $0x30] sm:$0xff] }
 0x1e3   : > { %v5192_v45 = vmax.f32 %v5179_v33, %v1487_v38 }
 0x1e4   : > { %2878 = vst.msk [vmem:[#allocation2 + $0x58] sm:$0xff] %vm509_vm1, %v5189_v42  ;;  %4071 = vmatpush3.bf16.msra.mxu1 %v4283_v50 }
 0x1e5   : > { %2875 = vst.msk [vmem:[#allocation2 + $0x40] sm:$0xff] %vm509_vm1, %v5192_v45  ;;  %1719 = vperm.xlu0 %4226, %v5189_v42   ;;  %1704 = vperm.xlu1 %4225, %v5192_v45   ;;  %v1489_v53 = vpop.xlane.xlu1 %1488 }
 0x1e6   : > { %v5209_v5 = vmax.f32 %v5194_v49, %v1489_v53  ;;  %v1473_v6 = vpop.xlane.xlu0 %1472  ;;  %4072 = vmatprep.subr.bf16.mxu1 %v4285_v11 }
 0x1e7   : > { %v5214_v20 = vmax.f32 %v5200_v52, %v1473_v6  ;;  %v4282_v6 = vld [vmem:[%s4738_s9 + $0x18] sm:$0xff]  }
 0x1e8   : > { %2876 = vst.msk [vmem:[#allocation2 + $0x48] sm:$0xff] %vm509_vm1, %v5209_v5  ;;  %4044 = vmatprep.subr.bf16.mxu0 %v4282_v6  ;;  %4073 = vmatpush3.bf16.msra.mxu1 %v4285_v11 }
 0x1e9   : > { %2868 = vst.msk [vmem:[#allocation2 + $0x8] sm:$0xff] %vm509_vm1, %v5214_v20  ;;  %1709 = vperm.xlu0 %4226, %v5209_v5   ;;  %1679 = vperm.xlu1 %4225, %v5167_v22   ;;  %v1485_v40 = vpop.xlane.xlu1 %1484  ;;  %v6128_v57 = vsub.f32 %v5200_v52, %v5214_v20  ;;  %v6130_v52 = vsub.f32 %v5140_v3, %v5146_v8 }
 0x1ea   : > { %v5231_v38 = vmax.f32 %v5216_v21, %v1485_v40  ;;  %v1483_v53 = vpop.xlane.xlu0 %1482  ;;  %v5244_v40 = vld [vmem:[#allocation2 + $0x70] sm:$0xff]  ;;  %4045 = vmatpush3.bf16.msra.mxu0 %v4282_v6  ;;  %4074 = vmatprep.subr.bf16.mxu1 %v4287_v60 }
 0x1eb   : > { %v5238_v28 = vmax.f32 %v5222_v37, %v1483_v53  ;;  %4046 = vmatprep.subr.bf16.mxu0 %v4284_v32  ;;  %v1600_v58 = vmul.f32 1.442695, %v6128_v57 }
 0x1ec   : > { %2874 = vst.msk [vmem:[#allocation2 + $0x38] sm:$0xff] %vm509_vm1, %v5231_v38  ;;  %4075 = vmatpush3.bf16.msra.mxu1 %v4287_v60  ;;  %v5321_v60 = vld [vmem:[#allocation2 + $0x98] sm:$0xff] }
 0x1ed   : > { %1669 = vperm.xlu1 %4225, %v5214_v20   ;;  %v1501_v7 = vpop.xlane.xlu1 %1500  ;;  %2873 = vst.msk [vmem:[#allocation2 + $0x30] sm:$0xff] %vm509_vm1, %v5238_v28  ;;  %4076 = vmatprep.subr.bf16.mxu1 %v4289_v61  ;;  %4307 = vpow2.f32 %v1600_v58 }
 0x1ee   : > { %v5252_v53 = vmax.f32 %v5235_v16, %v1501_v7  ;;  %v1499_v46 = vpop.xlane.xlu0 %1498  ;;  %v5266_v7 = vld [vmem:[#allocation2 + $0x20] sm:$0xff]  ;;  %4047 = vmatpush3.bf16.msra.mxu0 %v4284_v32  ;;  %v5327_v32 = vld [vmem:[#allocation2 + $0xd0] sm:$0xff] }
 0x1ef   : > { %v5259_v39 = vmax.f32 %v5244_v40, %v1499_v46  ;;  %4048 = vmatprep.subr.bf16.mxu0 %v4286_v48 }
 0x1f0   : > { %2882 = vst.msk [vmem:[#allocation2 + $0x78] sm:$0xff] %vm509_vm1, %v5252_v53  ;;  %1739 = vperm.xlu0 %4226, %v5252_v53   ;;  %4077 = vmatpush3.bf16.msra.mxu1 %v4289_v61 }
 0x1f1   : > { %1694 = vperm.xlu1 %4225, %v5238_v28   ;;  %v1481_v50 = vpop.xlane.xlu1 %1480  ;;  %2881 = vst.msk [vmem:[#allocation2 + $0x70] sm:$0xff] %vm509_vm1, %v5259_v39  ;;  %4110 = vmatprep.subr.bf16.mxu1 %v5336_v55 }
 0x1f2   : > { %v5274_v46 = vmax.f32 %v5256_v34, %v1481_v50  ;;  %v1479_v18 = vpop.xlane.xlu0 %1478  ;;  %v5287_v50 = vld [vmem:[#allocation2 + $0x60] sm:$0xff]  ;;  %4049 = vmatpush3.bf16.msra.mxu0 %v4286_v48  ;;  %v4290_v48 = vld [vmem:[%s4738_s9 + $0x38] sm:$0xff]  }
 0x1f3   : > { %v5281_v0 = vmax.f32 %v5266_v7, %v1479_v18  ;;  %4050 = vmatprep.subr.bf16.mxu0 %v4288_v62 }
 0x1f4   : > { %2872 = vst.msk [vmem:[#allocation2 + $0x28] sm:$0xff] %vm509_vm1, %v5274_v46 }
 0x1f5   : > { %1734 = vperm.xlu1 %4225, %v5259_v39   ;;  %v1497_v11 = vpop.xlane.xlu1 %1496  ;;  %2871 = vst.msk [vmem:[#allocation2 + $0x20] sm:$0xff] %vm509_vm1, %v5281_v0  ;;  %v6132_v3 = vsub.f32 %v5266_v7, %v5281_v0  ;;  %v6135_v7 = vsub.f32 %v5216_v21, %v5231_v38 }
 0x1f6   : > { %v5295_v18 = vmax.f32 %v5278_v1, %v1497_v11  ;;  %v1495_v6 = vpop.xlane.xlu0 %1494  ;;  %4051 = vmatpush3.bf16.msra.mxu0 %v4288_v62  ;;  %v5319_v11 = vld [vmem:[%s4738_s9 + $0x80] sm:$0xff]  }
 0x1f7   : > { %v5300_v56 = vmax.f32 %v5287_v50, %v1495_v6  ;;  %4052 = vmatprep.subr.bf16.mxu0 %v4290_v48  ;;  %v5316_v6 = vld [vmem:[#allocation2 + $0x90] sm:$0xff]  ;;  %6123 = vst [vmem:[#allocation39_spill] sm:$0xff] %v5319_v11  ;;  %v1606_v8 = vmul.f32 1.442695, %v6132_v3 }
 0x1f8   : > { %2880 = vst.msk [vmem:[#allocation2 + $0x68] sm:$0xff] %vm509_vm1, %v5295_v18  ;;  %1729 = vperm.xlu0 %4226, %v5295_v18   ;;  %v6141_v3 = vsub.f32 %v5278_v1, %v5295_v18  ;;  %v6143_v1 = vsub.f32 %v5235_v16, %v5252_v53 }
 0x1f9   : > { %1684 = vperm.xlu1 %4225, %v5281_v0   ;;  %2879 = vst.msk [vmem:[#allocation2 + $0x60] sm:$0xff] %vm509_vm1, %v5300_v56  ;;  %v5475_v0 = vpop.eup %4307 }
 0x1fa   : > { %4053 = vmatpush3.bf16.msra.mxu0 %v4290_v48  ;;  %v1628_v18 = vmul.f32 1.442695, %v6143_v1 }
 0x1fb   : > { %4086 = vmatprep.subr.bf16.mxu0 %v5319_v11 }
 0x1fd   : > { %1724 = vperm.xlu1 %4225, %v5300_v56  }
 0x201   : > { %1699 = vperm.xlu1 %4225, %v5231_v38   ;;  %v6138_v38 = vsub.f32 %v5142_v4, %v5149_v9 }
 0x205   : > { %1689 = vperm.xlu1 %4225, %v5274_v46  }
 0x219   : > { %v1507_v59 = vpop.xlane.xlu0 %1506 }
 0x21a   : > { %v5325_v61 = vmax.f32 %v5316_v6, %v1507_v59 }
 0x21b   : > { %v1509_v62 = vpop.xlane.xlu1 %1508 }
 0x21c   : > { %2885 = vst.msk [vmem:[#allocation2 + $0x90] sm:$0xff] %vm509_vm1, %v5325_v61  ;;  %v5332_v48 = vmax.f32 %v5321_v60, %v1509_v62  ;;  %1754 = vperm.xlu1 %4225, %v5325_v61   ;;  %v5347_v62 = vld [vmem:[#allocation2 + $0x80] sm:$0xff] }
 0x21d   : > { %v1523_v54 = vpop.xlane.xlu0 %1522 }
 0x21e   : > { %2886 = vst.msk [vmem:[#allocation2 + $0x98] sm:$0xff] %vm509_vm1, %v5332_v48  ;;  %v5343_v59 = vmax.f32 %v5327_v32, %v1523_v54  ;;  %1759 = vperm.xlu0 %4226, %v5332_v48  }
 0x21f   : > { %v1525_v51 = vpop.xlane.xlu1 %1524 }
 0x220   : > { %2893 = vst.msk [vmem:[#allocation2 + $0xd0] sm:$0xff] %vm509_vm1, %v5343_v59  ;;  %v5352_v44 = vmax.f32 %v5338_v35, %v1525_v51  ;;  %1794 = vperm.xlu1 %4225, %v5343_v59  }
 0x221   : > { %v1503_v41 = vpop.xlane.xlu0 %1502 }
 0x222   : > { %2894 = vst.msk [vmem:[#allocation2 + $0xd8] sm:$0xff] %vm509_vm1, %v5352_v44  ;;  %v5360_v54 = vmax.f32 %v5347_v62, %v1503_v41  ;;  %1799 = vperm.xlu0 %4226, %v5352_v44   ;;  %v1593_v53 = vsub.f32 %v5338_v35, %v5352_v44 }
 0x223   : > { %v1505_v36 = vpop.xlane.xlu1 %1504 }
 0x224   : > { %2883 = vst.msk [vmem:[#allocation2 + $0x80] sm:$0xff] %vm509_vm1, %v5360_v54  ;;  %v5368_v51 = vmax.f32 %v5355_v30, %v1505_v36  ;;  %1744 = vperm.xlu1 %4225, %v5360_v54  }
 0x225   : > { %v1519_v17 = vpop.xlane.xlu0 %1518 }
 0x226   : > { %2884 = vst.msk [vmem:[#allocation2 + $0x88] sm:$0xff] %vm509_vm1, %v5368_v51  ;;  %v5376_v41 = vmax.f32 %v5363_v24, %v1519_v17  ;;  %1749 = vperm.xlu0 %4226, %v5368_v51  }
 0x227   : > { %v1521_v11 = vpop.xlane.xlu1 %1520 }
 0x228   : > { %2891 = vst.msk [vmem:[#allocation2 + $0xc0] sm:$0xff] %vm509_vm1, %v5376_v41  ;;  %v5384_v36 = vmax.f32 %v5371_v15, %v1521_v11  ;;  %1784 = vperm.xlu1 %4225, %v5376_v41  }
 0x229   : > { %v1515_v55 = vpop.xlane.xlu0 %1514 }
 0x22a   : > { %2892 = vst.msk [vmem:[#allocation2 + $0xc8] sm:$0xff] %vm509_vm1, %v5384_v36  ;;  %v5392_v17 = vmax.f32 %v5379_v25, %v1515_v55  ;;  %1789 = vperm.xlu0 %4226, %v5384_v36  }
 0x22b   : > { %v1517_v19 = vpop.xlane.xlu1 %1516 }
 0x22c   : > { %2889 = vst.msk [vmem:[#allocation2 + $0xb0] sm:$0xff] %vm509_vm1, %v5392_v17  ;;  %v5400_v11 = vmax.f32 %v5387_v27, %v1517_v19  ;;  %1774 = vperm.xlu1 %4225, %v5392_v17  }
 0x22d   : > { %v1531_v23 = vpop.xlane.xlu0 %1530 }
 0x22e   : > { %6127 = vst [vmem:[#allocation43_spill] sm:$0xff] %v5400_v11  ;;  %2890 = vst.msk [vmem:[#allocation2 + $0xb8] sm:$0xff] %vm509_vm1, %v5400_v11  ;;  %v5408_v55 = vmax.f32 %v5395_v26, %v1531_v23  ;;  %1779 = vperm.xlu0 %4226, %v5400_v11   ;;  %v5433_v11 = vld [vmem:[#allocation2 + $0xe0] sm:$0xff]  ;;  %v5444_v23 = vld [vmem:[#allocation2 + $0xe8] sm:$0xff] }
 0x22f   : > { %v1533_v43 = vpop.xlane.xlu1 %1532 }
 0x230   : > { %2897 = vst.msk [vmem:[#allocation2 + $0xf0] sm:$0xff] %vm509_vm1, %v5408_v55  ;;  %v5416_v19 = vmax.f32 %v5403_v14, %v1533_v43  ;;  %v6129_v43 = vsub.f32 %v5158_v12, %v5170_v29 }
 0x231   : > { %v1511_v63 = vpop.xlane.xlu0 %1510 }
 0x232   : > { %2898 = vst.msk [vmem:[#allocation2 + $0xf8] sm:$0xff] %vm509_vm1, %v5416_v19  ;;  %v5428_v47 = vmax.f32 %v5411_v13, %v1511_v63  ;;  %v1598_v26 = vmul.f32 1.442695, %v6129_v43  ;;  %v1602_v63 = vmul.f32 1.442695, %v6130_v52 }
 0x233   : > { %v1513_v27 = vpop.xlane.xlu1 %1512 }
 0x234   : > { %2887 = vst.msk [vmem:[#allocation2 + $0xa0] sm:$0xff] %vm509_vm1, %v5428_v47  ;;  %v5438_v57 = vmax.f32 %v5421_v2, %v1513_v27  ;;  %1764 = vperm.xlu1 %4225, %v5428_v47   ;;  %v6131_v27 = vsub.f32 %v5151_v10, %v5167_v22  ;;  %4309 = vpow2.f32 %v1598_v26  ;;  %v6133_v26 = vsub.f32 %v5256_v34, %v5274_v46 }
 0x235   : > { %v1527_v20 = vpop.xlane.xlu0 %1526  ;;  %4311 = vpow2.f32 %v1602_v63  ;;  %v6134_v22 = vsub.f32 %v5222_v37, %v5238_v28  ;;  %v1612_v63 = vmul.f32 1.442695, %v6135_v7  ;;  %v6136_v46 = vsub.f32 %v5179_v33, %v5192_v45 }
 0x236   : > { %2888 = vst.msk [vmem:[#allocation2 + $0xa8] sm:$0xff] %vm509_vm1, %v5438_v57  ;;  %v5449_v12 = vmax.f32 %v5433_v11, %v1527_v20  ;;  %1769 = vperm.xlu0 %4226, %v5438_v57   ;;  %v1604_v29 = vmul.f32 1.442695, %v6131_v27  ;;  %v1608_v10 = vmul.f32 1.442695, %v6133_v26  ;;  %v6137_v37 = vsub.f32 %v5194_v49, %v5209_v5 }
 0x237   : > { %v1529_v43 = vpop.xlane.xlu1 %1528  ;;  %v1610_v52 = vmul.f32 1.442695, %v6134_v22  ;;  %v1614_v20 = vmul.f32 1.442695, %v6136_v46  ;;  %v6139_v45 = vsub.f32 %v5172_v31, %v5189_v42  ;;  %v6140_v5 = vsub.f32 %v5287_v50, %v5300_v56 }
 0x238   : > { %2895 = vst.msk [vmem:[#allocation2 + $0xe0] sm:$0xff] %vm509_vm1, %v5449_v12  ;;  %v5458_v58 = vmax.f32 %v5444_v23, %v1529_v43  ;;  %1804 = vperm.xlu1 %4225, %v5449_v12   ;;  %4313 = vpow2.f32 %v1604_v29  ;;  %v1616_v27 = vmul.f32 1.442695, %v6137_v37  ;;  %v1618_v29 = vmul.f32 1.442695, %v6138_v38 }
 0x239   : > { %4315 = vpow2.f32 %v1606_v8  ;;  %v1620_v43 = vmul.f32 1.442695, %v6139_v45  ;;  %v1622_v4 = vmul.f32 1.442695, %v6140_v5  ;;  %v1624_v31 = vmul.f32 1.442695, %v6141_v3 }
 0x23a   : > { %2896 = vst.msk [vmem:[#allocation2 + $0xe8] sm:$0xff] %vm509_vm1, %v5458_v58  ;;  %1809 = vperm.xlu0 %4226, %v5458_v58   ;;  %4317 = vpow2.f32 %v1608_v10  ;;  %v6142_v8 = vsub.f32 %v5244_v40, %v5259_v39  ;;  %v1584_v56 = vsub.f32 %v5316_v6, %v5325_v61  ;;  %v1585_v10 = vsub.f32 %v5321_v60, %v5332_v48 }
 0x23b   : > { %4319 = vpow2.f32 %v1610_v52  ;;  %v1592_v6 = vsub.f32 %v5327_v32, %v5343_v59  ;;  %v1582_v22 = vsub.f32 %v5347_v62, %v5360_v54  ;;  %v1652_v59 = vmul.f32 1.442695, %v1593_v53 }
 0x23c   : > { %1814 = vperm.xlu1 %4225, %v5408_v55   ;;  %4321 = vpow2.f32 %v1612_v63  ;;  %v1626_v26 = vmul.f32 1.442695, %v6142_v8  ;;  %v1634_v40 = vmul.f32 1.442695, %v1584_v56  ;;  %v1636_v16 = vmul.f32 1.442695, %v1585_v10 }
 0x23d   : > { %4323 = vpow2.f32 %v1614_v20  ;;  %v1650_v48 = vmul.f32 1.442695, %v1592_v6  ;;  %v1583_v52 = vsub.f32 %v5355_v30, %v5368_v51  ;;  %v1630_v44 = vmul.f32 1.442695, %v1582_v22  ;;  %v6145_v20 = vld [vmem:[#allocation41_spill] sm:$0xff] }
 0x23e   : > { %1819 = vperm.xlu0 %4226, %v5416_v19   ;;  %v5481_v34 = vpop.eup %4309  ;;  %4325 = vpow2.f32 %v1616_v27  ;;  %v1590_v7 = vsub.f32 %v5363_v24, %v5376_v41  ;;  %v1591_v63 = vsub.f32 %v5371_v15, %v5384_v36  ;;  %v1588_v30 = vsub.f32 %v5379_v25, %v5392_v17  ;;  %v6144_v41 = vld [vmem:[#allocation43_spill] sm:$0xff]  ;;  %v6146_v27 = vld [vmem:[#allocation42_spill] sm:$0xff] }
 0x23f   : > { %v5487_v28 = vpop.eup %4311  ;;  %4327 = vpow2.f32 %v1618_v29  ;;  %v1632_v54 = vmul.f32 1.442695, %v1583_v52  ;;  %v1589_v37 = vsub.f32 %v6145_v20, %v6144_v41  ;;  %v1596_v38 = vsub.f32 %v6146_v27, %v5408_v55 }
 0x240   : > { %2150 = vperm.xlu1 %4225, %v5475_v0   ;;  %4329 = vpow2.f32 %v1620_v43  ;;  %v1646_v24 = vmul.f32 1.442695, %v1590_v7  ;;  %v1648_v36 = vmul.f32 1.442695, %v1591_v63  ;;  %v1586_v25 = vsub.f32 %v5411_v13, %v5428_v47  ;;  %v6147_v13 = vld [vmem:[#allocation8_spill] sm:$0xff]  ;;  %v6151_v7 = vld [vmem:[#allocation9_spill] sm:$0xff] }
 0x241   : > { %4331 = vpow2.f32 %v1622_v4  ;;  %v1642_v29 = vmul.f32 1.442695, %v1588_v30  ;;  %v1587_v45 = vsub.f32 %v5421_v2, %v5438_v57  ;;  %v1644_v55 = vmul.f32 1.442695, %v1589_v37  ;;  %v6152_v63 = vld [vmem:[#allocation13_spill] sm:$0xff] }
 0x242   : > { %2145 = vperm.xlu0 %4226, %v5481_v34   ;;  %v5493_v21 = vpop.eup %4313  ;;  %4333 = vpow2.f32 %v1624_v31  ;;  %v1594_v4 = vsub.f32 %v5433_v11, %v5449_v12  ;;  %v1658_v3 = vmul.f32 1.442695, %v1596_v38  ;;  %v1595_v31 = vsub.f32 %v5444_v23, %v5458_v58  ;;  %v6148_v12 = vld [vmem:[#allocation12_spill] sm:$0xff]  ;;  %v6149_v58 = vld [vmem:[#allocation11_spill] sm:$0xff] }
 0x243   : > { %v5499_v33 = vpop.eup %4315  ;;  %4335 = vpow2.f32 %v1626_v26  ;;  %v1638_v2 = vmul.f32 1.442695, %v1586_v25  ;;  %v1640_v8 = vmul.f32 1.442695, %v1587_v45 }
 0x244   : > { %2155 = vperm.xlu1 %4225, %v5487_v28   ;;  %v5505_v49 = vpop.eup %4317  ;;  %4337 = vpow2.f32 %v1628_v18  ;;  %v1654_v11 = vmul.f32 1.442695, %v1594_v4  ;;  %v1656_v10 = vmul.f32 1.442695, %v1595_v31 }
 0x245   : > { %v5511_v9 = vpop.eup %4319  ;;  %4339 = vpow2.f32 %v1634_v40 }
 0x246   : > { %2160 = vperm.xlu0 %4226, %v5493_v21   ;;  %v5517_v42 = vpop.eup %4321  ;;  %4341 = vpow2.f32 %v1636_v16  ;;  %v6150_v16 = vld [vmem:[#allocation10_spill] sm:$0xff] }
 0x247   : > { %v5525_v50 = vpop.eup %4323  ;;  %4343 = vpow2.f32 %v1650_v48 }
 0x248   : > { %2165 = vperm.xlu1 %4225, %v5499_v33   ;;  %v5533_v39 = vpop.eup %4325  ;;  %4345 = vpow2.f32 %v1652_v59 }
 0x249   : > { %v5538_v61 = vpop.eup %4327  ;;  %4347 = vpow2.f32 %v1630_v44 }
 0x24a   : > { %2170 = vperm.xlu0 %4226, %v5505_v49   ;;  %v5543_v60 = vpop.eup %4329  ;;  %4349 = vpow2.f32 %v1632_v54 }
 0x24b   : > { %v5548_v32 = vpop.eup %4331  ;;  %4351 = vpow2.f32 %v1646_v24  ;;  %v6153_v24 = vld [vmem:[#allocation7_spill] sm:$0xff] }
 0x24c   : > { %2175 = vperm.xlu1 %4225, %v5511_v9   ;;  %v5553_v35 = vpop.eup %4333  ;;  %4353 = vpow2.f32 %v1648_v36 }
 0x24d   : > { %v5558_v62 = vpop.eup %4335  ;;  %4355 = vpow2.f32 %v1642_v29 }
 0x24e   : > { %2180 = vperm.xlu0 %4226, %v5517_v42   ;;  %v5567_v51 = vpop.eup %4337  ;;  %4357 = vpow2.f32 %v1644_v55 }
 0x24f   : > { %v5574_v15 = vpop.eup %4339  ;;  %4359 = vpow2.f32 %v1658_v3 }
 0x250   : > { %2185 = vperm.xlu1 %4225, %v5525_v50   ;;  %v5581_v5 = vpop.eup %4341  ;;  %4361 = vpow2.f32 %v1638_v2 }
 0x251   : > { %v5588_v47 = vpop.eup %4343  ;;  %4363 = vpow2.f32 %v1640_v8 }
 0x252   : > { %2190 = vperm.xlu0 %4226, %v5533_v39   ;;  %v5592_v1 = vpop.eup %4345  ;;  %4365 = vpow2.f32 %v1654_v11 }
 0x253   : > { %v5597_v40 = vpop.eup %4347  ;;  %4367 = vpow2.f32 %v1656_v10 }
 0x254   : > { %2195 = vperm.xlu1 %4225, %v5538_v61   ;;  %v5601_v52 = vpop.eup %4349 }
 0x255   : > { %v5608_v20 = vpop.eup %4351 }
 0x256   : > { %2200 = vperm.xlu0 %4226, %v5543_v60   ;;  %v5611_v25 = vpop.eup %4353 }
 0x257   : > { %v5614_v45 = vpop.eup %4355 }
 0x258   : > { %2205 = vperm.xlu1 %4225, %v5548_v32  }
 0x25a   : > { %2210 = vperm.xlu0 %4226, %v5553_v35  }
 0x25b   : > { %v5562_v46 = vpop.permute.xlu1 %1674 }
 0x25c   : > { %2215 = vperm.xlu1 %4225, %v5558_v62   ;;  %v1824_v41 = vsub.f32 %v6153_v24, %v5562_v46 }
 0x25e   : > { %2220 = vperm.xlu0 %4226, %v5567_v51   ;;  %v1858_v46 = vmul.f32 1.442695, %v1824_v41 }
 0x25f   : > { %v1715_v17 = vpop.permute.xlu1 %1714 }
 0x260   : > { %v1665_v43 = vpop.permute.xlu0 %1664  ;;  %2235 = vperm.xlu1 %4225, %v5574_v15   ;;  %v1832_v57 = vsub.f32 %v6147_v13, %v1715_v17  ;;  %v6154_v17 = vld [vmem:[#allocation14_spill] sm:$0xff] }
 0x261   : > { %v1822_v53 = vsub.f32 %v6150_v16, %v1665_v43  ;;  %v5617_v43 = vpop.eup %4357  ;;  %v6158_v16 = vld [vmem:[#allocation21_spill] sm:$0xff] }
 0x262   : > { %2240 = vperm.xlu0 %4226, %v5581_v5   ;;  %v1874_v6 = vmul.f32 1.442695, %v1832_v57  ;;  %v5619_v4 = vpop.eup %4359 }
 0x263   : > { %v1854_v37 = vmul.f32 1.442695, %v1822_v53  ;;  %v5624_v31 = vpop.eup %4361 }
 0x264   : > { %v1705_v26 = vpop.permute.xlu1 %1704  ;;  %v1720_v56 = vpop.permute.xlu0 %1719  ;;  %2275 = vperm.xlu1 %4225, %v5588_v47   ;;  %4369 = vpow2.f32 %v1874_v6 }
 0x265   : > { %v1830_v23 = vsub.f32 %v6148_v12, %v1705_v26  ;;  %v1833_v18 = vsub.f32 %v6149_v58, %v1720_v56  ;;  %v5626_v2 = vpop.eup %4363 }
 0x266   : > { %2280 = vperm.xlu0 %4226, %v5592_v1   ;;  %6155 = vst [vmem:[#allocation43_spill] sm:$0xff] %v5626_v2  ;;  %v5629_v13 = vpop.eup %4365 }
 0x267   : > { %v1870_v48 = vmul.f32 1.442695, %v1830_v23  ;;  %v1876_v44 = vmul.f32 1.442695, %v1833_v18  ;;  %v5631_v8 = vpop.eup %4367  ;;  %v6157_v23 = vld [vmem:[#allocation18_spill] sm:$0xff] }
 0x268   : > { %v1680_v22 = vpop.permute.xlu1 %1679  ;;  %v1710_v59 = vpop.permute.xlu0 %1709  ;;  %2225 = vperm.xlu1 %4225, %v5597_v40   ;;  %6156 = vst [vmem:[#allocation41_spill] sm:$0xff] %v5631_v8 }
 0x269   : > { %v1825_v54 = vsub.f32 %v6151_v7, %v1680_v22  ;;  %v1831_v30 = vsub.f32 %v6152_v63, %v1710_v59  ;;  %4371 = vpow2.f32 %v1870_v48  ;;  %v4295_v63 = vld [vmem:[%s4738_s9 + $0xc8] sm:$0xff]  }
 0x26a   : > { %2230 = vperm.xlu0 %4226, %v5601_v52   ;;  %4373 = vpow2.f32 %v1876_v44  ;;  %v6159_v44 = vld [vmem:[#allocation17_spill] sm:$0xff] }
 0x26b   : > { %v1872_v27 = vmul.f32 1.442695, %v1831_v30  ;;  %v1860_v38 = vmul.f32 1.442695, %v1825_v54 }
 0x26c   : > { %v1670_v36 = vpop.permute.xlu1 %1669  ;;  %2265 = vperm.xlu1 %4225, %v5608_v20  }
 0x26d   : > { %v1823_v29 = vsub.f32 %v6154_v17, %v1670_v36  ;;  %4375 = vpow2.f32 %v1872_v27  ;;  %v6160_v36 = vld [vmem:[#allocation22_spill] sm:$0xff] }
 0x26e   : > { %2270 = vperm.xlu0 %4226, %v5611_v25   ;;  %4377 = vpow2.f32 %v1854_v37  ;;  %v5634_v56 = vpop.eup %4369 }
 0x26f   : > { %v1856_v55 = vmul.f32 1.442695, %v1823_v29  ;;  %4379 = vpow2.f32 %v1860_v38  ;;  %v1740_v57 = vpop.permute.xlu0 %1739 }
 0x270   : > { %v5621_v3 = vpop.permute.xlu1 %1694  ;;  %2255 = vperm.xlu1 %4225, %v5614_v45   ;;  %v1837_v7 = vsub.f32 %v6159_v44, %v1740_v57 }
 0x271   : > { %4381 = vpow2.f32 %v1856_v55  ;;  %v6161_v55 = vld [vmem:[#allocation40_spill] sm:$0xff] }
 0x272   : > { %4383 = vpow2.f32 %v1858_v46  ;;  %2260 = vperm.xlu0 %4226, %v5617_v43   ;;  %v4292_v46 = vld [vmem:[%s4738_s9 + $0x88] sm:$0xff]   ;;  %v1884_v57 = vmul.f32 1.442695, %v1837_v7 }
 0x273   : > { %v5636_v11 = vpop.eup %4371  ;;  %v6165_v7 = vld [vmem:[#allocation16_spill] sm:$0xff] }
 0x274   : > { %v1735_v26 = vpop.permute.xlu1 %1734  ;;  %2295 = vperm.xlu1 %4225, %v5619_v4   ;;  %v5639_v12 = vpop.eup %4373 }
 0x275   : > { %v1836_v58 = vsub.f32 %v6157_v23, %v1735_v26  ;;  %v2340_v54 = vpack.c.bf16 %v5639_v12, %v5634_v56  ;;  %v4297_v26 = vld [vmem:[%s4738_s9 + $0xd0] sm:$0xff]   ;;  %v6162_v23 = vld [vmem:[#allocation20_spill] sm:$0xff] }
 0x276   : > { %2250 = vperm.xlu0 %4226, %v5626_v2  }
 0x277   : > { %v1730_v18 = vpop.permute.xlu0 %1729  ;;  %v5642_v10 = vpop.eup %4375  ;;  %v1882_v24 = vmul.f32 1.442695, %v1836_v58 }
 0x278   : > { %v1685_v6 = vpop.permute.xlu1 %1684  ;;  %v1835_v53 = vsub.f32 %v6158_v16, %v1730_v18  ;;  %2245 = vperm.xlu1 %4225, %v5624_v31   ;;  %v5646_v48 = vpop.eup %4377  ;;  %v2339_v22 = vpack.c.bf16 %v5642_v10, %v5636_v11 }
 0x279   : > { %v5650_v59 = vpop.eup %4379  ;;  %4385 = vpow2.f32 %v1882_v24  ;;  %v1826_v58 = vsub.f32 %v6162_v23, %v1685_v6  ;;  %v4299_v6 = vld [vmem:[%s4738_s9 + $0xd8] sm:$0xff]  }
 0x27a   : > { %2290 = vperm.xlu0 %4226, %v5631_v8   ;;  %4078 = vmatprep.mubr.bf16.mxu1 %v2339_v22  ;;  %v1880_v37 = vmul.f32 1.442695, %v1835_v53  ;;  %v6163_v53 = vld [vmem:[#allocation39_spill] sm:$0xff] }
 0x27b   : > { %v5657_v30 = vpop.eup %4381  ;;  %4079 = vmatmul.mubr.bf16.vlgmr.msra.gmra.mrb[16].mxu1 %v2340_v54  ;;  %v6164_v22 = vld [vmem:[#allocation15_spill] sm:$0xff]  ;;  %v4294_v54 = vld [vmem:[%s4738_s9 + $0x90] sm:$0xff]   ;;  %v1862_v24 = vmul.f32 1.442695, %v1826_v58 }
 0x27c   : > { %v5659_v41 = vpop.eup %4383  ;;  %v1725_v27 = vpop.permute.xlu1 %1724  ;;  %2285 = vperm.xlu1 %4225, %v5629_v13   ;;  %v2335_v38 = vpack.c.bf16 %v5657_v30, %v5646_v48  ;;  %4111 = vmatpush3.bf16.msra.mxu1 %v6161_v55  ;;  %4387 = vpow2.f32 %v1880_v37 }
 0x27d   : > { %v1834_v17 = vsub.f32 %v6160_v36, %v1725_v27  ;;  %v2336_v29 = vpack.c.bf16 %v5650_v59, %v5659_v41  ;;  %4112 = vmatprep.subr.bf16.mxu1 %v4295_v63  ;;  %v1828_v27 = vsub.f32 %v6165_v7, %v5621_v3  ;;  %v6166_v36 = vld [vmem:[#allocation19_spill] sm:$0xff]  ;;  %v4302_v7 = vld [vmem:[%s4738_s9 + $0xb0] sm:$0xff]  }
 0x27e   : > { %4054 = vmatprep.mubr.bf16.mxu0 %v2335_v38 }
 0x27f   : > { %v1878_v18 = vmul.f32 1.442695, %v1834_v17  ;;  %4055 = vmatmul.mubr.bf16.vlgmr.msra.gmra.mrb[16].mxu0 %v2336_v29  ;;  %v4296_v29 = vld [vmem:[%s4738_s9 + $0x98] sm:$0xff]   ;;  %v1866_v55 = vmul.f32 1.442695, %v1828_v27 }
 0x280   : > { %v1700_v16 = vpop.permute.xlu1 %1699  ;;  %4087 = vmatpush3.bf16.msra.mxu0 %v6163_v53  ;;  %4113 = vmatpush3.bf16.msra.mxu1 %v4295_v63  ;;  %v4301_v63 = vld [vmem:[%s4738_s9 + $0xe0] sm:$0xff]  }
 0x281   : > { %4389 = vpow2.f32 %v1878_v18  ;;  %v1829_v44 = vsub.f32 %v6164_v22, %v1700_v16  ;;  %4088 = vmatprep.subr.bf16.mxu0 %v4292_v46  ;;  %4114 = vmatprep.subr.bf16.mxu1 %v4297_v26  ;;  %v4300_v22 = vld [vmem:[%s4738_s9 + $0xa8] sm:$0xff]  }
 0x282   : > { %4391 = vpow2.f32 %v1884_v57  ;;  %v4298_v57 = vld [vmem:[%s4738_s9 + $0xa0] sm:$0xff]  }
 0x283   : > { %v1868_v38 = vmul.f32 1.442695, %v1829_v44  ;;  %4393 = vpow2.f32 %v1862_v24  ;;  %v5680_v3 = vpop.eup %4385  ;;  %v4305_v44 = vld [vmem:[%s4738_s9 + $0xf0] sm:$0xff]  }
 0x284   : > { %v1690_v37 = vpop.permute.xlu1 %1689  ;;  %4089 = vmatpush3.bf16.msra.mxu0 %v4292_v46  ;;  %4115 = vmatpush3.bf16.msra.mxu1 %v4297_v26  ;;  %v4303_v26 = vld [vmem:[%s4738_s9 + $0xe8] sm:$0xff]  }
 0x285   : > { %v1827_v17 = vsub.f32 %v6166_v36, %v1690_v37  ;;  %4090 = vmatprep.subr.bf16.mxu0 %v4294_v54  ;;  %4116 = vmatprep.subr.bf16.mxu1 %v4299_v6  ;;  %4395 = vpow2.f32 %v1868_v38 }
 0x286   : > { %v5683_v46 = vpop.eup %4387 }
 0x287   : > { %v1864_v23 = vmul.f32 1.442695, %v1827_v17  ;;  %v4304_v17 = vld [vmem:[%s4738_s9 + $0xb8] sm:$0xff]  }
 0x288   : > { %4091 = vmatpush3.bf16.msra.mxu0 %v4294_v54  ;;  %4117 = vmatpush3.bf16.msra.mxu1 %v4299_v6  ;;  %v4306_v6 = vld [vmem:[%s4738_s9 + $0xf8] sm:$0xff]  }
 0x289   : > { %4397 = vpow2.f32 %v1864_v23  ;;  %4092 = vmatprep.subr.bf16.mxu0 %v4296_v29  ;;  %4118 = vmatprep.subr.bf16.mxu1 %v4301_v63  ;;  %v6167_v23 = vld [vmem:[#allocation25_spill] sm:$0xff] }
 0x28a   : > { %4399 = vpow2.f32 %v1866_v55 }
 0x28b   : > { %v5686_v58 = vpop.eup %4389 }
 0x28c   : > { %v5688_v18 = vpop.eup %4391  ;;  %v2341_v16 = vpack.c.bf16 %v5683_v46, %v5686_v58  ;;  %4093 = vmatpush3.bf16.msra.mxu0 %v4296_v29  ;;  %4119 = vmatpush3.bf16.msra.mxu1 %v4301_v63 }
 0x28d   : > { %v2342_v53 = vpack.c.bf16 %v5688_v18, %v5680_v3  ;;  %4094 = vmatprep.subr.bf16.mxu0 %v4298_v57  ;;  %4120 = vmatprep.subr.bf16.mxu1 %v4303_v26  ;;  %v5696_v54 = vpop.eup %4393 }
 0x28e   : > { %4082 = vmatprep.mubr.bf16.mxu1 %v2341_v16  ;;  %v6168_v16 = vld [vmem:[#allocation23_spill] sm:$0xff] }
 0x28f   : > { %4083 = vmatmul.mubr.bf16.gmra.mrb[20].mxu1 %v2342_v53  ;;  %v5699_v27 = vpop.eup %4395 }
 0x290   : > { %4095 = vmatpush3.bf16.msra.mxu0 %v4298_v57  ;;  %4121 = vmatpush3.bf16.msra.mxu1 %v4303_v26 }
 0x291   : > { %4096 = vmatprep.subr.bf16.mxu0 %v4300_v22  ;;  %4122 = vmatprep.subr.bf16.mxu1 %v4305_v44 }
 0x293   : > { %v5702_v24 = vpop.eup %4397 }
 0x294   : > { %v4400_v38 = vpop.eup %4399  ;;  %v2337_v37 = vpack.c.bf16 %v5702_v24, %v5696_v54  ;;  %4097 = vmatpush3.bf16.msra.mxu0 %v4300_v22  ;;  %4123 = vmatpush3.bf16.msra.mxu1 %v4305_v44 }
 0x295   : > { %v2338_v36 = vpack.c.bf16 %v5699_v27, %v4400_v38  ;;  %4098 = vmatprep.subr.bf16.mxu0 %v4302_v7  ;;  %4124 = vmatprep.subr.bf16.mxu1 %v4306_v6 }
 0x296   : > { %4058 = vmatprep.mubr.bf16.mxu0 %v2337_v37 }
 0x297   : > { %4059 = vmatmul.mubr.bf16.gmra.mrb[20].mxu0 %v2338_v36 }
 0x298   : > { %4099 = vmatpush3.bf16.msra.mxu0 %v4302_v7  ;;  %4125 = vmatpush3.bf16.msra.mxu1 %v4306_v6  ;;  %v6170_v6 = vld [vmem:[#allocation27_spill] sm:$0xff] }
 0x299   : > { %1986 = vadd.xlane.f32.xlu0 %v5659_v41  ;;  %4100 = vmatprep.subr.bf16.mxu0 %v4304_v17  ;;  %v6169_v41 = vld [vmem:[#allocation26_spill] sm:$0xff] }
 0x29b   : > { %v1755_v29 = vpop.permute.xlu1 %1754 }
 0x29c   : > { %4101 = vmatpush3.bf16.msra.mxu0 %v4304_v17  ;;  %v1840_v53 = vsub.f32 %v6168_v16, %v1755_v29  ;;  %v6171_v17 = vld [vmem:[#allocation28_spill] sm:$0xff] }
 0x29d   : > { %2002 = vadd.xlane.f32.xlu0 %v5634_v56  ;;  %v1760_v55 = vpop.permute.xlu0 %1759 }
 0x29e   : > { %v1841_v57 = vsub.f32 %v6167_v23, %v1760_v55  ;;  %v6172_v23 = vld [vmem:[#allocation24_spill] sm:$0xff] }
 0x29f   : > { %v1795_v63 = vpop.permute.xlu1 %1794 }
 0x2a0   : > { %1982 = vadd.xlane.f32.xlu1 %v5646_v48  ;;  %v1892_v44 = vmul.f32 1.442695, %v1841_v57  ;;  %v1890_v48 = vmul.f32 1.442695, %v1840_v53  ;;  %v6173_v57 = vld [vmem:[#allocation29_spill] sm:$0xff] }
 0x2a1   : > { %1998 = vadd.xlane.f32.xlu0 %v5636_v11  ;;  %v1800_v26 = vpop.permute.xlu0 %1799  ;;  %v1848_v11 = vsub.f32 %v6172_v23, %v1795_v63 }
 0x2a2   : > { %v1849_v7 = vsub.f32 %v6169_v41, %v1800_v26  ;;  %4401 = vpow2.f32 %v1892_v44  ;;  %v6174_v26 = vld [vmem:[#allocation30_spill] sm:$0xff] }
 0x2a3   : > { %v1745_v22 = vpop.permute.xlu1 %1744  ;;  %v1906_v41 = vmul.f32 1.442695, %v1848_v11  ;;  %v6178_v11 = vld [vmem:[#allocation36_spill] sm:$0xff] }
 0x2a4   : > { %v1838_v37 = vsub.f32 %v6170_v6, %v1745_v22  ;;  %1988 = vadd.xlane.f32.xlu1 %v5650_v59  ;;  %v1908_v29 = vmul.f32 1.442695, %v1849_v7  ;;  %v6176_v7 = vld [vmem:[#allocation31_spill] sm:$0xff] }
 0x2a5   : > { %1984 = vadd.xlane.f32.xlu0 %v5657_v30  ;;  %v1750_v56 = vpop.permute.xlu0 %1749 }
 0x2a6   : > { %v1886_v36 = vmul.f32 1.442695, %v1838_v37  ;;  %v1839_v55 = vsub.f32 %v6171_v17, %v1750_v56 }
 0x2a7   : > { %v1785_v8 = vpop.permute.xlu1 %1784 }
 0x2a8   : > { %v1888_v16 = vmul.f32 1.442695, %v1839_v55  ;;  %v1846_v2 = vsub.f32 %v6173_v57, %v1785_v8  ;;  %2004 = vadd.xlane.f32.xlu1 %v5639_v12  ;;  %4403 = vpow2.f32 %v1886_v36  ;;  %v6175_v12 = vld [vmem:[#allocation32_spill] sm:$0xff]  ;;  %v6177_v36 = vld [vmem:[#allocation35_spill] sm:$0xff] }
 0x2a9   : > { %1994 = vadd.xlane.f32.xlu0 %v4400_v38  ;;  %v1790_v59 = vpop.permute.xlu0 %1789 }
 0x2aa   : > { %4405 = vpow2.f32 %v1888_v16  ;;  %v1902_v30 = vmul.f32 1.442695, %v1846_v2  ;;  %v1847_v22 = vsub.f32 %v6174_v26, %v1790_v59 }
 0x2ab   : > { %4407 = vpow2.f32 %v1890_v48  ;;  %v1775_v8 = vpop.permute.xlu1 %1774 }
 0x2ac   : > { %4409 = vpow2.f32 %v1908_v29  ;;  %v1904_v53 = vmul.f32 1.442695, %v1847_v22  ;;  %2000 = vadd.xlane.f32.xlu1 %v5642_v10  ;;  %v4402_v2 = vpop.eup %4401  ;;  %v1844_v6 = vsub.f32 %v6176_v7, %v1775_v8  ;;  %v6179_v22 = vld [vmem:[#allocation37_spill] sm:$0xff]  ;;  %v6180_v8 = vld [vmem:[#allocation38_spill] sm:$0xff] }
 0x2ad   : > { %4411 = vpow2.f32 %v1902_v30  ;;  %2010 = vadd.xlane.f32.xlu0 %v5680_v3  ;;  %v1780_v63 = vpop.permute.xlu0 %1779 }
 0x2ae   : > { %4413 = vpow2.f32 %v1904_v53  ;;  %v1845_v38 = vsub.f32 %v6175_v12, %v1780_v63  ;;  %v1898_v57 = vmul.f32 1.442695, %v1844_v6 }
 0x2af   : > { %4415 = vpow2.f32 %v1906_v41 }
 0x2b0   : > { %1996 = vadd.xlane.f32.xlu1 %v5699_v27  ;;  %v1900_v10 = vmul.f32 1.442695, %v1845_v38 }
 0x2b1   : > { %1990 = vadd.xlane.f32.xlu0 %v5696_v54 }
 0x2b2   : > { %v4404_v44 = vpop.eup %4403  ;;  %4417 = vpow2.f32 %v1900_v10 }
 0x2b3   : > { %v1765_v37 = vpop.permute.xlu1 %1764 }
 0x2b4   : > { %v4406_v56 = vpop.eup %4405  ;;  %v1842_v17 = vsub.f32 %v6177_v36, %v1765_v37  ;;  %2012 = vadd.xlane.f32.xlu1 %v5688_v18  ;;  %v6181_v37 = vld [vmem:[#allocation33_spill] sm:$0xff] }
 0x2b5   : > { %v4408_v3 = vpop.eup %4407  ;;  %2006 = vadd.xlane.f32.xlu0 %v5686_v58  ;;  %v1770_v55 = vpop.permute.xlu0 %1769  ;;  %v2343_v48 = vpack.c.bf16 %v4406_v56, %v4404_v44 }
 0x2b6   : > { %v4410_v23 = vpop.eup %4409  ;;  %v1894_v27 = vmul.f32 1.442695, %v1842_v17  ;;  %v1843_v54 = vsub.f32 %v6178_v11, %v1770_v55  ;;  %v2344_v29 = vpack.c.bf16 %v4402_v2, %v4408_v3  ;;  %v6182_v17 = vld [vmem:[#allocation34_spill] sm:$0xff] }
 0x2b7   : > { %v4412_v16 = vpop.eup %4411  ;;  %v1805_v59 = vpop.permute.xlu1 %1804  ;;  %4102 = vmatprep.mubr.bf16.mxu0 %v2343_v48 }
 0x2b8   : > { %v4414_v30 = vpop.eup %4413  ;;  %v1896_v26 = vmul.f32 1.442695, %v1843_v54  ;;  %v1850_v41 = vsub.f32 %v6179_v22, %v1805_v59  ;;  %1992 = vadd.xlane.f32.xlu1 %v5702_v24  ;;  %4103 = vmatmul.mubr.bf16.vlgmr.msra.gmra.mrb[24].mxu0 %v2344_v29  ;;  %4419 = vpow2.f32 %v1894_v27 }
 0x2b9   : > { %v4416_v58 = vpop.eup %4415  ;;  %2018 = vadd.xlane.f32.xlu0 %v4408_v3  ;;  %v1810_v18 = vpop.permute.xlu0 %1809  ;;  %v2347_v53 = vpack.c.bf16 %v4414_v30, %v4412_v16 }
 0x2ba   : > { %4421 = vpow2.f32 %v1896_v26  ;;  %v1910_v63 = vmul.f32 1.442695, %v1850_v41  ;;  %v1851_v12 = vsub.f32 %v6180_v8, %v1810_v18  ;;  %v2348_v38 = vpack.c.bf16 %v4410_v23, %v4416_v58 }
 0x2bb   : > { %4423 = vpow2.f32 %v1898_v57  ;;  %v1815_v7 = vpop.permute.xlu1 %1814  ;;  %4126 = vmatprep.mubr.bf16.mxu1 %v2347_v53 }
 0x2bc   : > { %v1912_v6 = vmul.f32 1.442695, %v1851_v12  ;;  %v1852_v10 = vsub.f32 %v6181_v37, %v1815_v7  ;;  %2008 = vadd.xlane.f32.xlu1 %v5683_v46  ;;  %4127 = vmatmul.mubr.bf16.vlgmr.msra.gmra.mrb[24].mxu1 %v2348_v38  ;;  %4425 = vpow2.f32 %v1910_v63  ;;  %v4418_v48 = vpop.eup %4417 }
 0x2bd   : > { %2034 = vadd.xlane.f32.xlu0 %v4416_v58  ;;  %v1820_v24 = vpop.permute.xlu0 %1819 }
 0x2be   : > { %4427 = vpow2.f32 %v1912_v6  ;;  %v1914_v36 = vmul.f32 1.442695, %v1852_v10  ;;  %v1853_v3 = vsub.f32 %v6182_v17, %v1820_v24 }
 0x2c0   : > { %v1916_v55 = vmul.f32 1.442695, %v1853_v3  ;;  %2020 = vadd.xlane.f32.xlu1 %v4402_v2  ;;  %4429 = vpow2.f32 %v1914_v36 }
 0x2c1   : > { %2014 = vadd.xlane.f32.xlu0 %v4404_v44  ;;  %v5739_v41 = vpop.permute.xlu0 %2145 }
 0x2c2   : > { %4431 = vpow2.f32 %v1916_v55  ;;  %v4420_v27 = vpop.eup %4419 }
 0x2c4   : > { %v4422_v11 = vpop.eup %4421  ;;  %2036 = vadd.xlane.f32.xlu1 %v4410_v23  ;;  %v5741_v23 = vpop.permute.xlu1 %2150 }
 0x2c5   : > { %v4424_v54 = vpop.eup %4423  ;;  %2030 = vadd.xlane.f32.xlu0 %v4412_v16  ;;  %v2345_v46 = vpack.c.bf16 %v4422_v11, %v4420_v27  ;;  %v5743_v16 = vpop.permute.xlu0 %2160 }
 0x2c6   : > { %v2346_v29 = vpack.c.bf16 %v4418_v48, %v4424_v54  ;;  %v4426_v57 = vpop.eup %4425 }
 0x2c7   : > { %4106 = vmatprep.mubr.bf16.mxu0 %v2345_v46 }
 0x2c8   : > { %v4428_v59 = vpop.eup %4427  ;;  %2016 = vadd.xlane.f32.xlu1 %v4406_v56  ;;  %4107 = vmatmul.mubr.bf16.gmra.mrb[28].mxu0 %v2346_v29  ;;  %v5745_v56 = vpop.permute.xlu1 %2155 }
 0x2c9   : > { %2026 = vadd.xlane.f32.xlu0 %v4424_v54  ;;  %v2349_v26 = vpack.c.bf16 %v4428_v59, %v4426_v57  ;;  %v5747_v58 = vpop.permute.xlu0 %2170 }
 0x2ca   : > { %v4430_v22 = vpop.eup %4429 }
 0x2cb   : > { %4130 = vmatprep.mubr.bf16.mxu1 %v2349_v26 }
 0x2cc   : > { %v4432_v2 = vpop.eup %4431  ;;  %2032 = vadd.xlane.f32.xlu1 %v4414_v30  ;;  %v5749_v18 = vpop.permute.xlu1 %2165  ;;  %v6183_v30 = vsub.f32 %v5403_v14, %v5416_v19 }
 0x2cd   : > { %2042 = vadd.xlane.f32.xlu0 %v4430_v22  ;;  %v2350_v44 = vpack.c.bf16 %v4432_v2, %v4430_v22  ;;  %v5754_v63 = vpop.permute.xlu0 %2180  ;;  %v1920_v22 = vld [vmem:[#allocation3 + $0x10] sm:$0xff] }
 0x2ce   : > { %v1660_v53 = vmul.f32 1.442695, %v6183_v30 }
 0x2cf   : > { %4131 = vmatmul.mubr.bf16.gmra.mrb[28].mxu1 %v2350_v44  ;;  %v1952_v44 = vmul.f32 %v5487_v28, %v1920_v22  ;;  %v1921_v22 = vld [vmem:[#allocation3 + $0x18] sm:$0xff] }
 0x2d0   : > { %2028 = vadd.xlane.f32.xlu1 %v4418_v48  ;;  %4433 = vpow2.f32 %v1660_v53  ;;  %v5756_v8 = vpop.permute.xlu1 %2175  ;;  %v1928_v53 = vld [vmem:[#allocation3 + $0x50] sm:$0xff] }
 0x2d1   : > { %2022 = vadd.xlane.f32.xlu0 %v4420_v27  ;;  %v5758_v12 = vpop.permute.xlu0 %2190 }
 0x2d4   : > { %2044 = vadd.xlane.f32.xlu1 %v4432_v2  ;;  %v5760_v38 = vpop.permute.xlu1 %2185 }
 0x2d5   : > { %2038 = vadd.xlane.f32.xlu0 %v4426_v57  ;;  %v5765_v6 = vpop.permute.xlu0 %2200 }
 0x2d8   : > { %2024 = vadd.xlane.f32.xlu1 %v4422_v11  ;;  %v5767_v37 = vpop.permute.xlu1 %2195 }
 0x2d9   : > { %v5769_v14 = vpop.permute.xlu0 %2210 }
 0x2da   : > { %v5762_v7 = vpop.eup %4433 }
 0x2dc   : > { %2040 = vadd.xlane.f32.xlu1 %v4428_v59  ;;  %v5771_v19 = vpop.permute.xlu1 %2205 }
 0x2dd   : > { %v5773_v10 = vpop.permute.xlu0 %2220 }
 0x2e0   : > { %v5775_v24 = vpop.permute.xlu1 %2215 }
 0x2e1   : > { %v5777_v36 = vpop.permute.xlu0 %2240 }
 0x2e4   : > { %v5779_v17 = vpop.permute.xlu1 %2235 }
 0x2e5   : > { %v5781_v3 = vpop.permute.xlu0 %2280 }
 0x2e6   : > { %6184 = vst [vmem:[#allocation42_spill] sm:$0xff] %v5781_v3 }
 0x2e8   : > { %v5783_v55 = vpop.permute.xlu1 %2275 }
 0x2e9   : > { %6185 = vst [vmem:[#allocation8_spill] sm:$0xff] %v5783_v55  ;;  %v5785_v48 = vpop.permute.xlu0 %2230 }
 0x2ea   : > { %6186 = vst [vmem:[#allocation12_spill] sm:$0xff] %v5785_v48 }
 0x2eb   : > { %2300 = vperm.xlu0 %4226, %v5762_v7  }
 0x2ec   : > { %v5787_v27 = vpop.permute.xlu1 %2225 }
 0x2ed   : > { %v5789_v11 = vpop.permute.xlu0 %2270 }
 0x2ee   : > { %6187 = vst [vmem:[#allocation11_spill] sm:$0xff] %v5789_v11 }
 0x2f0   : > { %v5791_v54 = vpop.permute.xlu1 %2265 }
 0x2f1   : > { %6188 = vst [vmem:[#allocation10_spill] sm:$0xff] %v5791_v54  ;;  %v5793_v46 = vpop.permute.xlu0 %2260  ;;  %v1926_v54 = vld [vmem:[#allocation3 + $0x40] sm:$0xff] }
 0x2f2   : > { %6189 = vst [vmem:[#allocation9_spill] sm:$0xff] %v5793_v46  ;;  %v1960_v46 = vmul.f32 %v5538_v61, %v1928_v53  ;;  %v1958_v28 = vmul.f32 %v5525_v50, %v1926_v54  ;;  %v1953_v61 = vmul.f32 %v5493_v21, %v1921_v22  ;;  %v1924_v50 = vld [vmem:[#allocation3 + $0x30] sm:$0xff] }
 0x2f4   : > { %v5795_v29 = vpop.permute.xlu1 %2255 }
 0x2f5   : > { %6190 = vst [vmem:[#allocation13_spill] sm:$0xff] %v5795_v29  ;;  %v5797_v57 = vpop.permute.xlu0 %2250  ;;  %v1918_v29 = vld [vmem:[#allocation3] sm:$0xff] }
 0x2f6   : > { %6191 = vst [vmem:[#allocation7_spill] sm:$0xff] %v5797_v57 }
 0x2f8   : > { %v5799_v59 = vpop.permute.xlu1 %2295 }
 0x2f9   : > { %6192 = vst [vmem:[#allocation14_spill] sm:$0xff] %v5799_v59  ;;  %v5801_v26 = vpop.permute.xlu0 %2290 }
 0x2fa   : > { %6193 = vst [vmem:[#allocation18_spill] sm:$0xff] %v5801_v26  ;;  %v1950_v26 = vmul.f32 %v5481_v34, %v1918_v29 }
 0x2fc   : > { %v5803_v2 = vpop.permute.xlu1 %2245 }
 0x2fd   : > { %6194 = vst [vmem:[#allocation21_spill] sm:$0xff] %v5803_v2 }
 0x300   : > { %v5806_v3 = vpop.permute.xlu1 %2285 }
 0x301   : > { %6195 = vst [vmem:[#allocation17_spill] sm:$0xff] %v5806_v3 }
 0x326   : > { %v1987_v30 = vpop.xlane.xlu0 %1986 }
 0x327   : > { %v2048_v11 = vadd.f32 %v1987_v30, %v1952_v44  ;;  %v1919_v30 = vld [vmem:[#allocation3 + $0x8] sm:$0xff] }
 0x328   : > { %v1951_v34 = vmul.f32 %v5475_v0, %v1919_v30  ;;  %v1932_v0 = vld [vmem:[#allocation3 + $0x70] sm:$0xff]  ;;  %v1925_v30 = vld [vmem:[#allocation3 + $0x38] sm:$0xff] }
 0x329   : > { %2081 = vst.msk [vmem:[#allocation3 + $0x10] sm:$0xff] %vm509_vm1, %v2048_v11 }
 0x32a   : > { %v2003_v57 = vpop.xlane.xlu0 %2002 }
 0x32b   : > { %v2056_v59 = vadd.f32 %v2003_v57, %v1960_v46  ;;  %v1929_v46 = vld [vmem:[#allocation3 + $0x58] sm:$0xff] }
 0x32d   : > { %2089 = vst.msk [vmem:[#allocation3 + $0x50] sm:$0xff] %vm509_vm1, %v2056_v59  ;;  %v1983_v2 = vpop.xlane.xlu1 %1982 }
 0x32e   : > { %v2046_v55 = vadd.f32 %v1983_v2, %v1950_v26  ;;  %v1999_v44 = vpop.xlane.xlu0 %1998  ;;  %v1961_v26 = vmul.f32 %v5543_v60, %v1929_v46 }
 0x32f   : > { %v2054_v3 = vadd.f32 %v1999_v44, %v1958_v28  ;;  %v1964_v44 = vmul.f32 %v5558_v62, %v1932_v0 }
 0x330   : > { %v2904_v48 = vld [vmem:[#allocation3 + $0x10] sm:$0xff]  ;;  %2079 = vst.msk [vmem:[#allocation3] sm:$0xff] %vm509_vm1, %v2046_v55  ;;  %v1956_v55 = vmul.f32 %v5511_v9, %v1924_v50  ;;  %v1957_v50 = vmul.f32 %v5517_v42, %v1925_v30 }
 0x331   : > { %4435 = vrcp.f32 %v2904_v48  ;;  %2087 = vst.msk [vmem:[#allocation3 + $0x40] sm:$0xff] %vm509_vm1, %v2054_v3  ;;  %v1989_v11 = vpop.xlane.xlu1 %1988  ;;  %v1927_v3 = vld [vmem:[#allocation3 + $0x48] sm:$0xff]  ;;  %v1936_v30 = vld [vmem:[#allocation3 + $0x90] sm:$0xff] }
 0x332   : > { %v2049_v29 = vadd.f32 %v1989_v11, %v1953_v61  ;;  %v1985_v57 = vpop.xlane.xlu0 %1984  ;;  %v1959_v22 = vmul.f32 %v5533_v39, %v1927_v3 }
 0x333   : > { %v2047_v54 = vadd.f32 %v1985_v57, %v1951_v34  ;;  %v1922_v34 = vld [vmem:[#allocation3 + $0x20] sm:$0xff] }
 0x334   : > { %v2912_v59 = vld [vmem:[#allocation3 + $0x50] sm:$0xff]  ;;  %2082 = vst.msk [vmem:[#allocation3 + $0x18] sm:$0xff] %vm509_vm1, %v2049_v29  ;;  %v1954_v62 = vmul.f32 %v5499_v33, %v1922_v34 }
 0x335   : > { %4437 = vrcp.f32 %v2912_v59  ;;  %2080 = vst.msk [vmem:[#allocation3 + $0x8] sm:$0xff] %vm509_vm1, %v2047_v54  ;;  %v2005_v21 = vpop.xlane.xlu1 %2004  ;;  %v1933_v54 = vld [vmem:[#allocation3 + $0x78] sm:$0xff] }
 0x336   : > { %v2057_v48 = vadd.f32 %v2005_v21, %v1961_v26  ;;  %v1995_v2 = vpop.xlane.xlu0 %1994  ;;  %v1930_v21 = vld [vmem:[#allocation3 + $0x60] sm:$0xff]  ;;  %v1965_v42 = vmul.f32 %v5567_v51, %v1933_v54 }
 0x337   : > { %v2902_v53 = vld [vmem:[#allocation3] sm:$0xff]  ;;  %v2052_v28 = vadd.f32 %v1995_v2, %v1956_v55  ;;  %v1962_v33 = vmul.f32 %v5548_v32, %v1930_v21  ;;  %v1968_v32 = vmul.f32 %v5574_v15, %v1936_v30 }
 0x338   : > { %4439 = vrcp.f32 %v2902_v53  ;;  %2090 = vst.msk [vmem:[#allocation3 + $0x58] sm:$0xff] %vm509_vm1, %v2057_v48  ;;  %v2910_v61 = vld [vmem:[#allocation3 + $0x40] sm:$0xff] }
 0x339   : > { %2085 = vst.msk [vmem:[#allocation3 + $0x30] sm:$0xff] %vm509_vm1, %v2052_v28  ;;  %v2001_v60 = vpop.xlane.xlu1 %2000  ;;  %v1923_v28 = vld [vmem:[#allocation3 + $0x28] sm:$0xff] }
 0x33a   : > { %v2055_v11 = vadd.f32 %v2001_v60, %v1959_v22  ;;  %v2011_v9 = vpop.xlane.xlu0 %2010  ;;  %v1955_v51 = vmul.f32 %v5505_v49, %v1923_v28  ;;  %v2119_v28 = vld [vmem:[#allocation4 + $0x40] sm:$0xff] }
 0x33b   : > { %v4436_v46 = vpop.eup %4435  ;;  %v2905_v29 = vld [vmem:[#allocation3 + $0x18] sm:$0xff]  ;;  %v2060_v57 = vadd.f32 %v2011_v9, %v1964_v44 }
 0x33c   : > { %4441 = vrcp.f32 %v2905_v29  ;;  %2088 = vst.msk [vmem:[#allocation3 + $0x48] sm:$0xff] %vm509_vm1, %v2055_v11  ;;  %3010 = vperm.xlu1 %4225, %v4436_v46   ;;  %v2903_v0 = vld [vmem:[#allocation3 + $0x8] sm:$0xff] }
 0x33d   : > { %4443 = vrcp.f32 %v2910_v61  ;;  %2093 = vst.msk [vmem:[#allocation3 + $0x70] sm:$0xff] %vm509_vm1, %v2060_v57  ;;  %v1997_v39 = vpop.xlane.xlu1 %1996  ;;  %v1931_v46 = vld [vmem:[#allocation3 + $0x68] sm:$0xff] }
 0x33e   : > { %v2053_v59 = vadd.f32 %v1997_v39, %v1957_v50  ;;  %v1991_v26 = vpop.xlane.xlu0 %1990  ;;  %v1944_v39 = vld [vmem:[#allocation3 + $0xd0] sm:$0xff]  ;;  %v1963_v49 = vmul.f32 %v5553_v35, %v1931_v46 }
 0x33f   : > { %v4438_v55 = vpop.eup %4437  ;;  %v2913_v3 = vld [vmem:[#allocation3 + $0x58] sm:$0xff]  ;;  %v2050_v48 = vadd.f32 %v1991_v26, %v1954_v62  ;;  %v1976_v21 = vmul.f32 %v5588_v47, %v1944_v39 }
 0x340   : > { %4445 = vrcp.f32 %v2913_v3  ;;  %v2908_v2 = vld [vmem:[#allocation3 + $0x30] sm:$0xff]  ;;  %2086 = vst.msk [vmem:[#allocation3 + $0x38] sm:$0xff] %vm509_vm1, %v2053_v59  ;;  %3050 = vperm.xlu1 %4225, %v4438_v55   ;;  %v1937_v55 = vld [vmem:[#allocation3 + $0x98] sm:$0xff] }
 0x341   : > { %4447 = vrcp.f32 %v2908_v2  ;;  %2083 = vst.msk [vmem:[#allocation3 + $0x20] sm:$0xff] %vm509_vm1, %v2050_v48  ;;  %v2013_v53 = vpop.xlane.xlu1 %2012  ;;  %v1969_v35 = vmul.f32 %v5581_v5, %v1937_v55  ;;  %v2311_v5 = vmul.f32 %v5760_v38, %v2119_v28 }
 0x342   : > { %v4440_v22 = vpop.eup %4439  ;;  %v2061_v60 = vadd.f32 %v2013_v53, %v1965_v42  ;;  %v2007_v44 = vpop.xlane.xlu0 %2006  ;;  %4449 = vrcp.f32 %v2903_v0  ;;  %v1934_v42 = vld [vmem:[#allocation3 + $0x80] sm:$0xff]  ;;  %v2121_v53 = vld [vmem:[#allocation4 + $0x50] sm:$0xff] }
 0x343   : > { %v2058_v61 = vadd.f32 %v2007_v44, %v1962_v33  ;;  %v2911_v9 = vld [vmem:[#allocation3 + $0x48] sm:$0xff]  ;;  %v1966_v30 = vmul.f32 %v5597_v40, %v1934_v42 }
 0x344   : > { %v2916_v11 = vld [vmem:[#allocation3 + $0x70] sm:$0xff]  ;;  %2094 = vst.msk [vmem:[#allocation3 + $0x78] sm:$0xff] %vm509_vm1, %v2061_v60  ;;  %3000 = vperm.xlu1 %4225, %v4440_v22   ;;  %v2122_v60 = vld [vmem:[#allocation4 + $0x58] sm:$0xff] }
 0x345   : > { %4451 = vrcp.f32 %v2916_v11  ;;  %2091 = vst.msk [vmem:[#allocation3 + $0x60] sm:$0xff] %vm509_vm1, %v2058_v61  ;;  %v1993_v34 = vpop.xlane.xlu1 %1992  ;;  %v1945_v61 = vld [vmem:[#allocation3 + $0xd8] sm:$0xff] }
 0x346   : > { %v4442_v29 = vpop.eup %4441  ;;  %v2051_v57 = vadd.f32 %v1993_v34, %v1955_v51  ;;  %v2019_v50 = vpop.xlane.xlu0 %2018  ;;  %4453 = vrcp.f32 %v2911_v9  ;;  %v2113_v51 = vld [vmem:[#allocation4 + $0x10] sm:$0xff]  ;;  %v2120_v9 = vld [vmem:[#allocation4 + $0x48] sm:$0xff]  ;;  %v2313_v34 = vmul.f32 %v5767_v37, %v2121_v53  ;;  %v1977_v37 = vmul.f32 %v5592_v1, %v1945_v61 }
 0x347   : > { %v4444_v62 = vpop.eup %4443  ;;  %v2064_v54 = vadd.f32 %v2019_v50, %v1968_v32  ;;  %3015 = vperm.xlu0 %4226, %v4442_v29   ;;  %v2909_v26 = vld [vmem:[#allocation3 + $0x38] sm:$0xff]  ;;  %v2305_v38 = vmul.f32 %v5745_v56, %v2113_v51  ;;  %v2312_v55 = vmul.f32 %v5758_v12, %v2120_v9 }
 0x348   : > { %v2906_v59 = vld [vmem:[#allocation3 + $0x20] sm:$0xff]  ;;  %2084 = vst.msk [vmem:[#allocation3 + $0x28] sm:$0xff] %vm509_vm1, %v2051_v57  ;;  %3040 = vperm.xlu1 %4225, %v4444_v62  }
 0x349   : > { %4455 = vrcp.f32 %v2906_v59  ;;  %2097 = vst.msk [vmem:[#allocation3 + $0x90] sm:$0xff] %vm509_vm1, %v2064_v54  ;;  %v2009_v15 = vpop.xlane.xlu1 %2008  ;;  %v2111_v57 = vld [vmem:[#allocation4] sm:$0xff]  ;;  %v2114_v54 = vld [vmem:[#allocation4 + $0x18] sm:$0xff]  ;;  %v2314_v59 = vmul.f32 %v5765_v6, %v2122_v60 }
 0x34a   : > { %v4446_v3 = vpop.eup %4445  ;;  %v2059_v48 = vadd.f32 %v2009_v15, %v1963_v49  ;;  %v2035_v2 = vpop.xlane.xlu0 %2034  ;;  %4457 = vrcp.f32 %v2909_v26  ;;  %v1942_v62 = vld [vmem:[#allocation3 + $0xc0] sm:$0xff]  ;;  %v1935_v15 = vld [vmem:[#allocation3 + $0x88] sm:$0xff]  ;;  %v2306_v12 = vmul.f32 %v5743_v16, %v2114_v54 }
 0x34b   : > { %v4448_v0 = vpop.eup %4447  ;;  %v2072_v33 = vadd.f32 %v2035_v2, %v1976_v21  ;;  %3055 = vperm.xlu0 %4226, %v4446_v3   ;;  %v2917_v44 = vld [vmem:[#allocation3 + $0x78] sm:$0xff]  ;;  %v2112_v21 = vld [vmem:[#allocation4 + $0x8] sm:$0xff]  ;;  %v1974_v56 = vmul.f32 %v5608_v20, %v1942_v62  ;;  %v1948_v62 = vld [vmem:[#allocation3 + $0xf0] sm:$0xff] }
 0x34c   : > { %v2914_v22 = vld [vmem:[#allocation3 + $0x60] sm:$0xff]  ;;  %2092 = vst.msk [vmem:[#allocation3 + $0x68] sm:$0xff] %vm509_vm1, %v2059_v48  ;;  %3030 = vperm.xlu1 %4225, %v4448_v0   ;;  %v4450_v11 = vpop.eup %4449  ;;  %v2303_v0 = vmul.f32 %v5739_v41, %v2111_v57  ;;  %v1967_v41 = vmul.f32 %v5601_v52, %v1935_v15  ;;  %v2304_v61 = vmul.f32 %v5741_v23, %v2112_v21  ;;  %v1943_v23 = vld [vmem:[#allocation3 + $0xc8] sm:$0xff] }
 0x34d   : > { %4459 = vrcp.f32 %v2914_v22  ;;  %2105 = vst.msk [vmem:[#allocation3 + $0xd0] sm:$0xff] %vm509_vm1, %v2072_v33  ;;  %v2021_v47 = vpop.xlane.xlu1 %2020  ;;  %v1980_v21 = vmul.f32 %v5619_v4, %v1948_v62  ;;  %v1947_v62 = vld [vmem:[#allocation3 + $0xe8] sm:$0xff] }
 0x34e   : > { %v2065_v32 = vadd.f32 %v2021_v47, %v1969_v35  ;;  %v2015_v46 = vpop.xlane.xlu0 %2014  ;;  %v4080_v50 = vpop.f32.mrb[16].mxu1  ;;  %4461 = vrcp.f32 %v2917_v44 }
 0x34f   : > { %v4452_v29 = vpop.eup %4451  ;;  %v2062_v39 = vadd.f32 %v2015_v46, %v1966_v30  ;;  %3005 = vperm.xlu0 %4226, %v4450_v11   ;;  %v2813_v49 = vadd.f32 %v4080_v50, %v2313_v34  ;;  %v2546_v26 = vpop.f32.mrb[17].mxu1  ;;  %v2907_v3 = vld [vmem:[#allocation3 + $0x28] sm:$0xff]  ;;  %v1940_v30 = vld [vmem:[#allocation3 + $0xb0] sm:$0xff] }
 0x350   : > { %v2920_v40 = vld [vmem:[#allocation3 + $0x90] sm:$0xff]  ;;  %2098 = vst.msk [vmem:[#allocation3 + $0x98] sm:$0xff] %vm509_vm1, %v2065_v32  ;;  %3070 = vperm.xlu1 %4225, %v4452_v29   ;;  %v2811_v48 = vadd.f32 %v2546_v26, %v2311_v5  ;;  %v4081_v6 = vpop.f32.mrb[18].mxu1  ;;  %v4454_v42 = vpop.eup %4453  ;;  %v1972_v5 = vmul.f32 %v5614_v45, %v1940_v30  ;;  %v1941_v45 = vld [vmem:[#allocation3 + $0xb8] sm:$0xff] }
 0x351   : > { %4463 = vrcp.f32 %v2920_v40  ;;  %2095 = vst.msk [vmem:[#allocation3 + $0x80] sm:$0xff] %vm509_vm1, %v2062_v39  ;;  %v2037_v2 = vpop.xlane.xlu1 %2036  ;;  %v2814_v53 = vadd.f32 %v4081_v6, %v2314_v59  ;;  %v2549_v1 = vpop.f32.mrb[19].mxu1  ;;  %v1975_v40 = vmul.f32 %v5611_v25, %v1943_v23  ;;  %v1973_v25 = vmul.f32 %v5617_v43, %v1941_v45  ;;  %v2118_v45 = vld [vmem:[#allocation4 + $0x38] sm:$0xff] }
 0x352   : > { %2845 = vst.msk [vmem:[#allocation4 + $0x50] sm:$0xff] %vm574_vm0, %v2813_v49  ;;  %v4056_v33 = vpop.f32.mrb[16].mxu0  ;;  %v2073_v28 = vadd.f32 %v2037_v2, %v1977_v37  ;;  %2843 = vst.msk [vmem:[#allocation4 + $0x40] sm:$0xff] %vm574_vm0, %v2811_v48  ;;  %v2812_v35 = vadd.f32 %v2549_v1, %v2312_v55  ;;  %v2031_v47 = vpop.xlane.xlu0 %2030  ;;  %4465 = vrcp.f32 %v2907_v3  ;;  %v1938_v3 = vld [vmem:[#allocation3 + $0xa0] sm:$0xff]  ;;  %v2125_v1 = vld [vmem:[#allocation4 + $0x70] sm:$0xff] }
 0x353   : > { %v4456_v22 = vpop.eup %4455  ;;  %v2805_v60 = vadd.f32 %v4056_v33, %v2305_v38  ;;  %v2433_v44 = vpop.f32.mrb[17].mxu0  ;;  %3045 = vperm.xlu0 %4226, %v4454_v42   ;;  %2846 = vst.msk [vmem:[#allocation4 + $0x58] sm:$0xff] %vm574_vm0, %v2814_v53  ;;  %v2070_v16 = vadd.f32 %v2031_v47, %v1974_v56  ;;  %v2915_v9 = vld [vmem:[#allocation3 + $0x68] sm:$0xff]  ;;  %v1970_v33 = vmul.f32 %v5624_v31, %v1938_v3  ;;  %v2123_v56 = vld [vmem:[#allocation4 + $0x60] sm:$0xff] }
 0x354   : > { %v2928_v11 = vld [vmem:[#allocation3 + $0xd0] sm:$0xff]  ;;  %2106 = vst.msk [vmem:[#allocation3 + $0xd8] sm:$0xff] %vm509_vm1, %v2073_v28  ;;  %v2803_v20 = vadd.f32 %v2433_v44, %v2303_v0  ;;  %v4057_v51 = vpop.f32.mrb[18].mxu0  ;;  %3020 = vperm.xlu1 %4225, %v4456_v22   ;;  %v4458_v46 = vpop.eup %4457  ;;  %v1949_v0 = vld [vmem:[#allocation3 + $0xf8] sm:$0xff]  ;;  %v1939_v44 = vld [vmem:[#allocation3 + $0xa8] sm:$0xff] }
 0x355   : > { %4467 = vrcp.f32 %v2928_v11  ;;  %2844 = vst.msk [vmem:[#allocation4 + $0x48] sm:$0xff] %vm574_vm0, %v2812_v35  ;;  %2837 = vst.msk [vmem:[#allocation4 + $0x10] sm:$0xff] %vm574_vm0, %v2805_v60  ;;  %v2806_v52 = vadd.f32 %v4057_v51, %v2306_v12  ;;  %v2436_v34 = vpop.f32.mrb[19].mxu0  ;;  %v2017_v32 = vpop.xlane.xlu1 %2016  ;;  %v1946_v12 = vld [vmem:[#allocation3 + $0xe0] sm:$0xff]  ;;  %v2126_v35 = vld [vmem:[#allocation4 + $0x78] sm:$0xff]  ;;  %v1981_v60 = vmul.f32 %v5762_v7, %v1949_v0  ;;  %v2310_v0 = vmul.f32 %v5754_v63, %v2118_v45 }
 0x356   : > { %2835 = vst.msk [vmem:[#allocation4] sm:$0xff] %vm574_vm0, %v2803_v20  ;;  %v2804_v29 = vadd.f32 %v2436_v34, %v2304_v61  ;;  %v2063_v57 = vadd.f32 %v2017_v32, %v1967_v41  ;;  %v2027_v39 = vpop.xlane.xlu0 %2026  ;;  %4469 = vrcp.f32 %v2915_v9  ;;  %v2124_v47 = vld [vmem:[#allocation4 + $0x68] sm:$0xff]  ;;  %v2317_v41 = vmul.f32 %v5775_v24, %v2125_v1  ;;  %v6196_v24 = vld [vmem:[#allocation43_spill] sm:$0xff] }
 0x357   : > { %2103 = vst.msk [vmem:[#allocation3 + $0xc0] sm:$0xff] %vm509_vm1, %v2070_v16  ;;  %v4460_v50 = vpop.eup %4459  ;;  %3035 = vperm.xlu0 %4226, %v4458_v46   ;;  %v2068_v59 = vadd.f32 %v2027_v39, %v1972_v5  ;;  %v2921_v49 = vld [vmem:[#allocation3 + $0x98] sm:$0xff]  ;;  %v2315_v20 = vmul.f32 %v5771_v19, %v2123_v56  ;;  %v1978_v9 = vmul.f32 %v5629_v13, %v1946_v12 }
 0x358   : > { %2838 = vst.msk [vmem:[#allocation4 + $0x18] sm:$0xff] %vm574_vm0, %v2806_v52  ;;  %v2918_v54 = vld [vmem:[#allocation3 + $0x80] sm:$0xff]  ;;  %2836 = vst.msk [vmem:[#allocation4 + $0x8] sm:$0xff] %vm574_vm0, %v2804_v29  ;;  %3060 = vperm.xlu1 %4225, %v4460_v50   ;;  %v4462_v37 = vpop.eup %4461  ;;  %v2318_v7 = vmul.f32 %v5773_v10, %v2126_v35  ;;  %v1971_v46 = vmul.f32 %v6196_v24, %v1939_v44  ;;  %v2316_v29 = vmul.f32 %v5769_v14, %v2124_v47 }
 0x359   : > { %2096 = vst.msk [vmem:[#allocation3 + $0x88] sm:$0xff] %vm509_vm1, %v2063_v57  ;;  %4471 = vrcp.f32 %v2918_v54  ;;  %v2033_v26 = vpop.xlane.xlu1 %2032  ;;  %2101 = vst.msk [vmem:[#allocation3 + $0xb0] sm:$0xff] %vm509_vm1, %v2068_v59  ;;  %v2117_v59 = vld [vmem:[#allocation4 + $0x30] sm:$0xff] }
 0x35a   : > { %v2071_v15 = vadd.f32 %v2033_v26, %v1975_v40  ;;  %v2043_v55 = vpop.xlane.xlu0 %2042  ;;  %4473 = vrcp.f32 %v2921_v49  ;;  %v2115_v49 = vld [vmem:[#allocation4 + $0x20] sm:$0xff] }
 0x35b   : > { %v4464_v38 = vpop.eup %4463  ;;  %3075 = vperm.xlu0 %4226, %v4462_v37   ;;  %v2076_v48 = vadd.f32 %v2043_v55, %v1980_v21  ;;  %v2929_v6 = vld [vmem:[#allocation3 + $0xd8] sm:$0xff]  ;;  %v6197_v37 = vld [vmem:[#allocation41_spill] sm:$0xff]  ;;  %v2116_v21 = vld [vmem:[#allocation4 + $0x28] sm:$0xff] }
 0x35c   : > { %2104 = vst.msk [vmem:[#allocation3 + $0xc8] sm:$0xff] %vm509_vm1, %v2071_v15  ;;  %3090 = vperm.xlu1 %4225, %v4464_v38   ;;  %v4466_v53 = vpop.eup %4465  ;;  %v1979_v15 = vmul.f32 %v6197_v37, %v1947_v62  ;;  %v2309_v38 = vmul.f32 %v5756_v8, %v2117_v59 }
 0x35d   : > { %v2029_v42 = vpop.xlane.xlu1 %2028  ;;  %2109 = vst.msk [vmem:[#allocation3 + $0xf0] sm:$0xff] %vm509_vm1, %v2076_v48 }
 0x35e   : > { %v2926_v2 = vld [vmem:[#allocation3 + $0xc0] sm:$0xff]  ;;  %v2069_v4 = vadd.f32 %v2029_v42, %v1973_v25  ;;  %v2023_v22 = vpop.xlane.xlu0 %2022 }
 0x35f   : > { %4475 = vrcp.f32 %v2926_v2  ;;  %v4468_v28 = vpop.eup %4467  ;;  %3025 = vperm.xlu0 %4226, %v4466_v53   ;;  %v2066_v43 = vadd.f32 %v2023_v22, %v1970_v33  ;;  %v2308_v33 = vmul.f32 %v5747_v58, %v2116_v21 }
 0x360   : > { %4477 = vrcp.f32 %v2929_v6  ;;  %2102 = vst.msk [vmem:[#allocation3 + $0xb8] sm:$0xff] %vm509_vm1, %v2069_v4  ;;  %3130 = vperm.xlu1 %4225, %v4468_v28   ;;  %v2919_v30 = vld [vmem:[#allocation3 + $0x88] sm:$0xff]  ;;  %v2924_v61 = vld [vmem:[#allocation3 + $0xb0] sm:$0xff]  ;;  %v4470_v11 = vpop.eup %4469  ;;  %v2307_v6 = vmul.f32 %v5749_v18, %v2115_v49  ;;  %v6201_v49 = vld [vmem:[#allocation42_spill] sm:$0xff] }
 0x361   : > { %v2045_v31 = vpop.xlane.xlu1 %2044  ;;  %4479 = vrcp.f32 %v2924_v61  ;;  %2099 = vst.msk [vmem:[#allocation3 + $0xa0] sm:$0xff] %vm509_vm1, %v2066_v43 }
 0x362   : > { %v4084_v16 = vpop.f32.mrb[20].mxu1  ;;  %v2077_v51 = vadd.f32 %v2045_v31, %v1981_v60  ;;  %v2039_v23 = vpop.xlane.xlu0 %2038  ;;  %4481 = vrcp.f32 %v2919_v30 }
 0x363   : > { %v4472_v52 = vpop.eup %4471  ;;  %v2817_v34 = vadd.f32 %v4084_v16, %v2317_v41  ;;  %v2562_v32 = vpop.f32.mrb[21].mxu1  ;;  %3065 = vperm.xlu0 %4226, %v4470_v11   ;;  %v2074_v57 = vadd.f32 %v2039_v23, %v1978_v9  ;;  %v2927_v50 = vld [vmem:[#allocation3 + $0xc8] sm:$0xff]  ;;  %v2129_v16 = vld [vmem:[#allocation4 + $0x90] sm:$0xff]  ;;  %v2130_v9 = vld [vmem:[#allocation4 + $0x98] sm:$0xff] }
 0x364   : > { %2110 = vst.msk [vmem:[#allocation3 + $0xf8] sm:$0xff] %vm509_vm1, %v2077_v51  ;;  %v2815_v19 = vadd.f32 %v2562_v32, %v2315_v20  ;;  %v4085_v5 = vpop.f32.mrb[22].mxu1  ;;  %3080 = vperm.xlu1 %4225, %v4472_v52   ;;  %v4474_v54 = vpop.eup %4473  ;;  %4483 = vrcp.f32 %v2927_v50  ;;  %v2932_v35 = vld [vmem:[#allocation3 + $0xf0] sm:$0xff]  ;;  %v2127_v51 = vld [vmem:[#allocation4 + $0x80] sm:$0xff]  ;;  %v2321_v52 = vmul.f32 %v5779_v17, %v2129_v16  ;;  %v2322_v24 = vmul.f32 %v5777_v36, %v2130_v9 }
 0x365   : > { %2849 = vst.msk [vmem:[#allocation4 + $0x70] sm:$0xff] %vm574_vm0, %v2817_v34  ;;  %v2818_v13 = vadd.f32 %v4085_v5, %v2318_v7  ;;  %v2565_v10 = vpop.f32.mrb[23].mxu1  ;;  %v2025_v39 = vpop.xlane.xlu1 %2024  ;;  %v2128_v7 = vld [vmem:[#allocation4 + $0x88] sm:$0xff]  ;;  %v2137_v34 = vld [vmem:[#allocation4 + $0xd0] sm:$0xff]  ;;  %v2319_v32 = vmul.f32 %v5787_v27, %v2127_v51 }
 0x366   : > { %2847 = vst.msk [vmem:[#allocation4 + $0x60] sm:$0xff] %vm574_vm0, %v2815_v19  ;;  %v2816_v14 = vadd.f32 %v2565_v10, %v2316_v29  ;;  %v2067_v40 = vadd.f32 %v2025_v39, %v1971_v46  ;;  %v2135_v46 = vld [vmem:[#allocation4 + $0xc0] sm:$0xff]  ;;  %v6198_v5 = vld [vmem:[#allocation12_spill] sm:$0xff]  ;;  %v6208_v16 = vld [vmem:[#allocation17_spill] sm:$0xff] }
 0x367   : > { %2107 = vst.msk [vmem:[#allocation3 + $0xe0] sm:$0xff] %vm509_vm1, %v2074_v57  ;;  %3095 = vperm.xlu0 %4226, %v4474_v54   ;;  %v2925_v55 = vld [vmem:[#allocation3 + $0xb8] sm:$0xff]  ;;  %v2320_v50 = vmul.f32 %v6198_v5, %v2128_v7  ;;  %v6199_v39 = vld [vmem:[#allocation8_spill] sm:$0xff]  ;;  %v2968_v5 = vld [vmem:[#allocation4 + $0x10] sm:$0xff] }
 0x368   : > { %2850 = vst.msk [vmem:[#allocation4 + $0x78] sm:$0xff] %vm574_vm0, %v2818_v13  ;;  %2848 = vst.msk [vmem:[#allocation4 + $0x68] sm:$0xff] %vm574_vm0, %v2816_v14  ;;  %v2922_v3 = vld [vmem:[#allocation3 + $0xa0] sm:$0xff]  ;;  %v2138_v57 = vld [vmem:[#allocation4 + $0xd8] sm:$0xff]  ;;  %v2329_v62 = vmul.f32 %v6199_v39, %v2137_v34 }
 0x369   : > { %v4476_v26 = vpop.eup %4475  ;;  %2100 = vst.msk [vmem:[#allocation3 + $0xa8] sm:$0xff] %vm509_vm1, %v2067_v40  ;;  %v2041_v48 = vpop.xlane.xlu1 %2040  ;;  %4485 = vrcp.f32 %v2922_v3  ;;  %v2136_v54 = vld [vmem:[#allocation4 + $0xc8] sm:$0xff]  ;;  %v6200_v14 = vld [vmem:[#allocation10_spill] sm:$0xff]  ;;  %v2976_v39 = vld [vmem:[#allocation4 + $0x50] sm:$0xff] }
 0x36a   : > { %3120 = vperm.xlu1 %4225, %v4476_v26   ;;  %v4478_v25 = vpop.eup %4477  ;;  %v4060_v2 = vpop.f32.mrb[20].mxu0  ;;  %v2075_v42 = vadd.f32 %v2041_v48, %v1979_v15  ;;  %4487 = vrcp.f32 %v2925_v55  ;;  %v2327_v27 = vmul.f32 %v6200_v14, %v2135_v46  ;;  %v2330_v26 = vmul.f32 %v6201_v49, %v2138_v57  ;;  %v6202_v15 = vld [vmem:[#allocation11_spill] sm:$0xff] }
 0x36b   : > { %v2809_v53 = vadd.f32 %v4060_v2, %v2309_v38  ;;  %v2449_v1 = vpop.f32.mrb[21].mxu0  ;;  %3135 = vperm.xlu0 %4226, %v4478_v25   ;;  %v4480_v4 = vpop.eup %4479  ;;  %v2933_v47 = vld [vmem:[#allocation3 + $0xf8] sm:$0xff]  ;;  %v2328_v21 = vmul.f32 %v6202_v15, %v2136_v54  ;;  %v2131_v2 = vld [vmem:[#allocation4 + $0xa0] sm:$0xff] }
 0x36c   : > { %2108 = vst.msk [vmem:[#allocation3 + $0xe8] sm:$0xff] %vm509_vm1, %v2075_v42  ;;  %v2807_v8 = vadd.f32 %v2449_v1, %v2307_v6  ;;  %v4061_v28 = vpop.f32.mrb[22].mxu0  ;;  %v4482_v12 = vpop.eup %4481  ;;  %v2133_v6 = vld [vmem:[#allocation4 + $0xb0] sm:$0xff]  ;;  %v2134_v42 = vld [vmem:[#allocation4 + $0xb8] sm:$0xff]  ;;  %v2132_v1 = vld [vmem:[#allocation4 + $0xa8] sm:$0xff] }
 0x36d   : > { %2841 = vst.msk [vmem:[#allocation4 + $0x30] sm:$0xff] %vm574_vm0, %v2809_v53  ;;  %v2810_v18 = vadd.f32 %v4061_v28, %v2310_v0  ;;  %v2452_v22 = vpop.f32.mrb[23].mxu0  ;;  %v6203_v0 = vld [vmem:[#allocation13_spill] sm:$0xff] }
 0x36e   : > { %v2930_v56 = vld [vmem:[#allocation3 + $0xe0] sm:$0xff]  ;;  %3110 = vperm.xlu1 %4225, %v4480_v4   ;;  %2839 = vst.msk [vmem:[#allocation4 + $0x20] sm:$0xff] %vm574_vm0, %v2807_v8  ;;  %v2808_v63 = vadd.f32 %v2452_v22, %v2308_v33  ;;  %v4484_v58 = vpop.eup %4483  ;;  %v2325_v53 = vmul.f32 %v6203_v0, %v2133_v6  ;;  %v6204_v4 = vld [vmem:[#allocation21_spill] sm:$0xff] }
 0x36f   : > { %4489 = vrcp.f32 %v2930_v56  ;;  %2842 = vst.msk [vmem:[#allocation4 + $0x38] sm:$0xff] %vm574_vm0, %v2810_v18  ;;  %3085 = vperm.xlu0 %4226, %v4482_v12   ;;  %v2323_v33 = vmul.f32 %v6204_v4, %v2131_v2  ;;  %v6205_v28 = vld [vmem:[#allocation9_spill] sm:$0xff]  ;;  %v6206_v12 = vld [vmem:[#allocation7_spill] sm:$0xff] }
 0x370   : > { %v2923_v43 = vld [vmem:[#allocation3 + $0xa8] sm:$0xff]  ;;  %2840 = vst.msk [vmem:[#allocation4 + $0x28] sm:$0xff] %vm574_vm0, %v2808_v63  ;;  %v2326_v56 = vmul.f32 %v6205_v28, %v2134_v42  ;;  %v2324_v63 = vmul.f32 %v6206_v12, %v2132_v1 }
 0x371   : > { %4491 = vrcp.f32 %v2923_v43 }
 0x372   : > { %4493 = vrcp.f32 %v2932_v35 }
 0x373   : > { %v2931_v60 = vld [vmem:[#allocation3 + $0xe8] sm:$0xff]  ;;  %3125 = vperm.xlu0 %4226, %v4484_v58   ;;  %v4486_v44 = vpop.eup %4485  ;;  %v2141_v58 = vld [vmem:[#allocation4 + $0xf0] sm:$0xff] }
 0x374   : > { %4495 = vrcp.f32 %v2931_v60  ;;  %3100 = vperm.xlu1 %4225, %v4486_v44   ;;  %v4488_v41 = vpop.eup %4487 }
 0x375   : > { %4497 = vrcp.f32 %v2933_v47  ;;  %v2139_v47 = vld [vmem:[#allocation4 + $0xe0] sm:$0xff] }
 0x376   : > { %v2331_v51 = vmul.f32 %v6208_v16, %v2139_v47  ;;  %v2973_v47 = vld [vmem:[#allocation4 + $0x38] sm:$0xff] }
 0x377   : > { %3115 = vperm.xlu0 %4226, %v4488_v41  }
 0x379   : > { %v4490_v30 = vpop.eup %4489 }
 0x37a   : > { %3140 = vperm.xlu1 %4225, %v4490_v30   ;;  %v2142_v30 = vld [vmem:[#allocation4 + $0xf8] sm:$0xff] }
 0x37b   : > { %v4492_v61 = vpop.eup %4491 }
 0x37c   : > { %3105 = vperm.xlu0 %4226, %v4492_v61   ;;  %v4494_v31 = vpop.eup %4493  ;;  %v2301_v61 = vpop.permute.xlu0 %2300 }
 0x37e   : > { %3150 = vperm.xlu1 %4225, %v4494_v31   ;;  %v4496_v11 = vpop.eup %4495  ;;  %v6207_v31 = vld [vmem:[#allocation14_spill] sm:$0xff] }
 0x37f   : > { %v4498_v20 = vpop.eup %4497 }
 0x380   : > { %3145 = vperm.xlu0 %4226, %v4496_v11   ;;  %v2333_v11 = vmul.f32 %v6207_v31, %v2141_v58 }
 0x384   : > { %3155 = vperm.xlu0 %4226, %v4498_v20   ;;  %v2140_v20 = vld [vmem:[#allocation4 + $0xe8] sm:$0xff] }
 0x38b   : > { %v4104_v23 = vpop.f32.mrb[24].mxu0 }
 0x38c   : > { %v2821_v29 = vadd.f32 %v4104_v23, %v2321_v52  ;;  %v2659_v19 = vpop.f32.mrb[25].mxu0  ;;  %v2334_v52 = vmul.f32 %v2301_v61, %v2142_v30  ;;  %v2978_v61 = vld [vmem:[#allocation4 + $0x60] sm:$0xff] }
 0x38d   : > { %v2819_v13 = vadd.f32 %v2659_v19, %v2319_v32  ;;  %v4105_v10 = vpop.f32.mrb[26].mxu0  ;;  %v6209_v32 = vld [vmem:[#allocation18_spill] sm:$0xff] }
 0x38e   : > { %2853 = vst.msk [vmem:[#allocation4 + $0x90] sm:$0xff] %vm574_vm0, %v2821_v29  ;;  %v2822_v17 = vadd.f32 %v4105_v10, %v2322_v24  ;;  %v2662_v59 = vpop.f32.mrb[27].mxu0  ;;  %v2332_v23 = vmul.f32 %v6209_v32, %v2140_v20 }
 0x38f   : > { %2851 = vst.msk [vmem:[#allocation4 + $0x80] sm:$0xff] %vm574_vm0, %v2819_v13  ;;  %v2820_v36 = vadd.f32 %v2662_v59, %v2320_v50  ;;  %v4128_v40 = vpop.f32.mrb[24].mxu1  ;;  %v2966_v59 = vld [vmem:[#allocation4] sm:$0xff] }
 0x390   : > { %2854 = vst.msk [vmem:[#allocation4 + $0x98] sm:$0xff] %vm574_vm0, %v2822_v17  ;;  %v2829_v45 = vadd.f32 %v4128_v40, %v2329_v62  ;;  %v2772_v37 = vpop.f32.mrb[25].mxu1  ;;  %v2969_v40 = vld [vmem:[#allocation4 + $0x18] sm:$0xff] }
 0x391   : > { %2852 = vst.msk [vmem:[#allocation4 + $0x88] sm:$0xff] %vm574_vm0, %v2820_v36  ;;  %v2827_v38 = vadd.f32 %v2772_v37, %v2327_v27  ;;  %v4129_v55 = vpop.f32.mrb[26].mxu1 }
 0x392   : > { %2861 = vst.msk [vmem:[#allocation4 + $0xd0] sm:$0xff] %vm574_vm0, %v2829_v45  ;;  %v2830_v3 = vadd.f32 %v4129_v55, %v2330_v26  ;;  %v2775_v48 = vpop.f32.mrb[27].mxu1  ;;  %v2974_v45 = vld [vmem:[#allocation4 + $0x40] sm:$0xff]  ;;  %v2977_v55 = vld [vmem:[#allocation4 + $0x58] sm:$0xff] }
 0x393   : > { %2859 = vst.msk [vmem:[#allocation4 + $0xc0] sm:$0xff] %vm574_vm0, %v2827_v38  ;;  %v2828_v25 = vadd.f32 %v2775_v48, %v2328_v21 }
 0x394   : > { %2862 = vst.msk [vmem:[#allocation4 + $0xd8] sm:$0xff] %vm574_vm0, %v2830_v3 }
 0x395   : > { %2860 = vst.msk [vmem:[#allocation4 + $0xc8] sm:$0xff] %vm574_vm0, %v2828_v25  ;;  %v2972_v25 = vld [vmem:[#allocation4 + $0x30] sm:$0xff] }
 0x39b   : > { %v4108_v8 = vpop.f32.mrb[28].mxu0 }
 0x39c   : > { %v2825_v18 = vadd.f32 %v4108_v8, %v2325_v53  ;;  %v2675_v22 = vpop.f32.mrb[29].mxu0  ;;  %v2967_v53 = vld [vmem:[#allocation4 + $0x8] sm:$0xff] }
 0x39d   : > { %v2823_v35 = vadd.f32 %v2675_v22, %v2323_v33  ;;  %v4109_v43 = vpop.f32.mrb[30].mxu0  ;;  %v2980_v33 = vld [vmem:[#allocation4 + $0x70] sm:$0xff]  ;;  %v2975_v22 = vld [vmem:[#allocation4 + $0x48] sm:$0xff] }
 0x39e   : > { %2857 = vst.msk [vmem:[#allocation4 + $0xb0] sm:$0xff] %vm574_vm0, %v2825_v18  ;;  %v2826_v60 = vadd.f32 %v4109_v43, %v2326_v56  ;;  %v2678_v44 = vpop.f32.mrb[31].mxu0 }
 0x39f   : > { %2855 = vst.msk [vmem:[#allocation4 + $0xa0] sm:$0xff] %vm574_vm0, %v2823_v35  ;;  %v2824_v41 = vadd.f32 %v2678_v44, %v2324_v63  ;;  %v2970_v35 = vld [vmem:[#allocation4 + $0x20] sm:$0xff] }
 0x3a0   : > { %2858 = vst.msk [vmem:[#allocation4 + $0xb8] sm:$0xff] %vm574_vm0, %v2826_v60 }
 0x3a1   : > { %2856 = vst.msk [vmem:[#allocation4 + $0xa8] sm:$0xff] %vm574_vm0, %v2824_v41 }
 0x3a2   : > { %v4132_v9 = vpop.f32.mrb[28].mxu1 }
 0x3a3   : > { %v2833_v7 = vadd.f32 %v4132_v9, %v2333_v11  ;;  %v2788_v34 = vpop.f32.mrb[29].mxu1 }
 0x3a4   : > { %v2831_v24 = vadd.f32 %v2788_v34, %v2331_v51  ;;  %v4133_v46 = vpop.f32.mrb[30].mxu1  ;;  %v2981_v51 = vld [vmem:[#allocation4 + $0x78] sm:$0xff] }
 0x3a5   : > { %2865 = vst.msk [vmem:[#allocation4 + $0xf0] sm:$0xff] %vm574_vm0, %v2833_v7  ;;  %v2834_v29 = vadd.f32 %v4133_v46, %v2334_v52  ;;  %v2791_v19 = vpop.f32.mrb[31].mxu1  ;;  %v2984_v7 = vld [vmem:[#allocation4 + $0x90] sm:$0xff]  ;;  %v2971_v46 = vld [vmem:[#allocation4 + $0x28] sm:$0xff] }
 0x3a6   : > { %2863 = vst.msk [vmem:[#allocation4 + $0xe0] sm:$0xff] %vm574_vm0, %v2831_v24  ;;  %v2832_v57 = vadd.f32 %v2791_v19, %v2332_v23 }
 0x3a7   : > { %2866 = vst.msk [vmem:[#allocation4 + $0xf8] sm:$0xff] %vm574_vm0, %v2834_v29 }
 0x3a8   : > { %2864 = vst.msk [vmem:[#allocation4 + $0xe8] sm:$0xff] %vm574_vm0, %v2832_v57  ;;  %v2992_v57 = vld [vmem:[#allocation4 + $0xd0] sm:$0xff] }
 0x3bb   : > { %v3011_v50 = vpop.permute.xlu1 %3010 }
 0x3bc   : > { %v3160_v13 = vmul.f32 %v3011_v50, %v2968_v5 }
 0x3be   : > { %v3816_v10 = vpack.c.bf16 %v3160_v13, %v3160_v13 }
 0x3bf   : > { %v3051_v62 = vpop.permute.xlu1 %3050 }
 0x3c0   : > { %3321 = vst.msk [vmem:[%s5935_s27 + $0x8] sm:$0xf] %vm3318_vm2, %v3816_v10  ;;  %v3168_v54 = vmul.f32 %v3051_v62, %v2976_v39  ;;  %v2979_v39 = vld [vmem:[#allocation4 + $0x68] sm:$0xff] }
 0x3c2   : > { %v3824_v17 = vpack.c.bf16 %v3168_v54, %v3168_v54 }
 0x3c3   : > { %v3001_v14 = vpop.permute.xlu1 %3000 }
 0x3c4   : > { %3329 = vst.msk [vmem:[%s5935_s27 + $0x28] sm:$0xf] %vm3318_vm2, %v3824_v17  ;;  %v3158_v27 = vmul.f32 %v3001_v14, %v2966_v59  ;;  %v2982_v17 = vld [vmem:[#allocation4 + $0x80] sm:$0xff] }
 0x3c6   : > { %v3814_v36 = vpack.c.bf16 %v3158_v27, %v3158_v27  ;;  %v3016_v49 = vpop.permute.xlu0 %3015 }
 0x3c7   : > { %v3161_v26 = vmul.f32 %v3016_v49, %v2969_v40  ;;  %v3041_v37 = vpop.permute.xlu1 %3040  ;;  %v2985_v40 = vld [vmem:[#allocation4 + $0x98] sm:$0xff] }
 0x3c8   : > { %3319 = vst.msk [vmem:[%s5935_s27] sm:$0xf] %vm3318_vm2, %v3814_v36  ;;  %v3166_v15 = vmul.f32 %v3041_v37, %v2974_v45  ;;  %v2990_v45 = vld [vmem:[#allocation4 + $0xc0] sm:$0xff] }
 0x3c9   : > { %v3817_v21 = vpack.c.bf16 %v3161_v26, %v3161_v26 }
 0x3ca   : > { %v3822_v38 = vpack.c.bf16 %v3166_v15, %v3166_v15  ;;  %v3056_v3 = vpop.permute.xlu0 %3055 }
 0x3cb   : > { %3322 = vst.msk [vmem:[%s5935_s27 + $0xc] sm:$0xf] %vm3318_vm2, %v3817_v21  ;;  %v3169_v48 = vmul.f32 %v3056_v3, %v2977_v55  ;;  %v3031_v6 = vpop.permute.xlu1 %3030 }
 0x3cc   : > { %3327 = vst.msk [vmem:[%s5935_s27 + $0x20] sm:$0xf] %vm3318_vm2, %v3822_v38  ;;  %v3164_v2 = vmul.f32 %v3031_v6, %v2972_v25  ;;  %v2993_v38 = vld [vmem:[#allocation4 + $0xd8] sm:$0xff]  ;;  %v2988_v25 = vld [vmem:[#allocation4 + $0xb0] sm:$0xff] }
 0x3cd   : > { %v3825_v42 = vpack.c.bf16 %v3169_v48, %v3169_v48 }
 0x3ce   : > { %v3820_v0 = vpack.c.bf16 %v3164_v2, %v3164_v2  ;;  %v3006_v1 = vpop.permute.xlu0 %3005 }
 0x3cf   : > { %3330 = vst.msk [vmem:[%s5935_s27 + $0x2c] sm:$0xf] %vm3318_vm2, %v3825_v42  ;;  %v3159_v4 = vmul.f32 %v3006_v1, %v2967_v53  ;;  %v3071_v8 = vpop.permute.xlu1 %3070 }
 0x3d0   : > { %3325 = vst.msk [vmem:[%s5935_s27 + $0x18] sm:$0xf] %vm3318_vm2, %v3820_v0  ;;  %v3172_v28 = vmul.f32 %v3071_v8, %v2980_v33  ;;  %v2983_v0 = vld [vmem:[#allocation4 + $0x88] sm:$0xff] }
 0x3d1   : > { %v3815_v56 = vpack.c.bf16 %v3159_v4, %v3159_v4  ;;  %v2991_v8 = vld [vmem:[#allocation4 + $0xc8] sm:$0xff] }
 0x3d2   : > { %v3828_v18 = vpack.c.bf16 %v3172_v28, %v3172_v28  ;;  %v3046_v12 = vpop.permute.xlu0 %3045 }
 0x3d3   : > { %3320 = vst.msk [vmem:[%s5935_s27 + $0x4] sm:$0xf] %vm3318_vm2, %v3815_v56  ;;  %v3167_v63 = vmul.f32 %v3046_v12, %v2975_v22  ;;  %v3021_v43 = vpop.permute.xlu1 %3020 }
 0x3d4   : > { %3333 = vst.msk [vmem:[%s5935_s27 + $0x38] sm:$0xf] %vm3318_vm2, %v3828_v18  ;;  %v3162_v58 = vmul.f32 %v3021_v43, %v2970_v35  ;;  %v2986_v18 = vld [vmem:[#allocation4 + $0xa0] sm:$0xff]  ;;  %v2989_v35 = vld [vmem:[#allocation4 + $0xb8] sm:$0xff] }
 0x3d5   : > { %v3823_v60 = vpack.c.bf16 %v3167_v63, %v3167_v63 }
 0x3d6   : > { %v3818_v44 = vpack.c.bf16 %v3162_v58, %v3162_v58  ;;  %v3036_v41 = vpop.permute.xlu0 %3035 }
 0x3d7   : > { %3328 = vst.msk [vmem:[%s5935_s27 + $0x24] sm:$0xf] %vm3318_vm2, %v3823_v60  ;;  %v3165_v30 = vmul.f32 %v3036_v41, %v2973_v47  ;;  %v3061_v31 = vpop.permute.xlu1 %3060 }
 0x3d8   : > { %3323 = vst.msk [vmem:[%s5935_s27 + $0x10] sm:$0xf] %vm3318_vm2, %v3818_v44  ;;  %v3170_v11 = vmul.f32 %v3061_v31, %v2978_v61  ;;  %v2994_v44 = vld [vmem:[#allocation4 + $0xe0] sm:$0xff]  ;;  %v2987_v61 = vld [vmem:[#allocation4 + $0xa8] sm:$0xff] }
 0x3d9   : > { %v3821_v20 = vpack.c.bf16 %v3165_v30, %v3165_v30 }
 0x3da   : > { %v3826_v16 = vpack.c.bf16 %v3170_v11, %v3170_v11  ;;  %v3076_v9 = vpop.permute.xlu0 %3075 }
 0x3db   : > { %3326 = vst.msk [vmem:[%s5935_s27 + $0x1c] sm:$0xf] %vm3318_vm2, %v3821_v20  ;;  %v3173_v52 = vmul.f32 %v3076_v9, %v2981_v51  ;;  %v3091_v34 = vpop.permute.xlu1 %3090 }
 0x3dc   : > { %3331 = vst.msk [vmem:[%s5935_s27 + $0x30] sm:$0xf] %vm3318_vm2, %v3826_v16  ;;  %v3176_v32 = vmul.f32 %v3091_v34, %v2984_v7  ;;  %v2996_v16 = vld [vmem:[#allocation4 + $0xf0] sm:$0xff]  ;;  %v2995_v7 = vld [vmem:[#allocation4 + $0xe8] sm:$0xff] }
 0x3dd   : > { %v3829_v23 = vpack.c.bf16 %v3173_v52, %v3173_v52 }
 0x3de   : > { %v3832_v24 = vpack.c.bf16 %v3176_v32, %v3176_v32  ;;  %v3026_v29 = vpop.permute.xlu0 %3025 }
 0x3df   : > { %3334 = vst.msk [vmem:[%s5935_s27 + $0x3c] sm:$0xf] %vm3318_vm2, %v3829_v23  ;;  %v3163_v19 = vmul.f32 %v3026_v29, %v2971_v46  ;;  %v3131_v5 = vpop.permute.xlu1 %3130  ;;  %v2997_v46 = vld [vmem:[#allocation4 + $0xf8] sm:$0xff] }
 0x3e0   : > { %3337 = vst.msk [vmem:[%s5935_s27 + $0x48] sm:$0xf] %vm3318_vm2, %v3832_v24  ;;  %v3184_v50 = vmul.f32 %v3131_v5, %v2992_v57  ;;  %v3378_v5 = vld [vmem:[%s5935_s27] sm:$0xff] (%p4631_p6)  }
 0x3e1   : > { %v3819_v13 = vpack.c.bf16 %v3163_v19, %v3163_v19  ;;  %3379 = vst [vmem:[%s3362_s8] sm:$0xff] (%p4631_p6), %v3378_v5  }
 0x3e2   : > { %v3840_v10 = vpack.c.bf16 %v3184_v50, %v3184_v50  ;;  %v3066_v62 = vpop.permute.xlu0 %3065  ;;  %v3382_v50 = vld [vmem:[%s5935_s27 + $0x8] sm:$0xff] (%p4631_p6)  }
 0x3e3   : > { %3324 = vst.msk [vmem:[%s5935_s27 + $0x14] sm:$0xf] %vm3318_vm2, %v3819_v13  ;;  %v3171_v54 = vmul.f32 %v3066_v62, %v2979_v39  ;;  %v3081_v59 = vpop.permute.xlu1 %3080  ;;  %v3394_v39 = vld [vmem:[%s5935_s27 + $0x20] sm:$0xff] (%p4631_p6)   ;;  %v3398_v62 = vld [vmem:[%s5935_s27 + $0x28] sm:$0xff] (%p4631_p6)   ;;  %3383 = vst [vmem:[%s3362_s8 + $0x8] sm:$0xff] (%p4631_p6), %v3382_v50  }
 0x3e4   : > { %3345 = vst.msk [vmem:[%s5935_s27 + $0x68] sm:$0xf] %vm3318_vm2, %v3840_v10  ;;  %v3174_v14 = vmul.f32 %v3081_v59, %v2982_v17  ;;  %v3390_v10 = vld [vmem:[%s5935_s27 + $0x18] sm:$0xff] (%p4631_p6)   ;;  %3395 = vst [vmem:[%s3362_s8 + $0x80] sm:$0xff] (%p4631_p6), %v3394_v39  }
 0x3e5   : > { %v3827_v27 = vpack.c.bf16 %v3171_v54, %v3171_v54  ;;  %3391 = vst [vmem:[%s3362_s8 + $0x18] sm:$0xff] (%p4631_p6), %v3390_v10   ;;  %3399 = vst [vmem:[%s3362_s8 + $0x88] sm:$0xff] (%p4631_p6), %v3398_v62  }
 0x3e6   : > { %v3830_v36 = vpack.c.bf16 %v3174_v14, %v3174_v14  ;;  %v3096_v49 = vpop.permute.xlu0 %3095  ;;  %v3406_v17 = vld [vmem:[%s5935_s27 + $0x38] sm:$0xff] (%p4631_p6)  }
 0x3e7   : > { %3332 = vst.msk [vmem:[%s5935_s27 + $0x34] sm:$0xf] %vm3318_vm2, %v3827_v27  ;;  %v3177_v26 = vmul.f32 %v3096_v49, %v2985_v40  ;;  %3407 = vst [vmem:[%s3362_s8 + $0x98] sm:$0xff] (%p4631_p6), %v3406_v17  }
 0x3e8   : > { %3335 = vst.msk [vmem:[%s5935_s27 + $0x40] sm:$0xf] %vm3318_vm2, %v3830_v36 }
 0x3e9   : > { %v3121_v37 = vpop.permute.xlu1 %3120  ;;  %v3833_v15 = vpack.c.bf16 %v3177_v26, %v3177_v26 }
 0x3ea   : > { %v3182_v21 = vmul.f32 %v3121_v37, %v2990_v45  ;;  %v3136_v55 = vpop.permute.xlu0 %3135  ;;  %v3386_v13 = vld [vmem:[%s5935_s27 + $0x10] sm:$0xff] (%p4631_p6)  }
 0x3eb   : > { %3338 = vst.msk [vmem:[%s5935_s27 + $0x4c] sm:$0xf] %vm3318_vm2, %v3833_v15  ;;  %v3185_v48 = vmul.f32 %v3136_v55, %v2993_v38  ;;  %3387 = vst [vmem:[%s3362_s8 + $0x10] sm:$0xff] (%p4631_p6), %v3386_v13  }
 0x3ec   : > { %v3838_v3 = vpack.c.bf16 %v3182_v21, %v3182_v21 }
 0x3ed   : > { %v3111_v6 = vpop.permute.xlu1 %3110  ;;  %v3841_v2 = vpack.c.bf16 %v3185_v48, %v3185_v48 }
 0x3ee   : > { %3343 = vst.msk [vmem:[%s5935_s27 + $0x60] sm:$0xf] %vm3318_vm2, %v3838_v3  ;;  %v3180_v42 = vmul.f32 %v3111_v6, %v2988_v25  ;;  %v3086_v53 = vpop.permute.xlu0 %3085  ;;  %v3402_v54 = vld [vmem:[%s5935_s27 + $0x30] sm:$0xff] (%p4631_p6)  }
 0x3ef   : > { %3346 = vst.msk [vmem:[%s5935_s27 + $0x6c] sm:$0xf] %vm3318_vm2, %v3841_v2  ;;  %v3175_v4 = vmul.f32 %v3086_v53, %v2983_v0  ;;  %3403 = vst [vmem:[%s3362_s8 + $0x90] sm:$0xff] (%p4631_p6), %v3402_v54  }
 0x3f0   : > { %v3836_v1 = vpack.c.bf16 %v3180_v42, %v3180_v42 }
 0x3f1   : > { %v3831_v33 = vpack.c.bf16 %v3175_v4, %v3175_v4 }
 0x3f2   : > { %3341 = vst.msk [vmem:[%s5935_s27 + $0x58] sm:$0xf] %vm3318_vm2, %v3836_v1  ;;  %v3126_v28 = vpop.permute.xlu0 %3125  ;;  %v3414_v14 = vld [vmem:[%s5935_s27 + $0x48] sm:$0xff] (%p4631_p6)  }
 0x3f3   : > { %3336 = vst.msk [vmem:[%s5935_s27 + $0x44] sm:$0xf] %vm3318_vm2, %v3831_v33  ;;  %v3183_v56 = vmul.f32 %v3126_v28, %v2991_v8  ;;  %v3101_v22 = vpop.permute.xlu1 %3100  ;;  %3415 = vst [vmem:[%s3362_s8 + $0x108] sm:$0xff] (%p4631_p6), %v3414_v14  }
 0x3f4   : > { %v3178_v63 = vmul.f32 %v3101_v22, %v2986_v18 }
 0x3f5   : > { %v3839_v12 = vpack.c.bf16 %v3183_v56, %v3183_v56 }
 0x3f6   : > { %v3116_v43 = vpop.permute.xlu0 %3115  ;;  %v3834_v58 = vpack.c.bf16 %v3178_v63, %v3178_v63  ;;  %v3430_v49 = vld [vmem:[%s5935_s27 + $0x68] sm:$0xff] (%p4631_p6)  }
 0x3f7   : > { %3344 = vst.msk [vmem:[%s5935_s27 + $0x64] sm:$0xf] %vm3318_vm2, %v3839_v12  ;;  %v3181_v60 = vmul.f32 %v3116_v43, %v2989_v35  ;;  %3431 = vst [vmem:[%s3362_s8 + $0x188] sm:$0xff] (%p4631_p6), %v3430_v49  }
 0x3f8   : > { %3339 = vst.msk [vmem:[%s5935_s27 + $0x50] sm:$0xf] %vm3318_vm2, %v3834_v58 }
 0x3f9   : > { %v3141_v47 = vpop.permute.xlu1 %3140  ;;  %v3837_v41 = vpack.c.bf16 %v3181_v60, %v3181_v60 }
 0x3fa   : > { %v3186_v30 = vmul.f32 %v3141_v47, %v2994_v44  ;;  %v3410_v59 = vld [vmem:[%s5935_s27 + $0x40] sm:$0xff] (%p4631_p6)  }
 0x3fb   : > { %v3106_v31 = vpop.permute.xlu0 %3105  ;;  %3342 = vst.msk [vmem:[%s5935_s27 + $0x5c] sm:$0xf] %vm3318_vm2, %v3837_v41  ;;  %3411 = vst [vmem:[%s3362_s8 + $0x100] sm:$0xff] (%p4631_p6), %v3410_v59  }
 0x3fc   : > { %v3842_v11 = vpack.c.bf16 %v3186_v30, %v3186_v30  ;;  %v3179_v20 = vmul.f32 %v3106_v31, %v2987_v61 }
 0x3fd   : > { %v3151_v51 = vpop.permute.xlu1 %3150 }
 0x3fe   : > { %3347 = vst.msk [vmem:[%s5935_s27 + $0x70] sm:$0xf] %vm3318_vm2, %v3842_v11  ;;  %v3835_v9 = vpack.c.bf16 %v3179_v20, %v3179_v20  ;;  %v3188_v52 = vmul.f32 %v3151_v51, %v2996_v16  ;;  %v3426_v40 = vld [vmem:[%s5935_s27 + $0x60] sm:$0xff] (%p4631_p6)  }
 0x3ff   : > { %v3146_v34 = vpop.permute.xlu0 %3145  ;;  %3427 = vst [vmem:[%s3362_s8 + $0x180] sm:$0xff] (%p4631_p6), %v3426_v40  }
 0x400   : > { %3340 = vst.msk [vmem:[%s5935_s27 + $0x54] sm:$0xf] %vm3318_vm2, %v3835_v9  ;;  %v3844_v32 = vpack.c.bf16 %v3188_v52, %v3188_v52  ;;  %v3187_v23 = vmul.f32 %v3146_v34, %v2995_v7 }
 0x402   : > { %3349 = vst.msk [vmem:[%s5935_s27 + $0x78] sm:$0xf] %vm3318_vm2, %v3844_v32  ;;  %v3843_v24 = vpack.c.bf16 %v3187_v23, %v3187_v23  ;;  %3357 = sbr.rel (!%p4631_p6) target bundleno = 1041 (0x411), region = 89  ;;  %v3422_v36 = vld [vmem:[%s5935_s27 + $0x58] sm:$0xff] (%p4631_p6)  }
 0x403   : > { %v3156_v29 = vpop.permute.xlu0 %3155  ;;  %3423 = vst [vmem:[%s3362_s8 + $0x118] sm:$0xff] (%p4631_p6), %v3422_v36  }
 0x404   : > { %3348 = vst.msk [vmem:[%s5935_s27 + $0x74] sm:$0xf] %vm3318_vm2, %v3843_v24  ;;  %v3189_v19 = vmul.f32 %v3156_v29, %v2997_v46 }
 0x406   : > { %v3845_v57 = vpack.c.bf16 %v3189_v19, %v3189_v19 }
 0x407   : > { %v3418_v27 = vld [vmem:[%s5935_s27 + $0x50] sm:$0xff] (%p4631_p6)  }
 0x408   : > { %3350 = vst.msk [vmem:[%s5935_s27 + $0x7c] sm:$0xf] %vm3318_vm2, %v3845_v57  ;;  %3419 = vst [vmem:[%s3362_s8 + $0x110] sm:$0xff] (%p4631_p6), %v3418_v27  }
 0x40b   : > { %v3434_v26 = vld [vmem:[%s5935_s27 + $0x70] sm:$0xff]  }
 0x40c   : > { %3435 = vst [vmem:[%s3362_s8 + $0x190] sm:$0xff] %v3434_v26  }
 0x40f   : > { %v3438_v45 = vld [vmem:[%s5935_s27 + $0x78] sm:$0xff]  }
 0x410   : > { %3439 = vst [vmem:[%s3362_s8 + $0x198] sm:$0xff] %v3438_v45  }
 0x411 PF: > { %s14_s21 = sadd.s32 1, %s4553_s21   ;;  %s6210_s15 = smov %s4533_s16 }
 0x412   : > { %p11_p0 = scmp.ge.s32.totalorder %s14_s21, 10   ;;  %s6211_s16 = smov %s4639_s30 }
 0x413   : > { %s6212_s17 = smov %s4545_s19  ;;  %s6213_s18 = smov %s4549_s20 }
 0x414   : > { %s6214_s19 = smov %s6217_s22  ;;  %s6215_s20 = smov %s6221_s23 }
 0x415   :  { %13 = sbr.rel (!%p11_p0) target bundleno = 4 (0x4), region = 170 }

</bundles_post_ra>
